<compile_context>
chip_gen: v6e
topology: v6e:2x2x1
jax: 0.10.0
libtpu: 0.0.40
codegen_flags: <defaults>
</compile_context>

<pallas_src>
import functools
import math

import numpy as np

import jax
import jax.numpy as jnp
from jax.experimental import pallas as pl
from jax.experimental.pallas import tpu as pltpu

LEAKY_SLOPE = 0.2
BN_EPS = 1e-5

_VMEM = pl.BlockSpec(memory_space=pltpu.MemorySpace.VMEM)


# ----------------------------------------------------------------------------
# Host-side (one-time) packing of constant selection / weight matrices
# ----------------------------------------------------------------------------
def _build_layer(n_b, hi, wi, ci, ho, wo, co, k, stride, pad, w_np,
                 transposed, co_pad=None):
    """Pack one (transposed-)conv layer for the row-slab formulation.

    Returns:
      S : (k, n_b*ho, n_b*hi) f32 0/1 — per-kernel-row input-row selection
          (stride, padding and batch boundaries baked in).
      B : (k, wi*ci, wo*co_pad) f32 — folds the in-row taps + channel
          contraction of kernel-row i into one deep matmul.
    """
    co_p = co if co_pad is None else co_pad
    s_mat = np.zeros((k, n_b * ho, n_b * hi), np.float32)
    b_mat = np.zeros((k, wi * ci, wo * co_p), np.float32)

    def src(out_idx, tap, size):
        if transposed:
            num = out_idx + pad - tap
            if num % stride:
                return None
            s = num // stride
        else:
            s = out_idx * stride - pad + tap
        return s if 0 <= s < size else None

    for i in range(k):
        for n in range(n_b):
            for yo in range(ho):
                h_src = src(yo, i, hi)
                if h_src is not None:
                    s_mat[i, n * ho + yo, n * hi + h_src] = 1.0
        for j in range(k):
            if transposed:                      # weight (Cin, Cout, k, k)
                blk = w_np[:, :, i, j]
            else:                               # weight (Cout, Cin, k, k)
                blk = w_np[:, :, i, j].T
            for xo in range(wo):
                w_src = src(xo, j, wi)
                if w_src is None:
                    continue
                b_mat[i, w_src * ci:(w_src + 1) * ci,
                      xo * co_p:xo * co_p + co] += blk
    return s_mat, b_mat


def _fold_mats(w, c):
    """A: (w*c, c) 0/1 channel-sum matrix; T = A.T: (c, w*c) channel-tile."""
    a = np.zeros((w * c, c), np.float32)
    eye = np.eye(c, dtype=np.float32)
    for ww in range(w):
        a[ww * c:(ww + 1) * c, :] = eye
    return a, np.ascontiguousarray(a.T)


def _latent_maps(n_b, h2, w2, d):
    """Constant maps between the latent slab (N*H2, W2*D) and per-pixel rows."""
    m_lat, r_lat = n_b * h2 * w2, n_b * h2
    scat = np.zeros((w2, m_lat, r_lat), np.float32)
    for n in range(n_b):
        for h in range(h2):
            for w in range(w2):
                scat[w, (n * h2 + h) * w2 + w, n * h2 + h] = 1.0
    scat_t = np.ascontiguousarray(np.transpose(scat, (0, 2, 1)))
    pext = np.zeros((w2, w2 * d, d), np.float32)        # lane extraction
    for w in range(w2):
        pext[w, w * d:(w + 1) * d, :] = np.eye(d, dtype=np.float32)
    pplace = np.ascontiguousarray(np.transpose(pext, (0, 2, 1)))  # lane placement
    return scat, scat_t, pext, pplace


def _pad_cout(w0, c_in):
    """Smallest c >= c_in making the recon lane width (w0*c) a multiple of 128."""
    step = 128 // math.gcd(w0, 128)
    return ((c_in + step - 1) // step) * step


def prepare_plan(params, *, batch, in_channels, spatial):
    """Pre-pack everything the fused kernel needs (run ONCE, outside jit)."""
    n_b, h0, w0 = batch, spatial, spatial
    h1, w1 = h0 // 2, w0 // 2          # after enc0 (k4 s2 p1)
    h2, w2 = h1 // 2, w1 // 2          # latent spatial
    d = int(params['emb'].shape[1])
    cpad = _pad_cout(w0, in_channels)

    def wv(name):
        return np.asarray(params[name], np.float32)

    def row(v):
        return np.asarray(v, np.float32)[None, :]

    # NOTE: conv biases on layers followed by training-mode BatchNorm are
    # exactly cancelled by the batch-mean subtraction -> intentionally dropped.
    s0, b0 = _build_layer(n_b, h0, w0, in_channels, h1, w1, 32, 4, 2, 1,
                          wv('enc0_w'), transposed=False)
    s1, b1 = _build_layer(n_b, h1, w1, 32, h2, w2, 64, 4, 2, 1,
                          wv('enc1_w'), transposed=False)
    s2, b2 = _build_layer(n_b, h2, w2, 64, h2, w2, d, 3, 1, 1,
                          wv('enc2_w'), transposed=False)
    s3, b3 = _build_layer(n_b, h2, w2, d, h2, w2, 64, 3, 1, 1,
                          wv('dec0_w'), transposed=False)
    s4, b4 = _build_layer(n_b, h2, w2, 64, h1, w1, 32, 4, 2, 1,
                          wv('dec1_w'), transposed=True)
    s5, b5 = _build_layer(n_b, h1, w1, 32, h0, w0, in_channels, 4, 2, 1,
                          wv('dec2_w'), transposed=True, co_pad=cpad)

    a0, t0 = _fold_mats(w1, 32)
    a1, t1 = _fold_mats(w2, 64)
    a3, t3 = _fold_mats(w2, 64)
    a4, t4 = _fold_mats(w1, 32)
    scat, scat_t, pext, pplace = _latent_maps(n_b, h2, w2, d)

    # final-layer bias expanded to the padded per-pixel lane layout
    bias5 = np.zeros((1, w0 * cpad), np.float32)
    b_dec2 = np.asarray(params['dec2_b'], np.float32)
    for xo in range(w0):
        bias5[0, xo * cpad:xo * cpad + in_channels] = b_dec2

    emb = np.asarray(params['emb'], np.float32)
    plan = dict(
        s0=s0, b0=b0, a0=a0, t0=t0, g0=row(params['bn0_g']), be0=row(params['bn0_b']),
        s1=s1, b1=b1, a1=a1, t1=t1, g1=row(params['bn1_g']), be1=row(params['bn1_b']),
        s2=s2, b2=b2, g2=row(params['bn2_g']), be2=row(params['bn2_b']),
        scat=scat, scat_t=scat_t, pext=pext, pplace=pplace,
        emb=emb, esq=np.sum(emb * emb, axis=1, keepdims=True).T,
        s3=s3, b3=b3, a3=a3, t3=t3, g3=row(params['bn3_g']), be3=row(params['bn3_b']),
        s4=s4, b4=b4, a4=a4, t4=t4, g4=row(params['bn4_g']), be4=row(params['bn4_b']),
        s5=s5, b5=b5, bias5=bias5,
    )
    return {k: jnp.asarray(v) for k, v in plan.items()}


# ----------------------------------------------------------------------------
# The single fused Pallas kernel
# ----------------------------------------------------------------------------
def _fused_vqvae_kernel(
    x_ref,
    s0_ref, b0_ref, a0_ref, t0_ref, g0_ref, be0_ref,
    s1_ref, b1_ref, a1_ref, t1_ref, g1_ref, be1_ref,
    s2_ref, b2_ref, g2_ref, be2_ref,
    scat_ref, scat_t_ref, pext_ref, pplace_ref, emb_ref, esq_ref,
    s3_ref, b3_ref, a3_ref, t3_ref, g3_ref, be3_ref,
    s4_ref, b4_ref, a4_ref, t4_ref, g4_ref, be4_ref,
    s5_ref, b5_ref, bias5_ref,
    recon_ref, code_ref, loss_ref,
    *, commitment_cost, mxu_bf16,
):
    mx = (lambda v: v.astype(jnp.bfloat16)) if mxu_bf16 else (lambda v: v)

    def conv_slab(x, s_ref, b_ref):
        """out = sum_i (S_i @ X) @ B_i — k (<=4) deep MXU matmuls, f32 accumulate."""
        k = s_ref.shape[0]
        xm = mx(x)
        out = None
        for i in range(k):   # short, small live set -> static unroll is fine
            tap = jnp.dot(mx(s_ref[i]), xm, preferred_element_type=jnp.float32)
            contrib = jnp.dot(mx(tap), mx(b_ref[i]),
                              preferred_element_type=jnp.float32)
            out = contrib if out is None else out + contrib
        return out

    def bn_lrelu_slab(y, a_ref, t_ref, gamma, beta):
        """Training-mode BatchNorm + LeakyReLU in slab layout; one FMA pass."""
        a = a_ref[...]
        inv_n = 1.0 / (y.shape[0] * (a.shape[0] // a.shape[1]))
        s1 = jnp.sum(y, axis=0, keepdims=True)
        s2 = jnp.sum(y * y, axis=0, keepdims=True)
        mu = jnp.dot(s1, a, preferred_element_type=jnp.float32) * inv_n    # (1,C)
        ex2 = jnp.dot(s2, a, preferred_element_type=jnp.float32) * inv_n
        scale_c = gamma * jax.lax.rsqrt(ex2 - mu * mu + BN_EPS)
        shift_c = beta - mu * scale_c
        t = t_ref[...]
        scale = jnp.dot(scale_c, t, preferred_element_type=jnp.float32)    # (1,W*C)
        shift = jnp.dot(shift_c, t, preferred_element_type=jnp.float32)
        yn = y * scale + shift
        return jnp.where(yn >= 0, yn, LEAKY_SLOPE * yn)

    def bn_lrelu_pixel(y, gamma, beta):
        inv_n = 1.0 / y.shape[0]
        mu = jnp.sum(y, axis=0, keepdims=True) * inv_n
        ex2 = jnp.sum(y * y, axis=0, keepdims=True) * inv_n
        scale = gamma * jax.lax.rsqrt(ex2 - mu * mu + BN_EPS)
        shift = beta - mu * scale
        yn = y * scale + shift
        return jnp.where(yn >= 0, yn, LEAKY_SLOPE * yn)

    # ------------------------------ encoder ------------------------------
    x0 = x_ref[...]
    h0 = bn_lrelu_slab(conv_slab(x0, s0_ref, b0_ref), a0_ref, t0_ref,
                       g0_ref[...], be0_ref[...])
    h1 = bn_lrelu_slab(conv_slab(h0, s1_ref, b1_ref), a1_ref, t1_ref,
                       g1_ref[...], be1_ref[...])
    z_slab = conv_slab(h1, s2_ref, b2_ref)                  # (N*H2, W2*D)

    # slab -> per-pixel rows: tiny constant extract/scatter matmuls (no reshape)
    w2 = scat_ref.shape[0]
    z_px = None
    for w in range(w2):
        col = jnp.dot(z_slab, pext_ref[w], preferred_element_type=jnp.float32)
        contrib = jnp.dot(scat_ref[w], col, preferred_element_type=jnp.float32)
        z_px = contrib if z_px is None else z_px + contrib
    z_px = bn_lrelu_pixel(z_px, g2_ref[...], be2_ref[...])  # (M_lat, D)

    # --------------------------- vector quantizer ---------------------------
    e = emb_ref[...]                                        # (K, D)
    num_embeddings = e.shape[0]
    x_sq = jnp.sum(z_px * z_px, axis=1, keepdims=True)      # (M,1)
    xe = jax.lax.dot_general(z_px, e, (((1,), (1,)), ((), ())),
                             preferred_element_type=jnp.float32)   # (M, K)
    dist = x_sq + esq_ref[...] - 2.0 * xe
    min_d = jnp.min(dist, axis=1, keepdims=True)
    iota_k = jax.lax.broadcasted_iota(jnp.int32, dist.shape, 1)
    cand = jnp.where(dist == min_d, iota_k, num_embeddings)
    code = jnp.min(cand, axis=1, keepdims=True)             # first argmin (torch)
    onehot = (iota_k == code).astype(jnp.float32)
    q = jnp.dot(onehot, e, preferred_element_type=jnp.float32)
    diff = q - z_px
    # Reference loss has ONLY the commitment term: commitment_cost * mse(q.detach(), z)
    loss = commitment_cost * jnp.mean(diff * diff)
    zq_px = q   # straight-through forward value (== q)
    # TODO(synk): straight-through / codebook gradients and the EMA (decay) update
    # need a custom_vjp + state update; this kernel implements the forward only.

    code_ref[...] = jnp.broadcast_to(code, code_ref.shape).astype(jnp.int32)
    loss_ref[...] = loss * jnp.ones(loss_ref.shape, jnp.float32)

    # per-pixel rows -> slab (inverse scatter + lane placement matmuls)
    zq_slab = None
    for w in range(w2):
        t = jnp.dot(scat_t_ref[w], zq_px, preferred_element_type=jnp.float32)
        contrib = jnp.dot(t, pplace_ref[w], preferred_element_type=jnp.float32)
        zq_slab = contrib if zq_slab is None else zq_slab + contrib

    # ------------------------------ decoder ------------------------------
    d0 = bn_lrelu_slab(conv_slab(zq_slab, s3_ref, b3_ref), a3_ref, t3_ref,
                       g3_ref[...], be3_ref[...])
    d1 = bn_lrelu_slab(conv_slab(d0, s4_ref, b4_ref), a4_ref, t4_ref,
                       g4_ref[...], be4_ref[...])
    y = conv_slab(d1, s5_ref, b5_ref) + bias5_ref[...]      # (N*H0, W0*Cpad)
    # TODO(synk): configuration.ACTIVATION_FUNCTIONS is not provided; assuming sigmoid.
    recon_ref[...] = 1.0 / (1.0 + jnp.exp(-y))


# ----------------------------------------------------------------------------
# Public wrapper (NCHW in / NCHW out)
# ----------------------------------------------------------------------------
def _vmem_limit_bytes():
    try:
        cap = int(pltpu.get_tpu_info().vmem_capacity_bytes)
    except Exception:  # conservative (v7x-sized) fallback
        cap = 64 * 1024 * 1024
    # ~75% of physical VMEM, capped at 100 MiB (v5e/v6e), floor 32 MiB.
    return max(32 * 1024 * 1024, min(cap * 3 // 4, 100 * 1024 * 1024))


def vqvae_forward(x_nchw, plan, commitment_cost=0.25, mxu_bf16=False):
    n_b, c_in, h, w = x_nchw.shape
    x_slab = jnp.transpose(x_nchw, (0, 2, 3, 1)).reshape(n_b * h, w * c_in)

    cpad = plan['bias5'].shape[1] // w
    m_out = plan['s5'].shape[1]          # N*H
    m_lat = plan['scat'].shape[1]        # N*(H//4)*(W//4)

    order = ('s0', 'b0', 'a0', 't0', 'g0', 'be0',
             's1', 'b1', 'a1', 't1', 'g1', 'be1',
             's2', 'b2', 'g2', 'be2',
             'scat', 'scat_t', 'pext', 'pplace', 'emb', 'esq',
             's3', 'b3', 'a3', 't3', 'g3', 'be3',
             's4', 'b4', 'a4', 't4', 'g4', 'be4',
             's5', 'b5', 'bias5')
    operands = (x_slab,) + tuple(plan[k] for k in order)

    kern = functools.partial(_fused_vqvae_kernel,
                             commitment_cost=commitment_cost, mxu_bf16=mxu_bf16)
    recon_slab, code, loss = pl.pallas_call(
        kern,
        out_shape=(jax.ShapeDtypeStruct((m_out, w * cpad), jnp.float32),
                   jax.ShapeDtypeStruct((m_lat, 128), jnp.int32),
                   jax.ShapeDtypeStruct((1, 128), jnp.float32)),
        in_specs=[_VMEM] * len(operands),
        out_specs=(_VMEM, _VMEM, _VMEM),
        compiler_params=pltpu.CompilerParams(
            vmem_limit_bytes=_vmem_limit_bytes()),
    )(*operands)

    x_recon = recon_slab.reshape(n_b, h, w, cpad)[..., :c_in].transpose(0, 3, 1, 2)
    indices = code[:, 0].reshape(n_b, h // 4, w // 4)
    return x_recon, loss[0, 0], indices


# ----------------------------------------------------------------------------
# Parameter init (PyTorch layouts, matching the reference module)
# ----------------------------------------------------------------------------
def init_params(key, in_channels, embedding_dim, num_embeddings):
    ks = jax.random.split(key, 13)

    def u(k, shape, scale=0.1):
        return jax.random.uniform(k, shape, jnp.float32, -scale, scale)

    return {
        # encoder (conv biases before BN are kept for parity but are no-ops
        # under training-mode BN and are not packed into the kernel plan)
        'enc0_w': u(ks[0], (32, in_channels, 4, 4)), 'enc0_b': u(ks[1], (32,)),
        'bn0_g': jnp.ones((32,), jnp.float32), 'bn0_b': jnp.zeros((32,), jnp.float32),
        'enc1_w': u(ks[2], (64, 32, 4, 4)), 'enc1_b': u(ks[3], (64,)),
        'bn1_g': jnp.ones((64,), jnp.float32), 'bn1_b': jnp.zeros((64,), jnp.float32),
        'enc2_w': u(ks[4], (embedding_dim, 64, 3, 3)),
        'enc2_b': u(ks[5], (embedding_dim,)),
        'bn2_g': jnp.ones((embedding_dim,), jnp.float32),
        'bn2_b': jnp.zeros((embedding_dim,), jnp.float32),
        # codebook: uniform(-1/K, 1/K) like the PyTorch init
        'emb': jax.random.uniform(ks[6], (num_embeddings, embedding_dim),
                                  jnp.float32, -1.0 / num_embeddings,
                                  1.0 / num_embeddings),
        # decoder
        'dec0_w': u(ks[7], (64, embedding_dim, 3, 3)), 'dec0_b': u(ks[8], (64,)),
        'bn3_g': jnp.ones((64,), jnp.float32), 'bn3_b': jnp.zeros((64,), jnp.float32),
        'dec1_w': u(ks[9], (64, 32, 4, 4)), 'dec1_b': u(ks[10], (32,)),
        'bn4_g': jnp.ones((32,), jnp.float32), 'bn4_b': jnp.zeros((32,), jnp.float32),
        'dec2_w': u(ks[11], (32, in_channels, 4, 4)),
        'dec2_b': u(ks[12], (in_channels,)),
    }


if __name__ == "__main__":
    key = jax.random.PRNGKey(0)
    k_x, k_p = jax.random.split(key)

    batch, in_channels, spatial = 2, 4, 16
    embedding_dim, num_embeddings, commitment_cost = 16, 32, 0.25

    x = jax.random.normal(k_x, (batch, in_channels, spatial, spatial), jnp.float32)
    params = init_params(k_p, in_channels, embedding_dim, num_embeddings)

    # all constant-matrix / weight packing happens ONCE, outside the hot path
    plan = prepare_plan(params, batch=batch, in_channels=in_channels,
                        spatial=spatial)

    fwd = jax.jit(functools.partial(vqvae_forward,
                                    commitment_cost=commitment_cost,
                                    mxu_bf16=False))
    x_recon, vq_loss, indices = fwd(x, plan)
    jax.block_until_ready((x_recon, vq_loss, indices))

    assert x_recon.shape == (batch, in_channels, spatial, spatial)
    assert indices.shape == (batch, spatial // 4, spatial // 4)
    assert vq_loss.shape == ()
    print("KERNEL_OK")
</pallas_src>

<mosaic_0001>
module attributes {stable_mosaic.version = 11 : i64} {
  func.func @_fused_vqvae_kernel(%arg0: memref<32x64xf32, #tpu.memory_space<vmem>>, %arg1: memref<4x16x32xf32, #tpu.memory_space<vmem>>, %arg2: memref<4x64x256xf32, #tpu.memory_space<vmem>>, %arg3: memref<256x32xf32, #tpu.memory_space<vmem>>, %arg4: memref<32x256xf32, #tpu.memory_space<vmem>>, %arg5: memref<1x32xf32, #tpu.memory_space<vmem>>, %arg6: memref<1x32xf32, #tpu.memory_space<vmem>>, %arg7: memref<4x8x16xf32, #tpu.memory_space<vmem>>, %arg8: memref<4x256x256xf32, #tpu.memory_space<vmem>>, %arg9: memref<256x64xf32, #tpu.memory_space<vmem>>, %arg10: memref<64x256xf32, #tpu.memory_space<vmem>>, %arg11: memref<1x64xf32, #tpu.memory_space<vmem>>, %arg12: memref<1x64xf32, #tpu.memory_space<vmem>>, %arg13: memref<3x8x8xf32, #tpu.memory_space<vmem>>, %arg14: memref<3x256x64xf32, #tpu.memory_space<vmem>>, %arg15: memref<1x16xf32, #tpu.memory_space<vmem>>, %arg16: memref<1x16xf32, #tpu.memory_space<vmem>>, %arg17: memref<4x32x8xf32, #tpu.memory_space<vmem>>, %arg18: memref<4x8x32xf32, #tpu.memory_space<vmem>>, %arg19: memref<4x64x16xf32, #tpu.memory_space<vmem>>, %arg20: memref<4x16x64xf32, #tpu.memory_space<vmem>>, %arg21: memref<32x16xf32, #tpu.memory_space<vmem>>, %arg22: memref<1x32xf32, #tpu.memory_space<vmem>>, %arg23: memref<3x8x8xf32, #tpu.memory_space<vmem>>, %arg24: memref<3x64x256xf32, #tpu.memory_space<vmem>>, %arg25: memref<256x64xf32, #tpu.memory_space<vmem>>, %arg26: memref<64x256xf32, #tpu.memory_space<vmem>>, %arg27: memref<1x64xf32, #tpu.memory_space<vmem>>, %arg28: memref<1x64xf32, #tpu.memory_space<vmem>>, %arg29: memref<4x16x8xf32, #tpu.memory_space<vmem>>, %arg30: memref<4x256x256xf32, #tpu.memory_space<vmem>>, %arg31: memref<256x32xf32, #tpu.memory_space<vmem>>, %arg32: memref<32x256xf32, #tpu.memory_space<vmem>>, %arg33: memref<1x32xf32, #tpu.memory_space<vmem>>, %arg34: memref<1x32xf32, #tpu.memory_space<vmem>>, %arg35: memref<4x32x16xf32, #tpu.memory_space<vmem>>, %arg36: memref<4x256x128xf32, #tpu.memory_space<vmem>>, %arg37: memref<1x128xf32, #tpu.memory_space<vmem>>, %arg38: memref<32x128xf32, #tpu.memory_space<vmem>>, %arg39: memref<32x128xi32, #tpu.memory_space<vmem>>, %arg40: memref<1x128xf32, #tpu.memory_space<vmem>>) attributes {dimension_semantics = [], scalar_prefetch = 0 : i64, scratch_operands = 0 : i64, tpu.core_type = #tpu.core_type<tc>} {
    %c0 = arith.constant 0 : index
    %c0_0 = arith.constant 0 : index
    %0 = vector.load %arg0[%c0, %c0_0] : memref<32x64xf32, #tpu.memory_space<vmem>>, vector<32x64xf32>
    %c0_1 = arith.constant 0 : index
    %c0_2 = arith.constant 0 : index
    %c0_3 = arith.constant 0 : index
    %1 = vector.load %arg1[%c0_1, %c0_2, %c0_3] : memref<4x16x32xf32, #tpu.memory_space<vmem>>, vector<1x16x32xf32>
    %2 = vector.shape_cast %1 : vector<1x16x32xf32> to vector<16x32xf32>
    %cst = arith.constant dense<0.000000e+00> : vector<16x64xf32>
    %3 = tpu.matmul %2, %0, %cst {dimension_numbers = #tpu.dot_dimension_numbers<[1], [0], [0], [1], [0, 0, 1, 1], [], []>} : vector<16x32xf32>, vector<32x64xf32>, vector<16x64xf32> -> vector<16x64xf32>
    %c0_4 = arith.constant 0 : index
    %c0_5 = arith.constant 0 : index
    %c0_6 = arith.constant 0 : index
    %4 = vector.load %arg2[%c0_4, %c0_5, %c0_6] : memref<4x64x256xf32, #tpu.memory_space<vmem>>, vector<1x64x256xf32>
    %5 = vector.shape_cast %4 : vector<1x64x256xf32> to vector<64x256xf32>
    %cst_7 = arith.constant dense<0.000000e+00> : vector<16x256xf32>
    %6 = tpu.matmul %3, %5, %cst_7 {dimension_numbers = #tpu.dot_dimension_numbers<[1], [0], [0], [1], [0, 0, 1, 1], [], []>} : vector<16x64xf32>, vector<64x256xf32>, vector<16x256xf32> -> vector<16x256xf32>
    %c1 = arith.constant 1 : index
    %c0_8 = arith.constant 0 : index
    %c0_9 = arith.constant 0 : index
    %7 = vector.load %arg1[%c1, %c0_8, %c0_9] : memref<4x16x32xf32, #tpu.memory_space<vmem>>, vector<1x16x32xf32>
    %8 = vector.shape_cast %7 : vector<1x16x32xf32> to vector<16x32xf32>
    %cst_10 = arith.constant dense<0.000000e+00> : vector<16x64xf32>
    %9 = tpu.matmul %8, %0, %cst_10 {dimension_numbers = #tpu.dot_dimension_numbers<[1], [0], [0], [1], [0, 0, 1, 1], [], []>} : vector<16x32xf32>, vector<32x64xf32>, vector<16x64xf32> -> vector<16x64xf32>
    %c1_11 = arith.constant 1 : index
    %c0_12 = arith.constant 0 : index
    %c0_13 = arith.constant 0 : index
    %10 = vector.load %arg2[%c1_11, %c0_12, %c0_13] : memref<4x64x256xf32, #tpu.memory_space<vmem>>, vector<1x64x256xf32>
    %11 = vector.shape_cast %10 : vector<1x64x256xf32> to vector<64x256xf32>
    %cst_14 = arith.constant dense<0.000000e+00> : vector<16x256xf32>
    %12 = tpu.matmul %9, %11, %cst_14 {dimension_numbers = #tpu.dot_dimension_numbers<[1], [0], [0], [1], [0, 0, 1, 1], [], []>} : vector<16x64xf32>, vector<64x256xf32>, vector<16x256xf32> -> vector<16x256xf32>
    %13 = arith.addf %6, %12 : vector<16x256xf32>
    %c2 = arith.constant 2 : index
    %c0_15 = arith.constant 0 : index
    %c0_16 = arith.constant 0 : index
    %14 = vector.load %arg1[%c2, %c0_15, %c0_16] : memref<4x16x32xf32, #tpu.memory_space<vmem>>, vector<1x16x32xf32>
    %15 = vector.shape_cast %14 : vector<1x16x32xf32> to vector<16x32xf32>
    %cst_17 = arith.constant dense<0.000000e+00> : vector<16x64xf32>
    %16 = tpu.matmul %15, %0, %cst_17 {dimension_numbers = #tpu.dot_dimension_numbers<[1], [0], [0], [1], [0, 0, 1, 1], [], []>} : vector<16x32xf32>, vector<32x64xf32>, vector<16x64xf32> -> vector<16x64xf32>
    %c2_18 = arith.constant 2 : index
    %c0_19 = arith.constant 0 : index
    %c0_20 = arith.constant 0 : index
    %17 = vector.load %arg2[%c2_18, %c0_19, %c0_20] : memref<4x64x256xf32, #tpu.memory_space<vmem>>, vector<1x64x256xf32>
    %18 = vector.shape_cast %17 : vector<1x64x256xf32> to vector<64x256xf32>
    %cst_21 = arith.constant dense<0.000000e+00> : vector<16x256xf32>
    %19 = tpu.matmul %16, %18, %cst_21 {dimension_numbers = #tpu.dot_dimension_numbers<[1], [0], [0], [1], [0, 0, 1, 1], [], []>} : vector<16x64xf32>, vector<64x256xf32>, vector<16x256xf32> -> vector<16x256xf32>
    %20 = arith.addf %13, %19 : vector<16x256xf32>
    %c3 = arith.constant 3 : index
    %c0_22 = arith.constant 0 : index
    %c0_23 = arith.constant 0 : index
    %21 = vector.load %arg1[%c3, %c0_22, %c0_23] : memref<4x16x32xf32, #tpu.memory_space<vmem>>, vector<1x16x32xf32>
    %22 = vector.shape_cast %21 : vector<1x16x32xf32> to vector<16x32xf32>
    %cst_24 = arith.constant dense<0.000000e+00> : vector<16x64xf32>
    %23 = tpu.matmul %22, %0, %cst_24 {dimension_numbers = #tpu.dot_dimension_numbers<[1], [0], [0], [1], [0, 0, 1, 1], [], []>} : vector<16x32xf32>, vector<32x64xf32>, vector<16x64xf32> -> vector<16x64xf32>
    %c3_25 = arith.constant 3 : index
    %c0_26 = arith.constant 0 : index
    %c0_27 = arith.constant 0 : index
    %24 = vector.load %arg2[%c3_25, %c0_26, %c0_27] : memref<4x64x256xf32, #tpu.memory_space<vmem>>, vector<1x64x256xf32>
    %25 = vector.shape_cast %24 : vector<1x64x256xf32> to vector<64x256xf32>
    %cst_28 = arith.constant dense<0.000000e+00> : vector<16x256xf32>
    %26 = tpu.matmul %23, %25, %cst_28 {dimension_numbers = #tpu.dot_dimension_numbers<[1], [0], [0], [1], [0, 0, 1, 1], [], []>} : vector<16x64xf32>, vector<64x256xf32>, vector<16x256xf32> -> vector<16x256xf32>
    %27 = arith.addf %20, %26 : vector<16x256xf32>
    %c0_29 = arith.constant 0 : index
    %c0_30 = arith.constant 0 : index
    %28 = vector.load %arg5[%c0_29, %c0_30] : memref<1x32xf32, #tpu.memory_space<vmem>>, vector<1x32xf32>
    %c0_31 = arith.constant 0 : index
    %c0_32 = arith.constant 0 : index
    %29 = vector.load %arg6[%c0_31, %c0_32] : memref<1x32xf32, #tpu.memory_space<vmem>>, vector<1x32xf32>
    %c0_33 = arith.constant 0 : index
    %c0_34 = arith.constant 0 : index
    %30 = vector.load %arg3[%c0_33, %c0_34] : memref<256x32xf32, #tpu.memory_space<vmem>>, vector<256x32xf32>
    %cst_35 = arith.constant dense<0.000000e+00> : vector<256xf32>
    %31 = vector.multi_reduction <add>, %27, %cst_35 [0] : vector<16x256xf32> to vector<256xf32>
    %32 = vector.shape_cast %31 : vector<256xf32> to vector<1x256xf32>
    %33 = arith.mulf %27, %27 : vector<16x256xf32>
    %cst_36 = arith.constant dense<0.000000e+00> : vector<256xf32>
    %34 = vector.multi_reduction <add>, %33, %cst_36 [0] : vector<16x256xf32> to vector<256xf32>
    %35 = vector.shape_cast %34 : vector<256xf32> to vector<1x256xf32>
    %cst_37 = arith.constant dense<0.000000e+00> : vector<1x32xf32>
    %36 = tpu.matmul %32, %30, %cst_37 {dimension_numbers = #tpu.dot_dimension_numbers<[1], [0], [0], [1], [0, 0, 1, 1], [], []>} : vector<1x256xf32>, vector<256x32xf32>, vector<1x32xf32> -> vector<1x32xf32>
    %cst_38 = arith.constant 7.812500e-03 : f32
    %37 = vector.broadcast %cst_38 : f32 to vector<1x32xf32>
    %38 = arith.mulf %36, %37 : vector<1x32xf32>
    %cst_39 = arith.constant dense<0.000000e+00> : vector<1x32xf32>
    %39 = tpu.matmul %35, %30, %cst_39 {dimension_numbers = #tpu.dot_dimension_numbers<[1], [0], [0], [1], [0, 0, 1, 1], [], []>} : vector<1x256xf32>, vector<256x32xf32>, vector<1x32xf32> -> vector<1x32xf32>
    %cst_40 = arith.constant 7.812500e-03 : f32
    %40 = vector.broadcast %cst_40 : f32 to vector<1x32xf32>
    %41 = arith.mulf %39, %40 : vector<1x32xf32>
    %42 = arith.mulf %38, %38 : vector<1x32xf32>
    %43 = arith.subf %41, %42 : vector<1x32xf32>
    %cst_41 = arith.constant 9.99999974E-6 : f32
    %44 = vector.broadcast %cst_41 : f32 to vector<1x32xf32>
    %45 = arith.addf %43, %44 : vector<1x32xf32>
    %46 = math.rsqrt %45 : vector<1x32xf32>
    %47 = arith.mulf %28, %46 : vector<1x32xf32>
    %48 = arith.mulf %38, %47 : vector<1x32xf32>
    %49 = arith.subf %29, %48 : vector<1x32xf32>
    %c0_42 = arith.constant 0 : index
    %c0_43 = arith.constant 0 : index
    %50 = vector.load %arg4[%c0_42, %c0_43] : memref<32x256xf32, #tpu.memory_space<vmem>>, vector<32x256xf32>
    %cst_44 = arith.constant dense<0.000000e+00> : vector<1x256xf32>
    %51 = tpu.matmul %47, %50, %cst_44 {dimension_numbers = #tpu.dot_dimension_numbers<[1], [0], [0], [1], [0, 0, 1, 1], [], []>} : vector<1x32xf32>, vector<32x256xf32>, vector<1x256xf32> -> vector<1x256xf32>
    %cst_45 = arith.constant dense<0.000000e+00> : vector<1x256xf32>
    %52 = tpu.matmul %49, %50, %cst_45 {dimension_numbers = #tpu.dot_dimension_numbers<[1], [0], [0], [1], [0, 0, 1, 1], [], []>} : vector<1x32xf32>, vector<32x256xf32>, vector<1x256xf32> -> vector<1x256xf32>
    %53 = vector.broadcast %51 : vector<1x256xf32> to vector<16x256xf32>
    %54 = arith.mulf %27, %53 : vector<16x256xf32>
    %55 = vector.broadcast %52 : vector<1x256xf32> to vector<16x256xf32>
    %56 = arith.addf %54, %55 : vector<16x256xf32>
    %cst_46 = arith.constant 0.000000e+00 : f32
    %57 = vector.broadcast %cst_46 : f32 to vector<16x256xf32>
    %58 = arith.cmpf oge, %56, %57 : vector<16x256xf32>
    %cst_47 = arith.constant 2.000000e-01 : f32
    %59 = vector.broadcast %cst_47 : f32 to vector<16x256xf32>
    %60 = arith.mulf %59, %56 : vector<16x256xf32>
    %61 = arith.select %58, %56, %60 : vector<16x256xi1>, vector<16x256xf32>
    %c0_48 = arith.constant 0 : index
    %c0_49 = arith.constant 0 : index
    %c0_50 = arith.constant 0 : index
    %62 = vector.load %arg7[%c0_48, %c0_49, %c0_50] : memref<4x8x16xf32, #tpu.memory_space<vmem>>, vector<1x8x16xf32>
    %63 = vector.shape_cast %62 : vector<1x8x16xf32> to vector<8x16xf32>
    %cst_51 = arith.constant dense<0.000000e+00> : vector<8x256xf32>
    %64 = tpu.matmul %63, %61, %cst_51 {dimension_numbers = #tpu.dot_dimension_numbers<[1], [0], [0], [1], [0, 0, 1, 1], [], []>} : vector<8x16xf32>, vector<16x256xf32>, vector<8x256xf32> -> vector<8x256xf32>
    %c0_52 = arith.constant 0 : index
    %c0_53 = arith.constant 0 : index
    %c0_54 = arith.constant 0 : index
    %65 = vector.load %arg8[%c0_52, %c0_53, %c0_54] : memref<4x256x256xf32, #tpu.memory_space<vmem>>, vector<1x256x256xf32>
    %66 = vector.shape_cast %65 : vector<1x256x256xf32> to vector<256x256xf32>
    %cst_55 = arith.constant dense<0.000000e+00> : vector<8x256xf32>
    %67 = tpu.matmul %64, %66, %cst_55 {dimension_numbers = #tpu.dot_dimension_numbers<[1], [0], [0], [1], [0, 0, 1, 1], [], []>} : vector<8x256xf32>, vector<256x256xf32>, vector<8x256xf32> -> vector<8x256xf32>
    %c1_56 = arith.constant 1 : index
    %c0_57 = arith.constant 0 : index
    %c0_58 = arith.constant 0 : index
    %68 = vector.load %arg7[%c1_56, %c0_57, %c0_58] : memref<4x8x16xf32, #tpu.memory_space<vmem>>, vector<1x8x16xf32>
    %69 = vector.shape_cast %68 : vector<1x8x16xf32> to vector<8x16xf32>
    %cst_59 = arith.constant dense<0.000000e+00> : vector<8x256xf32>
    %70 = tpu.matmul %69, %61, %cst_59 {dimension_numbers = #tpu.dot_dimension_numbers<[1], [0], [0], [1], [0, 0, 1, 1], [], []>} : vector<8x16xf32>, vector<16x256xf32>, vector<8x256xf32> -> vector<8x256xf32>
    %c1_60 = arith.constant 1 : index
    %c0_61 = arith.constant 0 : index
    %c0_62 = arith.constant 0 : index
    %71 = vector.load %arg8[%c1_60, %c0_61, %c0_62] : memref<4x256x256xf32, #tpu.memory_space<vmem>>, vector<1x256x256xf32>
    %72 = vector.shape_cast %71 : vector<1x256x256xf32> to vector<256x256xf32>
    %cst_63 = arith.constant dense<0.000000e+00> : vector<8x256xf32>
    %73 = tpu.matmul %70, %72, %cst_63 {dimension_numbers = #tpu.dot_dimension_numbers<[1], [0], [0], [1], [0, 0, 1, 1], [], []>} : vector<8x256xf32>, vector<256x256xf32>, vector<8x256xf32> -> vector<8x256xf32>
    %74 = arith.addf %67, %73 : vector<8x256xf32>
    %c2_64 = arith.constant 2 : index
    %c0_65 = arith.constant 0 : index
    %c0_66 = arith.constant 0 : index
    %75 = vector.load %arg7[%c2_64, %c0_65, %c0_66] : memref<4x8x16xf32, #tpu.memory_space<vmem>>, vector<1x8x16xf32>
    %76 = vector.shape_cast %75 : vector<1x8x16xf32> to vector<8x16xf32>
    %cst_67 = arith.constant dense<0.000000e+00> : vector<8x256xf32>
    %77 = tpu.matmul %76, %61, %cst_67 {dimension_numbers = #tpu.dot_dimension_numbers<[1], [0], [0], [1], [0, 0, 1, 1], [], []>} : vector<8x16xf32>, vector<16x256xf32>, vector<8x256xf32> -> vector<8x256xf32>
    %c2_68 = arith.constant 2 : index
    %c0_69 = arith.constant 0 : index
    %c0_70 = arith.constant 0 : index
    %78 = vector.load %arg8[%c2_68, %c0_69, %c0_70] : memref<4x256x256xf32, #tpu.memory_space<vmem>>, vector<1x256x256xf32>
    %79 = vector.shape_cast %78 : vector<1x256x256xf32> to vector<256x256xf32>
    %cst_71 = arith.constant dense<0.000000e+00> : vector<8x256xf32>
    %80 = tpu.matmul %77, %79, %cst_71 {dimension_numbers = #tpu.dot_dimension_numbers<[1], [0], [0], [1], [0, 0, 1, 1], [], []>} : vector<8x256xf32>, vector<256x256xf32>, vector<8x256xf32> -> vector<8x256xf32>
    %81 = arith.addf %74, %80 : vector<8x256xf32>
    %c3_72 = arith.constant 3 : index
    %c0_73 = arith.constant 0 : index
    %c0_74 = arith.constant 0 : index
    %82 = vector.load %arg7[%c3_72, %c0_73, %c0_74] : memref<4x8x16xf32, #tpu.memory_space<vmem>>, vector<1x8x16xf32>
    %83 = vector.shape_cast %82 : vector<1x8x16xf32> to vector<8x16xf32>
    %cst_75 = arith.constant dense<0.000000e+00> : vector<8x256xf32>
    %84 = tpu.matmul %83, %61, %cst_75 {dimension_numbers = #tpu.dot_dimension_numbers<[1], [0], [0], [1], [0, 0, 1, 1], [], []>} : vector<8x16xf32>, vector<16x256xf32>, vector<8x256xf32> -> vector<8x256xf32>
    %c3_76 = arith.constant 3 : index
    %c0_77 = arith.constant 0 : index
    %c0_78 = arith.constant 0 : index
    %85 = vector.load %arg8[%c3_76, %c0_77, %c0_78] : memref<4x256x256xf32, #tpu.memory_space<vmem>>, vector<1x256x256xf32>
    %86 = vector.shape_cast %85 : vector<1x256x256xf32> to vector<256x256xf32>
    %cst_79 = arith.constant dense<0.000000e+00> : vector<8x256xf32>
    %87 = tpu.matmul %84, %86, %cst_79 {dimension_numbers = #tpu.dot_dimension_numbers<[1], [0], [0], [1], [0, 0, 1, 1], [], []>} : vector<8x256xf32>, vector<256x256xf32>, vector<8x256xf32> -> vector<8x256xf32>
    %88 = arith.addf %81, %87 : vector<8x256xf32>
    %c0_80 = arith.constant 0 : index
    %c0_81 = arith.constant 0 : index
    %89 = vector.load %arg11[%c0_80, %c0_81] : memref<1x64xf32, #tpu.memory_space<vmem>>, vector<1x64xf32>
    %c0_82 = arith.constant 0 : index
    %c0_83 = arith.constant 0 : index
    %90 = vector.load %arg12[%c0_82, %c0_83] : memref<1x64xf32, #tpu.memory_space<vmem>>, vector<1x64xf32>
    %c0_84 = arith.constant 0 : index
    %c0_85 = arith.constant 0 : index
    %91 = vector.load %arg9[%c0_84, %c0_85] : memref<256x64xf32, #tpu.memory_space<vmem>>, vector<256x64xf32>
    %cst_86 = arith.constant dense<0.000000e+00> : vector<256xf32>
    %92 = vector.multi_reduction <add>, %88, %cst_86 [0] : vector<8x256xf32> to vector<256xf32>
    %93 = vector.shape_cast %92 : vector<256xf32> to vector<1x256xf32>
    %94 = arith.mulf %88, %88 : vector<8x256xf32>
    %cst_87 = arith.constant dense<0.000000e+00> : vector<256xf32>
    %95 = vector.multi_reduction <add>, %94, %cst_87 [0] : vector<8x256xf32> to vector<256xf32>
    %96 = vector.shape_cast %95 : vector<256xf32> to vector<1x256xf32>
    %cst_88 = arith.constant dense<0.000000e+00> : vector<1x64xf32>
    %97 = tpu.matmul %93, %91, %cst_88 {dimension_numbers = #tpu.dot_dimension_numbers<[1], [0], [0], [1], [0, 0, 1, 1], [], []>} : vector<1x256xf32>, vector<256x64xf32>, vector<1x64xf32> -> vector<1x64xf32>
    %cst_89 = arith.constant 3.125000e-02 : f32
    %98 = vector.broadcast %cst_89 : f32 to vector<1x64xf32>
    %99 = arith.mulf %97, %98 : vector<1x64xf32>
    %cst_90 = arith.constant dense<0.000000e+00> : vector<1x64xf32>
    %100 = tpu.matmul %96, %91, %cst_90 {dimension_numbers = #tpu.dot_dimension_numbers<[1], [0], [0], [1], [0, 0, 1, 1], [], []>} : vector<1x256xf32>, vector<256x64xf32>, vector<1x64xf32> -> vector<1x64xf32>
    %cst_91 = arith.constant 3.125000e-02 : f32
    %101 = vector.broadcast %cst_91 : f32 to vector<1x64xf32>
    %102 = arith.mulf %100, %101 : vector<1x64xf32>
    %103 = arith.mulf %99, %99 : vector<1x64xf32>
    %104 = arith.subf %102, %103 : vector<1x64xf32>
    %cst_92 = arith.constant 9.99999974E-6 : f32
    %105 = vector.broadcast %cst_92 : f32 to vector<1x64xf32>
    %106 = arith.addf %104, %105 : vector<1x64xf32>
    %107 = math.rsqrt %106 : vector<1x64xf32>
    %108 = arith.mulf %89, %107 : vector<1x64xf32>
    %109 = arith.mulf %99, %108 : vector<1x64xf32>
    %110 = arith.subf %90, %109 : vector<1x64xf32>
    %c0_93 = arith.constant 0 : index
    %c0_94 = arith.constant 0 : index
    %111 = vector.load %arg10[%c0_93, %c0_94] : memref<64x256xf32, #tpu.memory_space<vmem>>, vector<64x256xf32>
    %cst_95 = arith.constant dense<0.000000e+00> : vector<1x256xf32>
    %112 = tpu.matmul %108, %111, %cst_95 {dimension_numbers = #tpu.dot_dimension_numbers<[1], [0], [0], [1], [0, 0, 1, 1], [], []>} : vector<1x64xf32>, vector<64x256xf32>, vector<1x256xf32> -> vector<1x256xf32>
    %cst_96 = arith.constant dense<0.000000e+00> : vector<1x256xf32>
    %113 = tpu.matmul %110, %111, %cst_96 {dimension_numbers = #tpu.dot_dimension_numbers<[1], [0], [0], [1], [0, 0, 1, 1], [], []>} : vector<1x64xf32>, vector<64x256xf32>, vector<1x256xf32> -> vector<1x256xf32>
    %114 = vector.broadcast %112 : vector<1x256xf32> to vector<8x256xf32>
    %115 = arith.mulf %88, %114 : vector<8x256xf32>
    %116 = vector.broadcast %113 : vector<1x256xf32> to vector<8x256xf32>
    %117 = arith.addf %115, %116 : vector<8x256xf32>
    %cst_97 = arith.constant 0.000000e+00 : f32
    %118 = vector.broadcast %cst_97 : f32 to vector<8x256xf32>
    %119 = arith.cmpf oge, %117, %118 : vector<8x256xf32>
    %cst_98 = arith.constant 2.000000e-01 : f32
    %120 = vector.broadcast %cst_98 : f32 to vector<8x256xf32>
    %121 = arith.mulf %120, %117 : vector<8x256xf32>
    %122 = arith.select %119, %117, %121 : vector<8x256xi1>, vector<8x256xf32>
    %c0_99 = arith.constant 0 : index
    %c0_100 = arith.constant 0 : index
    %c0_101 = arith.constant 0 : index
    %123 = vector.load %arg13[%c0_99, %c0_100, %c0_101] : memref<3x8x8xf32, #tpu.memory_space<vmem>>, vector<1x8x8xf32>
    %124 = vector.shape_cast %123 : vector<1x8x8xf32> to vector<8x8xf32>
    %cst_102 = arith.constant dense<0.000000e+00> : vector<8x256xf32>
    %125 = tpu.matmul %124, %122, %cst_102 {dimension_numbers = #tpu.dot_dimension_numbers<[1], [0], [0], [1], [0, 0, 1, 1], [], []>} : vector<8x8xf32>, vector<8x256xf32>, vector<8x256xf32> -> vector<8x256xf32>
    %c0_103 = arith.constant 0 : index
    %c0_104 = arith.constant 0 : index
    %c0_105 = arith.constant 0 : index
    %126 = vector.load %arg14[%c0_103, %c0_104, %c0_105] : memref<3x256x64xf32, #tpu.memory_space<vmem>>, vector<1x256x64xf32>
    %127 = vector.shape_cast %126 : vector<1x256x64xf32> to vector<256x64xf32>
    %cst_106 = arith.constant dense<0.000000e+00> : vector<8x64xf32>
    %128 = tpu.matmul %125, %127, %cst_106 {dimension_numbers = #tpu.dot_dimension_numbers<[1], [0], [0], [1], [0, 0, 1, 1], [], []>} : vector<8x256xf32>, vector<256x64xf32>, vector<8x64xf32> -> vector<8x64xf32>
    %c1_107 = arith.constant 1 : index
    %c0_108 = arith.constant 0 : index
    %c0_109 = arith.constant 0 : index
    %129 = vector.load %arg13[%c1_107, %c0_108, %c0_109] : memref<3x8x8xf32, #tpu.memory_space<vmem>>, vector<1x8x8xf32>
    %130 = vector.shape_cast %129 : vector<1x8x8xf32> to vector<8x8xf32>
    %cst_110 = arith.constant dense<0.000000e+00> : vector<8x256xf32>
    %131 = tpu.matmul %130, %122, %cst_110 {dimension_numbers = #tpu.dot_dimension_numbers<[1], [0], [0], [1], [0, 0, 1, 1], [], []>} : vector<8x8xf32>, vector<8x256xf32>, vector<8x256xf32> -> vector<8x256xf32>
    %c1_111 = arith.constant 1 : index
    %c0_112 = arith.constant 0 : index
    %c0_113 = arith.constant 0 : index
    %132 = vector.load %arg14[%c1_111, %c0_112, %c0_113] : memref<3x256x64xf32, #tpu.memory_space<vmem>>, vector<1x256x64xf32>
    %133 = vector.shape_cast %132 : vector<1x256x64xf32> to vector<256x64xf32>
    %cst_114 = arith.constant dense<0.000000e+00> : vector<8x64xf32>
    %134 = tpu.matmul %131, %133, %cst_114 {dimension_numbers = #tpu.dot_dimension_numbers<[1], [0], [0], [1], [0, 0, 1, 1], [], []>} : vector<8x256xf32>, vector<256x64xf32>, vector<8x64xf32> -> vector<8x64xf32>
    %135 = arith.addf %128, %134 : vector<8x64xf32>
    %c2_115 = arith.constant 2 : index
    %c0_116 = arith.constant 0 : index
    %c0_117 = arith.constant 0 : index
    %136 = vector.load %arg13[%c2_115, %c0_116, %c0_117] : memref<3x8x8xf32, #tpu.memory_space<vmem>>, vector<1x8x8xf32>
    %137 = vector.shape_cast %136 : vector<1x8x8xf32> to vector<8x8xf32>
    %cst_118 = arith.constant dense<0.000000e+00> : vector<8x256xf32>
    %138 = tpu.matmul %137, %122, %cst_118 {dimension_numbers = #tpu.dot_dimension_numbers<[1], [0], [0], [1], [0, 0, 1, 1], [], []>} : vector<8x8xf32>, vector<8x256xf32>, vector<8x256xf32> -> vector<8x256xf32>
    %c2_119 = arith.constant 2 : index
    %c0_120 = arith.constant 0 : index
    %c0_121 = arith.constant 0 : index
    %139 = vector.load %arg14[%c2_119, %c0_120, %c0_121] : memref<3x256x64xf32, #tpu.memory_space<vmem>>, vector<1x256x64xf32>
    %140 = vector.shape_cast %139 : vector<1x256x64xf32> to vector<256x64xf32>
    %cst_122 = arith.constant dense<0.000000e+00> : vector<8x64xf32>
    %141 = tpu.matmul %138, %140, %cst_122 {dimension_numbers = #tpu.dot_dimension_numbers<[1], [0], [0], [1], [0, 0, 1, 1], [], []>} : vector<8x256xf32>, vector<256x64xf32>, vector<8x64xf32> -> vector<8x64xf32>
    %142 = arith.addf %135, %141 : vector<8x64xf32>
    %c0_123 = arith.constant 0 : index
    %c0_124 = arith.constant 0 : index
    %c0_125 = arith.constant 0 : index
    %143 = vector.load %arg19[%c0_123, %c0_124, %c0_125] : memref<4x64x16xf32, #tpu.memory_space<vmem>>, vector<1x64x16xf32>
    %144 = vector.shape_cast %143 : vector<1x64x16xf32> to vector<64x16xf32>
    %cst_126 = arith.constant dense<0.000000e+00> : vector<8x16xf32>
    %145 = tpu.matmul %142, %144, %cst_126 {dimension_numbers = #tpu.dot_dimension_numbers<[1], [0], [0], [1], [0, 0, 1, 1], [], []>} : vector<8x64xf32>, vector<64x16xf32>, vector<8x16xf32> -> vector<8x16xf32>
    %c0_127 = arith.constant 0 : index
    %c0_128 = arith.constant 0 : index
    %c0_129 = arith.constant 0 : index
    %146 = vector.load %arg17[%c0_127, %c0_128, %c0_129] : memref<4x32x8xf32, #tpu.memory_space<vmem>>, vector<1x32x8xf32>
    %147 = vector.shape_cast %146 : vector<1x32x8xf32> to vector<32x8xf32>
    %cst_130 = arith.constant dense<0.000000e+00> : vector<32x16xf32>
    %148 = tpu.matmul %147, %145, %cst_130 {dimension_numbers = #tpu.dot_dimension_numbers<[1], [0], [0], [1], [0, 0, 1, 1], [], []>} : vector<32x8xf32>, vector<8x16xf32>, vector<32x16xf32> -> vector<32x16xf32>
    %c1_131 = arith.constant 1 : index
    %c0_132 = arith.constant 0 : index
    %c0_133 = arith.constant 0 : index
    %149 = vector.load %arg19[%c1_131, %c0_132, %c0_133] : memref<4x64x16xf32, #tpu.memory_space<vmem>>, vector<1x64x16xf32>
    %150 = vector.shape_cast %149 : vector<1x64x16xf32> to vector<64x16xf32>
    %cst_134 = arith.constant dense<0.000000e+00> : vector<8x16xf32>
    %151 = tpu.matmul %142, %150, %cst_134 {dimension_numbers = #tpu.dot_dimension_numbers<[1], [0], [0], [1], [0, 0, 1, 1], [], []>} : vector<8x64xf32>, vector<64x16xf32>, vector<8x16xf32> -> vector<8x16xf32>
    %c1_135 = arith.constant 1 : index
    %c0_136 = arith.constant 0 : index
    %c0_137 = arith.constant 0 : index
    %152 = vector.load %arg17[%c1_135, %c0_136, %c0_137] : memref<4x32x8xf32, #tpu.memory_space<vmem>>, vector<1x32x8xf32>
    %153 = vector.shape_cast %152 : vector<1x32x8xf32> to vector<32x8xf32>
    %cst_138 = arith.constant dense<0.000000e+00> : vector<32x16xf32>
    %154 = tpu.matmul %153, %151, %cst_138 {dimension_numbers = #tpu.dot_dimension_numbers<[1], [0], [0], [1], [0, 0, 1, 1], [], []>} : vector<32x8xf32>, vector<8x16xf32>, vector<32x16xf32> -> vector<32x16xf32>
    %155 = arith.addf %148, %154 : vector<32x16xf32>
    %c2_139 = arith.constant 2 : index
    %c0_140 = arith.constant 0 : index
    %c0_141 = arith.constant 0 : index
    %156 = vector.load %arg19[%c2_139, %c0_140, %c0_141] : memref<4x64x16xf32, #tpu.memory_space<vmem>>, vector<1x64x16xf32>
    %157 = vector.shape_cast %156 : vector<1x64x16xf32> to vector<64x16xf32>
    %cst_142 = arith.constant dense<0.000000e+00> : vector<8x16xf32>
    %158 = tpu.matmul %142, %157, %cst_142 {dimension_numbers = #tpu.dot_dimension_numbers<[1], [0], [0], [1], [0, 0, 1, 1], [], []>} : vector<8x64xf32>, vector<64x16xf32>, vector<8x16xf32> -> vector<8x16xf32>
    %c2_143 = arith.constant 2 : index
    %c0_144 = arith.constant 0 : index
    %c0_145 = arith.constant 0 : index
    %159 = vector.load %arg17[%c2_143, %c0_144, %c0_145] : memref<4x32x8xf32, #tpu.memory_space<vmem>>, vector<1x32x8xf32>
    %160 = vector.shape_cast %159 : vector<1x32x8xf32> to vector<32x8xf32>
    %cst_146 = arith.constant dense<0.000000e+00> : vector<32x16xf32>
    %161 = tpu.matmul %160, %158, %cst_146 {dimension_numbers = #tpu.dot_dimension_numbers<[1], [0], [0], [1], [0, 0, 1, 1], [], []>} : vector<32x8xf32>, vector<8x16xf32>, vector<32x16xf32> -> vector<32x16xf32>
    %162 = arith.addf %155, %161 : vector<32x16xf32>
    %c3_147 = arith.constant 3 : index
    %c0_148 = arith.constant 0 : index
    %c0_149 = arith.constant 0 : index
    %163 = vector.load %arg19[%c3_147, %c0_148, %c0_149] : memref<4x64x16xf32, #tpu.memory_space<vmem>>, vector<1x64x16xf32>
    %164 = vector.shape_cast %163 : vector<1x64x16xf32> to vector<64x16xf32>
    %cst_150 = arith.constant dense<0.000000e+00> : vector<8x16xf32>
    %165 = tpu.matmul %142, %164, %cst_150 {dimension_numbers = #tpu.dot_dimension_numbers<[1], [0], [0], [1], [0, 0, 1, 1], [], []>} : vector<8x64xf32>, vector<64x16xf32>, vector<8x16xf32> -> vector<8x16xf32>
    %c3_151 = arith.constant 3 : index
    %c0_152 = arith.constant 0 : index
    %c0_153 = arith.constant 0 : index
    %166 = vector.load %arg17[%c3_151, %c0_152, %c0_153] : memref<4x32x8xf32, #tpu.memory_space<vmem>>, vector<1x32x8xf32>
    %167 = vector.shape_cast %166 : vector<1x32x8xf32> to vector<32x8xf32>
    %cst_154 = arith.constant dense<0.000000e+00> : vector<32x16xf32>
    %168 = tpu.matmul %167, %165, %cst_154 {dimension_numbers = #tpu.dot_dimension_numbers<[1], [0], [0], [1], [0, 0, 1, 1], [], []>} : vector<32x8xf32>, vector<8x16xf32>, vector<32x16xf32> -> vector<32x16xf32>
    %169 = arith.addf %162, %168 : vector<32x16xf32>
    %c0_155 = arith.constant 0 : index
    %c0_156 = arith.constant 0 : index
    %170 = vector.load %arg15[%c0_155, %c0_156] : memref<1x16xf32, #tpu.memory_space<vmem>>, vector<1x16xf32>
    %c0_157 = arith.constant 0 : index
    %c0_158 = arith.constant 0 : index
    %171 = vector.load %arg16[%c0_157, %c0_158] : memref<1x16xf32, #tpu.memory_space<vmem>>, vector<1x16xf32>
    %cst_159 = arith.constant dense<0.000000e+00> : vector<16xf32>
    %172 = vector.multi_reduction <add>, %169, %cst_159 [0] : vector<32x16xf32> to vector<16xf32>
    %173 = vector.shape_cast %172 : vector<16xf32> to vector<1x16xf32>
    %cst_160 = arith.constant 3.125000e-02 : f32
    %174 = vector.broadcast %cst_160 : f32 to vector<1x16xf32>
    %175 = arith.mulf %173, %174 : vector<1x16xf32>
    %176 = arith.mulf %169, %169 : vector<32x16xf32>
    %cst_161 = arith.constant dense<0.000000e+00> : vector<16xf32>
    %177 = vector.multi_reduction <add>, %176, %cst_161 [0] : vector<32x16xf32> to vector<16xf32>
    %178 = vector.shape_cast %177 : vector<16xf32> to vector<1x16xf32>
    %cst_162 = arith.constant 3.125000e-02 : f32
    %179 = vector.broadcast %cst_162 : f32 to vector<1x16xf32>
    %180 = arith.mulf %178, %179 : vector<1x16xf32>
    %181 = arith.mulf %175, %175 : vector<1x16xf32>
    %182 = arith.subf %180, %181 : vector<1x16xf32>
    %cst_163 = arith.constant 9.99999974E-6 : f32
    %183 = vector.broadcast %cst_163 : f32 to vector<1x16xf32>
    %184 = arith.addf %182, %183 : vector<1x16xf32>
    %185 = math.rsqrt %184 : vector<1x16xf32>
    %186 = arith.mulf %170, %185 : vector<1x16xf32>
    %187 = arith.mulf %175, %186 : vector<1x16xf32>
    %188 = arith.subf %171, %187 : vector<1x16xf32>
    %189 = vector.broadcast %186 : vector<1x16xf32> to vector<32x16xf32>
    %190 = arith.mulf %169, %189 : vector<32x16xf32>
    %191 = vector.broadcast %188 : vector<1x16xf32> to vector<32x16xf32>
    %192 = arith.addf %190, %191 : vector<32x16xf32>
    %cst_164 = arith.constant 0.000000e+00 : f32
    %193 = vector.broadcast %cst_164 : f32 to vector<32x16xf32>
    %194 = arith.cmpf oge, %192, %193 : vector<32x16xf32>
    %cst_165 = arith.constant 2.000000e-01 : f32
    %195 = vector.broadcast %cst_165 : f32 to vector<32x16xf32>
    %196 = arith.mulf %195, %192 : vector<32x16xf32>
    %197 = arith.select %194, %192, %196 : vector<32x16xi1>, vector<32x16xf32>
    %c0_166 = arith.constant 0 : index
    %c0_167 = arith.constant 0 : index
    %198 = vector.load %arg21[%c0_166, %c0_167] : memref<32x16xf32, #tpu.memory_space<vmem>>, vector<32x16xf32>
    %199 = arith.mulf %197, %197 : vector<32x16xf32>
    %cst_168 = arith.constant dense<0.000000e+00> : vector<32xf32>
    %200 = vector.multi_reduction <add>, %199, %cst_168 [1] : vector<32x16xf32> to vector<32xf32>
    %201 = vector.shape_cast %200 : vector<32xf32> to vector<32x1xf32>
    %cst_169 = arith.constant dense<0.000000e+00> : vector<32x32xf32>
    %202 = tpu.matmul %197, %198, %cst_169 {dimension_numbers = #tpu.dot_dimension_numbers<[1], [1], [0], [0], [0, 0, 1, 0], [], []>} : vector<32x16xf32>, vector<32x16xf32>, vector<32x32xf32> -> vector<32x32xf32>
    %c0_170 = arith.constant 0 : index
    %c0_171 = arith.constant 0 : index
    %203 = vector.load %arg22[%c0_170, %c0_171] : memref<1x32xf32, #tpu.memory_space<vmem>>, vector<1x32xf32>
    %204 = vector.broadcast %201 : vector<32x1xf32> to vector<32x32xf32>
    %205 = vector.broadcast %203 : vector<1x32xf32> to vector<32x32xf32>
    %206 = arith.addf %204, %205 : vector<32x32xf32>
    %cst_172 = arith.constant 2.000000e+00 : f32
    %207 = vector.broadcast %cst_172 : f32 to vector<32x32xf32>
    %208 = arith.mulf %207, %202 : vector<32x32xf32>
    %209 = arith.subf %206, %208 : vector<32x32xf32>
    %cst_173 = arith.constant dense<0x7F800000> : vector<32xf32>
    %210 = vector.multi_reduction <minimumf>, %209, %cst_173 [1] : vector<32x32xf32> to vector<32xf32>
    %211 = vector.shape_cast %210 : vector<32xf32> to vector<32x1xf32>
    %212 = tpu.iota {dimensions = array<i32: 1>} : vector<32x32xi32>
    %213 = vector.broadcast %211 : vector<32x1xf32> to vector<32x32xf32>
    %214 = arith.cmpf oeq, %209, %213 : vector<32x32xf32>
    %c32_i32 = arith.constant 32 : i32
    %215 = vector.broadcast %c32_i32 : i32 to vector<32x32xi32>
    %216 = arith.select %214, %212, %215 : vector<32x32xi1>, vector<32x32xi32>
    %cst_174 = arith.constant dense<2147483647> : vector<32xi32>
    %217 = vector.multi_reduction <minsi>, %216, %cst_174 [1] : vector<32x32xi32> to vector<32xi32>
    %218 = vector.shape_cast %217 : vector<32xi32> to vector<32x1xi32>
    %219 = vector.broadcast %218 : vector<32x1xi32> to vector<32x32xi32>
    %220 = arith.cmpi eq, %212, %219 : vector<32x32xi32>
    %221 = arith.extui %220 : vector<32x32xi1> to vector<32x32xi32>
    %222 = arith.sitofp %221 : vector<32x32xi32> to vector<32x32xf32>
    %cst_175 = arith.constant dense<0.000000e+00> : vector<32x16xf32>
    %223 = tpu.matmul %222, %198, %cst_175 {dimension_numbers = #tpu.dot_dimension_numbers<[1], [0], [0], [1], [0, 0, 1, 1], [], []>} : vector<32x32xf32>, vector<32x16xf32>, vector<32x16xf32> -> vector<32x16xf32>
    %224 = arith.subf %223, %197 : vector<32x16xf32>
    %225 = arith.mulf %224, %224 : vector<32x16xf32>
    %226 = vector.shape_cast %225 : vector<32x16xf32> to vector<1x32x16xf32>
    %cst_176 = arith.constant dense<0.000000e+00> : vector<1xf32>
    %227 = vector.multi_reduction <add>, %226, %cst_176 [1, 2] : vector<1x32x16xf32> to vector<1xf32>
    %228 = vector.shape_cast %227 : vector<1xf32> to vector<1x1x1xf32>
    %229 = vector.extract %228[0, 0, 0] : f32 from vector<1x1x1xf32>
    %cst_177 = arith.constant 5.120000e+02 : f32
    %230 = arith.divf %229, %cst_177 : f32
    %cst_178 = arith.constant 2.500000e-01 : f32
    %231 = arith.mulf %cst_178, %230 : f32
    %232 = vector.shape_cast %218 : vector<32x1xi32> to vector<32x1xi32>
    %233 = vector.broadcast %232 : vector<32x1xi32> to vector<32x128xi32>
    %c0_179 = arith.constant 0 : index
    %c0_180 = arith.constant 0 : index
    %234 = vector.load %arg39[%c0_179, %c0_180] : memref<32x128xi32, #tpu.memory_space<vmem>>, vector<32x128xi32>
    tpu.vector_store %arg39[%c0_179, %c0_180], %233 {strides = array<i32>} : memref<32x128xi32, #tpu.memory_space<vmem>>, vector<32x128xi32>,
    %cst_181 = arith.constant 1.000000e+00 : f32
    %235 = vector.broadcast %cst_181 : f32 to vector<1x128xf32>
    %236 = vector.broadcast %231 : f32 to vector<1x128xf32>
    %237 = arith.mulf %236, %235 : vector<1x128xf32>
    %c0_182 = arith.constant 0 : index
    %c0_183 = arith.constant 0 : index
    %238 = vector.load %arg40[%c0_182, %c0_183] : memref<1x128xf32, #tpu.memory_space<vmem>>, vector<1x128xf32>
    tpu.vector_store %arg40[%c0_182, %c0_183], %237 {strides = array<i32>} : memref<1x128xf32, #tpu.memory_space<vmem>>, vector<1x128xf32>,
    %c0_184 = arith.constant 0 : index
    %c0_185 = arith.constant 0 : index
    %c0_186 = arith.constant 0 : index
    %239 = vector.load %arg18[%c0_184, %c0_185, %c0_186] : memref<4x8x32xf32, #tpu.memory_space<vmem>>, vector<1x8x32xf32>
    %240 = vector.shape_cast %239 : vector<1x8x32xf32> to vector<8x32xf32>
    %cst_187 = arith.constant dense<0.000000e+00> : vector<8x16xf32>
    %241 = tpu.matmul %240, %223, %cst_187 {dimension_numbers = #tpu.dot_dimension_numbers<[1], [0], [0], [1], [0, 0, 1, 1], [], []>} : vector<8x32xf32>, vector<32x16xf32>, vector<8x16xf32> -> vector<8x16xf32>
    %c0_188 = arith.constant 0 : index
    %c0_189 = arith.constant 0 : index
    %c0_190 = arith.constant 0 : index
    %242 = vector.load %arg20[%c0_188, %c0_189, %c0_190] : memref<4x16x64xf32, #tpu.memory_space<vmem>>, vector<1x16x64xf32>
    %243 = vector.shape_cast %242 : vector<1x16x64xf32> to vector<16x64xf32>
    %cst_191 = arith.constant dense<0.000000e+00> : vector<8x64xf32>
    %244 = tpu.matmul %241, %243, %cst_191 {dimension_numbers = #tpu.dot_dimension_numbers<[1], [0], [0], [1], [0, 0, 1, 1], [], []>} : vector<8x16xf32>, vector<16x64xf32>, vector<8x64xf32> -> vector<8x64xf32>
    %c1_192 = arith.constant 1 : index
    %c0_193 = arith.constant 0 : index
    %c0_194 = arith.constant 0 : index
    %245 = vector.load %arg18[%c1_192, %c0_193, %c0_194] : memref<4x8x32xf32, #tpu.memory_space<vmem>>, vector<1x8x32xf32>
    %246 = vector.shape_cast %245 : vector<1x8x32xf32> to vector<8x32xf32>
    %cst_195 = arith.constant dense<0.000000e+00> : vector<8x16xf32>
    %247 = tpu.matmul %246, %223, %cst_195 {dimension_numbers = #tpu.dot_dimension_numbers<[1], [0], [0], [1], [0, 0, 1, 1], [], []>} : vector<8x32xf32>, vector<32x16xf32>, vector<8x16xf32> -> vector<8x16xf32>
    %c1_196 = arith.constant 1 : index
    %c0_197 = arith.constant 0 : index
    %c0_198 = arith.constant 0 : index
    %248 = vector.load %arg20[%c1_196, %c0_197, %c0_198] : memref<4x16x64xf32, #tpu.memory_space<vmem>>, vector<1x16x64xf32>
    %249 = vector.shape_cast %248 : vector<1x16x64xf32> to vector<16x64xf32>
    %cst_199 = arith.constant dense<0.000000e+00> : vector<8x64xf32>
    %250 = tpu.matmul %247, %249, %cst_199 {dimension_numbers = #tpu.dot_dimension_numbers<[1], [0], [0], [1], [0, 0, 1, 1], [], []>} : vector<8x16xf32>, vector<16x64xf32>, vector<8x64xf32> -> vector<8x64xf32>
    %251 = arith.addf %244, %250 : vector<8x64xf32>
    %c2_200 = arith.constant 2 : index
    %c0_201 = arith.constant 0 : index
    %c0_202 = arith.constant 0 : index
    %252 = vector.load %arg18[%c2_200, %c0_201, %c0_202] : memref<4x8x32xf32, #tpu.memory_space<vmem>>, vector<1x8x32xf32>
    %253 = vector.shape_cast %252 : vector<1x8x32xf32> to vector<8x32xf32>
    %cst_203 = arith.constant dense<0.000000e+00> : vector<8x16xf32>
    %254 = tpu.matmul %253, %223, %cst_203 {dimension_numbers = #tpu.dot_dimension_numbers<[1], [0], [0], [1], [0, 0, 1, 1], [], []>} : vector<8x32xf32>, vector<32x16xf32>, vector<8x16xf32> -> vector<8x16xf32>
    %c2_204 = arith.constant 2 : index
    %c0_205 = arith.constant 0 : index
    %c0_206 = arith.constant 0 : index
    %255 = vector.load %arg20[%c2_204, %c0_205, %c0_206] : memref<4x16x64xf32, #tpu.memory_space<vmem>>, vector<1x16x64xf32>
    %256 = vector.shape_cast %255 : vector<1x16x64xf32> to vector<16x64xf32>
    %cst_207 = arith.constant dense<0.000000e+00> : vector<8x64xf32>
    %257 = tpu.matmul %254, %256, %cst_207 {dimension_numbers = #tpu.dot_dimension_numbers<[1], [0], [0], [1], [0, 0, 1, 1], [], []>} : vector<8x16xf32>, vector<16x64xf32>, vector<8x64xf32> -> vector<8x64xf32>
    %258 = arith.addf %251, %257 : vector<8x64xf32>
    %c3_208 = arith.constant 3 : index
    %c0_209 = arith.constant 0 : index
    %c0_210 = arith.constant 0 : index
    %259 = vector.load %arg18[%c3_208, %c0_209, %c0_210] : memref<4x8x32xf32, #tpu.memory_space<vmem>>, vector<1x8x32xf32>
    %260 = vector.shape_cast %259 : vector<1x8x32xf32> to vector<8x32xf32>
    %cst_211 = arith.constant dense<0.000000e+00> : vector<8x16xf32>
    %261 = tpu.matmul %260, %223, %cst_211 {dimension_numbers = #tpu.dot_dimension_numbers<[1], [0], [0], [1], [0, 0, 1, 1], [], []>} : vector<8x32xf32>, vector<32x16xf32>, vector<8x16xf32> -> vector<8x16xf32>
    %c3_212 = arith.constant 3 : index
    %c0_213 = arith.constant 0 : index
    %c0_214 = arith.constant 0 : index
    %262 = vector.load %arg20[%c3_212, %c0_213, %c0_214] : memref<4x16x64xf32, #tpu.memory_space<vmem>>, vector<1x16x64xf32>
    %263 = vector.shape_cast %262 : vector<1x16x64xf32> to vector<16x64xf32>
    %cst_215 = arith.constant dense<0.000000e+00> : vector<8x64xf32>
    %264 = tpu.matmul %261, %263, %cst_215 {dimension_numbers = #tpu.dot_dimension_numbers<[1], [0], [0], [1], [0, 0, 1, 1], [], []>} : vector<8x16xf32>, vector<16x64xf32>, vector<8x64xf32> -> vector<8x64xf32>
    %265 = arith.addf %258, %264 : vector<8x64xf32>
    %c0_216 = arith.constant 0 : index
    %c0_217 = arith.constant 0 : index
    %c0_218 = arith.constant 0 : index
    %266 = vector.load %arg23[%c0_216, %c0_217, %c0_218] : memref<3x8x8xf32, #tpu.memory_space<vmem>>, vector<1x8x8xf32>
    %267 = vector.shape_cast %266 : vector<1x8x8xf32> to vector<8x8xf32>
    %cst_219 = arith.constant dense<0.000000e+00> : vector<8x64xf32>
    %268 = tpu.matmul %267, %265, %cst_219 {dimension_numbers = #tpu.dot_dimension_numbers<[1], [0], [0], [1], [0, 0, 1, 1], [], []>} : vector<8x8xf32>, vector<8x64xf32>, vector<8x64xf32> -> vector<8x64xf32>
    %c0_220 = arith.constant 0 : index
    %c0_221 = arith.constant 0 : index
    %c0_222 = arith.constant 0 : index
    %269 = vector.load %arg24[%c0_220, %c0_221, %c0_222] : memref<3x64x256xf32, #tpu.memory_space<vmem>>, vector<1x64x256xf32>
    %270 = vector.shape_cast %269 : vector<1x64x256xf32> to vector<64x256xf32>
    %cst_223 = arith.constant dense<0.000000e+00> : vector<8x256xf32>
    %271 = tpu.matmul %268, %270, %cst_223 {dimension_numbers = #tpu.dot_dimension_numbers<[1], [0], [0], [1], [0, 0, 1, 1], [], []>} : vector<8x64xf32>, vector<64x256xf32>, vector<8x256xf32> -> vector<8x256xf32>
    %c1_224 = arith.constant 1 : index
    %c0_225 = arith.constant 0 : index
    %c0_226 = arith.constant 0 : index
    %272 = vector.load %arg23[%c1_224, %c0_225, %c0_226] : memref<3x8x8xf32, #tpu.memory_space<vmem>>, vector<1x8x8xf32>
    %273 = vector.shape_cast %272 : vector<1x8x8xf32> to vector<8x8xf32>
    %cst_227 = arith.constant dense<0.000000e+00> : vector<8x64xf32>
    %274 = tpu.matmul %273, %265, %cst_227 {dimension_numbers = #tpu.dot_dimension_numbers<[1], [0], [0], [1], [0, 0, 1, 1], [], []>} : vector<8x8xf32>, vector<8x64xf32>, vector<8x64xf32> -> vector<8x64xf32>
    %c1_228 = arith.constant 1 : index
    %c0_229 = arith.constant 0 : index
    %c0_230 = arith.constant 0 : index
    %275 = vector.load %arg24[%c1_228, %c0_229, %c0_230] : memref<3x64x256xf32, #tpu.memory_space<vmem>>, vector<1x64x256xf32>
    %276 = vector.shape_cast %275 : vector<1x64x256xf32> to vector<64x256xf32>
    %cst_231 = arith.constant dense<0.000000e+00> : vector<8x256xf32>
    %277 = tpu.matmul %274, %276, %cst_231 {dimension_numbers = #tpu.dot_dimension_numbers<[1], [0], [0], [1], [0, 0, 1, 1], [], []>} : vector<8x64xf32>, vector<64x256xf32>, vector<8x256xf32> -> vector<8x256xf32>
    %278 = arith.addf %271, %277 : vector<8x256xf32>
    %c2_232 = arith.constant 2 : index
    %c0_233 = arith.constant 0 : index
    %c0_234 = arith.constant 0 : index
    %279 = vector.load %arg23[%c2_232, %c0_233, %c0_234] : memref<3x8x8xf32, #tpu.memory_space<vmem>>, vector<1x8x8xf32>
    %280 = vector.shape_cast %279 : vector<1x8x8xf32> to vector<8x8xf32>
    %cst_235 = arith.constant dense<0.000000e+00> : vector<8x64xf32>
    %281 = tpu.matmul %280, %265, %cst_235 {dimension_numbers = #tpu.dot_dimension_numbers<[1], [0], [0], [1], [0, 0, 1, 1], [], []>} : vector<8x8xf32>, vector<8x64xf32>, vector<8x64xf32> -> vector<8x64xf32>
    %c2_236 = arith.constant 2 : index
    %c0_237 = arith.constant 0 : index
    %c0_238 = arith.constant 0 : index
    %282 = vector.load %arg24[%c2_236, %c0_237, %c0_238] : memref<3x64x256xf32, #tpu.memory_space<vmem>>, vector<1x64x256xf32>
    %283 = vector.shape_cast %282 : vector<1x64x256xf32> to vector<64x256xf32>
    %cst_239 = arith.constant dense<0.000000e+00> : vector<8x256xf32>
    %284 = tpu.matmul %281, %283, %cst_239 {dimension_numbers = #tpu.dot_dimension_numbers<[1], [0], [0], [1], [0, 0, 1, 1], [], []>} : vector<8x64xf32>, vector<64x256xf32>, vector<8x256xf32> -> vector<8x256xf32>
    %285 = arith.addf %278, %284 : vector<8x256xf32>
    %c0_240 = arith.constant 0 : index
    %c0_241 = arith.constant 0 : index
    %286 = vector.load %arg27[%c0_240, %c0_241] : memref<1x64xf32, #tpu.memory_space<vmem>>, vector<1x64xf32>
    %c0_242 = arith.constant 0 : index
    %c0_243 = arith.constant 0 : index
    %287 = vector.load %arg28[%c0_242, %c0_243] : memref<1x64xf32, #tpu.memory_space<vmem>>, vector<1x64xf32>
    %c0_244 = arith.constant 0 : index
    %c0_245 = arith.constant 0 : index
    %288 = vector.load %arg25[%c0_244, %c0_245] : memref<256x64xf32, #tpu.memory_space<vmem>>, vector<256x64xf32>
    %cst_246 = arith.constant dense<0.000000e+00> : vector<256xf32>
    %289 = vector.multi_reduction <add>, %285, %cst_246 [0] : vector<8x256xf32> to vector<256xf32>
    %290 = vector.shape_cast %289 : vector<256xf32> to vector<1x256xf32>
    %291 = arith.mulf %285, %285 : vector<8x256xf32>
    %cst_247 = arith.constant dense<0.000000e+00> : vector<256xf32>
    %292 = vector.multi_reduction <add>, %291, %cst_247 [0] : vector<8x256xf32> to vector<256xf32>
    %293 = vector.shape_cast %292 : vector<256xf32> to vector<1x256xf32>
    %cst_248 = arith.constant dense<0.000000e+00> : vector<1x64xf32>
    %294 = tpu.matmul %290, %288, %cst_248 {dimension_numbers = #tpu.dot_dimension_numbers<[1], [0], [0], [1], [0, 0, 1, 1], [], []>} : vector<1x256xf32>, vector<256x64xf32>, vector<1x64xf32> -> vector<1x64xf32>
    %cst_249 = arith.constant 3.125000e-02 : f32
    %295 = vector.broadcast %cst_249 : f32 to vector<1x64xf32>
    %296 = arith.mulf %294, %295 : vector<1x64xf32>
    %cst_250 = arith.constant dense<0.000000e+00> : vector<1x64xf32>
    %297 = tpu.matmul %293, %288, %cst_250 {dimension_numbers = #tpu.dot_dimension_numbers<[1], [0], [0], [1], [0, 0, 1, 1], [], []>} : vector<1x256xf32>, vector<256x64xf32>, vector<1x64xf32> -> vector<1x64xf32>
    %cst_251 = arith.constant 3.125000e-02 : f32
    %298 = vector.broadcast %cst_251 : f32 to vector<1x64xf32>
    %299 = arith.mulf %297, %298 : vector<1x64xf32>
    %300 = arith.mulf %296, %296 : vector<1x64xf32>
    %301 = arith.subf %299, %300 : vector<1x64xf32>
    %cst_252 = arith.constant 9.99999974E-6 : f32
    %302 = vector.broadcast %cst_252 : f32 to vector<1x64xf32>
    %303 = arith.addf %301, %302 : vector<1x64xf32>
    %304 = math.rsqrt %303 : vector<1x64xf32>
    %305 = arith.mulf %286, %304 : vector<1x64xf32>
    %306 = arith.mulf %296, %305 : vector<1x64xf32>
    %307 = arith.subf %287, %306 : vector<1x64xf32>
    %c0_253 = arith.constant 0 : index
    %c0_254 = arith.constant 0 : index
    %308 = vector.load %arg26[%c0_253, %c0_254] : memref<64x256xf32, #tpu.memory_space<vmem>>, vector<64x256xf32>
    %cst_255 = arith.constant dense<0.000000e+00> : vector<1x256xf32>
    %309 = tpu.matmul %305, %308, %cst_255 {dimension_numbers = #tpu.dot_dimension_numbers<[1], [0], [0], [1], [0, 0, 1, 1], [], []>} : vector<1x64xf32>, vector<64x256xf32>, vector<1x256xf32> -> vector<1x256xf32>
    %cst_256 = arith.constant dense<0.000000e+00> : vector<1x256xf32>
    %310 = tpu.matmul %307, %308, %cst_256 {dimension_numbers = #tpu.dot_dimension_numbers<[1], [0], [0], [1], [0, 0, 1, 1], [], []>} : vector<1x64xf32>, vector<64x256xf32>, vector<1x256xf32> -> vector<1x256xf32>
    %311 = vector.broadcast %309 : vector<1x256xf32> to vector<8x256xf32>
    %312 = arith.mulf %285, %311 : vector<8x256xf32>
    %313 = vector.broadcast %310 : vector<1x256xf32> to vector<8x256xf32>
    %314 = arith.addf %312, %313 : vector<8x256xf32>
    %cst_257 = arith.constant 0.000000e+00 : f32
    %315 = vector.broadcast %cst_257 : f32 to vector<8x256xf32>
    %316 = arith.cmpf oge, %314, %315 : vector<8x256xf32>
    %cst_258 = arith.constant 2.000000e-01 : f32
    %317 = vector.broadcast %cst_258 : f32 to vector<8x256xf32>
    %318 = arith.mulf %317, %314 : vector<8x256xf32>
    %319 = arith.select %316, %314, %318 : vector<8x256xi1>, vector<8x256xf32>
    %c0_259 = arith.constant 0 : index
    %c0_260 = arith.constant 0 : index
    %c0_261 = arith.constant 0 : index
    %320 = vector.load %arg29[%c0_259, %c0_260, %c0_261] : memref<4x16x8xf32, #tpu.memory_space<vmem>>, vector<1x16x8xf32>
    %321 = vector.shape_cast %320 : vector<1x16x8xf32> to vector<16x8xf32>
    %cst_262 = arith.constant dense<0.000000e+00> : vector<16x256xf32>
    %322 = tpu.matmul %321, %319, %cst_262 {dimension_numbers = #tpu.dot_dimension_numbers<[1], [0], [0], [1], [0, 0, 1, 1], [], []>} : vector<16x8xf32>, vector<8x256xf32>, vector<16x256xf32> -> vector<16x256xf32>
    %c0_263 = arith.constant 0 : index
    %c0_264 = arith.constant 0 : index
    %c0_265 = arith.constant 0 : index
    %323 = vector.load %arg30[%c0_263, %c0_264, %c0_265] : memref<4x256x256xf32, #tpu.memory_space<vmem>>, vector<1x256x256xf32>
    %324 = vector.shape_cast %323 : vector<1x256x256xf32> to vector<256x256xf32>
    %cst_266 = arith.constant dense<0.000000e+00> : vector<16x256xf32>
    %325 = tpu.matmul %322, %324, %cst_266 {dimension_numbers = #tpu.dot_dimension_numbers<[1], [0], [0], [1], [0, 0, 1, 1], [], []>} : vector<16x256xf32>, vector<256x256xf32>, vector<16x256xf32> -> vector<16x256xf32>
    %c1_267 = arith.constant 1 : index
    %c0_268 = arith.constant 0 : index
    %c0_269 = arith.constant 0 : index
    %326 = vector.load %arg29[%c1_267, %c0_268, %c0_269] : memref<4x16x8xf32, #tpu.memory_space<vmem>>, vector<1x16x8xf32>
    %327 = vector.shape_cast %326 : vector<1x16x8xf32> to vector<16x8xf32>
    %cst_270 = arith.constant dense<0.000000e+00> : vector<16x256xf32>
    %328 = tpu.matmul %327, %319, %cst_270 {dimension_numbers = #tpu.dot_dimension_numbers<[1], [0], [0], [1], [0, 0, 1, 1], [], []>} : vector<16x8xf32>, vector<8x256xf32>, vector<16x256xf32> -> vector<16x256xf32>
    %c1_271 = arith.constant 1 : index
    %c0_272 = arith.constant 0 : index
    %c0_273 = arith.constant 0 : index
    %329 = vector.load %arg30[%c1_271, %c0_272, %c0_273] : memref<4x256x256xf32, #tpu.memory_space<vmem>>, vector<1x256x256xf32>
    %330 = vector.shape_cast %329 : vector<1x256x256xf32> to vector<256x256xf32>
    %cst_274 = arith.constant dense<0.000000e+00> : vector<16x256xf32>
    %331 = tpu.matmul %328, %330, %cst_274 {dimension_numbers = #tpu.dot_dimension_numbers<[1], [0], [0], [1], [0, 0, 1, 1], [], []>} : vector<16x256xf32>, vector<256x256xf32>, vector<16x256xf32> -> vector<16x256xf32>
    %332 = arith.addf %325, %331 : vector<16x256xf32>
    %c2_275 = arith.constant 2 : index
    %c0_276 = arith.constant 0 : index
    %c0_277 = arith.constant 0 : index
    %333 = vector.load %arg29[%c2_275, %c0_276, %c0_277] : memref<4x16x8xf32, #tpu.memory_space<vmem>>, vector<1x16x8xf32>
    %334 = vector.shape_cast %333 : vector<1x16x8xf32> to vector<16x8xf32>
    %cst_278 = arith.constant dense<0.000000e+00> : vector<16x256xf32>
    %335 = tpu.matmul %334, %319, %cst_278 {dimension_numbers = #tpu.dot_dimension_numbers<[1], [0], [0], [1], [0, 0, 1, 1], [], []>} : vector<16x8xf32>, vector<8x256xf32>, vector<16x256xf32> -> vector<16x256xf32>
    %c2_279 = arith.constant 2 : index
    %c0_280 = arith.constant 0 : index
    %c0_281 = arith.constant 0 : index
    %336 = vector.load %arg30[%c2_279, %c0_280, %c0_281] : memref<4x256x256xf32, #tpu.memory_space<vmem>>, vector<1x256x256xf32>
    %337 = vector.shape_cast %336 : vector<1x256x256xf32> to vector<256x256xf32>
    %cst_282 = arith.constant dense<0.000000e+00> : vector<16x256xf32>
    %338 = tpu.matmul %335, %337, %cst_282 {dimension_numbers = #tpu.dot_dimension_numbers<[1], [0], [0], [1], [0, 0, 1, 1], [], []>} : vector<16x256xf32>, vector<256x256xf32>, vector<16x256xf32> -> vector<16x256xf32>
    %339 = arith.addf %332, %338 : vector<16x256xf32>
    %c3_283 = arith.constant 3 : index
    %c0_284 = arith.constant 0 : index
    %c0_285 = arith.constant 0 : index
    %340 = vector.load %arg29[%c3_283, %c0_284, %c0_285] : memref<4x16x8xf32, #tpu.memory_space<vmem>>, vector<1x16x8xf32>
    %341 = vector.shape_cast %340 : vector<1x16x8xf32> to vector<16x8xf32>
    %cst_286 = arith.constant dense<0.000000e+00> : vector<16x256xf32>
    %342 = tpu.matmul %341, %319, %cst_286 {dimension_numbers = #tpu.dot_dimension_numbers<[1], [0], [0], [1], [0, 0, 1, 1], [], []>} : vector<16x8xf32>, vector<8x256xf32>, vector<16x256xf32> -> vector<16x256xf32>
    %c3_287 = arith.constant 3 : index
    %c0_288 = arith.constant 0 : index
    %c0_289 = arith.constant 0 : index
    %343 = vector.load %arg30[%c3_287, %c0_288, %c0_289] : memref<4x256x256xf32, #tpu.memory_space<vmem>>, vector<1x256x256xf32>
    %344 = vector.shape_cast %343 : vector<1x256x256xf32> to vector<256x256xf32>
    %cst_290 = arith.constant dense<0.000000e+00> : vector<16x256xf32>
    %345 = tpu.matmul %342, %344, %cst_290 {dimension_numbers = #tpu.dot_dimension_numbers<[1], [0], [0], [1], [0, 0, 1, 1], [], []>} : vector<16x256xf32>, vector<256x256xf32>, vector<16x256xf32> -> vector<16x256xf32>
    %346 = arith.addf %339, %345 : vector<16x256xf32>
    %c0_291 = arith.constant 0 : index
    %c0_292 = arith.constant 0 : index
    %347 = vector.load %arg33[%c0_291, %c0_292] : memref<1x32xf32, #tpu.memory_space<vmem>>, vector<1x32xf32>
    %c0_293 = arith.constant 0 : index
    %c0_294 = arith.constant 0 : index
    %348 = vector.load %arg34[%c0_293, %c0_294] : memref<1x32xf32, #tpu.memory_space<vmem>>, vector<1x32xf32>
    %c0_295 = arith.constant 0 : index
    %c0_296 = arith.constant 0 : index
    %349 = vector.load %arg31[%c0_295, %c0_296] : memref<256x32xf32, #tpu.memory_space<vmem>>, vector<256x32xf32>
    %cst_297 = arith.constant dense<0.000000e+00> : vector<256xf32>
    %350 = vector.multi_reduction <add>, %346, %cst_297 [0] : vector<16x256xf32> to vector<256xf32>
    %351 = vector.shape_cast %350 : vector<256xf32> to vector<1x256xf32>
    %352 = arith.mulf %346, %346 : vector<16x256xf32>
    %cst_298 = arith.constant dense<0.000000e+00> : vector<256xf32>
    %353 = vector.multi_reduction <add>, %352, %cst_298 [0] : vector<16x256xf32> to vector<256xf32>
    %354 = vector.shape_cast %353 : vector<256xf32> to vector<1x256xf32>
    %cst_299 = arith.constant dense<0.000000e+00> : vector<1x32xf32>
    %355 = tpu.matmul %351, %349, %cst_299 {dimension_numbers = #tpu.dot_dimension_numbers<[1], [0], [0], [1], [0, 0, 1, 1], [], []>} : vector<1x256xf32>, vector<256x32xf32>, vector<1x32xf32> -> vector<1x32xf32>
    %cst_300 = arith.constant 7.812500e-03 : f32
    %356 = vector.broadcast %cst_300 : f32 to vector<1x32xf32>
    %357 = arith.mulf %355, %356 : vector<1x32xf32>
    %cst_301 = arith.constant dense<0.000000e+00> : vector<1x32xf32>
    %358 = tpu.matmul %354, %349, %cst_301 {dimension_numbers = #tpu.dot_dimension_numbers<[1], [0], [0], [1], [0, 0, 1, 1], [], []>} : vector<1x256xf32>, vector<256x32xf32>, vector<1x32xf32> -> vector<1x32xf32>
    %cst_302 = arith.constant 7.812500e-03 : f32
    %359 = vector.broadcast %cst_302 : f32 to vector<1x32xf32>
    %360 = arith.mulf %358, %359 : vector<1x32xf32>
    %361 = arith.mulf %357, %357 : vector<1x32xf32>
    %362 = arith.subf %360, %361 : vector<1x32xf32>
    %cst_303 = arith.constant 9.99999974E-6 : f32
    %363 = vector.broadcast %cst_303 : f32 to vector<1x32xf32>
    %364 = arith.addf %362, %363 : vector<1x32xf32>
    %365 = math.rsqrt %364 : vector<1x32xf32>
    %366 = arith.mulf %347, %365 : vector<1x32xf32>
    %367 = arith.mulf %357, %366 : vector<1x32xf32>
    %368 = arith.subf %348, %367 : vector<1x32xf32>
    %c0_304 = arith.constant 0 : index
    %c0_305 = arith.constant 0 : index
    %369 = vector.load %arg32[%c0_304, %c0_305] : memref<32x256xf32, #tpu.memory_space<vmem>>, vector<32x256xf32>
    %cst_306 = arith.constant dense<0.000000e+00> : vector<1x256xf32>
    %370 = tpu.matmul %366, %369, %cst_306 {dimension_numbers = #tpu.dot_dimension_numbers<[1], [0], [0], [1], [0, 0, 1, 1], [], []>} : vector<1x32xf32>, vector<32x256xf32>, vector<1x256xf32> -> vector<1x256xf32>
    %cst_307 = arith.constant dense<0.000000e+00> : vector<1x256xf32>
    %371 = tpu.matmul %368, %369, %cst_307 {dimension_numbers = #tpu.dot_dimension_numbers<[1], [0], [0], [1], [0, 0, 1, 1], [], []>} : vector<1x32xf32>, vector<32x256xf32>, vector<1x256xf32> -> vector<1x256xf32>
    %372 = vector.broadcast %370 : vector<1x256xf32> to vector<16x256xf32>
    %373 = arith.mulf %346, %372 : vector<16x256xf32>
    %374 = vector.broadcast %371 : vector<1x256xf32> to vector<16x256xf32>
    %375 = arith.addf %373, %374 : vector<16x256xf32>
    %cst_308 = arith.constant 0.000000e+00 : f32
    %376 = vector.broadcast %cst_308 : f32 to vector<16x256xf32>
    %377 = arith.cmpf oge, %375, %376 : vector<16x256xf32>
    %cst_309 = arith.constant 2.000000e-01 : f32
    %378 = vector.broadcast %cst_309 : f32 to vector<16x256xf32>
    %379 = arith.mulf %378, %375 : vector<16x256xf32>
    %380 = arith.select %377, %375, %379 : vector<16x256xi1>, vector<16x256xf32>
    %c0_310 = arith.constant 0 : index
    %c0_311 = arith.constant 0 : index
    %c0_312 = arith.constant 0 : index
    %381 = vector.load %arg35[%c0_310, %c0_311, %c0_312] : memref<4x32x16xf32, #tpu.memory_space<vmem>>, vector<1x32x16xf32>
    %382 = vector.shape_cast %381 : vector<1x32x16xf32> to vector<32x16xf32>
    %cst_313 = arith.constant dense<0.000000e+00> : vector<32x256xf32>
    %383 = tpu.matmul %382, %380, %cst_313 {dimension_numbers = #tpu.dot_dimension_numbers<[1], [0], [0], [1], [0, 0, 1, 1], [], []>} : vector<32x16xf32>, vector<16x256xf32>, vector<32x256xf32> -> vector<32x256xf32>
    %c0_314 = arith.constant 0 : index
    %c0_315 = arith.constant 0 : index
    %c0_316 = arith.constant 0 : index
    %384 = vector.load %arg36[%c0_314, %c0_315, %c0_316] : memref<4x256x128xf32, #tpu.memory_space<vmem>>, vector<1x256x128xf32>
    %385 = vector.shape_cast %384 : vector<1x256x128xf32> to vector<256x128xf32>
    %cst_317 = arith.constant dense<0.000000e+00> : vector<32x128xf32>
    %386 = tpu.matmul %383, %385, %cst_317 {dimension_numbers = #tpu.dot_dimension_numbers<[1], [0], [0], [1], [0, 0, 1, 1], [], []>} : vector<32x256xf32>, vector<256x128xf32>, vector<32x128xf32> -> vector<32x128xf32>
    %c1_318 = arith.constant 1 : index
    %c0_319 = arith.constant 0 : index
    %c0_320 = arith.constant 0 : index
    %387 = vector.load %arg35[%c1_318, %c0_319, %c0_320] : memref<4x32x16xf32, #tpu.memory_space<vmem>>, vector<1x32x16xf32>
    %388 = vector.shape_cast %387 : vector<1x32x16xf32> to vector<32x16xf32>
    %cst_321 = arith.constant dense<0.000000e+00> : vector<32x256xf32>
    %389 = tpu.matmul %388, %380, %cst_321 {dimension_numbers = #tpu.dot_dimension_numbers<[1], [0], [0], [1], [0, 0, 1, 1], [], []>} : vector<32x16xf32>, vector<16x256xf32>, vector<32x256xf32> -> vector<32x256xf32>
    %c1_322 = arith.constant 1 : index
    %c0_323 = arith.constant 0 : index
    %c0_324 = arith.constant 0 : index
    %390 = vector.load %arg36[%c1_322, %c0_323, %c0_324] : memref<4x256x128xf32, #tpu.memory_space<vmem>>, vector<1x256x128xf32>
    %391 = vector.shape_cast %390 : vector<1x256x128xf32> to vector<256x128xf32>
    %cst_325 = arith.constant dense<0.000000e+00> : vector<32x128xf32>
    %392 = tpu.matmul %389, %391, %cst_325 {dimension_numbers = #tpu.dot_dimension_numbers<[1], [0], [0], [1], [0, 0, 1, 1], [], []>} : vector<32x256xf32>, vector<256x128xf32>, vector<32x128xf32> -> vector<32x128xf32>
    %393 = arith.addf %386, %392 : vector<32x128xf32>
    %c2_326 = arith.constant 2 : index
    %c0_327 = arith.constant 0 : index
    %c0_328 = arith.constant 0 : index
    %394 = vector.load %arg35[%c2_326, %c0_327, %c0_328] : memref<4x32x16xf32, #tpu.memory_space<vmem>>, vector<1x32x16xf32>
    %395 = vector.shape_cast %394 : vector<1x32x16xf32> to vector<32x16xf32>
    %cst_329 = arith.constant dense<0.000000e+00> : vector<32x256xf32>
    %396 = tpu.matmul %395, %380, %cst_329 {dimension_numbers = #tpu.dot_dimension_numbers<[1], [0], [0], [1], [0, 0, 1, 1], [], []>} : vector<32x16xf32>, vector<16x256xf32>, vector<32x256xf32> -> vector<32x256xf32>
    %c2_330 = arith.constant 2 : index
    %c0_331 = arith.constant 0 : index
    %c0_332 = arith.constant 0 : index
    %397 = vector.load %arg36[%c2_330, %c0_331, %c0_332] : memref<4x256x128xf32, #tpu.memory_space<vmem>>, vector<1x256x128xf32>
    %398 = vector.shape_cast %397 : vector<1x256x128xf32> to vector<256x128xf32>
    %cst_333 = arith.constant dense<0.000000e+00> : vector<32x128xf32>
    %399 = tpu.matmul %396, %398, %cst_333 {dimension_numbers = #tpu.dot_dimension_numbers<[1], [0], [0], [1], [0, 0, 1, 1], [], []>} : vector<32x256xf32>, vector<256x128xf32>, vector<32x128xf32> -> vector<32x128xf32>
    %400 = arith.addf %393, %399 : vector<32x128xf32>
    %c3_334 = arith.constant 3 : index
    %c0_335 = arith.constant 0 : index
    %c0_336 = arith.constant 0 : index
    %401 = vector.load %arg35[%c3_334, %c0_335, %c0_336] : memref<4x32x16xf32, #tpu.memory_space<vmem>>, vector<1x32x16xf32>
    %402 = vector.shape_cast %401 : vector<1x32x16xf32> to vector<32x16xf32>
    %cst_337 = arith.constant dense<0.000000e+00> : vector<32x256xf32>
    %403 = tpu.matmul %402, %380, %cst_337 {dimension_numbers = #tpu.dot_dimension_numbers<[1], [0], [0], [1], [0, 0, 1, 1], [], []>} : vector<32x16xf32>, vector<16x256xf32>, vector<32x256xf32> -> vector<32x256xf32>
    %c3_338 = arith.constant 3 : index
    %c0_339 = arith.constant 0 : index
    %c0_340 = arith.constant 0 : index
    %404 = vector.load %arg36[%c3_338, %c0_339, %c0_340] : memref<4x256x128xf32, #tpu.memory_space<vmem>>, vector<1x256x128xf32>
    %405 = vector.shape_cast %404 : vector<1x256x128xf32> to vector<256x128xf32>
    %cst_341 = arith.constant dense<0.000000e+00> : vector<32x128xf32>
    %406 = tpu.matmul %403, %405, %cst_341 {dimension_numbers = #tpu.dot_dimension_numbers<[1], [0], [0], [1], [0, 0, 1, 1], [], []>} : vector<32x256xf32>, vector<256x128xf32>, vector<32x128xf32> -> vector<32x128xf32>
    %407 = arith.addf %400, %406 : vector<32x128xf32>
    %c0_342 = arith.constant 0 : index
    %c0_343 = arith.constant 0 : index
    %408 = vector.load %arg37[%c0_342, %c0_343] : memref<1x128xf32, #tpu.memory_space<vmem>>, vector<1x128xf32>
    %409 = vector.broadcast %408 : vector<1x128xf32> to vector<32x128xf32>
    %410 = arith.addf %407, %409 : vector<32x128xf32>
    %cst_344 = arith.constant 0.000000e+00 : f32
    %411 = vector.broadcast %cst_344 : f32 to vector<32x128xf32>
    %412 = arith.subf %411, %410 : vector<32x128xf32>
    %413 = math.exp %412 : vector<32x128xf32>
    %cst_345 = arith.constant 1.000000e+00 : f32
    %414 = vector.broadcast %cst_345 : f32 to vector<32x128xf32>
    %415 = arith.addf %414, %413 : vector<32x128xf32>
    %cst_346 = arith.constant 1.000000e+00 : f32
    %416 = vector.broadcast %cst_346 : f32 to vector<32x128xf32>
    %417 = arith.divf %416, %415 : vector<32x128xf32>
    %c0_347 = arith.constant 0 : index
    %c0_348 = arith.constant 0 : index
    %418 = vector.load %arg38[%c0_347, %c0_348] : memref<32x128xf32, #tpu.memory_space<vmem>>, vector<32x128xf32>
    tpu.vector_store %arg38[%c0_347, %c0_348], %417 {strides = array<i32>} : memref<32x128xf32, #tpu.memory_space<vmem>>, vector<32x128xf32>,
    return
  }
}

</mosaic_0001>

<bundles_post_ra>
// kernel: squeeze.2
= control target key start
LH: loop header
LB: loop body
LE: loop exit
PB: predicated region body
PF: predicated region fallthrough
CT: control target
= control target key end

     0   :  { %s139_s0 = inlined_call_operand.vmem [shape: s32[32], index: 0, kind: input, shape index: {}]   ;;  %s140_s1 = inlined_call_operand.hbm [shape: s32[2,4,4], index: 1, kind: output, shape index: {}]  }
   0x1   :  { %v6_v0 = vld [vmem:[%s139_s0] sm:$0x1] }
   0x2   :  { %7 = vst [vmem:[#allocation3] sm:$0x1] %v6_v0 }
   0x3   :  { %2 = vsyncpa [#allocation1], 0  ;;  %s107_s0 = smov 124   ;;  %s108_s8 = smov 116   ;;  %vm9_vm0 = vcmask 31744  }
   0x4   :  { %s109_s9 = smov 120   ;;  %s110_s10 = smov 112  }
   0x5   :  { %s111_s11 = smov 108   ;;  %s112_s12 = smov 104  }
   0x6   :  { %s113_s13 = smov 100   ;;  %s114_s14 = smov [#allocation0]  }
   0x7   :  { %s71_s15 = sshll.u32 %s114_s14, 4  ;;  %s72_s15 = int_to_ptr.vmem [resolvable:$true] %s71_s15 }
   0x8   :  { %s85_s16 = scalar_lea.vmem %s72_s15, 128  ;;  %p90_p1 = scmp.lt.s32.totalorder %s72_s15, %s72_s15 }
   0x9   :  { %v11_v1 = vld [vmem:[#allocation3] sm:$0x1]   ;;  %p86_p0 = scmp.ne.s32.totalorder %s72_s15, %s85_s16  ;;  %p91_p2 = scmp.lt.s32.totalorder %s85_s16, %s85_s16 }
   0xa   :  { %v23_v2 = vld [vmem:[#allocation3] sm:$0x1]   ;;  %12 = vrot.lane.b32.xlu0 %v11_v1, %s107_s0 }
   0xb   :  { %24 = vrot.lane.b32.xlu1 %v23_v2, %s108_s8  ;;  %v17_v3 = vld [vmem:[#allocation3] sm:$0x1]   ;;  %p92_p3 = por %p91_p2, %p90_p1 }
   0xc   :  { %v29_v4 = vld [vmem:[#allocation3] sm:$0x1]  }
   0xd   :  { %v8_v5 = vld [vmem:[#allocation3] sm:$0x1]   ;;  %p93_p4 = pnand %p92_p3, %p86_p0 }
   0xe   :  { %10 = vst.msk [vmem:[#allocation2] sm:$0x1] %vm9_vm0, %v8_v5   ;;  %18 = vrot.lane.b32.xlu0 %v17_v3, %s109_s9  ;;  %v35_v6 = vld [vmem:[#allocation3] sm:$0x1]  }
   0xf   :  { %30 = vrot.lane.b32.xlu1 %v29_v4, %s110_s10  ;;  %v41_v7 = vld [vmem:[#allocation3] sm:$0x1]  }
  0x10   :  { %v47_v8 = vld [vmem:[#allocation3] sm:$0x1]  }
  0x12   :  { %36 = vrot.lane.b32.xlu0 %v35_v6, %s111_s11 }
  0x13   :  { %42 = vrot.lane.b32.xlu1 %v41_v7, %s112_s12 }
  0x16   :  { %48 = vrot.lane.b32.xlu0 %v47_v8, %s113_s13 }
  0x7c   :  { %v13_v9 = vpop.permute.xlu0 %12  }
  0x7d   :  { %v25_v10 = vpop.permute.xlu1 %24   ;;  %16 = vst.msk [vmem:[#allocation2 + $0x1] sm:$0x1] %vm9_vm0, %v13_v9  }
  0x7e   :  { %28 = vst.msk [vmem:[#allocation2 + $0x3] sm:$0x1] %vm9_vm0, %v25_v10  }
  0x80   :  { %v19_v11 = vpop.permute.xlu0 %18  }
  0x81   :  { %v31_v12 = vpop.permute.xlu1 %30   ;;  %22 = vst.msk [vmem:[#allocation2 + $0x2] sm:$0x1] %vm9_vm0, %v19_v11  }
  0x82   :  { %34 = vst.msk [vmem:[#allocation2 + $0x8] sm:$0x1] %vm9_vm0, %v31_v12  }
  0x84   :  { %v37_v13 = vpop.permute.xlu0 %36  }
  0x85   :  { %v43_v14 = vpop.permute.xlu1 %42   ;;  %40 = vst.msk [vmem:[#allocation2 + $0x9] sm:$0x1] %vm9_vm0, %v37_v13  }
  0x86   :  { %46 = vst.msk [vmem:[#allocation2 + $0xa] sm:$0x1] %vm9_vm0, %v43_v14  }
  0x88   :  { %v49_v15 = vpop.permute.xlu0 %48   ;;  %v57_v16 = vld [vmem:[#allocation2] sm:$0xf] }
  0x89   :  { %52 = vst.msk [vmem:[#allocation2 + $0xb] sm:$0x1] %vm9_vm0, %v49_v15   ;;  %60 = vst [vmem:[#allocation0] sm:$0xf] %v57_v16 }
  0x90   :  { %v62_v17 = vld [vmem:[#allocation2 + $0x8] sm:$0xf] }
  0x91   :  { %66 = vst [vmem:[#allocation0 + $0x4] sm:$0xf] %v62_v17 }
  0x92   :  { %96 = shalt.err (!%p93_p4)
}
  0x93   :  { %74 = dma.vmem_to_hbm [thread:$0]  %s72_s15, 128, %s140_s1, [#allocation1]  }
  0x94   :  { %105 = dma.done.wait [#allocation1], 128  }
  0x95   :  { %106 = vsyncadd [#allocation1], 4294967168 }
  0x96   :  { %76 = vsyncpa [#allocation1], 1 }

// kernel: vqvae_forward.1
= control target key start
LH: loop header
LB: loop body
LE: loop exit
PB: predicated region body
PF: predicated region fallthrough
CT: control target
= control target key end

     0   :  { %s10302_s6 = smov 1   ;;  %s10303_s10 = smov 2   ;;  %s11984_s0 = inlined_call_operand.smem [shape: u32[41], index: -1, kind: input, shape index: {}] }
   0x1   :  { %s10373_s5 = sld [smem:[%s11984_s0]]   ;;  %s10304_s14 = smov 3  }
   0x2   :  { %s10378_s9 = sld [smem:[%s11984_s0 + %s10302_s6]]   ;;  %s10305_s18 = smov 4  }
   0x3   :  { %s10383_s13 = sld [smem:[%s11984_s0 + %s10303_s10]]   ;;  %s10306_s22 = smov 5  }
   0x4   :  { %s10388_s17 = sld [smem:[%s11984_s0 + %s10304_s14]]   ;;  %s10307_s26 = smov 6  }
   0x5   :  { %s10393_s21 = sld [smem:[%s11984_s0 + %s10305_s18]]   ;;  %s10308_s30 = smov 7  }
   0x6   :  { %s10398_s25 = sld [smem:[%s11984_s0 + %s10306_s22]]   ;;  %s10309_s4 = smov 8  }
   0x7   :  { %12001 = sst [smem:[#allocation39_spill]] %s10373_s5  ;;  %s10310_s10 = smov 9  }
   0x8   :  { %s10403_s29 = sld [smem:[%s11984_s0 + %s10307_s26]]   ;;  %s10311_s15 = smov 10  }
   0x9   :  { %12002 = sst [smem:[#allocation40_spill]] %s10383_s13  ;;  %s10312_s20 = smov 11  }
   0xa   :  { %12003 = sst [smem:[#allocation41_spill]] %s10388_s17  ;;  %s10313_s26 = smov 12  }
   0xb   :  { %s10408_s3 = sld [smem:[%s11984_s0 + %s10308_s30]]   ;;  %s10314_s1 = smov 13  }
   0xc   :  { %12004 = sst [smem:[#allocation42_spill]] %s10398_s25  ;;  %s10315_s7 = smov 14  }
   0xd   :  { %s10413_s8 = sld [smem:[%s11984_s0 + %s10309_s4]]   ;;  %s10317_s22 = smov 16  }
   0xe   :  { %12005 = sst [smem:[#allocation43_spill]] %s10403_s29  ;;  %s10318_s28 = smov 17  }
   0xf   :  { %s10418_s14 = sld [smem:[%s11984_s0 + %s10310_s10]]  }
  0x10   :  { %s10423_s19 = sld [smem:[%s11984_s0 + %s10311_s15]]   ;;  %s10316_s15 = smov 15  }
  0x11   :  { %s10428_s24 = sld [smem:[%s11984_s0 + %s10312_s20]]  }
  0x12   :  { %s10433_s30 = sld [smem:[%s11984_s0 + %s10313_s26]]  }
  0x13   :  { %12006 = sst [smem:[#allocation44_spill]] %s10413_s8 }
  0x14   :  { %s10438_s6 = sld [smem:[%s11984_s0 + %s10314_s1]]  }
  0x15   :  { %12007 = sst [smem:[#allocation45_spill]] %s10418_s14 }
  0x16   :  { %12008 = sst [smem:[#allocation46_spill]] %s10423_s19 }
  0x17   :  { %12009 = sst [smem:[#allocation47_spill]] %s10428_s24 }
  0x18   :  { %12010 = sst [smem:[#allocation48_spill]] %s10433_s30 }
  0x19   :  { %s10443_s12 = sld [smem:[%s11984_s0 + %s10315_s7]]   ;;  %s10319_s7 = smov 18  }
  0x1a   :  { %s10448_s20 = sld [smem:[%s11984_s0 + %s10316_s15]]   ;;  %s10320_s15 = smov 19  }
  0x1b   :  { %s10453_s27 = sld [smem:[%s11984_s0 + %s10317_s22]]   ;;  %s10321_s22 = smov 20  }
  0x1c   :  { %s10458_s4 = sld [smem:[%s11984_s0 + %s10318_s28]]   ;;  %s10322_s28 = smov 21  }
  0x1d   :  { %s10463_s30 = sld [smem:[%s11984_s0 + %s10319_s7]]   ;;  %s10323_s7 = smov 22  }
  0x1e   :  { %s10483_s24 = sld [smem:[%s11984_s0 + %s10323_s7]]   ;;  %s10327_s7 = smov 26  }
  0x1f   :  { %12011 = sst [smem:[#allocation49_spill]] %s10443_s12 }
  0x20   :  { %12012 = sst [smem:[#allocation50_spill]] %s10448_s20 }
  0x21   :  { %12013 = sst [smem:[#allocation51_spill]] %s10453_s27 }
  0x22   :  { %12014 = sst [smem:[#allocation52_spill]] %s10458_s4 }
  0x23   :  { %s10468_s20 = sld [smem:[%s11984_s0 + %s10320_s15]]   ;;  %s10324_s15 = smov 23  }
  0x24   :  { %s10473_s27 = sld [smem:[%s11984_s0 + %s10321_s22]]   ;;  %s10325_s22 = smov 24  }
  0x25   :  { %s10478_s4 = sld [smem:[%s11984_s0 + %s10322_s28]]   ;;  %s10326_s28 = smov 25  }
  0x26   :  { %s10493_s12 = sld [smem:[%s11984_s0 + %s10325_s22]]   ;;  %s10329_s22 = smov 28  }
  0x27   :  { %s10503_s19 = sld [smem:[%s11984_s0 + %s10327_s7]]   ;;  %s10331_s7 = smov 30  }
  0x28   :  { %s10513_s8 = sld [smem:[%s11984_s0 + %s10329_s22]]   ;;  %s10333_s22 = smov 32  }
  0x29   :  { %12015 = sst [smem:[#allocation53_spill]] %s10468_s20 }
  0x2a   :  { %s10488_s20 = sld [smem:[%s11984_s0 + %s10324_s15]]   ;;  %s10328_s15 = smov 27  }
  0x2b   :  { %12016 = sst [smem:[#allocation54_spill]] %s10478_s4 }
  0x2c   :  { %s10498_s4 = sld [smem:[%s11984_s0 + %s10326_s28]]   ;;  %s10330_s28 = smov 29  }
  0x2d   :  { %12018 = sst [smem:[#allocation56_spill]] %s10503_s19 }
  0x2e   :  { %s10508_s14 = sld [smem:[%s11984_s0 + %s10328_s15]]   ;;  %s10332_s15 = smov 31  }
  0x2f   :  { %s10523_s19 = sld [smem:[%s11984_s0 + %s10331_s7]]   ;;  %s10335_s7 = smov 34  }
  0x30   :  { %s10528_s29 = sld [smem:[%s11984_s0 + %s10332_s15]]   ;;  %s10336_s15 = smov 35  }
  0x31   :  { %s10533_s25 = sld [smem:[%s11984_s0 + %s10333_s22]]   ;;  %s10337_s22 = smov 36  }
  0x32   :  { %12017 = sst [smem:[#allocation55_spill]] %s10498_s4 }
  0x33   :  { %s10518_s4 = sld [smem:[%s11984_s0 + %s10330_s28]]   ;;  %s10334_s28 = smov 33  }
  0x34   :  { %s10543_s17 = sld [smem:[%s11984_s0 + %s10335_s7]]   ;;  %s10339_s7 = smov 38  }
  0x35   :  { %s10553_s13 = sld [smem:[%s11984_s0 + %s10337_s22]]   ;;  %s10341_s22 = smov 40  }
  0x36   :  { %12020 = sst [smem:[#allocation58_spill]] %s10528_s29 }
  0x37   :  { %s10548_s29 = sld [smem:[%s11984_s0 + %s10336_s15]]   ;;  %s10340_s15 = smov 39  }
  0x39   :  { %12019 = sst [smem:[#allocation57_spill]] %s10518_s4 }
  0x3a   :  { %s10538_s4 = sld [smem:[%s11984_s0 + %s10334_s28]]   ;;  %s10338_s28 = smov 37  }
  0x3b   :  { %12021 = sst [smem:[#allocation59_spill]] %s10543_s17 }
  0x3c   :  { %12023 = sst [smem:[#allocation61_spill]] %s10553_s13 }
  0x3d   :  { %12022 = sst [smem:[#allocation60_spill]] %s10548_s29 }
  0x3e   :  { %s10558_s5 = sld [smem:[%s11984_s0 + %s10338_s28]]  }
  0x3f   :  { %s10563_s17 = sld [smem:[%s11984_s0 + %s10339_s7]]  }
  0x40   :  { %s10568_s29 = sld [smem:[%s11984_s0 + %s10340_s15]]  }
  0x41   :  { %s10573_s13 = sld [smem:[%s11984_s0 + %s10341_s22]]  }
  0x42   :  { %87 = vsyncpa [#allocation3], 0 }
  0x43   :  { %88 = vsyncpa [#allocation6], 0 }
  0x44   :  { %89 = vsyncpa [#allocation9], 0 }
  0x45   :  { %90 = vsyncpa [#allocation12], 0 }
  0x46   :  { %91 = vsyncpa [#allocation15], 0 }
  0x47   :  { %92 = vsyncpa [#allocation18], 0 }
  0x48   :  { %93 = vsyncpa [#allocation21], 0 }
  0x49   :  { %94 = vsyncpa [#allocation24], 0 }
  0x4a   :  { %95 = vsyncpa [#allocation27], 0 }
  0x4b   :  { %96 = vsyncpa [#allocation4], 0  ;;  %s10342_s28 = smov [#allocation5]  }
  0x4c   :  { %s120_s1 = sshll.u32 %s10342_s28, 4  ;;  %s121_s1 = int_to_ptr.vmem [resolvable:$true] %s120_s1 }
  0x4d   :  { %s9950_s2 = scalar_lea.vmem %s121_s1, 1024  ;;  %p9955_p1 = scmp.lt.s32.totalorder %s121_s1, %s121_s1 }
  0x4e   :  { %p9951_p0 = scmp.ne.s32.totalorder %s121_s1, %s9950_s2  ;;  %p9956_p2 = scmp.lt.s32.totalorder %s9950_s2, %s9950_s2 }
  0x50   :  { %p9957_p3 = por %p9956_p2, %p9955_p1 }
  0x52   :  { %p9958_p4 = pnand %p9957_p3, %p9951_p0 }
  0x54   :  { %9961 = shalt.err (!%p9958_p4)
}
  0x55   :  { %s10343_s0 = smov 256   ;;  %s10344_s7 = smov 16  }
  0x56   :  { %126 = dma.hbm_to_vmem [thread:$0]  %s10393_s21, 1024, %s121_s1, [#allocation6], %s10343_s0, %s10343_s0, %s10344_s7  }
  0x57   :  { %s10345_s10 = smov [#allocation8]   ;;  %s10346_s15 = smov [#allocation11]  }
  0x58   :  { %s158_s11 = sshll.u32 %s10345_s10, 4  ;;  %s192_s16 = sshll.u32 %s10346_s15, 4  ;;  %s159_s11 = int_to_ptr.vmem [resolvable:$true] %s158_s11  ;;  %s193_s16 = int_to_ptr.vmem [resolvable:$true] %s192_s16 }
  0x59   :  { %s9970_s18 = scalar_lea.vmem %s159_s11, 384  ;;  %p9975_p6 = scmp.lt.s32.totalorder %s159_s11, %s159_s11 }
  0x5a   :  { %p9971_p5 = scmp.ne.s32.totalorder %s159_s11, %s9970_s18  ;;  %p9976_p7 = scmp.lt.s32.totalorder %s9970_s18, %s9970_s18 }
  0x5c   :  { %p9977_p8 = por %p9976_p7, %p9975_p6 }
  0x5e   :  { %p9978_p9 = pnand %p9977_p8, %p9971_p5 }
  0x60   :  { %9981 = shalt.err (!%p9978_p9)
}
  0x61   :  { %s10347_s22 = smov 128   ;;  %s10348_s23 = smov 8  }
  0x62   :  { %164 = dma.hbm_to_vmem [thread:$0]  %s10438_s6, 384, %s159_s11, [#allocation9], %s10347_s22, %s10347_s22, %s10348_s23  }
  0x63   :  { %s9990_s21 = scalar_lea.vmem %s193_s16, 1024  ;;  %p9995_p11 = scmp.lt.s32.totalorder %s193_s16, %s193_s16 }
  0x64   :  { %p9991_p10 = scmp.ne.s32.totalorder %s193_s16, %s9990_s21  ;;  %p9996_p12 = scmp.lt.s32.totalorder %s9990_s21, %s9990_s21 }
  0x66   :  { %p9997_p13 = por %p9996_p12, %p9995_p11 }
  0x68   :  { %p9998_p0 = pnand %p9997_p13, %p9991_p10 }
  0x6a   :  { %10001 = shalt.err (!%p9998_p0)
}
  0x6b   :  { %198 = dma.hbm_to_vmem [thread:$0]  %s10473_s27, 1024, %s193_s16, [#allocation12], %s10347_s22, %s10347_s22, %s10348_s23  }
  0x6c   :  { %s10349_s26 = smov [#allocation14]   ;;  %s10350_s1 = smov [#allocation17]  }
  0x6d   :  { %s216_s28 = sshll.u32 %s10349_s26, 4  ;;  %s245_s2 = sshll.u32 %s10350_s1, 4  ;;  %s217_s28 = int_to_ptr.vmem [resolvable:$true] %s216_s28  ;;  %s246_s2 = int_to_ptr.vmem [resolvable:$true] %s245_s2 }
  0x6e   :  { %s10010_s10 = scalar_lea.vmem %s217_s28, 384  ;;  %p10015_p2 = scmp.lt.s32.totalorder %s217_s28, %s217_s28 }
  0x6f   :  { %p10011_p1 = scmp.ne.s32.totalorder %s217_s28, %s10010_s10  ;;  %p10016_p3 = scmp.lt.s32.totalorder %s10010_s10, %s10010_s10 }
  0x71   :  { %p10017_p4 = por %p10016_p3, %p10015_p2 }
  0x73   :  { %p10018_p5 = pnand %p10017_p4, %p10011_p1 }
  0x75   :  { %10021 = shalt.err (!%p10018_p5)
}
  0x76   :  { %222 = dma.hbm_to_vmem [thread:$0]  %s10488_s20, 384, %s217_s28, [#allocation15], %s10347_s22, %s10347_s22, %s10348_s23  }
  0x77   :  { %s10030_s6 = scalar_lea.vmem %s246_s2, 16  ;;  %s10034_s27 = scalar_lea.vmem %s246_s2, 32 }
  0x78   :  { %p10031_p6 = scmp.ne.s32.totalorder %s246_s2, %s10030_s6  ;;  %p10035_p7 = scmp.lt.s32.totalorder %s246_s2, %s246_s2 }
  0x79   :  { %p10036_p8 = scmp.lt.s32.totalorder %s10034_s27, %s10030_s6 }
  0x7b   :  { %p10037_p9 = por %p10036_p8, %p10035_p7 }
  0x7d   :  { %p10038_p10 = pnand %p10037_p9, %p10031_p6 }
  0x7f   :  { %10041 = shalt.err (!%p10038_p10)
}
  0x80   :  { %248 = dma.hbm_to_vmem [thread:$0]  %s10508_s14, 16, %s246_s2, [#allocation18]  }
  0x81   :  { %s10351_s11 = smov [#allocation20]   ;;  %s10352_s16 = smov [#allocation23]  }
  0x82   :  { %s266_s15 = sshll.u32 %s10351_s11, 4  ;;  %s293_s18 = sshll.u32 %s10352_s16, 4  ;;  %s267_s15 = int_to_ptr.vmem [resolvable:$true] %s266_s15  ;;  %s294_s18 = int_to_ptr.vmem [resolvable:$true] %s293_s18 }
  0x83   :  { %s10050_s21 = scalar_lea.vmem %s267_s15, 32768  ;;  %p10055_p12 = scmp.lt.s32.totalorder %s267_s15, %s267_s15 }
  0x84   :  { %p10051_p11 = scmp.ne.s32.totalorder %s267_s15, %s10050_s21  ;;  %p10056_p13 = scmp.lt.s32.totalorder %s10050_s21, %s10050_s21 }
  0x86   :  { %p10057_p0 = por %p10056_p13, %p10055_p12 }
  0x88   :  { %p10058_p1 = pnand %p10057_p0, %p10051_p11 }
  0x8a   :  { %10061 = shalt.err (!%p10058_p1)
}
  0x8b   :  { %272 = dma.hbm_to_vmem [thread:$0]  %s10523_s19, 32768, %s267_s15, [#allocation21], %s10343_s0, %s10343_s0, %s10344_s7  }
  0x8c   :  { %s10070_s20 = scalar_lea.vmem %s294_s18, 16  ;;  %s10074_s14 = scalar_lea.vmem %s294_s18, 32 }
  0x8d   :  { %p10071_p2 = scmp.ne.s32.totalorder %s294_s18, %s10070_s20  ;;  %p10075_p3 = scmp.lt.s32.totalorder %s294_s18, %s294_s18 }
  0x8e   :  { %p10076_p4 = scmp.lt.s32.totalorder %s10074_s14, %s10070_s20 }
  0x90   :  { %p10077_p5 = por %p10076_p4, %p10075_p3 }
  0x92   :  { %p10078_p6 = pnand %p10077_p5, %p10071_p2 }
  0x94   :  { %10081 = shalt.err (!%p10078_p6)
}
  0x95   :  { %296 = dma.hbm_to_vmem [thread:$0]  %s10538_s4, 16, %s294_s18, [#allocation24]  }
  0x96   :  { %s10353_s26 = smov [#allocation2]   ;;  %s10354_s1 = smov [#allocation7]  }
  0x97   :  { %s104_s28 = sshll.u32 %s10353_s26, 4  ;;  %s136_s2 = sshll.u32 %s10354_s1, 4  ;;  %s105_s28 = int_to_ptr.vmem [resolvable:$true] %s104_s28  ;;  %s137_s2 = int_to_ptr.vmem [resolvable:$true] %s136_s2 }
  0x98   :  { %s10090_s10 = scalar_lea.vmem %s105_s28, 1024  ;;  %p10095_p8 = scmp.lt.s32.totalorder %s105_s28, %s105_s28 }
  0x99   :  { %p10091_p7 = scmp.ne.s32.totalorder %s105_s28, %s10090_s10  ;;  %p10096_p9 = scmp.lt.s32.totalorder %s10090_s10, %s10090_s10 }
  0x9b   :  { %p10097_p10 = por %p10096_p9, %p10095_p8 }
  0x9d   :  { %p10098_p11 = pnand %p10097_p10, %p10091_p7 }
  0x9f   :  { %10101 = shalt.err (!%p10098_p11)
}
  0xa0   :  { %110 = dma.hbm_to_vmem [thread:$0]  %s10378_s9, 1024, %s105_s28, [#allocation3], %s10347_s22, %s10347_s22, %s10348_s23  }
  0xa1   :  { %s10110_s19 = scalar_lea.vmem %s137_s2, 512  ;;  %p10115_p13 = scmp.lt.s32.totalorder %s137_s2, %s137_s2 }
  0xa2   :  { %p10111_p12 = scmp.ne.s32.totalorder %s137_s2, %s10110_s19  ;;  %p10116_p0 = scmp.lt.s32.totalorder %s10110_s19, %s10110_s19 }
  0xa4   :  { %p10117_p1 = por %p10116_p0, %p10115_p13 }
  0xa6   :  { %p10118_p2 = pnand %p10117_p1, %p10111_p12 }
  0xa8   :  { %10121 = shalt.err (!%p10118_p2)
}
  0xa9   :  { %142 = dma.hbm_to_vmem [thread:$0]  %s10408_s3, 512, %s137_s2, [#allocation6], %s10347_s22, %s10347_s22, %s10348_s23  }
  0xaa   :  { %s10355_s4 = smov [#allocation10]   ;;  %s10356_s27 = smov [#allocation13]  }
  0xab   :  { %s178_s6 = sshll.u32 %s10355_s4, 4  ;;  %s207_s11 = sshll.u32 %s10356_s27, 4  ;;  %s179_s6 = int_to_ptr.vmem [resolvable:$true] %s178_s6  ;;  %s208_s11 = int_to_ptr.vmem [resolvable:$true] %s207_s11 }
  0xac   :  { %s10130_s15 = scalar_lea.vmem %s179_s6, 512  ;;  %p10135_p4 = scmp.lt.s32.totalorder %s179_s6, %s179_s6 }
  0xad   :  { %p10131_p3 = scmp.ne.s32.totalorder %s179_s6, %s10130_s15  ;;  %p10136_p5 = scmp.lt.s32.totalorder %s10130_s15, %s10130_s15 }
  0xaf   :  { %p10137_p6 = por %p10136_p5, %p10135_p4 }
  0xb1   :  { %p10138_p7 = pnand %p10137_p6, %p10131_p3 }
  0xb3   :  { %10141 = shalt.err (!%p10138_p7)
}
  0xb4   :  { %184 = dma.hbm_to_vmem [thread:$0]  %s10463_s30, 512, %s179_s6, [#allocation9], %s10347_s22, %s10347_s22, %s10348_s23  }
  0xb5   :  { %s10150_s9 = scalar_lea.vmem %s208_s11, 16  ;;  %s10154_s3 = scalar_lea.vmem %s208_s11, 32 }
  0xb6   :  { %p10151_p8 = scmp.ne.s32.totalorder %s208_s11, %s10150_s9  ;;  %p10155_p9 = scmp.lt.s32.totalorder %s208_s11, %s208_s11 }
  0xb7   :  { %p10156_p10 = scmp.lt.s32.totalorder %s10154_s3, %s10150_s9 }
  0xb9   :  { %p10157_p11 = por %p10156_p10, %p10155_p9 }
  0xbb   :  { %p10158_p12 = pnand %p10157_p11, %p10151_p8 }
  0xbd   :  { %10161 = shalt.err (!%p10158_p12)
}
  0xbe   :  { %210 = dma.hbm_to_vmem [thread:$0]  %s10483_s24, 16, %s208_s11, [#allocation12]  }
  0xbf   :  { %s10357_s16 = smov [#allocation16]   ;;  %s10358_s21 = smov [#allocation19]  }
  0xc0   :  { %s228_s18 = sshll.u32 %s10357_s16, 4  ;;  %s255_s20 = sshll.u32 %s10358_s21, 4  ;;  %s229_s18 = int_to_ptr.vmem [resolvable:$true] %s228_s18  ;;  %s256_s20 = int_to_ptr.vmem [resolvable:$true] %s255_s20 }
  0xc1   :  { %s10170_s14 = scalar_lea.vmem %s229_s18, 6144  ;;  %p10175_p0 = scmp.lt.s32.totalorder %s229_s18, %s229_s18 }
  0xc2   :  { %p10171_p13 = scmp.ne.s32.totalorder %s229_s18, %s10170_s14  ;;  %p10176_p1 = scmp.lt.s32.totalorder %s10170_s14, %s10170_s14 }
  0xc4   :  { %p10177_p2 = por %p10176_p1, %p10175_p0 }
  0xc6   :  { %p10178_p3 = pnand %p10177_p2, %p10171_p13 }
  0xc8   :  { %10181 = shalt.err (!%p10178_p3)
}
  0xc9   :  { %234 = dma.hbm_to_vmem [thread:$0]  %s10493_s12, 6144, %s229_s18, [#allocation15], %s10343_s0, %s10343_s0, %s10344_s7  }
  0xca   :  { %s10190_s30 = scalar_lea.vmem %s256_s20, 16  ;;  %s10194_s24 = scalar_lea.vmem %s256_s20, 32 }
  0xcb   :  { %p10191_p4 = scmp.ne.s32.totalorder %s256_s20, %s10190_s30  ;;  %p10195_p5 = scmp.lt.s32.totalorder %s256_s20, %s256_s20 }
  0xcc   :  { %p10196_p6 = scmp.lt.s32.totalorder %s10194_s24, %s10190_s30 }
  0xce   :  { %p10197_p7 = por %p10196_p6, %p10195_p5 }
  0xd0   :  { %p10198_p8 = pnand %p10197_p7, %p10191_p4 }
  0xd2   :  { %10201 = shalt.err (!%p10198_p8)
}
  0xd3   :  { %258 = dma.hbm_to_vmem [thread:$0]  %s10513_s8, 16, %s256_s20, [#allocation18]  }
  0xd4   :  { %s10359_s22 = smov [#allocation22]   ;;  %s10360_s26 = smov [#allocation25]  }
  0xd5   :  { %s280_s23 = sshll.u32 %s10359_s22, 4  ;;  %s303_s28 = sshll.u32 %s10360_s26, 4  ;;  %s281_s23 = int_to_ptr.vmem [resolvable:$true] %s280_s23  ;;  %s304_s28 = int_to_ptr.vmem [resolvable:$true] %s303_s28 }
  0xd6   :  { %s10210_s1 = scalar_lea.vmem %s281_s23, 1024  ;;  %p10215_p10 = scmp.lt.s32.totalorder %s281_s23, %s281_s23 }
  0xd7   :  { %p10211_p9 = scmp.ne.s32.totalorder %s281_s23, %s10210_s1  ;;  %p10216_p11 = scmp.lt.s32.totalorder %s10210_s1, %s10210_s1 }
  0xd9   :  { %p10217_p12 = por %p10216_p11, %p10215_p10 }
  0xdb   :  { %p10218_p13 = pnand %p10217_p12, %p10211_p9 }
  0xdd   :  { %10221 = shalt.err (!%p10218_p13)
}
  0xde   :  { %286 = dma.hbm_to_vmem [thread:$0]  %s10533_s25, 1024, %s281_s23, [#allocation21], %s10343_s0, %s10343_s0, %s10344_s7  }
  0xdf   :  { %s10230_s12 = scalar_lea.vmem %s304_s28, 16  ;;  %s10234_s8 = scalar_lea.vmem %s304_s28, 32 }
  0xe0   :  { %p10231_p0 = scmp.ne.s32.totalorder %s304_s28, %s10230_s12  ;;  %p10235_p1 = scmp.lt.s32.totalorder %s304_s28, %s304_s28 }
  0xe1   :  { %p10236_p2 = scmp.lt.s32.totalorder %s10234_s8, %s10230_s12 }
  0xe3   :  { %p10237_p3 = por %p10236_p2, %p10235_p1 }
  0xe5   :  { %p10238_p4 = pnand %p10237_p3, %p10231_p0 }
  0xe7   :  { %10241 = shalt.err (!%p10238_p4)
}
  0xe8   :  { %s12024_s2 = sld [smem:[#allocation59_spill]]  ;;  %s10361_s10 = smov [#allocation26]  }
  0xe9   :  { %s317_s19 = sshll.u32 %s10361_s10, 4  ;;  %s318_s19 = int_to_ptr.vmem [resolvable:$true] %s317_s19 }
  0xea   :  { %s10250_s4 = scalar_lea.vmem %s318_s19, 16  ;;  %s10254_s6 = scalar_lea.vmem %s318_s19, 32 }
  0xeb   :  { %p10251_p5 = scmp.ne.s32.totalorder %s318_s19, %s10250_s4  ;;  %p10255_p6 = scmp.lt.s32.totalorder %s318_s19, %s318_s19 }
  0xec   :  { %p10256_p7 = scmp.lt.s32.totalorder %s10254_s6, %s10250_s4 }
  0xee   :  { %306 = dma.hbm_to_vmem [thread:$0]  %s12024_s2, 16, %s304_s28, [#allocation24]  }
  0xef   :  { %p10257_p8 = por %p10256_p7, %p10255_p6 }
  0xf1   :  { %p10258_p9 = pnand %p10257_p8, %p10251_p5 }
  0xf3   :  { %10261 = shalt.err (!%p10258_p9)
}
  0xf4   :  { %320 = dma.hbm_to_vmem [thread:$0]  %s10558_s5, 16, %s318_s19, [#allocation27]  }
  0xf5   :  { %10282 = dma.done.wait [#allocation3], 1024  }
  0xf6   :  { %10283 = vsyncadd [#allocation3], 4294966272 }
  0xf7   :  { %10284 = dma.done.wait [#allocation6], 1536  }
  0xf8   :  { %10285 = vsyncadd [#allocation6], 4294965760 }
  0xf9   :  { %10286 = dma.done.wait [#allocation9], 896  }
  0xfa   :  { %10287 = vsyncadd [#allocation9], 4294966400 }
  0xfb   :  { %10288 = dma.done.wait [#allocation12], 1040  }
  0xfc   :  { %10289 = vsyncadd [#allocation12], 4294966256 }
  0xfd   :  { %10290 = dma.done.wait [#allocation15], 6528  }
  0xfe   :  { %10291 = vsyncadd [#allocation15], 4294960768 }
  0xff   :  { %10292 = dma.done.wait [#allocation18], 32  }
 0x100   :  { %10293 = vsyncadd [#allocation18], 4294967264 }
 0x101   :  { %10294 = dma.done.wait [#allocation21], 33792  }
 0x102   :  { %10295 = vsyncadd [#allocation21], 4294933504 }
 0x103   :  { %10296 = dma.done.wait [#allocation24], 32  }
 0x104   :  { %10297 = vsyncadd [#allocation24], 4294967264 }
 0x105   :  { %10298 = dma.done.wait [#allocation27], 16  }
 0x106   :  { %10299 = vsyncadd [#allocation27], 4294967280  ;;  %s12025_s25 = sld [smem:[#allocation39_spill]]  ;;  %vm375_vm0 = vcmask 261120   ;;  %v474_v2 = vld [vmem:[#allocation2 + $0x10] sm:$0xff]  ;;  %v475_v5 = vld [vmem:[#allocation2 + $0x18] sm:$0xff] }
 0x107   :  { %9603 = vmatprep.mubr.msk.f32.mxu1 %vm375_vm0, %v474_v2  ;;  %s12026_s5 = sld [smem:[#allocation40_spill]]  ;;  %v373_v6 = vld [vmem:[#allocation2] sm:$0xff]  ;;  %v374_v7 = vld [vmem:[#allocation2 + $0x8] sm:$0xff]  ;;  %v930_v17 = vld [vmem:[#allocation2 + $0x30] sm:$0xff]  ;;  %v10362_v29 = vmov 0.0   ;;  %vm574_vm1 = vcmask 523264  }
 0x108   :  { %v742_v9 = vld [vmem:[#allocation2 + $0x20] sm:$0xff]  ;;  %9592 = vmatprep.mubr.msk.f32.mxu0 %vm375_vm0, %v373_v6  ;;  %v743_v16 = vld [vmem:[#allocation2 + $0x28] sm:$0xff]  ;;  %v931_v24 = vld [vmem:[#allocation2 + $0x38] sm:$0xff]  ;;  %s12027_s0 = sld [smem:[#allocation41_spill]]  ;;  %vm1525_vm6 = vcmask 130048   ;;  %vm2775_vm9 = vcmask 64512  }
 0x109   :  { %s12028_s7 = sld [smem:[#allocation42_spill]]  ;;  %vm10363_vm10 = vmmov 0   ;;  %s10364_s10 = smov [#allocation28]  }
 0x10a   :  { %s12029_s27 = sld [smem:[#allocation43_spill]]  ;;  %s8267_s19 = sshll.u32 %s10364_s10, 4  ;;  %s8268_s19 = int_to_ptr.vmem [resolvable:$true] %s8267_s19 }
 0x10b   :  { %s12030_s11 = sld [smem:[#allocation44_spill]]  ;;  %s10262_s4 = scalar_lea.vmem %s8268_s19, 16 }
 0x10c   :  { %v372_v0 = vld [vmem:[%s12025_s25 + $0x18] sm:$0xff]  ;;  %v371_v1 = vld [vmem:[%s12025_s25 + $0x10] sm:$0xff]  ;;  %v10624_v3 = vld [vmem:[%s12025_s25 + $0x8] sm:$0xff]  ;;  %s12031_s15 = sld [smem:[#allocation45_spill]]  ;;  %p10263_p10 = scmp.ne.s32.totalorder %s8268_s19, %s10262_s4 }
 0x10d   :  { %9595 = vmatprep.subr.mxu1 %v372_v0  ;;  %9584 = vmatprep.subr.mxu0 %v372_v0  ;;  %v10628_v4 = vld [vmem:[%s12025_s25] sm:$0xff]  ;;  %v8347_v8 = vld [vmem:[%s12026_s5 + $0xf8] sm:$0xff]  ;;  %v8346_v10 = vld [vmem:[%s12026_s5 + $0xf0] sm:$0xff]  ;;  %s12032_s9 = sld [smem:[#allocation46_spill]]  ;;  %s10266_s6 = scalar_lea.vmem %s8268_s19, 32 }
 0x10e   :  { %9596 = vmatpush3.msra.mxu1 %v372_v0  ;;  %9585 = vmatpush3.msra.mxu0 %v372_v0  ;;  %v8345_v11 = vld [vmem:[%s12026_s5 + $0xe8] sm:$0xff]  ;;  %v8344_v12 = vld [vmem:[%s12026_s5 + $0xe0] sm:$0xff]  ;;  %v8343_v13 = vld [vmem:[%s12026_s5 + $0xd8] sm:$0xff]  ;;  %s12033_s3 = sld [smem:[#allocation49_spill]]  ;;  %p10267_p11 = scmp.lt.s32.totalorder %s8268_s19, %s8268_s19 }
 0x10f   :  { %9597 = vmatprep.subr.mxu1 %v371_v1  ;;  %9586 = vmatprep.subr.mxu0 %v371_v1  ;;  %v8342_v14 = vld [vmem:[%s12026_s5 + $0xd0] sm:$0xff]  ;;  %v8341_v15 = vld [vmem:[%s12026_s5 + $0xc8] sm:$0xff]  ;;  %v8340_v18 = vld [vmem:[%s12026_s5 + $0xc0] sm:$0xff]  ;;  %s12034_s16 = sld [smem:[#allocation47_spill]]  ;;  %p10268_p12 = scmp.lt.s32.totalorder %s10266_s6, %s10262_s4 }
 0x110   :  { %9598 = vmatpush3.msra.mxu1 %v371_v1  ;;  %9587 = vmatpush3.msra.mxu0 %v371_v1  ;;  %v8339_v19 = vld [vmem:[%s12026_s5 + $0xb8] sm:$0xff]  ;;  %v8338_v20 = vld [vmem:[%s12026_s5 + $0xb0] sm:$0xff]  ;;  %v8337_v21 = vld [vmem:[%s12026_s5 + $0xa8] sm:$0xff]  ;;  %s12035_s18 = sld [smem:[#allocation48_spill]] }
 0x111   :  { %9599 = vmatprep.subr.mxu1 %v10624_v3  ;;  %9588 = vmatprep.subr.mxu0 %v10624_v3  ;;  %v8336_v22 = vld [vmem:[%s12026_s5 + $0xa0] sm:$0xff]  ;;  %v8335_v23 = vld [vmem:[%s12026_s5 + $0x98] sm:$0xff]  ;;  %v8334_v25 = vld [vmem:[%s12026_s5 + $0x90] sm:$0xff]  ;;  %s12036_s21 = sld [smem:[#allocation53_spill]]  ;;  %p10269_p13 = por %p10268_p12, %p10267_p11 }
 0x112   :  { %9600 = vmatpush3.msra.mxu1 %v10624_v3  ;;  %9589 = vmatpush3.msra.mxu0 %v10624_v3  ;;  %v8333_v26 = vld [vmem:[%s12026_s5 + $0x88] sm:$0xff]  ;;  %v8332_v27 = vld [vmem:[%s12026_s5 + $0x80] sm:$0xff]  ;;  %v472_v28 = vld [vmem:[%s12026_s5 + $0x78] sm:$0xff]  ;;  %s12037_s20 = sld [smem:[#allocation52_spill]] }
 0x113   :  { %9601 = vmatprep.subr.mxu1 %v10628_v4  ;;  %9590 = vmatprep.subr.mxu0 %v10628_v4  ;;  %v8389_v30 = vld [vmem:[%s12026_s5 + $0x1f8] sm:$0xff]  ;;  %v8388_v31 = vld [vmem:[%s12026_s5 + $0x1f0] sm:$0xff]  ;;  %v8387_v32 = vld [vmem:[%s12026_s5 + $0x1e8] sm:$0xff]  ;;  %s12038_s14 = sld [smem:[#allocation54_spill]]  ;;  %p10270_p0 = pnand %p10269_p13, %p10263_p10 }
 0x114   :  { %9602 = vmatpush3.msra.mxu1 %v10628_v4  ;;  %9591 = vmatpush3.msra.mxu0 %v10628_v4  ;;  %v8386_v33 = vld [vmem:[%s12026_s5 + $0x1e0] sm:$0xff]  ;;  %v8385_v34 = vld [vmem:[%s12026_s5 + $0x1d8] sm:$0xff]  ;;  %v8384_v35 = vld [vmem:[%s12026_s5 + $0x1d0] sm:$0xff]  ;;  %s12039_s30 = sld [smem:[#allocation50_spill]] }
 0x115   :  { %9604 = vmatmul.mubr.msk.f32.vlgmr.msra.gmra.mxu1 %vm375_vm0, %v475_v5  ;;  %9606 = vmatprep.subr.mxu0 %v372_v0  ;;  %v8383_v36 = vld [vmem:[%s12026_s5 + $0x1c8] sm:$0xff]  ;;  %v8382_v37 = vld [vmem:[%s12026_s5 + $0x1c0] sm:$0xff]  ;;  %v8381_v38 = vld [vmem:[%s12026_s5 + $0x1b8] sm:$0xff]  ;;  %s12040_s24 = sld [smem:[#allocation51_spill]] }
 0x116   :  { %9593 = vmatmul.mubr.msk.f32.vlgmr.msra.gmra.mxu0 %vm375_vm0, %v374_v7  ;;  %597 = vmatprep.subr.mxu1 %v8347_v8  ;;  %v8380_v39 = vld [vmem:[%s12026_s5 + $0x1b0] sm:$0xff]  ;;  %v8379_v40 = vld [vmem:[%s12026_s5 + $0x1a8] sm:$0xff]  ;;  %v8378_v41 = vld [vmem:[%s12026_s5 + $0x1a0] sm:$0xff]  ;;  %s12041_s26 = sld [smem:[#allocation55_spill]] }
 0x117   :  { %9607 = vmatpush3.msra.mxu0 %v372_v0  ;;  %9614 = vmatprep.mubr.msk.f32.mxu0 %vm375_vm0, %v742_v9  ;;  %v8377_v42 = vld [vmem:[%s12026_s5 + $0x198] sm:$0xff]  ;;  %v8376_v43 = vld [vmem:[%s12026_s5 + $0x190] sm:$0xff]  ;;  %v8375_v44 = vld [vmem:[%s12026_s5 + $0x188] sm:$0xff]  ;;  %s12042_s28 = sld [smem:[#allocation56_spill]] }
 0x118   :  { %9608 = vmatprep.subr.mxu0 %v371_v1  ;;  %598 = vmatpush1.msra.mxu1 %v8346_v10  ;;  %v8374_v45 = vld [vmem:[%s12026_s5 + $0x180] sm:$0xff]  ;;  %v471_v47 = vld [vmem:[%s12026_s5 + $0x70] sm:$0xff]  ;;  %v470_v49 = vld [vmem:[%s12026_s5 + $0x68] sm:$0xff]  ;;  %s12043_s1 = sld [smem:[#allocation57_spill]] }
 0x119   :  { %9609 = vmatpush3.msra.mxu0 %v371_v1  ;;  %599 = vmatprep.subr.mxu1 %v8345_v11  ;;  %v469_v50 = vld [vmem:[%s12026_s5 + $0x60] sm:$0xff]  ;;  %v468_v51 = vld [vmem:[%s12026_s5 + $0x58] sm:$0xff]  ;;  %v467_v53 = vld [vmem:[%s12026_s5 + $0x50] sm:$0xff]  ;;  %s12044_s12 = sld [smem:[#allocation58_spill]] }
 0x11a   :  { %9610 = vmatprep.subr.mxu0 %v10624_v3  ;;  %600 = vmatpush1.msra.mxu1 %v8344_v12  ;;  %v466_v54 = vld [vmem:[%s12026_s5 + $0x48] sm:$0xff]  ;;  %v465_v55 = vld [vmem:[%s12026_s5 + $0x40] sm:$0xff]  ;;  %v464_v56 = vld [vmem:[%s12026_s5 + $0x38] sm:$0xff]  ;;  %s12045_s8 = sld [smem:[#allocation60_spill]] }
 0x11b   :  { %9611 = vmatpush3.msra.mxu0 %v10624_v3  ;;  %601 = vmatprep.subr.mxu1 %v8343_v13  ;;  %v463_v58 = vld [vmem:[%s12026_s5 + $0x30] sm:$0xff]  ;;  %v462_v59 = vld [vmem:[%s12026_s5 + $0x28] sm:$0xff]  ;;  %v461_v61 = vld [vmem:[%s12026_s5 + $0x20] sm:$0xff]  ;;  %s12046_s2 = sld [smem:[#allocation61_spill]] }
 0x11c   :  { %9612 = vmatprep.subr.mxu0 %v10628_v4  ;;  %602 = vmatpush1.msra.mxu1 %v8342_v14  ;;  %v460_v62 = vld [vmem:[%s12026_s5 + $0x18] sm:$0xff]  ;;  %v459_v63 = vld [vmem:[%s12026_s5 + $0x10] sm:$0xff]  ;;  %v457_v2 = vld [vmem:[%s12026_s5] sm:$0xff] }
 0x11d   :  { %9613 = vmatpush3.msra.mxu0 %v10628_v4  ;;  %603 = vmatprep.subr.mxu1 %v8341_v15  ;;  %v8367_v5 = vld [vmem:[%s12026_s5 + $0x168] sm:$0xff]  ;;  %v8366_v7 = vld [vmem:[%s12026_s5 + $0x160] sm:$0xff]  ;;  %v8365_v8 = vld [vmem:[%s12026_s5 + $0x158] sm:$0xff] }
 0x11e   :  { %9617 = vmatprep.subr.mxu0 %v372_v0  ;;  %9615 = vmatmul.mubr.msk.f32.vlgmr.msra.gmra.mxu0 %vm375_vm0, %v743_v16  ;;  %v8364_v10 = vld [vmem:[%s12026_s5 + $0x150] sm:$0xff]  ;;  %v8363_v11 = vld [vmem:[%s12026_s5 + $0x148] sm:$0xff]  ;;  %v8362_v12 = vld [vmem:[%s12026_s5 + $0x140] sm:$0xff] }
 0x11f   :  { %9618 = vmatpush3.msra.mxu0 %v372_v0  ;;  %9625 = vmatprep.mubr.msk.f32.mxu0 %vm375_vm0, %v930_v17  ;;  %v458_v0 = vld [vmem:[%s12026_s5 + $0x8] sm:$0xff]  ;;  %v8361_v13 = vld [vmem:[%s12026_s5 + $0x138] sm:$0xff]  ;;  %v8360_v14 = vld [vmem:[%s12026_s5 + $0x130] sm:$0xff] }
 0x120   :  { %9619 = vmatprep.subr.mxu0 %v371_v1  ;;  %604 = vmatpush1.msra.mxu1 %v8340_v18  ;;  %v8359_v15 = vld [vmem:[%s12026_s5 + $0x128] sm:$0xff]  ;;  %v8358_v16 = vld [vmem:[%s12026_s5 + $0x120] sm:$0xff]  ;;  %v8357_v17 = vld [vmem:[%s12026_s5 + $0x118] sm:$0xff] }
 0x121   :  { %9620 = vmatpush3.msra.mxu0 %v371_v1  ;;  %605 = vmatprep.subr.mxu1 %v8339_v19  ;;  %v8356_v18 = vld [vmem:[%s12026_s5 + $0x110] sm:$0xff]  ;;  %v8355_v19 = vld [vmem:[%s12026_s5 + $0x108] sm:$0xff] }
 0x122   :  { %9621 = vmatprep.subr.mxu0 %v10624_v3  ;;  %606 = vmatpush1.msra.mxu1 %v8338_v20  ;;  %v8354_v20 = vld [vmem:[%s12026_s5 + $0x100] sm:$0xff] }
 0x123   :  { %9622 = vmatpush3.msra.mxu0 %v10624_v3  ;;  %607 = vmatprep.subr.mxu1 %v8337_v21  ;;  %v8369_v3 = vld [vmem:[%s12026_s5 + $0x178] sm:$0xff] }
 0x124   :  { %9623 = vmatprep.subr.mxu0 %v10628_v4  ;;  %608 = vmatpush1.msra.mxu1 %v8336_v22  ;;  %v1150_v21 = vld [vmem:[%s12027_s0 + $0xf8] sm:$0xff] }
 0x125   :  { %9624 = vmatpush3.msra.mxu0 %v10628_v4  ;;  %609 = vmatprep.subr.mxu1 %v8335_v23  ;;  %v8368_v4 = vld [vmem:[%s12026_s5 + $0x170] sm:$0xff]  ;;  %v1134_v22 = vld [vmem:[%s12027_s0 + $0x78] sm:$0xff] }
 0x126   :  { %9626 = vmatmul.mubr.msk.f32.vlgmr.msra.gmra.mxu0 %vm375_vm0, %v931_v24  ;;  %610 = vmatpush1.msra.mxu1 %v8334_v25  ;;  %v1149_v23 = vld [vmem:[%s12027_s0 + $0xf0] sm:$0xff]  ;;  %v1148_v25 = vld [vmem:[%s12027_s0 + $0xe8] sm:$0xff] }
 0x127   :  { %611 = vmatprep.subr.mxu1 %v8333_v26  ;;  %645 = vmatprep.mubr.f32.mxu1 %v10362_v29  ;;  %v1133_v24 = vld [vmem:[%s12027_s0 + $0x70] sm:$0xff]  ;;  %v1132_v26 = vld [vmem:[%s12027_s0 + $0x68] sm:$0xff] }
 0x128   :  { %612 = vmatpush1.msra.mxu1 %v8332_v27  ;;  %1100 = vmatprep.mubr.f32.mxu0 %v10362_v29  ;;  %v1147_v27 = vld [vmem:[%s12027_s0 + $0xe0] sm:$0xff] }
 0x129   :  { %680 = vmatprep.subr.mxu1 %v472_v28  ;;  %1052 = vmatprep.subr.mxu0 %v8389_v30  ;;  %v1131_v28 = vld [vmem:[%s12027_s0 + $0x60] sm:$0xff]  ;;  %v1146_v30 = vld [vmem:[%s12027_s0 + $0xd8] sm:$0xff] }
 0x12a   :  { %1053 = vmatpush1.msra.mxu0 %v8388_v31  ;;  %v1130_v31 = vld [vmem:[%s12027_s0 + $0x58] sm:$0xff] }
 0x12b   :  { %1054 = vmatprep.subr.mxu0 %v8387_v32  ;;  %v1145_v32 = vld [vmem:[%s12027_s0 + $0xd0] sm:$0xff] }
 0x12c   :  { %1055 = vmatpush1.msra.mxu0 %v8386_v33  ;;  %v1129_v33 = vld [vmem:[%s12027_s0 + $0x50] sm:$0xff] }
 0x12d   :  { %1056 = vmatprep.subr.mxu0 %v8385_v34  ;;  %v1144_v34 = vld [vmem:[%s12027_s0 + $0xc8] sm:$0xff] }
 0x12e   :  { %1057 = vmatpush1.msra.mxu0 %v8384_v35  ;;  %v1128_v35 = vld [vmem:[%s12027_s0 + $0x48] sm:$0xff] }
 0x12f   :  { %1058 = vmatprep.subr.mxu0 %v8383_v36  ;;  %v1143_v36 = vld [vmem:[%s12027_s0 + $0xc0] sm:$0xff] }
 0x130   :  { %1059 = vmatpush1.msra.mxu0 %v8382_v37  ;;  %v1127_v37 = vld [vmem:[%s12027_s0 + $0x40] sm:$0xff] }
 0x131   :  { %1060 = vmatprep.subr.mxu0 %v8381_v38  ;;  %v1142_v38 = vld [vmem:[%s12027_s0 + $0xb8] sm:$0xff] }
 0x132   :  { %1061 = vmatpush1.msra.mxu0 %v8380_v39  ;;  %v1126_v39 = vld [vmem:[%s12027_s0 + $0x38] sm:$0xff] }
 0x133   :  { %1062 = vmatprep.subr.mxu0 %v8379_v40  ;;  %v1141_v40 = vld [vmem:[%s12027_s0 + $0xb0] sm:$0xff] }
 0x134   :  { %1063 = vmatpush1.msra.mxu0 %v8378_v41  ;;  %v1125_v41 = vld [vmem:[%s12027_s0 + $0x30] sm:$0xff] }
 0x135   :  { %1064 = vmatprep.subr.mxu0 %v8377_v42  ;;  %v1140_v42 = vld [vmem:[%s12027_s0 + $0xa8] sm:$0xff] }
 0x136   :  { %1065 = vmatpush1.msra.mxu0 %v8376_v43  ;;  %v1124_v43 = vld [vmem:[%s12027_s0 + $0x28] sm:$0xff] }
 0x137   :  { %1066 = vmatprep.subr.mxu0 %v8375_v44  ;;  %v1139_v44 = vld [vmem:[%s12027_s0 + $0xa0] sm:$0xff] }
 0x138   :  { %1067 = vmatpush1.msra.mxu0 %v8374_v45  ;;  %v1123_v45 = vld [vmem:[%s12027_s0 + $0x20] sm:$0xff] }
 0x139   :  { %8948 = vmatprep.subr.mxu0 %v1150_v21 }
 0x1d5   :  { %v9605_v46 = vpop.f32.mrf.mxu1 }
 0x1d6   :  { %v9594_v52 = vpop.f32.mrf.mxu0 }
 0x1d7   :  { %v548_v48 = vpop.f32.mrf.mxu1 }
 0x1d8   :  { %8348 = vmatmul.mubr.msk.f32.vlgmr.msra.gmra.mxu1 %vm574_vm1, %v548_v48  ;;  %v448_v57 = vpop.f32.mrf.mxu0  ;;  %v1137_v48 = vld [vmem:[%s12027_s0 + $0x90] sm:$0xff] }
 0x1d9   :  { %681 = vmatpush1.msra.mxu1 %v471_v47  ;;  %651 = vmatprep.mubr.f32.mxu1 %v10362_v29  ;;  %v1122_v47 = vld [vmem:[%s12027_s0 + $0x18] sm:$0xff] }
 0x1da   :  { %682 = vmatprep.subr.mxu1 %v470_v49  ;;  %v1121_v49 = vld [vmem:[%s12027_s0 + $0x10] sm:$0xff] }
 0x1db   :  { %683 = vmatpush1.msra.mxu1 %v469_v50  ;;  %v1136_v50 = vld [vmem:[%s12027_s0 + $0x88] sm:$0xff] }
 0x1dc   :  { %684 = vmatprep.subr.mxu1 %v468_v51  ;;  %8349 = vmatmul.mubr.msk.f32.gmra.mxu1 %vm574_vm1, %v9605_v46  ;;  %v1138_v46 = vld [vmem:[%s12027_s0 + $0x98] sm:$0xff]  ;;  %v1120_v51 = vld [vmem:[%s12027_s0 + $0x8] sm:$0xff] }
 0x1dd   :  { %685 = vmatpush1.msra.mxu1 %v467_v53  ;;  %728 = vmatprep.mubr.f32.mxu1 %v10362_v29  ;;  %v1119_v53 = vld [vmem:[%s12027_s0] sm:$0xff] }
 0x1de   :  { %686 = vmatprep.subr.mxu1 %v466_v54  ;;  %v9616_v60 = vpop.f32.mrf.mxu0 }
 0x1df   :  { %687 = vmatpush1.msra.mxu1 %v465_v55 }
 0x1e0   :  { %688 = vmatprep.subr.mxu1 %v464_v56  ;;  %v816_v1 = vpop.f32.mrf.mxu0 }
 0x1e1   :  { %689 = vmatpush1.msra.mxu1 %v463_v58 }
 0x1e2   :  { %690 = vmatprep.subr.mxu1 %v462_v59 }
 0x1e3   :  { %691 = vmatpush1.msra.mxu1 %v461_v61 }
 0x1e4   :  { %692 = vmatprep.subr.mxu1 %v460_v62 }
 0x1e5   :  { %693 = vmatpush1.msra.mxu1 %v459_v63 }
 0x1e6   :  { %694 = vmatprep.subr.mxu1 %v458_v0  ;;  %v9627_v6 = vpop.f32.mrf.mxu0 }
 0x1e7   :  { %695 = vmatpush1.msra.mxu1 %v457_v2 }
 0x1e8   :  { %8350 = vmatmul.mubr.msk.f32.vlgmr.msra.gmra.mxu1 %vm574_vm1, %v448_v57  ;;  %864 = vmatprep.subr.mxu1 %v8369_v3  ;;  %v1004_v9 = vpop.f32.mrf.mxu0 }
 0x1e9   :  { %865 = vmatpush1.msra.mxu1 %v8368_v4  ;;  %734 = vmatprep.mubr.f32.mxu1 %v10362_v29 }
 0x1ea   :  { %866 = vmatprep.subr.mxu1 %v8367_v5  ;;  %8390 = vmatmul.mubr.msk.f32.vlgmr.msra.gmra.mxu0 %vm574_vm1, %v1004_v9 }
 0x1eb   :  { %867 = vmatpush1.msra.mxu1 %v8366_v7  ;;  %1106 = vmatprep.mubr.f32.mxu0 %v10362_v29 }
 0x1ec   :  { %8351 = vmatmul.mubr.msk.f32.gmra.mxu1 %vm574_vm1, %v9594_v52  ;;  %868 = vmatprep.subr.mxu1 %v8365_v8  ;;  %v1135_v52 = vld [vmem:[%s12027_s0 + $0x80] sm:$0xff] }
 0x1ed   :  { %869 = vmatpush1.msra.mxu1 %v8364_v10  ;;  %912 = vmatprep.mubr.f32.mxu1 %v10362_v29 }
 0x1ee   :  { %870 = vmatprep.subr.mxu1 %v8363_v11  ;;  %8391 = vmatmul.mubr.msk.f32.gmra.mxu0 %vm574_vm1, %v9627_v6 }
 0x1ef   :  { %871 = vmatpush1.msra.mxu1 %v8362_v12  ;;  %8949 = vmatpush3.msra.mxu0 %v1134_v22 }
 0x1f0   :  { %872 = vmatprep.subr.mxu1 %v8361_v13  ;;  %8950 = vmatprep.subr.mxu0 %v1149_v23 }
 0x1f1   :  { %873 = vmatpush1.msra.mxu1 %v8360_v14  ;;  %8951 = vmatpush3.msra.mxu0 %v1133_v24 }
 0x1f2   :  { %874 = vmatprep.subr.mxu1 %v8359_v15  ;;  %8952 = vmatprep.subr.mxu0 %v1148_v25 }
 0x1f3   :  { %875 = vmatpush1.msra.mxu1 %v8358_v16  ;;  %8953 = vmatpush3.msra.mxu0 %v1132_v26 }
 0x1f4   :  { %876 = vmatprep.subr.mxu1 %v8357_v17  ;;  %8954 = vmatprep.subr.mxu0 %v1147_v27 }
 0x1f5   :  { %877 = vmatpush1.msra.mxu1 %v8356_v18  ;;  %8955 = vmatpush3.msra.mxu0 %v1131_v28 }
 0x1f6   :  { %878 = vmatprep.subr.mxu1 %v8355_v19  ;;  %8956 = vmatprep.subr.mxu0 %v1146_v30 }
 0x1f7   :  { %879 = vmatpush1.msra.mxu1 %v8354_v20  ;;  %8957 = vmatpush3.msra.mxu0 %v1130_v31 }
 0x1f8   :  { %8370 = vmatmul.mubr.msk.f32.vlgmr.msra.gmra.mxu1 %vm574_vm1, %v816_v1  ;;  %8913 = vmatprep.subr.mxu1 %v1150_v21 }
 0x1f9   :  { %918 = vmatprep.mubr.f32.mxu1 %v10362_v29  ;;  %8914 = vmatpush3.msra.mxu1 %v1134_v22 }
 0x1fa   :  { %8915 = vmatprep.subr.mxu1 %v1149_v23  ;;  %8958 = vmatprep.subr.mxu0 %v1145_v32 }
 0x1fb   :  { %8916 = vmatpush3.msra.mxu1 %v1133_v24  ;;  %8959 = vmatpush3.msra.mxu0 %v1129_v33 }
 0x1fc   :  { %8371 = vmatmul.mubr.msk.f32.gmra.mxu1 %vm574_vm1, %v9616_v60  ;;  %8917 = vmatprep.subr.mxu1 %v1148_v25 }
 0x1fd   :  { %8918 = vmatpush3.msra.mxu1 %v1132_v26  ;;  %8960 = vmatprep.subr.mxu0 %v1144_v34 }
 0x1fe   :  { %8919 = vmatprep.subr.mxu1 %v1147_v27  ;;  %8961 = vmatpush3.msra.mxu0 %v1128_v35 }
 0x1ff   :  { %8920 = vmatpush3.msra.mxu1 %v1131_v28  ;;  %8962 = vmatprep.subr.mxu0 %v1143_v36 }
 0x200   :  { %8921 = vmatprep.subr.mxu1 %v1146_v30  ;;  %8963 = vmatpush3.msra.mxu0 %v1127_v37 }
 0x201   :  { %8922 = vmatpush3.msra.mxu1 %v1130_v31  ;;  %8964 = vmatprep.subr.mxu0 %v1142_v38 }
 0x202   :  { %8923 = vmatprep.subr.mxu1 %v1145_v32  ;;  %8965 = vmatpush3.msra.mxu0 %v1126_v39 }
 0x203   :  { %8924 = vmatpush3.msra.mxu1 %v1129_v33  ;;  %8966 = vmatprep.subr.mxu0 %v1141_v40 }
 0x204   :  { %8925 = vmatprep.subr.mxu1 %v1144_v34  ;;  %8967 = vmatpush3.msra.mxu0 %v1125_v41 }
 0x205   :  { %8926 = vmatpush3.msra.mxu1 %v1128_v35  ;;  %8968 = vmatprep.subr.mxu0 %v1140_v42 }
 0x206   :  { %8927 = vmatprep.subr.mxu1 %v1143_v36  ;;  %8969 = vmatpush3.msra.mxu0 %v1124_v43 }
 0x207   :  { %8928 = vmatpush3.msra.mxu1 %v1127_v37  ;;  %8970 = vmatprep.subr.mxu0 %v1139_v44 }
 0x208   :  { %8929 = vmatprep.subr.mxu1 %v1142_v38  ;;  %8971 = vmatpush3.msra.mxu0 %v1123_v45 }
 0x209   :  { %8930 = vmatpush3.msra.mxu1 %v1126_v39  ;;  %8972 = vmatprep.subr.mxu0 %v1138_v46 }
 0x20a   :  { %8931 = vmatprep.subr.mxu1 %v1141_v40  ;;  %8973 = vmatpush3.msra.mxu0 %v1122_v47 }
 0x20b   :  { %8932 = vmatpush3.msra.mxu1 %v1125_v41  ;;  %8974 = vmatprep.subr.mxu0 %v1137_v48 }
 0x20c   :  { %8933 = vmatprep.subr.mxu1 %v1140_v42  ;;  %8975 = vmatpush3.msra.mxu0 %v1121_v49 }
 0x20d   :  { %8934 = vmatpush3.msra.mxu1 %v1124_v43  ;;  %8976 = vmatprep.subr.mxu0 %v1136_v50 }
 0x20e   :  { %8935 = vmatprep.subr.mxu1 %v1139_v44  ;;  %8977 = vmatpush3.msra.mxu0 %v1120_v51 }
 0x20f   :  { %8936 = vmatpush3.msra.mxu1 %v1123_v45  ;;  %8978 = vmatprep.subr.mxu0 %v1135_v52 }
 0x210   :  { %8937 = vmatprep.subr.mxu1 %v1138_v46  ;;  %8979 = vmatpush3.msra.mxu0 %v1119_v53 }
 0x211   :  { %8938 = vmatpush3.msra.mxu1 %v1122_v47 }
 0x212   :  { %8939 = vmatprep.subr.mxu1 %v1137_v48 }
 0x213   :  { %8940 = vmatpush3.msra.mxu1 %v1121_v49 }
 0x214   :  { %8941 = vmatprep.subr.mxu1 %v1136_v50 }
 0x215   :  { %8942 = vmatpush3.msra.mxu1 %v1120_v51  ;;  %v1339_v51 = vld [vmem:[#allocation5 + $0x38] sm:$0xff] }
 0x216   :  { %8943 = vmatprep.subr.mxu1 %v1135_v52  ;;  %v1338_v52 = vld [vmem:[#allocation5 + $0x30] sm:$0xff] }
 0x217   :  { %8944 = vmatpush3.msra.mxu1 %v1119_v53  ;;  %v1337_v53 = vld [vmem:[#allocation5 + $0x28] sm:$0xff] }
 0x218   :  { %1367 = vmatprep.subr.mxu1 %v1339_v51 }
 0x298   :  { %v647_v54 = vpop.f32.mrf.mxu1 }
 0x29a   :  { %v649_v55 = vpop.f32.mrf.mxu1 }
 0x29c   :  { %v653_v56 = vpop.f32.mrf.mxu1 }
 0x29e   :  { %v655_v57 = vpop.f32.mrf.mxu1 }
 0x2a8   :  { %v730_v58 = vpop.f32.mrf.mxu1 }
 0x2a9   :  { %v731_v63 = vadd.f32 %v730_v58, %v647_v54  ;;  %v1336_v54 = vld [vmem:[#allocation5 + $0x20] sm:$0xff] }
 0x2aa   :  { %v732_v59 = vpop.f32.mrf.mxu1  ;;  %v1102_v61 = vpop.f32.mrf.mxu0  ;;  %v1332_v58 = vld [vmem:[#allocation5] sm:$0xff] }
 0x2ab   :  { %v733_v2 = vadd.f32 %v732_v59, %v649_v55  ;;  %v1335_v55 = vld [vmem:[#allocation5 + $0x18] sm:$0xff] }
 0x2ac   :  { %v736_v60 = vpop.f32.mrf.mxu1  ;;  %v1104_v0 = vpop.f32.mrf.mxu0 }
 0x2ad   :  { %v737_v5 = vadd.f32 %v736_v60, %v653_v56  ;;  %v1334_v56 = vld [vmem:[#allocation5 + $0x10] sm:$0xff] }
 0x2ae   :  { %v738_v62 = vpop.f32.mrf.mxu1  ;;  %v1108_v7 = vpop.f32.mrf.mxu0 }
 0x2af   :  { %v739_v9 = vadd.f32 %v738_v62, %v655_v57  ;;  %v1333_v57 = vld [vmem:[#allocation5 + $0x8] sm:$0xff] }
 0x2b0   :  { %v1110_v16 = vpop.f32.mrf.mxu0 }
 0x2b8   :  { %v914_v1 = vpop.f32.mrf.mxu1 }
 0x2b9   :  { %v925_v3 = vadd.f32 %v914_v1, %v731_v63 }
 0x2ba   :  { %v916_v4 = vpop.f32.mrf.mxu1 }
 0x2bb   :  { %v926_v6 = vadd.f32 %v916_v4, %v733_v2  ;;  %v10765_v10 = vadd.f32 %v1102_v61, %v925_v3 }
 0x2bc   :  { %v920_v8 = vpop.f32.mrf.mxu1 }
 0x2bd   :  { %v927_v11 = vadd.f32 %v920_v8, %v737_v5  ;;  %v10767_v12 = vadd.f32 %v1104_v0, %v926_v6  ;;  %v1165_v17 = vmul.f32 %v10765_v10, %v10765_v10  ;;  %v1117_v6 = vld [vmem:[%s12028_s7] sm:$0x1] }
 0x2be   :  { %v922_v13 = vpop.f32.mrf.mxu1 }
 0x2bf   :  { %v10769_v14 = vadd.f32 %v1108_v7, %v927_v11  ;;  %v928_v15 = vadd.f32 %v922_v13, %v739_v9  ;;  %v1166_v21 = vmul.f32 %v10767_v12, %v10767_v12  ;;  %v1118_v11 = vld [vmem:[%s12029_s27] sm:$0x1] }
 0x2c1   :  { %v1151_v18 = vadd.f32 %v10769_v14, %v10765_v10  ;;  %v1167_v19 = vmul.f32 %v10769_v14, %v10769_v14  ;;  %v10777_v20 = vadd.f32 %v1110_v16, %v928_v15  ;;  %v1488_v15 = vlaneseq }
 0x2c3   :  { %v1152_v22 = vrot.slane %v1151_v18, 4  ;;  %v1169_v23 = vadd.f32 %v1167_v19, %v1165_v17  ;;  %v1158_v24 = vadd.f32 %v10777_v20, %v10767_v12  ;;  %v1168_v25 = vmul.f32 %v10777_v20, %v10777_v20 }
 0x2c4   :  { %v1489_v16 = vshrl.u32 %v1488_v15, 7 }
 0x2c5   :  { %v1153_v26 = vadd.f32 %v1152_v22, %v1151_v18  ;;  %v1170_v27 = vrot.slane %v1169_v23, 4  ;;  %v1159_v28 = vrot.slane %v1158_v24, 4  ;;  %v1176_v30 = vadd.f32 %v1168_v25, %v1166_v21 }
 0x2c6   :  { %v10794_v18 = vsub.s32 0, %v1489_v16  ;;  %v8410_v16 = vld [vmem:[%s12030_s11 + $0x270] sm:$0xff] }
 0x2c7   :  { %v1154_v31 = vrot.slane %v1153_v26, 2  ;;  %v1171_v32 = vadd.f32 %v1170_v27, %v1169_v23  ;;  %v1160_v33 = vadd.f32 %v1159_v28, %v1158_v24  ;;  %v1177_v34 = vrot.slane %v1176_v30, 4 }
 0x2c9   :  { %v1155_v35 = vadd.f32 %v1154_v31, %v1153_v26  ;;  %v1172_v36 = vrot.slane %v1171_v32, 2  ;;  %v1161_v37 = vrot.slane %v1160_v33, 2  ;;  %v1178_v38 = vadd.f32 %v1177_v34, %v1176_v30 }
 0x2cb   :  { %v1173_v39 = vadd.f32 %v1172_v36, %v1171_v32  ;;  %v1162_v40 = vadd.f32 %v1161_v37, %v1160_v33  ;;  %v1179_v41 = vrot.slane %v1178_v38, 2  ;;  %v1156_v42 = vrot.slane %v1155_v35, 1 }
 0x2cd   :  { %v1163_v43 = vrot.slane %v1162_v40, 1  ;;  %v1180_v44 = vadd.f32 %v1179_v41, %v1178_v38  ;;  %v1174_v45 = vrot.slane %v1173_v39, 1  ;;  %v1157_v48 = vadd.f32 %v1156_v42, %v1155_v35  ;;  %v8427_v42 = vld [vmem:[%s12030_s11 + $0x2f8] sm:$0xff] }
 0x2cf   :  { %v1164_v46 = vadd.f32 %v1163_v43, %v1162_v40  ;;  %v1181_v47 = vrot.slane %v1180_v44, 1  ;;  %v1175_v50 = vadd.f32 %v1174_v45, %v1173_v39  ;;  %v1524_v39 = vld [vmem:[#allocation7] sm:$0xff]  ;;  %v1665_v40 = vld [vmem:[#allocation7 + $0x8] sm:$0xff]  ;;  %v1631_v43 = vld [vmem:[%s12030_s11 + $0xf8] sm:$0xff] }
 0x2d0   :  { %v1630_v45 = vld [vmem:[%s12030_s11 + $0xf0] sm:$0xff] }
 0x2d1   :  { %1247 = vmatprep.mubr.f32.mxu1 %v1164_v46  ;;  %v1182_v49 = vadd.f32 %v1181_v47, %v1180_v44  ;;  %v8426_v44 = vld [vmem:[%s12030_s11 + $0x2f0] sm:$0xff]  ;;  %v8425_v46 = vld [vmem:[%s12030_s11 + $0x2e8] sm:$0xff] }
 0x2d2   :  { %1248 = vmatmul.mubr.f32.vlgmr.msra.gmra.mxu1 %v1157_v48  ;;  %v1629_v47 = vld [vmem:[%s12030_s11 + $0xe8] sm:$0xff]  ;;  %v8424_v48 = vld [vmem:[%s12030_s11 + $0x2e0] sm:$0xff] }
 0x2d3   :  { %1318 = vmatprep.mubr.f32.mxu0 %v1182_v49  ;;  %1407 = vmatprep.mubr.f32.mxu1 %v10362_v29  ;;  %v1628_v49 = vld [vmem:[%s12030_s11 + $0xe0] sm:$0xff] }
 0x2d4   :  { %1319 = vmatmul.mubr.f32.vlgmr.msra.gmra.mxu0 %v1175_v50  ;;  %1368 = vmatpush1.msra.mxu1 %v1338_v52  ;;  %v8423_v50 = vld [vmem:[%s12030_s11 + $0x2d8] sm:$0xff] }
 0x2d5   :  { %1593 = vmatprep.mubr.f32.mxu0 %v10362_v29  ;;  %1369 = vmatprep.subr.mxu1 %v1337_v53 }
 0x2d6   :  { %1370 = vmatpush1.msra.mxu1 %v1336_v54 }
 0x2d7   :  { %1371 = vmatprep.subr.mxu1 %v1335_v55 }
 0x2d8   :  { %1372 = vmatpush1.msra.mxu1 %v1334_v56 }
 0x2d9   :  { %1373 = vmatprep.subr.mxu1 %v1333_v57 }
 0x2da   :  { %1374 = vmatpush1.msra.mxu1 %v1332_v58 }
 0x2db   :  { %1441 = vmatprep.subr.mxu1 %v1339_v51  ;;  %v1627_v51 = vld [vmem:[%s12030_s11 + $0xd8] sm:$0xff] }
 0x392   :  { %v8945_v59 = vpop.f32.mrf.mxu1 }
 0x394   :  { %v8946_v60 = vpop.f32.mrf.mxu1  ;;  %v8980_v61 = vpop.f32.mrf.mxu0 }
 0x395   :  { %v8947_v62 = vadd.f32 %v8946_v60, %v8945_v59  ;;  %v1623_v59 = vld [vmem:[%s12030_s11 + $0xb8] sm:$0xff]  ;;  %v8418_v60 = vld [vmem:[%s12030_s11 + $0x2b0] sm:$0xff] }
 0x396   :  { %v8981_v63 = vpop.f32.mrf.mxu0 }
 0x397   :  { %v1253_v0 = vmul.f32 0.0078125, %v8947_v62  ;;  %v8982_v1 = vadd.f32 %v8981_v63, %v8980_v61  ;;  %v1622_v61 = vld [vmem:[%s12030_s11 + $0xb0] sm:$0xff]  ;;  %v8417_v62 = vld [vmem:[%s12030_s11 + $0x2a8] sm:$0xff] }
 0x398   :  { %v1621_v63 = vld [vmem:[%s12030_s11 + $0xa8] sm:$0xff] }
 0x399   :  { %v1325_v2 = vmul.f32 %v1253_v0, %v1253_v0  ;;  %v1324_v3 = vmul.f32 0.0078125, %v8982_v1  ;;  %v1620_v1 = vld [vmem:[%s12030_s11 + $0xa0] sm:$0xff] }
 0x39b   :  { %v1326_v4 = vsub.f32 %v1324_v3, %v1325_v2  ;;  %v8415_v2 = vld [vmem:[%s12030_s11 + $0x298] sm:$0xff] }
 0x39c   :  { %v1619_v3 = vld [vmem:[%s12030_s11 + $0x98] sm:$0xff] }
 0x39d   :  { %v1327_v5 = vadd.f32 1e-05, %v1326_v4  ;;  %v8414_v4 = vld [vmem:[%s12030_s11 + $0x290] sm:$0xff] }
 0x39f   :  { %9916 = vrsqrt.f32 %v1327_v5  ;;  %v1618_v5 = vld [vmem:[%s12030_s11 + $0x90] sm:$0xff] }
 0x3ac   :  { %v9917_v7 = vpop.eup %9916 }
 0x3ad   :  { %v1329_v8 = vmul.f32 %v9917_v7, %v1117_v6  ;;  %v8413_v6 = vld [vmem:[%s12030_s11 + $0x288] sm:$0xff] }
 0x3ae   :  { %v1617_v7 = vld [vmem:[%s12030_s11 + $0x88] sm:$0xff] }
 0x3af   :  { %8392 = vmatmul.mubr.msk.f32.vlgmr.msra.gmra.mxu1 %vm375_vm0, %v1329_v8  ;;  %v1330_v9 = vmul.f32 %v1329_v8, %v1253_v0  ;;  %v8416_v0 = vld [vmem:[%s12030_s11 + $0x2a0] sm:$0xff] }
 0x3b0   :  { %1442 = vmatpush1.msra.mxu1 %v1338_v52  ;;  %1481 = vmatprep.mubr.f32.mxu1 %v10362_v29  ;;  %v8422_v52 = vld [vmem:[%s12030_s11 + $0x2d0] sm:$0xff]  ;;  %v8412_v8 = vld [vmem:[%s12030_s11 + $0x280] sm:$0xff] }
 0x3b1   :  { %1443 = vmatprep.subr.mxu1 %v1337_v53  ;;  %v1331_v13 = vsub.f32 %v1118_v11, %v1330_v9  ;;  %v1626_v53 = vld [vmem:[%s12030_s11 + $0xd0] sm:$0xff]  ;;  %v1616_v9 = vld [vmem:[%s12030_s11 + $0x80] sm:$0xff]  ;;  %v8411_v11 = vld [vmem:[%s12030_s11 + $0x278] sm:$0xff] }
 0x3b2   :  { %1444 = vmatpush1.msra.mxu1 %v1336_v54  ;;  %v8421_v54 = vld [vmem:[%s12030_s11 + $0x2c8] sm:$0xff] }
 0x3b3   :  { %1445 = vmatprep.subr.mxu1 %v1335_v55  ;;  %v1625_v55 = vld [vmem:[%s12030_s11 + $0xc8] sm:$0xff] }
 0x3b4   :  { %1446 = vmatpush1.msra.mxu1 %v1334_v56  ;;  %v8420_v56 = vld [vmem:[%s12030_s11 + $0x2c0] sm:$0xff] }
 0x3b5   :  { %1447 = vmatprep.subr.mxu1 %v1333_v57  ;;  %v1624_v57 = vld [vmem:[%s12030_s11 + $0xc0] sm:$0xff] }
 0x3b6   :  { %1448 = vmatpush1.msra.mxu1 %v1332_v58  ;;  %v8419_v58 = vld [vmem:[%s12030_s11 + $0x2b8] sm:$0xff] }
 0x3b7   :  { %8393 = vmatmul.mubr.msk.f32.vlgmr.msra.gmra.mxu1 %vm375_vm0, %v1331_v13  ;;  %v1615_v13 = vld [vmem:[%s12030_s11 + $0x78] sm:$0xff] }
 0x3b8   :  { %1733 = vmatprep.mubr.f32.mxu1 %v10362_v29 }
 0x46f   :  { %v1409_v17 = vpop.f32.mrf.mxu1 }
 0x470   :  { %v1491_v21 = vrot.slane %v1409_v17, %v10794_v18  ;;  %v1614_v17 = vld [vmem:[%s12030_s11 + $0x70] sm:$0xff] }
 0x471   :  { %v1411_v19 = vpop.f32.mrf.mxu1 }
 0x472   :  { %v1495_v22 = vrot.slane %v1411_v19, %v10794_v18  ;;  %v1498_v24 = vmul.f32 %v1491_v21, %v10769_v14  ;;  %v1496_v26 = vmul.f32 %v1491_v21, %v10765_v10  ;;  %v8409_v19 = vld [vmem:[%s12030_s11 + $0x268] sm:$0xff] }
 0x473   :  { %v1613_v21 = vld [vmem:[%s12030_s11 + $0x68] sm:$0xff] }
 0x474   :  { %v1497_v28 = vmul.f32 %v1495_v22, %v10767_v12  ;;  %v1499_v30 = vmul.f32 %v1495_v22, %v10777_v20  ;;  %v8408_v22 = vld [vmem:[%s12030_s11 + $0x260] sm:$0xff] }
 0x477   :  { %v1483_v23 = vpop.f32.mrf.mxu1 }
 0x478   :  { %v1503_v25 = vrot.slane %v1483_v23, %v10794_v18  ;;  %v1612_v23 = vld [vmem:[%s12030_s11 + $0x60] sm:$0xff] }
 0x479   :  { %v1485_v27 = vpop.f32.mrf.mxu1 }
 0x47a   :  { %v1510_v31 = vadd.f32 %v1503_v25, %v1498_v24  ;;  %v1507_v32 = vrot.slane %v1485_v27, %v10794_v18  ;;  %v1508_v33 = vadd.f32 %v1503_v25, %v1496_v26  ;;  %v8407_v24 = vld [vmem:[%s12030_s11 + $0x258] sm:$0xff]  ;;  %v8406_v26 = vld [vmem:[%s12030_s11 + $0x250] sm:$0xff] }
 0x47b   :  { %v1611_v25 = vld [vmem:[%s12030_s11 + $0x58] sm:$0xff]  ;;  %v1610_v27 = vld [vmem:[%s12030_s11 + $0x50] sm:$0xff] }
 0x47c   :  { %v1509_v34 = vadd.f32 %v1507_v32, %v1497_v28  ;;  %v1511_v35 = vadd.f32 %v1507_v32, %v1499_v30  ;;  %v1518_v36 = vmul.f32 0.2, %v1510_v31  ;;  %vm1514_vm3 = vcmp.ge.f32.partialorder %v1510_v31, 0.0  ;;  %v8405_v28 = vld [vmem:[%s12030_s11 + $0x248] sm:$0xff]  ;;  %v1608_v32 = vld [vmem:[%s12030_s11 + $0x40] sm:$0xff] }
 0x47d   :  { %v1516_v14 = vmul.f32 0.2, %v1508_v33  ;;  %vm1512_vm5 = vcmp.ge.f32.partialorder %v1508_v33, 0.0  ;;  %v1609_v30 = vld [vmem:[%s12030_s11 + $0x48] sm:$0xff] }
 0x47e   :  { %v1517_v37 = vmul.f32 0.2, %v1509_v34  ;;  %v1519_v38 = vmul.f32 0.2, %v1511_v35  ;;  %vm1515_vm2 = vcmp.ge.f32.partialorder %v1511_v35, 0.0  ;;  %vm1513_vm4 = vcmp.ge.f32.partialorder %v1509_v34, 0.0 }
 0x47f   :  { %v10808_v12 = vsel %vm1514_vm3, %v1510_v31, %v1518_v36  ;;  %v10816_v41 = vsel %vm1512_vm5, %v1508_v33, %v1516_v14  ;;  %v8404_v31 = vld [vmem:[%s12030_s11 + $0x240] sm:$0xff]  ;;  %v8403_v33 = vld [vmem:[%s12030_s11 + $0x238] sm:$0xff]  ;;  %v1606_v36 = vld [vmem:[%s12030_s11 + $0x30] sm:$0xff] }
 0x480   :  { %v10804_v10 = vsel %vm1515_vm2, %v1511_v35, %v1519_v38  ;;  %v10812_v20 = vsel %vm1513_vm4, %v1509_v34, %v1517_v37  ;;  %v1607_v34 = vld [vmem:[%s12030_s11 + $0x38] sm:$0xff]  ;;  %v8402_v35 = vld [vmem:[%s12030_s11 + $0x230] sm:$0xff]  ;;  %v8401_v37 = vld [vmem:[%s12030_s11 + $0x228] sm:$0xff] }
 0x481   :  { %1557 = vmatprep.subr.mxu0 %v10804_v10  ;;  %1697 = vmatprep.subr.mxu1 %v10804_v10  ;;  %v1605_v38 = vld [vmem:[%s12030_s11 + $0x28] sm:$0xff]  ;;  %v8400_v14 = vld [vmem:[%s12030_s11 + $0x220] sm:$0xff] }
 0x482   :  { %1558 = vmatpush1.msra.mxu0 %v10808_v12  ;;  %1698 = vmatpush1.msra.mxu1 %v10808_v12 }
 0x483   :  { %1559 = vmatprep.subr.mxu0 %v10812_v20  ;;  %1699 = vmatprep.subr.mxu1 %v10812_v20 }
 0x484   :  { %1560 = vmatpush1.msra.mxu0 %v10816_v41  ;;  %1700 = vmatpush1.msra.mxu1 %v10816_v41 }
 0x485   :  { %8394 = vmatmul.mubr.msk.f32.vlgmr.msra.gmra.mxu0 %vm1525_vm6, %v1524_v39  ;;  %8395 = vmatmul.mubr.msk.f32.vlgmr.msra.gmra.mxu1 %vm1525_vm6, %v1665_v40  ;;  %v1604_v39 = vld [vmem:[%s12030_s11 + $0x20] sm:$0xff]  ;;  %v8399_v40 = vld [vmem:[%s12030_s11 + $0x218] sm:$0xff] }
 0x486   :  { %1805 = vmatprep.subr.mxu0 %v8427_v42  ;;  %1876 = vmatprep.subr.mxu1 %v1631_v43  ;;  %v1603_v42 = vld [vmem:[%s12030_s11 + $0x18] sm:$0xff]  ;;  %v8398_v43 = vld [vmem:[%s12030_s11 + $0x210] sm:$0xff] }
 0x487   :  { %1806 = vmatpush1.msra.mxu0 %v8426_v44  ;;  %1877 = vmatpush1.msra.mxu1 %v1630_v45  ;;  %v1602_v44 = vld [vmem:[%s12030_s11 + $0x10] sm:$0xff]  ;;  %v8397_v45 = vld [vmem:[%s12030_s11 + $0x208] sm:$0xff] }
 0x488   :  { %1807 = vmatprep.subr.mxu0 %v8425_v46  ;;  %1878 = vmatprep.subr.mxu1 %v1629_v47  ;;  %v1601_v46 = vld [vmem:[%s12030_s11 + $0x8] sm:$0xff]  ;;  %v8396_v47 = vld [vmem:[%s12030_s11 + $0x200] sm:$0xff] }
 0x489   :  { %1808 = vmatpush1.msra.mxu0 %v8424_v48  ;;  %1879 = vmatpush1.msra.mxu1 %v1628_v49  ;;  %v1600_v48 = vld [vmem:[%s12030_s11] sm:$0xff]  ;;  %v8459_v49 = vld [vmem:[%s12030_s11 + $0x3f8] sm:$0xff] }
 0x48a   :  { %1809 = vmatprep.subr.mxu0 %v8423_v50  ;;  %1880 = vmatprep.subr.mxu1 %v1627_v51  ;;  %v1663_v50 = vld [vmem:[%s12030_s11 + $0x1f8] sm:$0xff]  ;;  %v8458_v51 = vld [vmem:[%s12030_s11 + $0x3f0] sm:$0xff] }
 0x48b   :  { %1810 = vmatpush1.msra.mxu0 %v8422_v52  ;;  %1881 = vmatpush1.msra.mxu1 %v1626_v53  ;;  %v1662_v52 = vld [vmem:[%s12030_s11 + $0x1f0] sm:$0xff]  ;;  %v8457_v53 = vld [vmem:[%s12030_s11 + $0x3e8] sm:$0xff] }
 0x48c   :  { %1811 = vmatprep.subr.mxu0 %v8421_v54  ;;  %1882 = vmatprep.subr.mxu1 %v1625_v55  ;;  %v1661_v54 = vld [vmem:[%s12030_s11 + $0x1e8] sm:$0xff]  ;;  %v8456_v55 = vld [vmem:[%s12030_s11 + $0x3e0] sm:$0xff] }
 0x48d   :  { %1812 = vmatpush1.msra.mxu0 %v8420_v56  ;;  %1883 = vmatpush1.msra.mxu1 %v1624_v57  ;;  %v1660_v56 = vld [vmem:[%s12030_s11 + $0x1e0] sm:$0xff]  ;;  %v8455_v57 = vld [vmem:[%s12030_s11 + $0x3d8] sm:$0xff] }
 0x48e   :  { %1813 = vmatprep.subr.mxu0 %v8419_v58  ;;  %1884 = vmatprep.subr.mxu1 %v1623_v59  ;;  %v1659_v58 = vld [vmem:[%s12030_s11 + $0x1d8] sm:$0xff]  ;;  %v8454_v59 = vld [vmem:[%s12030_s11 + $0x3d0] sm:$0xff] }
 0x48f   :  { %1814 = vmatpush1.msra.mxu0 %v8418_v60  ;;  %1885 = vmatpush1.msra.mxu1 %v1622_v61  ;;  %v1658_v60 = vld [vmem:[%s12030_s11 + $0x1d0] sm:$0xff]  ;;  %v8453_v61 = vld [vmem:[%s12030_s11 + $0x3c8] sm:$0xff] }
 0x490   :  { %1815 = vmatprep.subr.mxu0 %v8417_v62  ;;  %1886 = vmatprep.subr.mxu1 %v1621_v63  ;;  %v1657_v62 = vld [vmem:[%s12030_s11 + $0x1c8] sm:$0xff]  ;;  %v8452_v63 = vld [vmem:[%s12030_s11 + $0x3c0] sm:$0xff] }
 0x491   :  { %1816 = vmatpush1.msra.mxu0 %v8416_v0  ;;  %1887 = vmatpush1.msra.mxu1 %v1620_v1  ;;  %v1656_v0 = vld [vmem:[%s12030_s11 + $0x1c0] sm:$0xff]  ;;  %v8451_v1 = vld [vmem:[%s12030_s11 + $0x3b8] sm:$0xff] }
 0x492   :  { %1817 = vmatprep.subr.mxu0 %v8415_v2  ;;  %1888 = vmatprep.subr.mxu1 %v1619_v3  ;;  %v1655_v2 = vld [vmem:[%s12030_s11 + $0x1b8] sm:$0xff]  ;;  %v8450_v3 = vld [vmem:[%s12030_s11 + $0x3b0] sm:$0xff] }
 0x493   :  { %1818 = vmatpush1.msra.mxu0 %v8414_v4  ;;  %1889 = vmatpush1.msra.mxu1 %v1618_v5  ;;  %v1654_v4 = vld [vmem:[%s12030_s11 + $0x1b0] sm:$0xff]  ;;  %v8449_v5 = vld [vmem:[%s12030_s11 + $0x3a8] sm:$0xff] }
 0x494   :  { %1819 = vmatprep.subr.mxu0 %v8413_v6  ;;  %1890 = vmatprep.subr.mxu1 %v1617_v7  ;;  %v1653_v6 = vld [vmem:[%s12030_s11 + $0x1a8] sm:$0xff]  ;;  %v8448_v7 = vld [vmem:[%s12030_s11 + $0x3a0] sm:$0xff] }
 0x495   :  { %1820 = vmatpush1.msra.mxu0 %v8412_v8  ;;  %1891 = vmatpush1.msra.mxu1 %v1616_v9  ;;  %v1652_v8 = vld [vmem:[%s12030_s11 + $0x1a0] sm:$0xff]  ;;  %v8447_v9 = vld [vmem:[%s12030_s11 + $0x398] sm:$0xff] }
 0x496   :  { %1821 = vmatprep.subr.mxu0 %v8411_v11  ;;  %1892 = vmatprep.subr.mxu1 %v1615_v13  ;;  %v1651_v11 = vld [vmem:[%s12030_s11 + $0x198] sm:$0xff]  ;;  %v8446_v13 = vld [vmem:[%s12030_s11 + $0x390] sm:$0xff] }
 0x497   :  { %1822 = vmatpush1.msra.mxu0 %v8410_v16  ;;  %1893 = vmatpush1.msra.mxu1 %v1614_v17  ;;  %v1650_v16 = vld [vmem:[%s12030_s11 + $0x190] sm:$0xff]  ;;  %v8445_v17 = vld [vmem:[%s12030_s11 + $0x388] sm:$0xff] }
 0x498   :  { %1823 = vmatprep.subr.mxu0 %v8409_v19  ;;  %1894 = vmatprep.subr.mxu1 %v1613_v21  ;;  %v1649_v19 = vld [vmem:[%s12030_s11 + $0x188] sm:$0xff]  ;;  %v8444_v21 = vld [vmem:[%s12030_s11 + $0x380] sm:$0xff] }
 0x499   :  { %1824 = vmatpush1.msra.mxu0 %v8408_v22  ;;  %1895 = vmatpush1.msra.mxu1 %v1612_v23  ;;  %v1648_v22 = vld [vmem:[%s12030_s11 + $0x180] sm:$0xff]  ;;  %v8443_v23 = vld [vmem:[%s12030_s11 + $0x378] sm:$0xff] }
 0x49a   :  { %1825 = vmatprep.subr.mxu0 %v8407_v24  ;;  %1896 = vmatprep.subr.mxu1 %v1611_v25  ;;  %v1647_v24 = vld [vmem:[%s12030_s11 + $0x178] sm:$0xff]  ;;  %v8442_v25 = vld [vmem:[%s12030_s11 + $0x370] sm:$0xff] }
 0x49b   :  { %1826 = vmatpush1.msra.mxu0 %v8406_v26  ;;  %1897 = vmatpush1.msra.mxu1 %v1610_v27  ;;  %v1646_v26 = vld [vmem:[%s12030_s11 + $0x170] sm:$0xff]  ;;  %v8441_v27 = vld [vmem:[%s12030_s11 + $0x368] sm:$0xff] }
 0x49c   :  { %1827 = vmatprep.subr.mxu0 %v8405_v28  ;;  %1898 = vmatprep.subr.mxu1 %v1609_v30  ;;  %v1645_v28 = vld [vmem:[%s12030_s11 + $0x168] sm:$0xff]  ;;  %v8440_v30 = vld [vmem:[%s12030_s11 + $0x360] sm:$0xff] }
 0x49d   :  { %1828 = vmatpush1.msra.mxu0 %v8404_v31  ;;  %1899 = vmatpush1.msra.mxu1 %v1608_v32  ;;  %v1644_v31 = vld [vmem:[%s12030_s11 + $0x160] sm:$0xff]  ;;  %v8439_v32 = vld [vmem:[%s12030_s11 + $0x358] sm:$0xff] }
 0x49e   :  { %1829 = vmatprep.subr.mxu0 %v8403_v33  ;;  %1900 = vmatprep.subr.mxu1 %v1607_v34  ;;  %v1643_v33 = vld [vmem:[%s12030_s11 + $0x158] sm:$0xff]  ;;  %v8438_v34 = vld [vmem:[%s12030_s11 + $0x350] sm:$0xff] }
 0x49f   :  { %1830 = vmatpush1.msra.mxu0 %v8402_v35  ;;  %1901 = vmatpush1.msra.mxu1 %v1606_v36  ;;  %v1642_v35 = vld [vmem:[%s12030_s11 + $0x150] sm:$0xff]  ;;  %v8437_v36 = vld [vmem:[%s12030_s11 + $0x348] sm:$0xff] }
 0x4a0   :  { %1831 = vmatprep.subr.mxu0 %v8401_v37  ;;  %1902 = vmatprep.subr.mxu1 %v1605_v38  ;;  %v1641_v37 = vld [vmem:[%s12030_s11 + $0x148] sm:$0xff]  ;;  %v8436_v38 = vld [vmem:[%s12030_s11 + $0x340] sm:$0xff] }
 0x4a1   :  { %1832 = vmatpush1.msra.mxu0 %v8400_v14  ;;  %1903 = vmatpush1.msra.mxu1 %v1604_v39  ;;  %v1640_v14 = vld [vmem:[%s12030_s11 + $0x140] sm:$0xff]  ;;  %v8435_v39 = vld [vmem:[%s12030_s11 + $0x338] sm:$0xff] }
 0x4a2   :  { %1833 = vmatprep.subr.mxu0 %v8399_v40  ;;  %1904 = vmatprep.subr.mxu1 %v1603_v42  ;;  %v1639_v40 = vld [vmem:[%s12030_s11 + $0x138] sm:$0xff]  ;;  %v8434_v42 = vld [vmem:[%s12030_s11 + $0x330] sm:$0xff] }
 0x4a3   :  { %1834 = vmatpush1.msra.mxu0 %v8398_v43  ;;  %1905 = vmatpush1.msra.mxu1 %v1602_v44  ;;  %v1638_v43 = vld [vmem:[%s12030_s11 + $0x130] sm:$0xff]  ;;  %v8433_v44 = vld [vmem:[%s12030_s11 + $0x328] sm:$0xff] }
 0x4a4   :  { %1835 = vmatprep.subr.mxu0 %v8397_v45  ;;  %1906 = vmatprep.subr.mxu1 %v1601_v46  ;;  %v1637_v45 = vld [vmem:[%s12030_s11 + $0x128] sm:$0xff]  ;;  %v8432_v46 = vld [vmem:[%s12030_s11 + $0x320] sm:$0xff] }
 0x4a5   :  { %1836 = vmatpush1.msra.mxu0 %v8396_v47  ;;  %1907 = vmatpush1.msra.mxu1 %v1600_v48  ;;  %v1636_v47 = vld [vmem:[%s12030_s11 + $0x120] sm:$0xff]  ;;  %v8431_v48 = vld [vmem:[%s12030_s11 + $0x318] sm:$0xff] }
 0x4a6   :  { %1837 = vmatprep.subr.mxu0 %v8459_v49  ;;  %1908 = vmatprep.subr.mxu1 %v1663_v50  ;;  %v8430_v49 = vld [vmem:[%s12030_s11 + $0x310] sm:$0xff]  ;;  %v8429_v50 = vld [vmem:[%s12030_s11 + $0x308] sm:$0xff] }
 0x4a7   :  { %1838 = vmatpush2.msra.mxu0 %v8458_v51  ;;  %1909 = vmatpush2.msra.mxu1 %v1662_v52  ;;  %v8428_v51 = vld [vmem:[%s12030_s11 + $0x300] sm:$0xff]  ;;  %v1635_v52 = vld [vmem:[%s12030_s11 + $0x118] sm:$0xff] }
 0x4a8   :  { %1839 = vmatprep.subr.mxu0 %v8457_v53  ;;  %1910 = vmatprep.subr.mxu1 %v1661_v54  ;;  %v1634_v53 = vld [vmem:[%s12030_s11 + $0x110] sm:$0xff]  ;;  %v1633_v54 = vld [vmem:[%s12030_s11 + $0x108] sm:$0xff] }
 0x4a9   :  { %1840 = vmatpush2.msra.mxu0 %v8456_v55  ;;  %1911 = vmatpush2.msra.mxu1 %v1660_v56  ;;  %v1632_v55 = vld [vmem:[%s12030_s11 + $0x100] sm:$0xff]  ;;  %v8492_v56 = vld [vmem:[%s12030_s11 + $0x4f8] sm:$0xff] }
 0x4aa   :  { %1841 = vmatprep.subr.mxu0 %v8455_v57  ;;  %1912 = vmatprep.subr.mxu1 %v1659_v58 }
 0x4ab   :  { %1842 = vmatpush2.msra.mxu0 %v8454_v59  ;;  %1913 = vmatpush2.msra.mxu1 %v1658_v60 }
 0x4ac   :  { %1843 = vmatprep.subr.mxu0 %v8453_v61  ;;  %1914 = vmatprep.subr.mxu1 %v1657_v62  ;;  %v8491_v61 = vld [vmem:[%s12030_s11 + $0x4f0] sm:$0xff]  ;;  %v8490_v62 = vld [vmem:[%s12030_s11 + $0x4e8] sm:$0xff] }
 0x4ad   :  { %1844 = vmatpush2.msra.mxu0 %v8452_v63  ;;  %1915 = vmatpush2.msra.mxu1 %v1656_v0  ;;  %v1948_v63 = vld [vmem:[#allocation7 + $0x10] sm:$0xff]  ;;  %v8489_v0 = vld [vmem:[%s12030_s11 + $0x4e0] sm:$0xff] }
 0x4ae   :  { %1845 = vmatprep.subr.mxu0 %v8451_v1  ;;  %1916 = vmatprep.subr.mxu1 %v1655_v2  ;;  %v8488_v1 = vld [vmem:[%s12030_s11 + $0x4d8] sm:$0xff] }
 0x4af   :  { %1846 = vmatpush2.msra.mxu0 %v8450_v3  ;;  %1917 = vmatpush2.msra.mxu1 %v1654_v4  ;;  %v2162_v2 = vld [vmem:[#allocation7 + $0x18] sm:$0xff]  ;;  %v8487_v4 = vld [vmem:[%s12030_s11 + $0x4d0] sm:$0xff] }
 0x4b0   :  { %1847 = vmatprep.subr.mxu0 %v8449_v5  ;;  %1918 = vmatprep.subr.mxu1 %v1653_v6  ;;  %v8557_v3 = vld [vmem:[%s12030_s11 + $0x6f8] sm:$0xff]  ;;  %v8556_v5 = vld [vmem:[%s12030_s11 + $0x6f0] sm:$0xff]  ;;  %v8555_v6 = vld [vmem:[%s12030_s11 + $0x6e8] sm:$0xff] }
 0x4b1   :  { %1848 = vmatpush2.msra.mxu0 %v8448_v7  ;;  %1919 = vmatpush2.msra.mxu1 %v1652_v8  ;;  %v8554_v7 = vld [vmem:[%s12030_s11 + $0x6e0] sm:$0xff]  ;;  %v8553_v8 = vld [vmem:[%s12030_s11 + $0x6d8] sm:$0xff] }
 0x4b2   :  { %1849 = vmatprep.subr.mxu0 %v8447_v9  ;;  %1920 = vmatprep.subr.mxu1 %v1651_v11  ;;  %v8552_v9 = vld [vmem:[%s12030_s11 + $0x6d0] sm:$0xff]  ;;  %v8482_v11 = vld [vmem:[%s12030_s11 + $0x4a8] sm:$0xff] }
 0x4b3   :  { %1850 = vmatpush2.msra.mxu0 %v8446_v13  ;;  %1921 = vmatpush2.msra.mxu1 %v1650_v16  ;;  %v8551_v13 = vld [vmem:[%s12030_s11 + $0x6c8] sm:$0xff]  ;;  %v8481_v16 = vld [vmem:[%s12030_s11 + $0x4a0] sm:$0xff] }
 0x4b4   :  { %1851 = vmatprep.subr.mxu0 %v8445_v17  ;;  %1922 = vmatprep.subr.mxu1 %v1649_v19  ;;  %v8550_v17 = vld [vmem:[%s12030_s11 + $0x6c0] sm:$0xff]  ;;  %v8480_v19 = vld [vmem:[%s12030_s11 + $0x498] sm:$0xff] }
 0x4b5   :  { %1852 = vmatpush2.msra.mxu0 %v8444_v21  ;;  %1923 = vmatpush2.msra.mxu1 %v1648_v22  ;;  %v8549_v21 = vld [vmem:[%s12030_s11 + $0x6b8] sm:$0xff]  ;;  %v8479_v22 = vld [vmem:[%s12030_s11 + $0x490] sm:$0xff] }
 0x4b6   :  { %1853 = vmatprep.subr.mxu0 %v8443_v23  ;;  %1924 = vmatprep.subr.mxu1 %v1647_v24  ;;  %v8548_v23 = vld [vmem:[%s12030_s11 + $0x6b0] sm:$0xff]  ;;  %v8478_v24 = vld [vmem:[%s12030_s11 + $0x488] sm:$0xff] }
 0x4b7   :  { %1854 = vmatpush2.msra.mxu0 %v8442_v25  ;;  %1925 = vmatpush2.msra.mxu1 %v1646_v26  ;;  %v8547_v25 = vld [vmem:[%s12030_s11 + $0x6a8] sm:$0xff]  ;;  %v8477_v26 = vld [vmem:[%s12030_s11 + $0x480] sm:$0xff] }
 0x4b8   :  { %1855 = vmatprep.subr.mxu0 %v8441_v27  ;;  %1926 = vmatprep.subr.mxu1 %v1645_v28  ;;  %v8546_v27 = vld [vmem:[%s12030_s11 + $0x6a0] sm:$0xff]  ;;  %v8476_v28 = vld [vmem:[%s12030_s11 + $0x478] sm:$0xff] }
 0x4b9   :  { %1856 = vmatpush2.msra.mxu0 %v8440_v30  ;;  %1927 = vmatpush2.msra.mxu1 %v1644_v31  ;;  %v8545_v30 = vld [vmem:[%s12030_s11 + $0x698] sm:$0xff]  ;;  %v8475_v31 = vld [vmem:[%s12030_s11 + $0x470] sm:$0xff] }
 0x4ba   :  { %1857 = vmatprep.subr.mxu0 %v8439_v32  ;;  %1928 = vmatprep.subr.mxu1 %v1643_v33  ;;  %v8544_v32 = vld [vmem:[%s12030_s11 + $0x690] sm:$0xff]  ;;  %v8474_v33 = vld [vmem:[%s12030_s11 + $0x468] sm:$0xff] }
 0x4bb   :  { %1858 = vmatpush2.msra.mxu0 %v8438_v34  ;;  %1929 = vmatpush2.msra.mxu1 %v1642_v35  ;;  %v8543_v34 = vld [vmem:[%s12030_s11 + $0x688] sm:$0xff]  ;;  %v8473_v35 = vld [vmem:[%s12030_s11 + $0x460] sm:$0xff] }
 0x4bc   :  { %1859 = vmatprep.subr.mxu0 %v8437_v36  ;;  %1930 = vmatprep.subr.mxu1 %v1641_v37  ;;  %v8542_v36 = vld [vmem:[%s12030_s11 + $0x680] sm:$0xff]  ;;  %v8472_v37 = vld [vmem:[%s12030_s11 + $0x458] sm:$0xff] }
 0x4bd   :  { %1860 = vmatpush2.msra.mxu0 %v8436_v38  ;;  %1931 = vmatpush2.msra.mxu1 %v1640_v14  ;;  %v8541_v38 = vld [vmem:[%s12030_s11 + $0x678] sm:$0xff]  ;;  %v8471_v14 = vld [vmem:[%s12030_s11 + $0x450] sm:$0xff] }
 0x4be   :  { %1861 = vmatprep.subr.mxu0 %v8435_v39  ;;  %1932 = vmatprep.subr.mxu1 %v1639_v40  ;;  %v8540_v39 = vld [vmem:[%s12030_s11 + $0x670] sm:$0xff]  ;;  %v8470_v40 = vld [vmem:[%s12030_s11 + $0x448] sm:$0xff] }
 0x4bf   :  { %1862 = vmatpush2.msra.mxu0 %v8434_v42  ;;  %1933 = vmatpush2.msra.mxu1 %v1638_v43  ;;  %v8539_v42 = vld [vmem:[%s12030_s11 + $0x668] sm:$0xff]  ;;  %v8469_v43 = vld [vmem:[%s12030_s11 + $0x440] sm:$0xff] }
 0x4c0   :  { %1863 = vmatprep.subr.mxu0 %v8433_v44  ;;  %1934 = vmatprep.subr.mxu1 %v1637_v45  ;;  %v8538_v44 = vld [vmem:[%s12030_s11 + $0x660] sm:$0xff]  ;;  %v8468_v45 = vld [vmem:[%s12030_s11 + $0x438] sm:$0xff] }
 0x4c1   :  { %1864 = vmatpush2.msra.mxu0 %v8432_v46  ;;  %1935 = vmatpush2.msra.mxu1 %v1636_v47  ;;  %v8537_v46 = vld [vmem:[%s12030_s11 + $0x658] sm:$0xff]  ;;  %v8467_v47 = vld [vmem:[%s12030_s11 + $0x430] sm:$0xff] }
 0x4c2   :  { %1865 = vmatprep.subr.mxu0 %v8431_v48  ;;  %1936 = vmatprep.subr.mxu1 %v1635_v52  ;;  %v8536_v48 = vld [vmem:[%s12030_s11 + $0x650] sm:$0xff]  ;;  %v8534_v52 = vld [vmem:[%s12030_s11 + $0x640] sm:$0xff] }
 0x4c3   :  { %1866 = vmatpush2.msra.mxu0 %v8430_v49  ;;  %1937 = vmatpush2.msra.mxu1 %v1634_v53  ;;  %v8466_v49 = vld [vmem:[%s12030_s11 + $0x428] sm:$0xff]  ;;  %v8464_v53 = vld [vmem:[%s12030_s11 + $0x418] sm:$0xff] }
 0x4c4   :  { %1867 = vmatprep.subr.mxu0 %v8429_v50  ;;  %1938 = vmatprep.subr.mxu1 %v1633_v54  ;;  %v8535_v50 = vld [vmem:[%s12030_s11 + $0x648] sm:$0xff]  ;;  %v8533_v54 = vld [vmem:[%s12030_s11 + $0x638] sm:$0xff] }
 0x4c5   :  { %1868 = vmatpush2.msra.mxu0 %v8428_v51  ;;  %1939 = vmatpush2.msra.mxu1 %v1632_v55  ;;  %v8465_v51 = vld [vmem:[%s12030_s11 + $0x420] sm:$0xff]  ;;  %v8463_v55 = vld [vmem:[%s12030_s11 + $0x410] sm:$0xff] }
 0x4c6   :  { %1980 = vmatprep.subr.mxu0 %v10804_v10  ;;  %2088 = vmatprep.subr.mxu1 %v8492_v56  ;;  %v8532_v56 = vld [vmem:[%s12030_s11 + $0x630] sm:$0xff] }
 0x545   :  { %v1595_v57 = vpop.f32.mrf.mxu0  ;;  %v1735_v58 = vpop.f32.mrf.mxu1 }
 0x547   :  { %v1597_v59 = vpop.f32.mrf.mxu0  ;;  %v1737_v60 = vpop.f32.mrf.mxu1 }
 0x548   :  { %1869 = vmatprep.mubr.f32.mxu0 %v1737_v60  ;;  %1940 = vmatprep.mubr.f32.mxu1 %v1597_v59  ;;  %v8461_v59 = vld [vmem:[%s12030_s11 + $0x400] sm:$0xff] }
 0x549   :  { %1870 = vmatmul.mubr.f32.vlgmr.msra.gmra.mxu0 %v1735_v58  ;;  %1941 = vmatmul.mubr.f32.vlgmr.msra.gmra.mxu1 %v1595_v57  ;;  %v8462_v57 = vld [vmem:[%s12030_s11 + $0x408] sm:$0xff]  ;;  %v8530_v60 = vld [vmem:[%s12030_s11 + $0x620] sm:$0xff] }
 0x54a   :  { %1981 = vmatpush1.msra.mxu0 %v10808_v12  ;;  %2016 = vmatprep.mubr.f32.mxu0 %v10362_v29  ;;  %v8531_v58 = vld [vmem:[%s12030_s11 + $0x628] sm:$0xff] }
 0x54b   :  { %1982 = vmatprep.subr.mxu0 %v10812_v20  ;;  %2089 = vmatpush1.msra.mxu1 %v8491_v61  ;;  %v8524_v61 = vld [vmem:[%s12030_s11 + $0x5f8] sm:$0xff] }
 0x54c   :  { %1983 = vmatpush1.msra.mxu0 %v10816_v41  ;;  %2090 = vmatprep.subr.mxu1 %v8490_v62  ;;  %v8529_v62 = vld [vmem:[%s12030_s11 + $0x618] sm:$0xff] }
 0x54d   :  { %2194 = vmatprep.subr.mxu0 %v10804_v10  ;;  %8460 = vmatmul.mubr.msk.f32.vlgmr.msra.gmra.mxu0 %vm1525_vm6, %v1948_v63  ;;  %v8486_v10 = vld [vmem:[%s12030_s11 + $0x4c8] sm:$0xff]  ;;  %v8523_v63 = vld [vmem:[%s12030_s11 + $0x5f0] sm:$0xff] }
 0x54e   :  { %2195 = vmatpush1.msra.mxu0 %v10808_v12  ;;  %2230 = vmatprep.mubr.f32.mxu0 %v10362_v29  ;;  %v8485_v12 = vld [vmem:[%s12030_s11 + $0x4c0] sm:$0xff] }
 0x54f   :  { %2196 = vmatprep.subr.mxu0 %v10812_v20  ;;  %2091 = vmatpush1.msra.mxu1 %v8489_v0  ;;  %v8484_v20 = vld [vmem:[%s12030_s11 + $0x4b8] sm:$0xff]  ;;  %v8528_v0 = vld [vmem:[%s12030_s11 + $0x610] sm:$0xff] }
 0x550   :  { %2197 = vmatpush1.msra.mxu0 %v10816_v41  ;;  %2092 = vmatprep.subr.mxu1 %v8488_v1  ;;  %v8483_v41 = vld [vmem:[%s12030_s11 + $0x4b0] sm:$0xff]  ;;  %v8522_v1 = vld [vmem:[%s12030_s11 + $0x5e8] sm:$0xff] }
 0x551   :  { %8525 = vmatmul.mubr.msk.f32.vlgmr.msra.gmra.mxu0 %vm1525_vm6, %v2162_v2  ;;  %2302 = vmatprep.subr.mxu0 %v8557_v3  ;;  %v8527_v2 = vld [vmem:[%s12030_s11 + $0x608] sm:$0xff]  ;;  %v8521_v3 = vld [vmem:[%s12030_s11 + $0x5e0] sm:$0xff] }
 0x552   :  { %2093 = vmatpush1.msra.mxu1 %v8487_v4  ;;  %2303 = vmatpush1.msra.mxu0 %v8556_v5  ;;  %v8526_v4 = vld [vmem:[%s12030_s11 + $0x600] sm:$0xff]  ;;  %v8520_v5 = vld [vmem:[%s12030_s11 + $0x5d8] sm:$0xff] }
 0x553   :  { %2094 = vmatprep.subr.mxu1 %v8486_v10  ;;  %2304 = vmatprep.subr.mxu0 %v8555_v6  ;;  %v8589_v10 = vld [vmem:[%s12030_s11 + $0x7f8] sm:$0xff]  ;;  %v8519_v6 = vld [vmem:[%s12030_s11 + $0x5d0] sm:$0xff] }
 0x554   :  { %2095 = vmatpush1.msra.mxu1 %v8485_v12  ;;  %2305 = vmatpush1.msra.mxu0 %v8554_v7  ;;  %v8588_v12 = vld [vmem:[%s12030_s11 + $0x7f0] sm:$0xff]  ;;  %v8518_v7 = vld [vmem:[%s12030_s11 + $0x5c8] sm:$0xff] }
 0x555   :  { %2096 = vmatprep.subr.mxu1 %v8484_v20  ;;  %2306 = vmatprep.subr.mxu0 %v8553_v8  ;;  %v8587_v20 = vld [vmem:[%s12030_s11 + $0x7e8] sm:$0xff]  ;;  %v8517_v8 = vld [vmem:[%s12030_s11 + $0x5c0] sm:$0xff] }
 0x556   :  { %2097 = vmatpush1.msra.mxu1 %v8483_v41  ;;  %2307 = vmatpush1.msra.mxu0 %v8552_v9  ;;  %v8586_v41 = vld [vmem:[%s12030_s11 + $0x7e0] sm:$0xff]  ;;  %v8516_v9 = vld [vmem:[%s12030_s11 + $0x5b8] sm:$0xff] }
 0x557   :  { %2098 = vmatprep.subr.mxu1 %v8482_v11  ;;  %2308 = vmatprep.subr.mxu0 %v8551_v13  ;;  %v8585_v11 = vld [vmem:[%s12030_s11 + $0x7d8] sm:$0xff]  ;;  %v8515_v13 = vld [vmem:[%s12030_s11 + $0x5b0] sm:$0xff] }
 0x558   :  { %2099 = vmatpush1.msra.mxu1 %v8481_v16  ;;  %2309 = vmatpush1.msra.mxu0 %v8550_v17  ;;  %v8584_v16 = vld [vmem:[%s12030_s11 + $0x7d0] sm:$0xff]  ;;  %v8514_v17 = vld [vmem:[%s12030_s11 + $0x5a8] sm:$0xff] }
 0x559   :  { %2100 = vmatprep.subr.mxu1 %v8480_v19  ;;  %2310 = vmatprep.subr.mxu0 %v8549_v21  ;;  %v8583_v19 = vld [vmem:[%s12030_s11 + $0x7c8] sm:$0xff]  ;;  %v8513_v21 = vld [vmem:[%s12030_s11 + $0x5a0] sm:$0xff] }
 0x55a   :  { %2101 = vmatpush1.msra.mxu1 %v8479_v22  ;;  %2311 = vmatpush1.msra.mxu0 %v8548_v23  ;;  %v8582_v22 = vld [vmem:[%s12030_s11 + $0x7c0] sm:$0xff]  ;;  %v8512_v23 = vld [vmem:[%s12030_s11 + $0x598] sm:$0xff] }
 0x55b   :  { %2102 = vmatprep.subr.mxu1 %v8478_v24  ;;  %2312 = vmatprep.subr.mxu0 %v8547_v25  ;;  %v8581_v24 = vld [vmem:[%s12030_s11 + $0x7b8] sm:$0xff]  ;;  %v8511_v25 = vld [vmem:[%s12030_s11 + $0x590] sm:$0xff] }
 0x55c   :  { %2103 = vmatpush1.msra.mxu1 %v8477_v26  ;;  %2313 = vmatpush1.msra.mxu0 %v8546_v27  ;;  %v8580_v26 = vld [vmem:[%s12030_s11 + $0x7b0] sm:$0xff]  ;;  %v8510_v27 = vld [vmem:[%s12030_s11 + $0x588] sm:$0xff] }
 0x55d   :  { %2104 = vmatprep.subr.mxu1 %v8476_v28  ;;  %2314 = vmatprep.subr.mxu0 %v8545_v30  ;;  %v8579_v28 = vld [vmem:[%s12030_s11 + $0x7a8] sm:$0xff]  ;;  %v8509_v30 = vld [vmem:[%s12030_s11 + $0x580] sm:$0xff] }
 0x55e   :  { %2105 = vmatpush1.msra.mxu1 %v8475_v31  ;;  %2315 = vmatpush1.msra.mxu0 %v8544_v32  ;;  %v8578_v31 = vld [vmem:[%s12030_s11 + $0x7a0] sm:$0xff]  ;;  %v8508_v32 = vld [vmem:[%s12030_s11 + $0x578] sm:$0xff] }
 0x55f   :  { %2106 = vmatprep.subr.mxu1 %v8474_v33  ;;  %2316 = vmatprep.subr.mxu0 %v8543_v34  ;;  %v8577_v33 = vld [vmem:[%s12030_s11 + $0x798] sm:$0xff]  ;;  %v8507_v34 = vld [vmem:[%s12030_s11 + $0x570] sm:$0xff] }
 0x560   :  { %2107 = vmatpush1.msra.mxu1 %v8473_v35  ;;  %2317 = vmatpush1.msra.mxu0 %v8542_v36  ;;  %v8576_v35 = vld [vmem:[%s12030_s11 + $0x790] sm:$0xff]  ;;  %v8506_v36 = vld [vmem:[%s12030_s11 + $0x568] sm:$0xff] }
 0x561   :  { %2108 = vmatprep.subr.mxu1 %v8472_v37  ;;  %2318 = vmatprep.subr.mxu0 %v8541_v38  ;;  %v8575_v37 = vld [vmem:[%s12030_s11 + $0x788] sm:$0xff]  ;;  %v8505_v38 = vld [vmem:[%s12030_s11 + $0x560] sm:$0xff] }
 0x562   :  { %2109 = vmatpush1.msra.mxu1 %v8471_v14  ;;  %2319 = vmatpush1.msra.mxu0 %v8540_v39  ;;  %v8574_v14 = vld [vmem:[%s12030_s11 + $0x780] sm:$0xff]  ;;  %v8504_v39 = vld [vmem:[%s12030_s11 + $0x558] sm:$0xff] }
 0x563   :  { %2110 = vmatprep.subr.mxu1 %v8470_v40  ;;  %2320 = vmatprep.subr.mxu0 %v8539_v42  ;;  %v8573_v40 = vld [vmem:[%s12030_s11 + $0x778] sm:$0xff]  ;;  %v8503_v42 = vld [vmem:[%s12030_s11 + $0x550] sm:$0xff] }
 0x564   :  { %2111 = vmatpush1.msra.mxu1 %v8469_v43  ;;  %2321 = vmatpush1.msra.mxu0 %v8538_v44  ;;  %v8572_v43 = vld [vmem:[%s12030_s11 + $0x770] sm:$0xff]  ;;  %v8502_v44 = vld [vmem:[%s12030_s11 + $0x548] sm:$0xff] }
 0x565   :  { %2112 = vmatprep.subr.mxu1 %v8468_v45  ;;  %2322 = vmatprep.subr.mxu0 %v8537_v46  ;;  %v8571_v45 = vld [vmem:[%s12030_s11 + $0x768] sm:$0xff]  ;;  %v8501_v46 = vld [vmem:[%s12030_s11 + $0x540] sm:$0xff] }
 0x566   :  { %2113 = vmatpush1.msra.mxu1 %v8467_v47  ;;  %2323 = vmatpush1.msra.mxu0 %v8536_v48  ;;  %v8570_v47 = vld [vmem:[%s12030_s11 + $0x760] sm:$0xff]  ;;  %v8500_v48 = vld [vmem:[%s12030_s11 + $0x538] sm:$0xff] }
 0x567   :  { %2114 = vmatprep.subr.mxu1 %v8466_v49  ;;  %2324 = vmatprep.subr.mxu0 %v8535_v50  ;;  %v8569_v49 = vld [vmem:[%s12030_s11 + $0x758] sm:$0xff]  ;;  %v8499_v50 = vld [vmem:[%s12030_s11 + $0x530] sm:$0xff] }
 0x568   :  { %2115 = vmatpush1.msra.mxu1 %v8465_v51  ;;  %2325 = vmatpush1.msra.mxu0 %v8534_v52  ;;  %v8568_v51 = vld [vmem:[%s12030_s11 + $0x750] sm:$0xff]  ;;  %v8498_v52 = vld [vmem:[%s12030_s11 + $0x528] sm:$0xff] }
 0x569   :  { %2116 = vmatprep.subr.mxu1 %v8464_v53  ;;  %2326 = vmatprep.subr.mxu0 %v8533_v54  ;;  %v8567_v53 = vld [vmem:[%s12030_s11 + $0x748] sm:$0xff]  ;;  %v8497_v54 = vld [vmem:[%s12030_s11 + $0x520] sm:$0xff] }
 0x56a   :  { %2117 = vmatpush1.msra.mxu1 %v8463_v55  ;;  %2327 = vmatpush1.msra.mxu0 %v8532_v56  ;;  %v8566_v55 = vld [vmem:[%s12030_s11 + $0x740] sm:$0xff]  ;;  %v8496_v56 = vld [vmem:[%s12030_s11 + $0x518] sm:$0xff] }
 0x56b   :  { %2118 = vmatprep.subr.mxu1 %v8462_v57  ;;  %2328 = vmatprep.subr.mxu0 %v8531_v58  ;;  %v8565_v57 = vld [vmem:[%s12030_s11 + $0x738] sm:$0xff]  ;;  %v8495_v58 = vld [vmem:[%s12030_s11 + $0x510] sm:$0xff] }
 0x56c   :  { %2119 = vmatpush1.msra.mxu1 %v8461_v59  ;;  %2329 = vmatpush1.msra.mxu0 %v8530_v60  ;;  %v8564_v59 = vld [vmem:[%s12030_s11 + $0x730] sm:$0xff]  ;;  %v8494_v60 = vld [vmem:[%s12030_s11 + $0x508] sm:$0xff] }
 0x56d   :  { %2120 = vmatprep.subr.mxu1 %v8524_v61  ;;  %2330 = vmatprep.subr.mxu0 %v8529_v62  ;;  %v8563_v61 = vld [vmem:[%s12030_s11 + $0x728] sm:$0xff]  ;;  %v8493_v62 = vld [vmem:[%s12030_s11 + $0x500] sm:$0xff] }
 0x56e   :  { %2121 = vmatpush2.msra.mxu1 %v8523_v63  ;;  %2331 = vmatpush1.msra.mxu0 %v8528_v0  ;;  %v8562_v63 = vld [vmem:[%s12030_s11 + $0x720] sm:$0xff]  ;;  %v8561_v0 = vld [vmem:[%s12030_s11 + $0x718] sm:$0xff] }
 0x56f   :  { %2122 = vmatprep.subr.mxu1 %v8522_v1  ;;  %2332 = vmatprep.subr.mxu0 %v8527_v2  ;;  %v8560_v1 = vld [vmem:[%s12030_s11 + $0x710] sm:$0xff]  ;;  %v8559_v2 = vld [vmem:[%s12030_s11 + $0x708] sm:$0xff] }
 0x570   :  { %2123 = vmatpush2.msra.mxu1 %v8521_v3  ;;  %2333 = vmatpush1.msra.mxu0 %v8526_v4  ;;  %v8558_v3 = vld [vmem:[%s12030_s11 + $0x700] sm:$0xff]  ;;  %v2408_v4 = vld [vmem:[%s12031_s15 + $0xf8] sm:$0xff] }
 0x571   :  { %2124 = vmatprep.subr.mxu1 %v8520_v5  ;;  %2334 = vmatprep.subr.mxu0 %v8589_v10 }
 0x572   :  { %2125 = vmatpush2.msra.mxu1 %v8519_v6  ;;  %2335 = vmatpush2.msra.mxu0 %v8588_v12 }
 0x573   :  { %2126 = vmatprep.subr.mxu1 %v8518_v7  ;;  %2336 = vmatprep.subr.mxu0 %v8587_v20  ;;  %v2392_v7 = vld [vmem:[%s12031_s15 + $0x78] sm:$0xff]  ;;  %v2407_v20 = vld [vmem:[%s12031_s15 + $0xf0] sm:$0xff] }
 0x574   :  { %2127 = vmatpush2.msra.mxu1 %v8517_v8  ;;  %2337 = vmatpush2.msra.mxu0 %v8586_v41  ;;  %v2391_v41 = vld [vmem:[%s12031_s15 + $0x70] sm:$0xff] }
 0x575   :  { %2128 = vmatprep.subr.mxu1 %v8516_v9  ;;  %2338 = vmatprep.subr.mxu0 %v8585_v11  ;;  %v2406_v9 = vld [vmem:[%s12031_s15 + $0xe8] sm:$0xff] }
 0x576   :  { %2129 = vmatpush2.msra.mxu1 %v8515_v13  ;;  %2339 = vmatpush2.msra.mxu0 %v8584_v16  ;;  %v2390_v13 = vld [vmem:[%s12031_s15 + $0x68] sm:$0xff]  ;;  %v2405_v16 = vld [vmem:[%s12031_s15 + $0xe0] sm:$0xff] }
 0x577   :  { %2130 = vmatprep.subr.mxu1 %v8514_v17  ;;  %2340 = vmatprep.subr.mxu0 %v8583_v19  ;;  %v2389_v17 = vld [vmem:[%s12031_s15 + $0x60] sm:$0xff]  ;;  %v2404_v19 = vld [vmem:[%s12031_s15 + $0xd8] sm:$0xff] }
 0x578   :  { %2131 = vmatpush2.msra.mxu1 %v8513_v21  ;;  %2341 = vmatpush2.msra.mxu0 %v8582_v22  ;;  %v2388_v21 = vld [vmem:[%s12031_s15 + $0x58] sm:$0xff]  ;;  %v2403_v22 = vld [vmem:[%s12031_s15 + $0xd0] sm:$0xff] }
 0x579   :  { %2132 = vmatprep.subr.mxu1 %v8512_v23  ;;  %2342 = vmatprep.subr.mxu0 %v8581_v24  ;;  %v2387_v23 = vld [vmem:[%s12031_s15 + $0x50] sm:$0xff]  ;;  %v2402_v24 = vld [vmem:[%s12031_s15 + $0xc8] sm:$0xff] }
 0x57a   :  { %2133 = vmatpush2.msra.mxu1 %v8511_v25  ;;  %2343 = vmatpush2.msra.mxu0 %v8580_v26  ;;  %v2386_v25 = vld [vmem:[%s12031_s15 + $0x48] sm:$0xff]  ;;  %v2401_v26 = vld [vmem:[%s12031_s15 + $0xc0] sm:$0xff] }
 0x57b   :  { %2134 = vmatprep.subr.mxu1 %v8510_v27  ;;  %2344 = vmatprep.subr.mxu0 %v8579_v28  ;;  %v2385_v27 = vld [vmem:[%s12031_s15 + $0x40] sm:$0xff]  ;;  %v2400_v28 = vld [vmem:[%s12031_s15 + $0xb8] sm:$0xff] }
 0x57c   :  { %2135 = vmatpush2.msra.mxu1 %v8509_v30  ;;  %2345 = vmatpush2.msra.mxu0 %v8578_v31  ;;  %v2384_v30 = vld [vmem:[%s12031_s15 + $0x38] sm:$0xff]  ;;  %v2399_v31 = vld [vmem:[%s12031_s15 + $0xb0] sm:$0xff] }
 0x57d   :  { %2136 = vmatprep.subr.mxu1 %v8508_v32  ;;  %2346 = vmatprep.subr.mxu0 %v8577_v33  ;;  %v2383_v32 = vld [vmem:[%s12031_s15 + $0x30] sm:$0xff]  ;;  %v2398_v33 = vld [vmem:[%s12031_s15 + $0xa8] sm:$0xff] }
 0x57e   :  { %2137 = vmatpush2.msra.mxu1 %v8507_v34  ;;  %2347 = vmatpush2.msra.mxu0 %v8576_v35  ;;  %v2382_v34 = vld [vmem:[%s12031_s15 + $0x28] sm:$0xff]  ;;  %v2397_v35 = vld [vmem:[%s12031_s15 + $0xa0] sm:$0xff] }
 0x57f   :  { %2138 = vmatprep.subr.mxu1 %v8506_v36  ;;  %2348 = vmatprep.subr.mxu0 %v8575_v37  ;;  %v2381_v36 = vld [vmem:[%s12031_s15 + $0x20] sm:$0xff]  ;;  %v2396_v37 = vld [vmem:[%s12031_s15 + $0x98] sm:$0xff] }
 0x580   :  { %2139 = vmatpush2.msra.mxu1 %v8505_v38  ;;  %2349 = vmatpush2.msra.mxu0 %v8574_v14  ;;  %v2380_v38 = vld [vmem:[%s12031_s15 + $0x18] sm:$0xff]  ;;  %v2395_v14 = vld [vmem:[%s12031_s15 + $0x90] sm:$0xff] }
 0x581   :  { %2140 = vmatprep.subr.mxu1 %v8504_v39  ;;  %2350 = vmatprep.subr.mxu0 %v8573_v40  ;;  %v2379_v39 = vld [vmem:[%s12031_s15 + $0x10] sm:$0xff]  ;;  %v2394_v40 = vld [vmem:[%s12031_s15 + $0x88] sm:$0xff] }
 0x582   :  { %2141 = vmatpush2.msra.mxu1 %v8503_v42  ;;  %2351 = vmatpush2.msra.mxu0 %v8572_v43  ;;  %v2378_v42 = vld [vmem:[%s12031_s15 + $0x8] sm:$0xff]  ;;  %v2393_v43 = vld [vmem:[%s12031_s15 + $0x80] sm:$0xff] }
 0x583   :  { %2142 = vmatprep.subr.mxu1 %v8502_v44  ;;  %2352 = vmatprep.subr.mxu0 %v8571_v45  ;;  %v2377_v44 = vld [vmem:[%s12031_s15] sm:$0xff] }
 0x584   :  { %2143 = vmatpush2.msra.mxu1 %v8501_v46  ;;  %2353 = vmatpush2.msra.mxu0 %v8570_v47 }
 0x585   :  { %2144 = vmatprep.subr.mxu1 %v8500_v48  ;;  %2354 = vmatprep.subr.mxu0 %v8569_v49 }
 0x586   :  { %2145 = vmatpush2.msra.mxu1 %v8499_v50  ;;  %2355 = vmatpush2.msra.mxu0 %v8568_v51 }
 0x587   :  { %2146 = vmatprep.subr.mxu1 %v8498_v52  ;;  %2356 = vmatprep.subr.mxu0 %v8567_v53 }
 0x588   :  { %2147 = vmatpush2.msra.mxu1 %v8497_v54  ;;  %2357 = vmatpush2.msra.mxu0 %v8566_v55 }
 0x589   :  { %2148 = vmatprep.subr.mxu1 %v8496_v56  ;;  %2358 = vmatprep.subr.mxu0 %v8565_v57 }
 0x58a   :  { %2149 = vmatpush2.msra.mxu1 %v8495_v58  ;;  %2359 = vmatpush2.msra.mxu0 %v8564_v59 }
 0x58b   :  { %2150 = vmatprep.subr.mxu1 %v8494_v60  ;;  %2360 = vmatprep.subr.mxu0 %v8563_v61 }
 0x58c   :  { %2151 = vmatpush2.msra.mxu1 %v8493_v62  ;;  %2361 = vmatpush2.msra.mxu0 %v8562_v63 }
 0x58d   :  { %2362 = vmatprep.subr.mxu0 %v8561_v0  ;;  %8983 = vmatprep.subr.mxu1 %v2408_v4 }
 0x58e   :  { %2363 = vmatpush2.msra.mxu0 %v8560_v1 }
 0x58f   :  { %2364 = vmatprep.subr.mxu0 %v8559_v2 }
 0x590   :  { %2365 = vmatpush2.msra.mxu0 %v8558_v3 }
 0x591   :  { %9018 = vmatprep.subr.mxu0 %v2408_v4 }
 0x609   :  { %v11091_v5 = vpop.f32.mrf.mxu0  ;;  %v1942_v45 = vpop.f32.mrf.mxu1 }
 0x60a   :  { %v1943_v48 = vadd.f32 %v1942_v45, %v11091_v5 }
 0x60b   :  { %v11093_v10 = vpop.f32.mrf.mxu0  ;;  %v1944_v46 = vpop.f32.mrf.mxu1 }
 0x60c   :  { %v1945_v50 = vadd.f32 %v1944_v46, %v11093_v10 }
 0x60d   :  { %v2018_v6 = vpop.f32.mrf.mxu0 }
 0x60f   :  { %v2020_v12 = vpop.f32.mrf.mxu0 }
 0x610   :  { %2152 = vmatprep.mubr.f32.mxu1 %v2020_v12 }
 0x611   :  { %2153 = vmatmul.mubr.f32.vlgmr.msra.gmra.mxu1 %v2018_v6  ;;  %v2232_v8 = vpop.f32.mrf.mxu0 }
 0x612   :  { %8984 = vmatpush3.msra.mxu1 %v2392_v7 }
 0x613   :  { %v2234_v11 = vpop.f32.mrf.mxu0  ;;  %8985 = vmatprep.subr.mxu1 %v2407_v20 }
 0x614   :  { %2366 = vmatprep.mubr.f32.mxu0 %v2234_v11  ;;  %8986 = vmatpush3.msra.mxu1 %v2391_v41 }
 0x615   :  { %2367 = vmatmul.mubr.f32.vlgmr.msra.gmra.mxu0 %v2232_v8  ;;  %8987 = vmatprep.subr.mxu1 %v2406_v9 }
 0x616   :  { %9019 = vmatpush3.msra.mxu0 %v2392_v7  ;;  %8988 = vmatpush3.msra.mxu1 %v2390_v13 }
 0x617   :  { %9020 = vmatprep.subr.mxu0 %v2407_v20  ;;  %8989 = vmatprep.subr.mxu1 %v2405_v16 }
 0x618   :  { %9021 = vmatpush3.msra.mxu0 %v2391_v41  ;;  %8990 = vmatpush3.msra.mxu1 %v2389_v17 }
 0x619   :  { %9022 = vmatprep.subr.mxu0 %v2406_v9  ;;  %8991 = vmatprep.subr.mxu1 %v2404_v19 }
 0x61a   :  { %9023 = vmatpush3.msra.mxu0 %v2390_v13  ;;  %8992 = vmatpush3.msra.mxu1 %v2388_v21 }
 0x61b   :  { %9024 = vmatprep.subr.mxu0 %v2405_v16  ;;  %8993 = vmatprep.subr.mxu1 %v2403_v22 }
 0x61c   :  { %9025 = vmatpush3.msra.mxu0 %v2389_v17  ;;  %8994 = vmatpush3.msra.mxu1 %v2387_v23 }
 0x61d   :  { %9026 = vmatprep.subr.mxu0 %v2404_v19  ;;  %8995 = vmatprep.subr.mxu1 %v2402_v24 }
 0x61e   :  { %9027 = vmatpush3.msra.mxu0 %v2388_v21  ;;  %8996 = vmatpush3.msra.mxu1 %v2386_v25  ;;  %v2599_v21 = vld [vmem:[%s12032_s9 + $0x78] sm:$0xff] }
 0x61f   :  { %9028 = vmatprep.subr.mxu0 %v2403_v22  ;;  %8997 = vmatprep.subr.mxu1 %v2401_v26  ;;  %v2598_v22 = vld [vmem:[%s12032_s9 + $0x70] sm:$0xff] }
 0x620   :  { %9029 = vmatpush3.msra.mxu0 %v2387_v23  ;;  %8998 = vmatpush3.msra.mxu1 %v2385_v27  ;;  %v2597_v23 = vld [vmem:[%s12032_s9 + $0x68] sm:$0xff] }
 0x621   :  { %9030 = vmatprep.subr.mxu0 %v2402_v24  ;;  %8999 = vmatprep.subr.mxu1 %v2400_v28  ;;  %v2596_v24 = vld [vmem:[%s12032_s9 + $0x60] sm:$0xff] }
 0x622   :  { %9031 = vmatpush3.msra.mxu0 %v2386_v25  ;;  %9000 = vmatpush3.msra.mxu1 %v2384_v30  ;;  %v2595_v25 = vld [vmem:[%s12032_s9 + $0x58] sm:$0xff] }
 0x623   :  { %9032 = vmatprep.subr.mxu0 %v2401_v26  ;;  %9001 = vmatprep.subr.mxu1 %v2399_v31  ;;  %v2594_v26 = vld [vmem:[%s12032_s9 + $0x50] sm:$0xff] }
 0x624   :  { %9033 = vmatpush3.msra.mxu0 %v2385_v27  ;;  %9002 = vmatpush3.msra.mxu1 %v2383_v32  ;;  %v2593_v27 = vld [vmem:[%s12032_s9 + $0x48] sm:$0xff] }
 0x625   :  { %9034 = vmatprep.subr.mxu0 %v2400_v28  ;;  %9003 = vmatprep.subr.mxu1 %v2398_v33  ;;  %v2592_v28 = vld [vmem:[%s12032_s9 + $0x40] sm:$0xff] }
 0x626   :  { %9035 = vmatpush3.msra.mxu0 %v2384_v30  ;;  %9004 = vmatpush3.msra.mxu1 %v2382_v34  ;;  %v2591_v30 = vld [vmem:[%s12032_s9 + $0x38] sm:$0xff] }
 0x627   :  { %9036 = vmatprep.subr.mxu0 %v2399_v31  ;;  %9005 = vmatprep.subr.mxu1 %v2397_v35  ;;  %v2590_v31 = vld [vmem:[%s12032_s9 + $0x30] sm:$0xff] }
 0x628   :  { %9037 = vmatpush3.msra.mxu0 %v2383_v32  ;;  %9006 = vmatpush3.msra.mxu1 %v2381_v36  ;;  %v2589_v32 = vld [vmem:[%s12032_s9 + $0x28] sm:$0xff] }
 0x629   :  { %9038 = vmatprep.subr.mxu0 %v2398_v33  ;;  %9007 = vmatprep.subr.mxu1 %v2396_v37  ;;  %v2588_v33 = vld [vmem:[%s12032_s9 + $0x20] sm:$0xff] }
 0x62a   :  { %9039 = vmatpush3.msra.mxu0 %v2382_v34  ;;  %9008 = vmatpush3.msra.mxu1 %v2380_v38  ;;  %v2587_v34 = vld [vmem:[%s12032_s9 + $0x18] sm:$0xff] }
 0x62b   :  { %9040 = vmatprep.subr.mxu0 %v2397_v35  ;;  %9009 = vmatprep.subr.mxu1 %v2395_v14  ;;  %v2586_v35 = vld [vmem:[%s12032_s9 + $0x10] sm:$0xff] }
 0x62c   :  { %9041 = vmatpush3.msra.mxu0 %v2381_v36  ;;  %9010 = vmatpush3.msra.mxu1 %v2379_v39  ;;  %v2585_v36 = vld [vmem:[%s12032_s9 + $0x8] sm:$0xff] }
 0x62d   :  { %9042 = vmatprep.subr.mxu0 %v2396_v37  ;;  %9011 = vmatprep.subr.mxu1 %v2394_v40  ;;  %v2584_v37 = vld [vmem:[%s12032_s9] sm:$0xff] }
 0x62e   :  { %9043 = vmatpush3.msra.mxu0 %v2380_v38  ;;  %9012 = vmatpush3.msra.mxu1 %v2378_v42  ;;  %v8625_v38 = vld [vmem:[%s12033_s3 + $0x1f8] sm:$0xff] }
 0x62f   :  { %9044 = vmatprep.subr.mxu0 %v2395_v14  ;;  %9013 = vmatprep.subr.mxu1 %v2393_v43 }
 0x630   :  { %9045 = vmatpush3.msra.mxu0 %v2379_v39  ;;  %9014 = vmatpush3.msra.mxu1 %v2377_v44 }
 0x631   :  { %9046 = vmatprep.subr.mxu0 %v2394_v40  ;;  %2619 = vmatprep.subr.mxu1 %v2599_v21 }
 0x632   :  { %9047 = vmatpush3.msra.mxu0 %v2378_v42 }
 0x633   :  { %9048 = vmatprep.subr.mxu0 %v2393_v43 }
 0x634   :  { %9049 = vmatpush3.msra.mxu0 %v2377_v44 }
 0x635   :  { %2693 = vmatprep.subr.mxu0 %v2599_v21  ;;  %v8612_v21 = vld [vmem:[%s12033_s3 + $0x190] sm:$0xff] }
 0x6d1   :  { %v2154_v47 = vpop.f32.mrf.mxu1 }
 0x6d2   :  { %v2159_v51 = vadd.f32 %v2154_v47, %v1943_v48 }
 0x6d3   :  { %v2156_v49 = vpop.f32.mrf.mxu1 }
 0x6d4   :  { %v2160_v53 = vadd.f32 %v2156_v49, %v1945_v50  ;;  %v2375_v50 = vld [vmem:[%s12034_s16] sm:$0x1] }
 0x6d5   :  { %v2368_v52 = vpop.f32.mrf.mxu0 }
 0x6d6   :  { %v11128_v54 = vadd.f32 %v2368_v52, %v2159_v51 }
 0x6d7   :  { %v2370_v55 = vpop.f32.mrf.mxu0 }
 0x6d8   :  { %v2409_v56 = vrot.slane %v11128_v54, 4  ;;  %v2421_v57 = vmul.f32 %v11128_v54, %v11128_v54  ;;  %v11133_v58 = vadd.f32 %v2370_v55, %v2160_v53  ;;  %v2376_v53 = vld [vmem:[%s12035_s18] sm:$0x1] }
 0x6da   :  { %v2410_v59 = vadd.f32 %v2409_v56, %v11128_v54  ;;  %v2423_v60 = vrot.slane %v2421_v57, 4  ;;  %v2415_v61 = vrot.slane %v11133_v58, 4  ;;  %v2422_v62 = vmul.f32 %v11133_v58, %v11133_v58 }
 0x6dc   :  { %v2411_v63 = vrot.slane %v2410_v59, 2  ;;  %v2424_v0 = vadd.f32 %v2423_v60, %v2421_v57  ;;  %v2416_v1 = vadd.f32 %v2415_v61, %v11133_v58  ;;  %v2429_v2 = vrot.slane %v2422_v62, 4  ;;  %v8609_v57 = vld [vmem:[%s12033_s3 + $0x178] sm:$0xff]  ;;  %v8608_v60 = vld [vmem:[%s12033_s3 + $0x170] sm:$0xff]  ;;  %v8623_v61 = vld [vmem:[%s12033_s3 + $0x1e8] sm:$0xff] }
 0x6de   :  { %v2417_v3 = vrot.slane %v2416_v1, 2  ;;  %v2412_v4 = vadd.f32 %v2411_v63, %v2410_v59  ;;  %v2430_v5 = vadd.f32 %v2429_v2, %v2422_v62  ;;  %v2425_v10 = vrot.slane %v2424_v0, 2  ;;  %v8624_v59 = vld [vmem:[%s12033_s3 + $0x1f0] sm:$0xff]  ;;  %v8607_v62 = vld [vmem:[%s12033_s3 + $0x168] sm:$0xff]  ;;  %v8622_v63 = vld [vmem:[%s12033_s3 + $0x1e0] sm:$0xff] }
 0x6df   :  { %v8605_v2 = vld [vmem:[%s12033_s3 + $0x158] sm:$0xff] }
 0x6e0   :  { %v2418_v6 = vadd.f32 %v2417_v3, %v2416_v1  ;;  %v2431_v12 = vrot.slane %v2430_v5, 2  ;;  %v2426_v7 = vadd.f32 %v2425_v10, %v2424_v0  ;;  %v2413_v20 = vrot.slane %v2412_v4, 1  ;;  %v8606_v0 = vld [vmem:[%s12033_s3 + $0x160] sm:$0xff]  ;;  %v8621_v1 = vld [vmem:[%s12033_s3 + $0x1d8] sm:$0xff]  ;;  %v8620_v3 = vld [vmem:[%s12033_s3 + $0x1d0] sm:$0xff] }
 0x6e1   :  { %v8603_v10 = vld [vmem:[%s12033_s3 + $0x148] sm:$0xff] }
 0x6e2   :  { %v2419_v8 = vrot.slane %v2418_v6, 1  ;;  %v2432_v41 = vadd.f32 %v2431_v12, %v2430_v5  ;;  %v2427_v9 = vrot.slane %v2426_v7, 1  ;;  %v2414_v16 = vadd.f32 %v2413_v20, %v2412_v4  ;;  %v8604_v4 = vld [vmem:[%s12033_s3 + $0x150] sm:$0xff]  ;;  %v8619_v5 = vld [vmem:[%s12033_s3 + $0x1c8] sm:$0xff]  ;;  %v8602_v12 = vld [vmem:[%s12033_s3 + $0x140] sm:$0xff] }
 0x6e3   :  { %v8601_v20 = vld [vmem:[%s12033_s3 + $0x138] sm:$0xff] }
 0x6e4   :  { %v2420_v11 = vadd.f32 %v2419_v8, %v2418_v6  ;;  %v2433_v13 = vrot.slane %v2432_v41, 1  ;;  %v2428_v19 = vadd.f32 %v2427_v9, %v2426_v7  ;;  %v8618_v6 = vld [vmem:[%s12033_s3 + $0x1c0] sm:$0xff]  ;;  %v8617_v7 = vld [vmem:[%s12033_s3 + $0x1b8] sm:$0xff]  ;;  %v8616_v8 = vld [vmem:[%s12033_s3 + $0x1b0] sm:$0xff] }
 0x6e5   :  { %v8615_v9 = vld [vmem:[%s12033_s3 + $0x1a8] sm:$0xff] }
 0x6e6   :  { %2499 = vmatprep.mubr.f32.mxu1 %v2420_v11  ;;  %v2434_v17 = vadd.f32 %v2433_v13, %v2432_v41  ;;  %v8600_v41 = vld [vmem:[%s12033_s3 + $0x130] sm:$0xff]  ;;  %v8599_v11 = vld [vmem:[%s12033_s3 + $0x128] sm:$0xff]  ;;  %v8614_v13 = vld [vmem:[%s12033_s3 + $0x1a0] sm:$0xff] }
 0x6e7   :  { %2500 = vmatmul.mubr.f32.vlgmr.msra.gmra.mxu1 %v2414_v16  ;;  %v8598_v16 = vld [vmem:[%s12033_s3 + $0x120] sm:$0xff] }
 0x6e8   :  { %2570 = vmatprep.mubr.f32.mxu0 %v2434_v17  ;;  %2667 = vmatprep.mubr.f32.mxu1 %v10362_v29  ;;  %v8613_v17 = vld [vmem:[%s12033_s3 + $0x198] sm:$0xff] }
 0x6e9   :  { %2571 = vmatmul.mubr.f32.vlgmr.msra.gmra.mxu0 %v2428_v19  ;;  %2620 = vmatpush1.msra.mxu1 %v2598_v22  ;;  %v8597_v19 = vld [vmem:[%s12033_s3 + $0x118] sm:$0xff] }
 0x6ea   :  { %2741 = vmatprep.mubr.f32.mxu0 %v10362_v29  ;;  %2694 = vmatpush1.msra.mxu0 %v2598_v22  ;;  %v8596_v22 = vld [vmem:[%s12033_s3 + $0x110] sm:$0xff] }
 0x6eb   :  { %2621 = vmatprep.subr.mxu1 %v2597_v23  ;;  %2695 = vmatprep.subr.mxu0 %v2597_v23  ;;  %v8611_v23 = vld [vmem:[%s12033_s3 + $0x188] sm:$0xff] }
 0x6ec   :  { %2622 = vmatpush1.msra.mxu1 %v2596_v24  ;;  %2696 = vmatpush1.msra.mxu0 %v2596_v24  ;;  %v8595_v24 = vld [vmem:[%s12033_s3 + $0x108] sm:$0xff] }
 0x6ed   :  { %2623 = vmatprep.subr.mxu1 %v2595_v25  ;;  %2697 = vmatprep.subr.mxu0 %v2595_v25  ;;  %v8610_v25 = vld [vmem:[%s12033_s3 + $0x180] sm:$0xff] }
 0x6ee   :  { %2624 = vmatpush1.msra.mxu1 %v2594_v26  ;;  %2698 = vmatpush1.msra.mxu0 %v2594_v26  ;;  %v8594_v26 = vld [vmem:[%s12033_s3 + $0x100] sm:$0xff] }
 0x6ef   :  { %2625 = vmatprep.subr.mxu1 %v2593_v27  ;;  %2699 = vmatprep.subr.mxu0 %v2593_v27 }
 0x6f0   :  { %2626 = vmatpush1.msra.mxu1 %v2592_v28  ;;  %2700 = vmatpush1.msra.mxu0 %v2592_v28 }
 0x6f1   :  { %2627 = vmatprep.subr.mxu1 %v2591_v30  ;;  %2701 = vmatprep.subr.mxu0 %v2591_v30 }
 0x6f2   :  { %2628 = vmatpush1.msra.mxu1 %v2590_v31  ;;  %2702 = vmatpush1.msra.mxu0 %v2590_v31 }
 0x6f3   :  { %2629 = vmatprep.subr.mxu1 %v2589_v32  ;;  %2703 = vmatprep.subr.mxu0 %v2589_v32 }
 0x6f4   :  { %2630 = vmatpush1.msra.mxu1 %v2588_v33  ;;  %2704 = vmatpush1.msra.mxu0 %v2588_v33 }
 0x6f5   :  { %2631 = vmatprep.subr.mxu1 %v2587_v34  ;;  %2705 = vmatprep.subr.mxu0 %v2587_v34 }
 0x6f6   :  { %2632 = vmatpush1.msra.mxu1 %v2586_v35  ;;  %2706 = vmatpush1.msra.mxu0 %v2586_v35 }
 0x6f7   :  { %2633 = vmatprep.subr.mxu1 %v2585_v36  ;;  %2707 = vmatprep.subr.mxu0 %v2585_v36 }
 0x6f8   :  { %2634 = vmatpush1.msra.mxu1 %v2584_v37  ;;  %2708 = vmatpush1.msra.mxu0 %v2584_v37 }
 0x6f9   :  { %9053 = vmatprep.subr.mxu0 %v8625_v38 }
 0x7a7   :  { %v9015_v14 = vpop.f32.mrf.mxu1 }
 0x7a9   :  { %v9016_v39 = vpop.f32.mrf.mxu1  ;;  %v9050_v40 = vpop.f32.mrf.mxu0 }
 0x7aa   :  { %v9017_v42 = vadd.f32 %v9016_v39, %v9015_v14 }
 0x7ab   :  { %v9051_v43 = vpop.f32.mrf.mxu0 }
 0x7ac   :  { %v2505_v44 = vmul.f32 0.03125, %v9017_v42  ;;  %v9052_v45 = vadd.f32 %v9051_v43, %v9050_v40  ;;  %v2774_v43 = vld [vmem:[#allocation8] sm:$0xff] }
 0x7ae   :  { %v2577_v46 = vmul.f32 %v2505_v44, %v2505_v44  ;;  %v2576_v47 = vmul.f32 0.03125, %v9052_v45  ;;  %v2865_v45 = vld [vmem:[%s12033_s3 + $0x78] sm:$0xff] }
 0x7b0   :  { %v2578_v48 = vsub.f32 %v2576_v47, %v2577_v46  ;;  %v2880_v46 = vld [vmem:[%s12033_s3 + $0xf0] sm:$0xff] }
 0x7b1   :  { %v2864_v47 = vld [vmem:[%s12033_s3 + $0x70] sm:$0xff] }
 0x7b2   :  { %v2579_v49 = vadd.f32 1e-05, %v2578_v48  ;;  %v2879_v48 = vld [vmem:[%s12033_s3 + $0xe8] sm:$0xff] }
 0x7b4   :  { %9918 = vrsqrt.f32 %v2579_v49  ;;  %v2863_v49 = vld [vmem:[%s12033_s3 + $0x68] sm:$0xff] }
 0x7c1   :  { %v9919_v51 = vpop.eup %9918 }
 0x7c2   :  { %v2581_v52 = vmul.f32 %v9919_v51, %v2375_v50  ;;  %v2878_v50 = vld [vmem:[%s12033_s3 + $0xe0] sm:$0xff] }
 0x7c3   :  { %v2862_v51 = vld [vmem:[%s12033_s3 + $0x60] sm:$0xff] }
 0x7c4   :  { %8590 = vmatmul.mubr.msk.f32.vlgmr.msra.gmra.mxu1 %vm574_vm1, %v2581_v52  ;;  %v2582_v55 = vmul.f32 %v2581_v52, %v2505_v44  ;;  %v2883_v44 = vld [vmem:[#allocation8 + $0x8] sm:$0xff]  ;;  %v2877_v52 = vld [vmem:[%s12033_s3 + $0xd8] sm:$0xff] }
 0x7c5   :  { %2843 = vmatprep.mubr.f32.mxu1 %v10362_v29 }
 0x7c6   :  { %v2583_v56 = vsub.f32 %v2376_v53, %v2582_v55  ;;  %v2861_v53 = vld [vmem:[%s12033_s3 + $0x58] sm:$0xff]  ;;  %v2876_v55 = vld [vmem:[%s12033_s3 + $0xd0] sm:$0xff] }
 0x7c8   :  { %8591 = vmatmul.mubr.msk.f32.vlgmr.msra.gmra.mxu0 %vm574_vm1, %v2583_v56  ;;  %v2860_v56 = vld [vmem:[%s12033_s3 + $0x50] sm:$0xff] }
 0x7c9   :  { %9054 = vmatpush3.msra.mxu0 %v8609_v57  ;;  %v2875_v57 = vld [vmem:[%s12033_s3 + $0xc8] sm:$0xff] }
 0x7ca   :  { %9055 = vmatprep.subr.mxu0 %v8624_v59  ;;  %v2859_v59 = vld [vmem:[%s12033_s3 + $0x48] sm:$0xff] }
 0x7cb   :  { %9056 = vmatpush3.msra.mxu0 %v8608_v60  ;;  %v2874_v60 = vld [vmem:[%s12033_s3 + $0xc0] sm:$0xff] }
 0x7cc   :  { %9057 = vmatprep.subr.mxu0 %v8623_v61  ;;  %v2858_v61 = vld [vmem:[%s12033_s3 + $0x40] sm:$0xff] }
 0x7cd   :  { %9058 = vmatpush3.msra.mxu0 %v8607_v62  ;;  %v2873_v62 = vld [vmem:[%s12033_s3 + $0xb8] sm:$0xff] }
 0x7ce   :  { %9059 = vmatprep.subr.mxu0 %v8622_v63  ;;  %v2857_v63 = vld [vmem:[%s12033_s3 + $0x38] sm:$0xff] }
 0x7cf   :  { %9060 = vmatpush3.msra.mxu0 %v8606_v0  ;;  %v2872_v0 = vld [vmem:[%s12033_s3 + $0xb0] sm:$0xff] }
 0x7d0   :  { %9061 = vmatprep.subr.mxu0 %v8621_v1  ;;  %v2856_v1 = vld [vmem:[%s12033_s3 + $0x30] sm:$0xff] }
 0x7d1   :  { %9062 = vmatpush3.msra.mxu0 %v8605_v2  ;;  %v2871_v2 = vld [vmem:[%s12033_s3 + $0xa8] sm:$0xff] }
 0x7d2   :  { %9063 = vmatprep.subr.mxu0 %v8620_v3  ;;  %v2855_v3 = vld [vmem:[%s12033_s3 + $0x28] sm:$0xff] }
 0x7d3   :  { %9064 = vmatpush3.msra.mxu0 %v8604_v4  ;;  %v2870_v4 = vld [vmem:[%s12033_s3 + $0xa0] sm:$0xff] }
 0x7d4   :  { %9065 = vmatprep.subr.mxu0 %v8619_v5  ;;  %v2854_v5 = vld [vmem:[%s12033_s3 + $0x20] sm:$0xff] }
 0x7d5   :  { %9066 = vmatpush3.msra.mxu0 %v8603_v10  ;;  %v2869_v10 = vld [vmem:[%s12033_s3 + $0x98] sm:$0xff] }
 0x7d6   :  { %9067 = vmatprep.subr.mxu0 %v8618_v6  ;;  %v2853_v6 = vld [vmem:[%s12033_s3 + $0x18] sm:$0xff] }
 0x7d7   :  { %9068 = vmatpush3.msra.mxu0 %v8602_v12  ;;  %v2868_v12 = vld [vmem:[%s12033_s3 + $0x90] sm:$0xff] }
 0x7d8   :  { %9069 = vmatprep.subr.mxu0 %v8617_v7  ;;  %v2852_v7 = vld [vmem:[%s12033_s3 + $0x10] sm:$0xff] }
 0x7d9   :  { %9070 = vmatpush3.msra.mxu0 %v8601_v20  ;;  %v2867_v20 = vld [vmem:[%s12033_s3 + $0x88] sm:$0xff] }
 0x7da   :  { %9071 = vmatprep.subr.mxu0 %v8616_v8  ;;  %v2851_v8 = vld [vmem:[%s12033_s3 + $0x8] sm:$0xff] }
 0x7db   :  { %9072 = vmatpush3.msra.mxu0 %v8600_v41  ;;  %v2866_v41 = vld [vmem:[%s12033_s3 + $0x80] sm:$0xff] }
 0x7dc   :  { %9073 = vmatprep.subr.mxu0 %v8615_v9  ;;  %v2850_v9 = vld [vmem:[%s12033_s3] sm:$0xff] }
 0x7dd   :  { %9074 = vmatpush3.msra.mxu0 %v8599_v11  ;;  %v8658_v11 = vld [vmem:[%s12033_s3 + $0x2f8] sm:$0xff] }
 0x7de   :  { %9075 = vmatprep.subr.mxu0 %v8614_v13 }
 0x7df   :  { %9076 = vmatpush3.msra.mxu0 %v8598_v16 }
 0x7e0   :  { %9077 = vmatprep.subr.mxu0 %v8613_v17  ;;  %v8642_v17 = vld [vmem:[%s12033_s3 + $0x278] sm:$0xff] }
 0x7e1   :  { %9078 = vmatpush3.msra.mxu0 %v8597_v19  ;;  %v8657_v19 = vld [vmem:[%s12033_s3 + $0x2f0] sm:$0xff] }
 0x7e2   :  { %9079 = vmatprep.subr.mxu0 %v8612_v21 }
 0x7e3   :  { %9080 = vmatpush3.msra.mxu0 %v8596_v22  ;;  %v8641_v22 = vld [vmem:[%s12033_s3 + $0x270] sm:$0xff] }
 0x7e4   :  { %9081 = vmatprep.subr.mxu0 %v8611_v23  ;;  %v8656_v23 = vld [vmem:[%s12033_s3 + $0x2e8] sm:$0xff] }
 0x7e5   :  { %9082 = vmatpush3.msra.mxu0 %v8595_v24 }
 0x7e6   :  { %9083 = vmatprep.subr.mxu0 %v8610_v25  ;;  %v8640_v25 = vld [vmem:[%s12033_s3 + $0x268] sm:$0xff] }
 0x7e7   :  { %9084 = vmatpush3.msra.mxu0 %v8594_v26  ;;  %v8655_v26 = vld [vmem:[%s12033_s3 + $0x2e0] sm:$0xff] }
 0x884   :  { %v2669_v27 = vpop.f32.mrf.mxu1 }
 0x885   :  { %v2751_v28 = vrot.slane %v2669_v27, %v10794_v18  ;;  %v3132_v27 = vld [vmem:[#allocation8 + $0x10] sm:$0xff] }
 0x886   :  { %v2671_v30 = vpop.f32.mrf.mxu1 }
 0x887   :  { %v2755_v31 = vrot.slane %v2671_v30, %v10794_v18  ;;  %v2756_v33 = vmul.f32 %v2751_v28, %v11128_v54  ;;  %v8639_v28 = vld [vmem:[%s12033_s3 + $0x260] sm:$0xff]  ;;  %v8654_v30 = vld [vmem:[%s12033_s3 + $0x2d8] sm:$0xff] }
 0x888   :  { %v2743_v32 = vpop.f32.mrf.mxu0 }
 0x889   :  { %v2761_v34 = vrot.slane %v2743_v32, %v10794_v18  ;;  %v2757_v36 = vmul.f32 %v2755_v31, %v11133_v58  ;;  %v2881_v58 = vld [vmem:[%s12033_s3 + $0xf8] sm:$0xff]  ;;  %v8653_v32 = vld [vmem:[%s12033_s3 + $0x2d0] sm:$0xff] }
 0x88a   :  { %v2745_v35 = vpop.f32.mrf.mxu0  ;;  %v8638_v31 = vld [vmem:[%s12033_s3 + $0x258] sm:$0xff] }
 0x88b   :  { %v2766_v37 = vadd.f32 %v2761_v34, %v2756_v33  ;;  %v2765_v38 = vrot.slane %v2745_v35, %v10794_v18  ;;  %v8637_v33 = vld [vmem:[%s12033_s3 + $0x250] sm:$0xff]  ;;  %v8652_v34 = vld [vmem:[%s12033_s3 + $0x2c8] sm:$0xff] }
 0x88c   :  { %v8636_v35 = vld [vmem:[%s12033_s3 + $0x248] sm:$0xff] }
 0x88d   :  { %v2767_v14 = vadd.f32 %v2765_v38, %v2757_v36  ;;  %v2770_v39 = vmul.f32 0.2, %v2766_v37  ;;  %vm2768_vm8 = vcmp.ge.f32.partialorder %v2766_v37, 0.0  ;;  %v8651_v36 = vld [vmem:[%s12033_s3 + $0x2c0] sm:$0xff]  ;;  %v8650_v38 = vld [vmem:[%s12033_s3 + $0x2b8] sm:$0xff] }
 0x88f   :  { %vm2769_vm7 = vcmp.ge.f32.partialorder %v2767_v14, 0.0  ;;  %v2771_v40 = vmul.f32 0.2, %v2767_v14  ;;  %v11201_v54 = vsel %vm2768_vm8, %v2766_v37, %v2770_v39  ;;  %v8635_v37 = vld [vmem:[%s12033_s3 + $0x240] sm:$0xff]  ;;  %v8649_v39 = vld [vmem:[%s12033_s3 + $0x2b0] sm:$0xff] }
 0x891   :  { %v2773_v42 = vsel %vm2769_vm7, %v2767_v14, %v2771_v40  ;;  %v8634_v14 = vld [vmem:[%s12033_s3 + $0x238] sm:$0xff]  ;;  %v8633_v40 = vld [vmem:[%s12033_s3 + $0x230] sm:$0xff] }
 0x892   :  { %2809 = vmatprep.subr.mxu1 %v2773_v42  ;;  %3166 = vmatprep.subr.mxu0 %v2773_v42 }
 0x893   :  { %2810 = vmatpush1.msra.mxu1 %v11201_v54 }
 0x894   :  { %8592 = vmatmul.mubr.msk.f32.vlgmr.msra.gmra.mxu1 %vm2775_vm9, %v2774_v43  ;;  %2917 = vmatprep.subr.mxu1 %v2773_v42  ;;  %v8648_v42 = vld [vmem:[%s12033_s3 + $0x2a8] sm:$0xff] }
 0x895   :  { %2918 = vmatpush1.msra.mxu1 %v11201_v54  ;;  %2951 = vmatprep.mubr.f32.mxu1 %v10362_v29  ;;  %v8632_v43 = vld [vmem:[%s12033_s3 + $0x228] sm:$0xff] }
 0x896   :  { %9088 = vmatprep.subr.mxu1 %v2881_v58  ;;  %v8631_v58 = vld [vmem:[%s12033_s3 + $0x220] sm:$0xff] }
 0x898   :  { %8593 = vmatmul.mubr.msk.f32.vlgmr.msra.gmra.mxu1 %vm2775_vm9, %v2883_v44  ;;  %v8646_v44 = vld [vmem:[%s12033_s3 + $0x298] sm:$0xff] }
 0x899   :  { %9089 = vmatpush3.msra.mxu1 %v2865_v45  ;;  %v8630_v45 = vld [vmem:[%s12033_s3 + $0x218] sm:$0xff] }
 0x89a   :  { %9090 = vmatprep.subr.mxu1 %v2880_v46  ;;  %v8645_v46 = vld [vmem:[%s12033_s3 + $0x290] sm:$0xff] }
 0x89b   :  { %9091 = vmatpush3.msra.mxu1 %v2864_v47  ;;  %v8629_v47 = vld [vmem:[%s12033_s3 + $0x210] sm:$0xff] }
 0x89c   :  { %9092 = vmatprep.subr.mxu1 %v2879_v48  ;;  %v8644_v48 = vld [vmem:[%s12033_s3 + $0x288] sm:$0xff] }
 0x89d   :  { %9093 = vmatpush3.msra.mxu1 %v2863_v49  ;;  %v8628_v49 = vld [vmem:[%s12033_s3 + $0x208] sm:$0xff] }
 0x89e   :  { %9094 = vmatprep.subr.mxu1 %v2878_v50  ;;  %v8643_v50 = vld [vmem:[%s12033_s3 + $0x280] sm:$0xff] }
 0x89f   :  { %9095 = vmatpush3.msra.mxu1 %v2862_v51  ;;  %v8627_v51 = vld [vmem:[%s12033_s3 + $0x200] sm:$0xff] }
 0x8a0   :  { %9096 = vmatprep.subr.mxu1 %v2877_v52  ;;  %v3318_v52 = vld [vmem:[%s12036_s21 + $0x38] sm:$0xff] }
 0x8a1   :  { %9097 = vmatpush3.msra.mxu1 %v2861_v53  ;;  %v3317_v53 = vld [vmem:[%s12036_s21 + $0x30] sm:$0xff] }
 0x8a2   :  { %9098 = vmatprep.subr.mxu1 %v2876_v55  ;;  %v3316_v55 = vld [vmem:[%s12036_s21 + $0x28] sm:$0xff] }
 0x8a3   :  { %9099 = vmatpush3.msra.mxu1 %v2860_v56  ;;  %v3315_v56 = vld [vmem:[%s12036_s21 + $0x20] sm:$0xff] }
 0x8a4   :  { %9100 = vmatprep.subr.mxu1 %v2875_v57  ;;  %v3314_v57 = vld [vmem:[%s12036_s21 + $0x18] sm:$0xff] }
 0x8a5   :  { %9101 = vmatpush3.msra.mxu1 %v2859_v59 }
 0x8a6   :  { %9102 = vmatprep.subr.mxu1 %v2874_v60 }
 0x8a7   :  { %9103 = vmatpush3.msra.mxu1 %v2858_v61 }
 0x8a8   :  { %9104 = vmatprep.subr.mxu1 %v2873_v62 }
 0x8a9   :  { %9105 = vmatpush3.msra.mxu1 %v2857_v63 }
 0x8aa   :  { %9106 = vmatprep.subr.mxu1 %v2872_v0  ;;  %v3313_v0 = vld [vmem:[%s12036_s21 + $0x10] sm:$0xff] }
 0x8ab   :  { %9107 = vmatpush3.msra.mxu1 %v2856_v1  ;;  %v3312_v1 = vld [vmem:[%s12036_s21 + $0x8] sm:$0xff] }
 0x8ac   :  { %9108 = vmatprep.subr.mxu1 %v2871_v2  ;;  %v3311_v2 = vld [vmem:[%s12036_s21] sm:$0xff] }
 0x8ad   :  { %9109 = vmatpush3.msra.mxu1 %v2855_v3 }
 0x8ae   :  { %9110 = vmatprep.subr.mxu1 %v2870_v4 }
 0x8af   :  { %9111 = vmatpush3.msra.mxu1 %v2854_v5 }
 0x8b0   :  { %9112 = vmatprep.subr.mxu1 %v2869_v10 }
 0x8b1   :  { %9113 = vmatpush3.msra.mxu1 %v2853_v6 }
 0x8b2   :  { %9114 = vmatprep.subr.mxu1 %v2868_v12 }
 0x8b3   :  { %9115 = vmatpush3.msra.mxu1 %v2852_v7 }
 0x8b4   :  { %9116 = vmatprep.subr.mxu1 %v2867_v20 }
 0x8b5   :  { %9117 = vmatpush3.msra.mxu1 %v2851_v8  ;;  %v8667_v8 = vld [vmem:[%s12036_s21 + $0x78] sm:$0xff] }
 0x8b6   :  { %9118 = vmatprep.subr.mxu1 %v2866_v41  ;;  %v8666_v41 = vld [vmem:[%s12036_s21 + $0x70] sm:$0xff] }
 0x8b7   :  { %9119 = vmatpush3.msra.mxu1 %v2850_v9  ;;  %v8665_v9 = vld [vmem:[%s12036_s21 + $0x68] sm:$0xff] }
 0x8b8   :  { %9123 = vmatprep.subr.mxu1 %v8658_v11  ;;  %v8664_v11 = vld [vmem:[%s12036_s21 + $0x60] sm:$0xff] }
 0x954   :  { %v2845_v13 = vpop.f32.mrf.mxu1 }
 0x956   :  { %v2847_v16 = vpop.f32.mrf.mxu1 }
 0x957   :  { %3125 = vmatprep.mubr.f32.mxu1 %v2847_v16  ;;  %v8662_v16 = vld [vmem:[%s12036_s21 + $0x50] sm:$0xff] }
 0x958   :  { %v2953_v21 = vpop.f32.mrf.mxu1  ;;  %3126 = vmatmul.mubr.f32.vlgmr.msra.gmra.mxu1 %v2845_v13  ;;  %v8663_v13 = vld [vmem:[%s12036_s21 + $0x58] sm:$0xff] }
 0x959   :  { %9124 = vmatpush3.msra.mxu1 %v8642_v17  ;;  %v8661_v17 = vld [vmem:[%s12036_s21 + $0x48] sm:$0xff] }
 0x95a   :  { %v2955_v24 = vpop.f32.mrf.mxu1  ;;  %9125 = vmatprep.subr.mxu1 %v8657_v19  ;;  %v8660_v19 = vld [vmem:[%s12036_s21 + $0x40] sm:$0xff] }
 0x95b   :  { %3055 = vmatprep.mubr.f32.mxu0 %v2955_v24  ;;  %9126 = vmatpush3.msra.mxu1 %v8641_v22  ;;  %v3392_v22 = vld [vmem:[%s12037_s20] sm:$0xff]  ;;  %v3393_v24 = vld [vmem:[%s12037_s20 + $0x8] sm:$0xff] }
 0x95c   :  { %3056 = vmatmul.mubr.f32.vlgmr.msra.gmra.mxu0 %v2953_v21  ;;  %9127 = vmatprep.subr.mxu1 %v8656_v23  ;;  %v8669_v21 = vld [vmem:[%s12037_s20 + $0x20] sm:$0xff] }
 0x95d   :  { %3167 = vmatpush1.msra.mxu0 %v11201_v54  ;;  %3200 = vmatprep.mubr.f32.mxu0 %v10362_v29  ;;  %v8647_v54 = vld [vmem:[%s12033_s3 + $0x2a0] sm:$0xff] }
 0x95e   :  { %9128 = vmatpush3.msra.mxu1 %v8640_v25  ;;  %9628 = vmatprep.subr.mxu0 %v10362_v29  ;;  %v3394_v25 = vld [vmem:[%s12037_s20 + $0x10] sm:$0xff] }
 0x95f   :  { %9129 = vmatprep.subr.mxu1 %v8655_v26 }
 0x960   :  { %8626 = vmatmul.mubr.msk.f32.vlgmr.msra.gmra.mxu0 %vm2775_vm9, %v3132_v27  ;;  %9130 = vmatpush3.msra.mxu1 %v8639_v28  ;;  %v3395_v27 = vld [vmem:[%s12037_s20 + $0x18] sm:$0xff] }
 0x961   :  { %9131 = vmatprep.subr.mxu1 %v8654_v30  ;;  %9629 = vmatpush3.msra.mxu0 %v3318_v52  ;;  %v8670_v30 = vld [vmem:[%s12037_s20 + $0x28] sm:$0xff] }
 0x962   :  { %9132 = vmatpush3.msra.mxu1 %v8638_v31  ;;  %9630 = vmatprep.subr.mxu0 %v10362_v29  ;;  %v8688_v31 = vld [vmem:[%s12036_s21 + $0xb8] sm:$0xff]  ;;  %v8691_v52 = vld [vmem:[%s12037_s20 + $0x48] sm:$0xff] }
 0x963   :  { %9133 = vmatprep.subr.mxu1 %v8653_v32  ;;  %9631 = vmatpush3.msra.mxu0 %v3317_v53  ;;  %v8671_v32 = vld [vmem:[%s12037_s20 + $0x30] sm:$0xff]  ;;  %v8705_v53 = vld [vmem:[%s12036_s21 + $0xf8] sm:$0xff] }
 0x964   :  { %9134 = vmatpush3.msra.mxu1 %v8637_v33  ;;  %9632 = vmatprep.subr.mxu0 %v10362_v29 }
 0x965   :  { %9135 = vmatprep.subr.mxu1 %v8652_v34  ;;  %9633 = vmatpush3.msra.mxu0 %v3316_v55  ;;  %v8687_v34 = vld [vmem:[%s12036_s21 + $0xb0] sm:$0xff] }
 0x966   :  { %9136 = vmatpush3.msra.mxu1 %v8636_v35  ;;  %9634 = vmatprep.subr.mxu0 %v10362_v29  ;;  %v8672_v35 = vld [vmem:[%s12037_s20 + $0x38] sm:$0xff]  ;;  %v8692_v55 = vld [vmem:[%s12037_s20 + $0x50] sm:$0xff] }
 0x967   :  { %9137 = vmatprep.subr.mxu1 %v8651_v36  ;;  %9635 = vmatpush3.msra.mxu0 %v3315_v56  ;;  %v8686_v36 = vld [vmem:[%s12036_s21 + $0xa8] sm:$0xff] }
 0x968   :  { %9138 = vmatpush3.msra.mxu1 %v8635_v37  ;;  %9636 = vmatprep.subr.mxu0 %v10362_v29  ;;  %v8685_v37 = vld [vmem:[%s12036_s21 + $0xa0] sm:$0xff] }
 0x969   :  { %9139 = vmatprep.subr.mxu1 %v8650_v38  ;;  %9637 = vmatpush3.msra.mxu0 %v3314_v57  ;;  %v8684_v38 = vld [vmem:[%s12036_s21 + $0x98] sm:$0xff]  ;;  %v8704_v57 = vld [vmem:[%s12036_s21 + $0xf0] sm:$0xff] }
 0x96a   :  { %9140 = vmatpush3.msra.mxu1 %v8634_v14  ;;  %9638 = vmatprep.subr.mxu0 %v10362_v29  ;;  %v8683_v14 = vld [vmem:[%s12036_s21 + $0x90] sm:$0xff] }
 0x96b   :  { %9141 = vmatprep.subr.mxu1 %v8649_v39  ;;  %9639 = vmatpush3.msra.mxu0 %v3313_v0  ;;  %v8682_v39 = vld [vmem:[%s12036_s21 + $0x88] sm:$0xff] }
 0x96c   :  { %9142 = vmatpush3.msra.mxu1 %v8633_v40  ;;  %9640 = vmatprep.subr.mxu0 %v10362_v29  ;;  %v8681_v40 = vld [vmem:[%s12036_s21 + $0x80] sm:$0xff]  ;;  %v8699_v0 = vld [vmem:[%s12036_s21 + $0xc8] sm:$0xff] }
 0x96d   :  { %9143 = vmatprep.subr.mxu1 %v8648_v42  ;;  %9641 = vmatpush3.msra.mxu0 %v3312_v1  ;;  %v8690_v42 = vld [vmem:[%s12037_s20 + $0x40] sm:$0xff] }
 0x96e   :  { %9144 = vmatpush3.msra.mxu1 %v8632_v43  ;;  %9642 = vmatprep.subr.mxu0 %v10362_v29  ;;  %v8698_v1 = vld [vmem:[%s12036_s21 + $0xc0] sm:$0xff] }
 0x96f   :  { %9145 = vmatprep.subr.mxu1 %v8647_v54  ;;  %9643 = vmatpush3.msra.mxu0 %v3311_v2  ;;  %v8707_v2 = vld [vmem:[%s12037_s20 + $0x60] sm:$0xff] }
 0x970   :  { %9146 = vmatpush3.msra.mxu1 %v8631_v58  ;;  %9644 = vmatprep.mubr.msk.f32.mxu0 %vm10363_vm10, %v10362_v29 }
 0x971   :  { %9147 = vmatprep.subr.mxu1 %v8646_v44  ;;  %9647 = vmatprep.subr.mxu0 %v10362_v29 }
 0x972   :  { %9148 = vmatpush3.msra.mxu1 %v8630_v45 }
 0x973   :  { %9149 = vmatprep.subr.mxu1 %v8645_v46 }
 0x974   :  { %9150 = vmatpush3.msra.mxu1 %v8629_v47 }
 0x975   :  { %9151 = vmatprep.subr.mxu1 %v8644_v48 }
 0x976   :  { %9152 = vmatpush3.msra.mxu1 %v8628_v49 }
 0x977   :  { %9153 = vmatprep.subr.mxu1 %v8643_v50 }
 0x978   :  { %9154 = vmatpush3.msra.mxu1 %v8627_v51 }
 0xa18   :  { %v9120_v3 = vpop.f32.mrf.mxu1 }
 0xa1a   :  { %v9121_v4 = vpop.f32.mrf.mxu1 }
 0xa1b   :  { %v9122_v10 = vadd.f32 %v9121_v4, %v9120_v3 }
 0xa1c   :  { %v9085_v59 = vpop.f32.mrf.mxu0 }
 0xa1e   :  { %v9086_v60 = vpop.f32.mrf.mxu0 }
 0xa1f   :  { %v9087_v61 = vadd.f32 %v9086_v60, %v9085_v59  ;;  %v8693_v59 = vld [vmem:[%s12037_s20 + $0x58] sm:$0xff]  ;;  %v8703_v60 = vld [vmem:[%s12036_s21 + $0xe8] sm:$0xff] }
 0xa20   :  { %v3202_v62 = vpop.f32.mrf.mxu0 }
 0xa21   :  { %v3128_v12 = vadd.f32 %v9122_v10, %v9087_v61  ;;  %v8702_v61 = vld [vmem:[%s12036_s21 + $0xe0] sm:$0xff] }
 0xa22   :  { %v3204_v63 = vpop.f32.mrf.mxu0 }
 0xa23   :  { %3304 = vmatprep.mubr.f32.mxu1 %v3204_v63  ;;  %v8700_v63 = vld [vmem:[%s12036_s21 + $0xd0] sm:$0xff] }
 0xa24   :  { %3305 = vmatmul.mubr.f32.vlgmr.msra.gmra.mxu1 %v3202_v62  ;;  %v8701_v62 = vld [vmem:[%s12036_s21 + $0xd8] sm:$0xff] }
 0xa25   :  { %9668 = vmatprep.mubr.msk.f32.mxu1 %vm2775_vm9, %v8669_v21  ;;  %v4119_v21 = vld [vmem:[%s12038_s14 + $0x10] sm:$0xff] }
 0xae4   :  { %v9155_v5 = vpop.f32.mrf.mxu1 }
 0xae6   :  { %v9156_v6 = vpop.f32.mrf.mxu1 }
 0xae7   :  { %v9157_v7 = vadd.f32 %v9156_v6, %v9155_v5 }
 0xae9   :  { %v11294_v20 = vadd.f32 %v9157_v7, %v3128_v12 }
 0xaeb   :  { %9645 = vmatmul.mubr.msk.f32.vlgmr.msra.gmra.mxu0 %vm574_vm1, %v11294_v20 }
 0xaec   :  { %9648 = vmatpush3.msra.mxu0 %v8667_v8  ;;  %9663 = vmatprep.mubr.msk.f32.mxu0 %vm10363_vm10, %v10362_v29 }
 0xaed   :  { %9649 = vmatprep.subr.mxu0 %v10362_v29 }
 0xaee   :  { %9650 = vmatpush3.msra.mxu0 %v8666_v41 }
 0xaef   :  { %9651 = vmatprep.subr.mxu0 %v10362_v29 }
 0xaf0   :  { %9652 = vmatpush3.msra.mxu0 %v8665_v9 }
 0xaf1   :  { %9653 = vmatprep.subr.mxu0 %v10362_v29 }
 0xaf2   :  { %9654 = vmatpush3.msra.mxu0 %v8664_v11 }
 0xaf3   :  { %9655 = vmatprep.subr.mxu0 %v10362_v29 }
 0xaf4   :  { %9656 = vmatpush3.msra.mxu0 %v8663_v13  ;;  %v8708_v13 = vld [vmem:[%s12037_s20 + $0x68] sm:$0xff] }
 0xaf5   :  { %9657 = vmatprep.subr.mxu0 %v10362_v29 }
 0xaf6   :  { %9658 = vmatpush3.msra.mxu0 %v8662_v16 }
 0xaf7   :  { %9659 = vmatprep.subr.mxu0 %v10362_v29 }
 0xaf8   :  { %9660 = vmatpush3.msra.mxu0 %v8661_v17  ;;  %v8710_v17 = vld [vmem:[%s12037_s20 + $0x78] sm:$0xff] }
 0xaf9   :  { %9661 = vmatprep.subr.mxu0 %v10362_v29 }
 0xafa   :  { %9662 = vmatpush3.msra.mxu0 %v8660_v19  ;;  %v4120_v19 = vld [vmem:[%s12038_s14 + $0x18] sm:$0xff] }
 0xafb   :  { %9664 = vmatmul.mubr.msk.f32.vlgmr.msra.gmra.mxu0 %vm574_vm1, %v11294_v20 }
 0xafc   :  { %9676 = vmatprep.mubr.msk.f32.mxu0 %vm2775_vm9, %v3392_v22  ;;  %v4118_v22 = vld [vmem:[%s12038_s14 + $0x8] sm:$0xff] }
 0xbab   :  { %v3388_v23 = vpop.f32.mrf.mxu0 }
 0xbac   :  { %9674 = vmatprep.subr.mxu0 %v3388_v23 }
 0xbad   :  { %v9646_v26 = vpop.f32.mrf.mxu0  ;;  %9675 = vmatpush3.msra.mxu0 %v3388_v23  ;;  %v4117_v23 = vld [vmem:[%s12038_s14] sm:$0xff] }
 0xbae   :  { %9677 = vmatmul.mubr.msk.f32.vlgmr.msra.gmra.mxu0 %vm2775_vm9, %v3393_v24 }
 0xbaf   :  { %9679 = vmatprep.mubr.msk.f32.mxu0 %vm2775_vm9, %v3394_v25 }
 0xbb2   :  { %9680 = vmatmul.mubr.msk.f32.gmra.mxu0 %vm2775_vm9, %v3395_v27 }
 0xbb3   :  { %9703 = vmatprep.mubr.msk.f32.mxu0 %vm2775_vm9, %v8690_v42 }
 0xbbb   :  { %v3471_v28 = vpop.f32.mrf.mxu0 }
 0xbbc   :  { %9666 = vmatprep.subr.mxu1 %v3471_v28 }
 0xbbd   :  { %v9665_v33 = vpop.f32.mrf.mxu0  ;;  %9667 = vmatpush3.msra.mxu1 %v3471_v28 }
 0xbbe   :  { %9669 = vmatmul.mubr.msk.f32.vlgmr.msra.gmra.mxu1 %vm2775_vm9, %v8670_v30  ;;  %9682 = vmatprep.subr.mxu1 %v10362_v29 }
 0xbbf   :  { %9683 = vmatpush3.msra.mxu1 %v8688_v31  ;;  %9671 = vmatprep.mubr.msk.f32.mxu1 %vm2775_vm9, %v8671_v32 }
 0xbc0   :  { %9684 = vmatprep.subr.mxu1 %v10362_v29 }
 0xbc1   :  { %9685 = vmatpush3.msra.mxu1 %v8687_v34 }
 0xbc2   :  { %9686 = vmatprep.subr.mxu1 %v10362_v29  ;;  %9672 = vmatmul.mubr.msk.f32.gmra.mxu1 %vm2775_vm9, %v8672_v35 }
 0xbc3   :  { %9687 = vmatpush3.msra.mxu1 %v8686_v36  ;;  %9698 = vmatprep.mubr.msk.f32.mxu1 %vm10363_vm10, %v10362_v29 }
 0xbc4   :  { %9688 = vmatprep.subr.mxu1 %v10362_v29 }
 0xbc5   :  { %9689 = vmatpush3.msra.mxu1 %v8685_v37 }
 0xbc6   :  { %9690 = vmatprep.subr.mxu1 %v10362_v29 }
 0xbc7   :  { %9691 = vmatpush3.msra.mxu1 %v8684_v38 }
 0xbc8   :  { %9692 = vmatprep.subr.mxu1 %v10362_v29 }
 0xbc9   :  { %9693 = vmatpush3.msra.mxu1 %v8683_v14 }
 0xbca   :  { %9694 = vmatprep.subr.mxu1 %v10362_v29 }
 0xbcb   :  { %9695 = vmatpush3.msra.mxu1 %v8682_v39 }
 0xbcc   :  { %9696 = vmatprep.subr.mxu1 %v10362_v29 }
 0xbcd   :  { %9697 = vmatpush3.msra.mxu1 %v8681_v40 }
 0xbce   :  { %9699 = vmatmul.mubr.msk.f32.vlgmr.msra.gmra.mxu1 %vm574_vm1, %v11294_v20 }
 0xbcf   :  { %9730 = vmatprep.mubr.msk.f32.mxu1 %vm2775_vm9, %v8707_v2 }
 0xc6e   :  { %v9678_v43 = vpop.f32.mrf.mxu0 }
 0xc70   :  { %v3655_v58 = vpop.f32.mrf.mxu0 }
 0xc72   :  { %v9681_v48 = vpop.f32.mrf.mxu0 }
 0xc74   :  { %v3665_v3 = vpop.f32.mrf.mxu0 }
 0xc7e   :  { %v9670_v54 = vpop.f32.mrf.mxu1 }
 0xc7f   :  { %v3661_v44 = vadd.f32 %v9678_v43, %v9670_v54 }
 0xc80   :  { %v3558_v45 = vpop.f32.mrf.mxu1 }
 0xc81   :  { %v3656_v46 = vadd.f32 %v3655_v58, %v3558_v45 }
 0xc82   :  { %v9673_v47 = vpop.f32.mrf.mxu1 }
 0xc83   :  { %v3671_v49 = vadd.f32 %v9681_v48, %v9673_v47 }
 0xc84   :  { %v3568_v50 = vpop.f32.mrf.mxu1 }
 0xc85   :  { %v3666_v7 = vadd.f32 %v3665_v3, %v3568_v50 }
 0xc8e   :  { %v3749_v51 = vpop.f32.mrf.mxu1 }
 0xc8f   :  { %9701 = vmatprep.subr.mxu0 %v3749_v51 }
 0xc90   :  { %v9700_v56 = vpop.f32.mrf.mxu1  ;;  %9702 = vmatpush3.msra.mxu0 %v3749_v51 }
 0xc91   :  { %9704 = vmatmul.mubr.msk.f32.vlgmr.msra.gmra.mxu0 %vm2775_vm9, %v8691_v52  ;;  %9709 = vmatprep.subr.mxu0 %v10362_v29 }
 0xc92   :  { %9710 = vmatpush3.msra.mxu0 %v8705_v53  ;;  %9706 = vmatprep.mubr.msk.f32.mxu0 %vm2775_vm9, %v8692_v55 }
 0xc93   :  { %9711 = vmatprep.subr.mxu0 %v10362_v29 }
 0xc94   :  { %9712 = vmatpush3.msra.mxu0 %v8704_v57 }
 0xc95   :  { %9707 = vmatmul.mubr.msk.f32.gmra.mxu0 %vm2775_vm9, %v8693_v59  ;;  %9713 = vmatprep.subr.mxu0 %v10362_v29 }
 0xc96   :  { %9714 = vmatpush3.msra.mxu0 %v8703_v60  ;;  %9725 = vmatprep.mubr.msk.f32.mxu0 %vm10363_vm10, %v10362_v29 }
 0xc97   :  { %9715 = vmatprep.subr.mxu0 %v10362_v29 }
 0xc98   :  { %9716 = vmatpush3.msra.mxu0 %v8702_v61 }
 0xc99   :  { %9717 = vmatprep.subr.mxu0 %v10362_v29 }
 0xc9a   :  { %9718 = vmatpush3.msra.mxu0 %v8701_v62 }
 0xc9b   :  { %9719 = vmatprep.subr.mxu0 %v10362_v29 }
 0xc9c   :  { %9720 = vmatpush3.msra.mxu0 %v8700_v63 }
 0xc9d   :  { %9721 = vmatprep.subr.mxu0 %v10362_v29 }
 0xc9e   :  { %9722 = vmatpush3.msra.mxu0 %v8699_v0 }
 0xc9f   :  { %9723 = vmatprep.subr.mxu0 %v10362_v29 }
 0xca0   :  { %9724 = vmatpush3.msra.mxu0 %v8698_v1 }
 0xca1   :  { %9726 = vmatmul.mubr.msk.f32.vlgmr.msra.gmra.mxu0 %vm574_vm1, %v11294_v20  ;;  %v8709_v20 = vld [vmem:[%s12037_s20 + $0x70] sm:$0xff]  ;;  %9750 = vmatprep.subr.mxu0 %v4120_v19 }
 0xca2   :  { %9751 = vmatpush3.msra.mxu0 %v4120_v19 }
 0xca3   :  { %9752 = vmatprep.subr.mxu0 %v4119_v21 }
 0xca4   :  { %9753 = vmatpush3.msra.mxu0 %v4119_v21 }
 0xca5   :  { %9754 = vmatprep.subr.mxu0 %v4118_v22 }
 0xca6   :  { %9755 = vmatpush3.msra.mxu0 %v4118_v22 }
 0xca7   :  { %9756 = vmatprep.subr.mxu0 %v4117_v23 }
 0xca8   :  { %9757 = vmatpush3.msra.mxu0 %v4117_v23 }
 0xca9   :  { %9764 = vmatprep.subr.mxu0 %v10362_v29 }
 0xd51   :  { %v9705_v4 = vpop.f32.mrf.mxu0 }
 0xd52   :  { %v3856_v5 = vadd.f32 %v9705_v4, %v3661_v44  ;;  %v4044_v4 = vld [vmem:[%s12039_s30] sm:$0x1] }
 0xd53   :  { %v3836_v10 = vpop.f32.mrf.mxu0 }
 0xd54   :  { %v3855_v6 = vadd.f32 %v3836_v10, %v3656_v46 }
 0xd55   :  { %v9708_v12 = vpop.f32.mrf.mxu0 }
 0xd56   :  { %v3858_v8 = vadd.f32 %v9708_v12, %v3671_v49 }
 0xd57   :  { %v3846_v41 = vpop.f32.mrf.mxu0 }
 0xd58   :  { %v3857_v9 = vadd.f32 %v3846_v41, %v3666_v7 }
 0xd61   :  { %v3934_v11 = vpop.f32.mrf.mxu0 }
 0xd62   :  { %9728 = vmatprep.subr.mxu1 %v3934_v11 }
 0xd63   :  { %v9727_v16 = vpop.f32.mrf.mxu0  ;;  %9729 = vmatpush3.msra.mxu1 %v3934_v11 }
 0xd64   :  { %9731 = vmatmul.mubr.msk.f32.vlgmr.msra.gmra.mxu1 %vm2775_vm9, %v8708_v13  ;;  %9736 = vmatprep.subr.msk.mxu1 %vm1525_vm6, %v4120_v19 }
 0xd65   :  { %9733 = vmatprep.mubr.msk.f32.mxu1 %vm2775_vm9, %v8709_v20  ;;  %9737 = vmatpush3.xpose.msk.msra.mxu1 %vm1525_vm6, %v4120_v19 }
 0xd66   :  { %9738 = vmatprep.subr.msk.mxu1 %vm1525_vm6, %v4119_v21 }
 0xd68   :  { %9734 = vmatmul.mubr.msk.f32.gmra.mxu1 %vm2775_vm9, %v8710_v17 }
 0xd69   :  { %9739 = vmatpush3.xpose.msk.msra.mxu1 %vm1525_vm6, %v4119_v21 }
 0xd6a   :  { %9740 = vmatprep.subr.msk.mxu1 %vm1525_vm6, %v4118_v22 }
 0xd6d   :  { %9741 = vmatpush3.xpose.msk.msra.mxu1 %vm1525_vm6, %v4118_v22 }
 0xd6e   :  { %9742 = vmatprep.subr.msk.mxu1 %vm1525_vm6, %v4117_v23 }
 0xd71   :  { %9743 = vmatpush3.xpose.msk.msra.mxu1 %vm1525_vm6, %v4117_v23 }
 0xd72   :  { %9775 = vmatprep.subr.mxu1 %v10362_v29 }
 0xe24   :  { %v9732_v24 = vpop.f32.mrf.mxu1 }
 0xe25   :  { %v4041_v25 = vadd.f32 %v9732_v24, %v3856_v5 }
 0xe26   :  { %v4021_v26 = vpop.f32.mrf.mxu1 }
 0xe27   :  { %v4061_v27 = vmul.f32 %v4041_v25, %v4041_v25  ;;  %v4040_v28 = vadd.f32 %v4021_v26, %v3855_v6  ;;  %v4047_v31 = vsel %vm1525_vm6, %v4041_v25, 0.0  ;;  %v4045_v6 = vld [vmem:[%s12040_s24] sm:$0x1] }
 0xe28   :  { %v9735_v30 = vpop.f32.mrf.mxu1 }
 0xe29   :  { %v4046_v32 = vsel %vm1525_vm6, %v4040_v28, 0.0  ;;  %v4060_v33 = vmul.f32 %v4040_v28, %v4040_v28  ;;  %v4043_v34 = vadd.f32 %v9735_v30, %v3858_v8  ;;  %v4065_v37 = vsel %vm1525_vm6, %v4061_v27, 0.0 }
 0xe2a   :  { %v4048_v35 = vadd.f32 %v4047_v31, %v4046_v32  ;;  %v4031_v36 = vpop.f32.mrf.mxu1 }
 0xe2b   :  { %v4064_v38 = vsel %vm1525_vm6, %v4060_v33, 0.0  ;;  %v4042_v14 = vadd.f32 %v4031_v36, %v3857_v9  ;;  %v4063_v40 = vmul.f32 %v4043_v34, %v4043_v34  ;;  %v4051_v58 = vsel %vm1525_vm6, %v4043_v34, 0.0 }
 0xe2c   :  { %v4066_v39 = vadd.f32 %v4065_v37, %v4064_v38 }
 0xe2d   :  { %v4049_v42 = vsel %vm1525_vm6, %v4042_v14, 0.0  ;;  %v4062_v43 = vmul.f32 %v4042_v14, %v4042_v14  ;;  %v4069_v47 = vsel %vm1525_vm6, %v4063_v40, 0.0 }
 0xe2e   :  { %v4050_v54 = vadd.f32 %v4049_v42, %v4048_v35  ;;  %v8723_v42 = vld [vmem:[#allocation13] ss:$0 sm:$0xff] }
 0xe2f   :  { %v4067_v44 = vsel %vm1525_vm6, %v4062_v43, 0.0 }
 0xe30   :  { %v4052_v45 = vadd.f32 %v4051_v58, %v4050_v54  ;;  %v4068_v46 = vadd.f32 %v4067_v44, %v4066_v39 }
 0xe32   :  { %v4053_v48 = vrot.slane %v4052_v45, 4  ;;  %v4070_v49 = vadd.f32 %v4069_v47, %v4068_v46 }
 0xe34   :  { %v4054_v50 = vadd.f32 %v4053_v48, %v4052_v45  ;;  %v4071_v51 = vrot.slane %v4070_v49, 4 }
 0xe36   :  { %v4055_v52 = vrot.slane %v4054_v50, 2  ;;  %v4072_v53 = vadd.f32 %v4071_v51, %v4070_v49 }
 0xe38   :  { %v4056_v55 = vadd.f32 %v4055_v52, %v4054_v50  ;;  %v4073_v56 = vrot.slane %v4072_v53, 2 }
 0xe3a   :  { %v4057_v57 = vrot.slane %v4056_v55, 1  ;;  %v4074_v59 = vadd.f32 %v4073_v56, %v4072_v53 }
 0xe3c   :  { %v4058_v60 = vadd.f32 %v4057_v57, %v4056_v55  ;;  %v4075_v61 = vrot.slane %v4074_v59, 1 }
 0xe3e   :  { %v4059_v62 = vmul.f32 0.03125, %v4058_v60  ;;  %v4076_v63 = vadd.f32 %v4075_v61, %v4074_v59 }
 0xe40   :  { %v4077_v0 = vmul.f32 0.03125, %v4076_v63  ;;  %v4078_v1 = vmul.f32 %v4059_v62, %v4059_v62 }
 0xe42   :  { %v4079_v2 = vsub.f32 %v4077_v0, %v4078_v1  ;;  %v11450_v0 = vand.u32 127, %v1488_v15 }
 0xe44   :  { %v4080_v3 = vadd.f32 1e-05, %v4079_v2 }
 0xe46   :  { %9920 = vrsqrt.f32 %v4080_v3 }
 0xe53   :  { %v9921_v5 = vpop.eup %9920 }
 0xe54   :  { %v4082_v10 = vmul.f32 %v9921_v5, %v4044_v4 }
 0xe56   :  { %v4083_v12 = vmul.f32 %v4082_v10, %v4059_v62  ;;  %v4089_v7 = vrot.slane %v4082_v10, %v10794_v18 }
 0xe58   :  { %v4084_v8 = vsub.f32 %v4045_v6, %v4083_v12  ;;  %v4093_v41 = vmul.f32 %v4089_v7, %v4042_v14  ;;  %v4091_v9 = vmul.f32 %v4089_v7, %v4040_v28  ;;  %v4092_v11 = vmul.f32 %v4089_v7, %v4041_v25 }
 0xe59   :  { %v4094_v13 = vmul.f32 %v4089_v7, %v4043_v34 }
 0xe5a   :  { %v4099_v20 = vrot.slane %v4084_v8, %v10794_v18 }
 0xe5c   :  { %v4103_v16 = vadd.f32 %v4099_v20, %v4093_v41  ;;  %v4101_v17 = vadd.f32 %v4099_v20, %v4091_v9  ;;  %v4102_v19 = vadd.f32 %v4099_v20, %v4092_v11  ;;  %v4104_v21 = vadd.f32 %v4099_v20, %v4094_v13 }
 0xe5e   :  { %vm4105_vm11 = vcmp.ge.f32.partialorder %v4101_v17, 0.0  ;;  %v4109_v22 = vmul.f32 0.2, %v4101_v17  ;;  %vm4106_vm12 = vcmp.ge.f32.partialorder %v4102_v19, 0.0  ;;  %v4110_v23 = vmul.f32 0.2, %v4102_v19 }
 0xe5f   :  { %vm4107_vm13 = vcmp.ge.f32.partialorder %v4103_v16, 0.0  ;;  %v4111_v24 = vmul.f32 0.2, %v4103_v16  ;;  %vm4108_vm14 = vcmp.ge.f32.partialorder %v4104_v21, 0.0  ;;  %v4112_v26 = vmul.f32 0.2, %v4104_v21 }
 0xe60   :  { %v11415_v27 = vsel %vm4105_vm11, %v4101_v17, %v4109_v22  ;;  %v11417_v30 = vsel %vm4106_vm12, %v4102_v19, %v4110_v23 }
 0xe61   :  { %9744 = vmatprep.mubr.msk.f32.mxu1 %vm1525_vm6, %v11415_v27  ;;  %v11421_v25 = vsel %vm4107_vm13, %v4103_v16, %v4111_v24  ;;  %v4121_v28 = vmul.f32 %v11415_v27, %v11415_v27  ;;  %v11425_v31 = vsel %vm4108_vm14, %v4104_v21, %v4112_v26  ;;  %v4122_v34 = vmul.f32 %v11417_v30, %v11417_v30 }
 0xe62   :  { %9745 = vmatmul.mubr.msk.f32.vlgmr.msra.gmra.mxu1 %vm1525_vm6, %v11417_v30  ;;  %v4123_v32 = vmul.f32 %v11421_v25, %v11421_v25  ;;  %v4124_v36 = vmul.f32 %v11425_v31, %v11425_v31 }
 0xe63   :  { %9747 = vmatprep.mubr.msk.f32.mxu1 %vm1525_vm6, %v11421_v25  ;;  %v4125_v33 = vsel %vm1525_vm6, %v4121_v28, 0.0  ;;  %v4128_v37 = vsel %vm1525_vm6, %v4122_v34, 0.0 }
 0xe64   :  { %v4131_v35 = vsel %vm1525_vm6, %v4123_v32, 0.0  ;;  %4126 = vadd.xlane.f32.xlu0 %v4125_v33  ;;  %v4134_v38 = vsel %vm1525_vm6, %v4124_v36, 0.0 }
 0xe65   :  { %4132 = vadd.xlane.f32.xlu1 %v4131_v35 }
 0xe66   :  { %9748 = vmatmul.mubr.msk.f32.gmra.mxu1 %vm1525_vm6, %v11425_v31 }
 0xe67   :  { %9783 = vmatprep.mubr.msk.f32.mxu1 %vm10363_vm10, %v10362_v29 }
 0xe68   :  { %4129 = vadd.xlane.f32.xlu0 %v4128_v37 }
 0xe69   :  { %4135 = vadd.xlane.f32.xlu1 %v4134_v38 }
 0xeed   :  { %v4127_v14 = vpop.xlane.xlu0 %4126 }
 0xeee   :  { %v4133_v39 = vpop.xlane.xlu1 %4132  ;;  %v4253_v46 = vadd.f32 %v8723_v42, %v4127_v14 }
 0xeef   :  { %v4255_v56 = vadd.f32 %v8723_v42, %v4133_v39 }
 0xef1   :  { %v4130_v40 = vpop.xlane.xlu0 %4129 }
 0xef2   :  { %v4254_v54 = vadd.f32 %v8723_v42, %v4130_v40  ;;  %v4136_v44 = vpop.xlane.xlu1 %4135 }
 0xef3   :  { %v4256_v50 = vadd.f32 %v8723_v42, %v4136_v44 }
 0xf22   :  { %v9746_v43 = vpop.f32.mrf.mxu1 }
 0xf23   :  { %v4258_v58 = vmul.f32 2.0, %v9746_v43 }
 0xf24   :  { %v4227_v45 = vpop.f32.mrf.mxu1 }
 0xf25   :  { %v4257_v47 = vmul.f32 2.0, %v4227_v45  ;;  %v4262_v48 = vsub.f32 %v4254_v54, %v4258_v58 }
 0xf26   :  { %v9749_v49 = vpop.f32.mrf.mxu1 }
 0xf27   :  { %v4260_v51 = vmul.f32 2.0, %v9749_v49  ;;  %v4268_v52 = vsel %vm375_vm0, %v4262_v48, inf  ;;  %v4261_v53 = vsub.f32 %v4253_v46, %v4257_v47 }
 0xf28   :  { %v4237_v55 = vpop.f32.mrf.mxu1  ;;  %4269 = vmin.xlane.f32.xlu1 %v4268_v52 }
 0xf29   :  { %v4259_v57 = vmul.f32 2.0, %v4237_v55  ;;  %v4265_v59 = vsel %vm375_vm0, %v4261_v53, inf  ;;  %v4264_v60 = vsub.f32 %v4256_v50, %v4260_v51 }
 0xf2a   :  { %4266 = vmin.xlane.f32.xlu0 %v4265_v59 }
 0xf2b   :  { %v4274_v61 = vsel %vm375_vm0, %v4264_v60, inf  ;;  %v4263_v62 = vsub.f32 %v4255_v56, %v4259_v57 }
 0xf2c   :  { %4275 = vmin.xlane.f32.xlu1 %v4274_v61 }
 0xf2d   :  { %v4271_v63 = vsel %vm375_vm0, %v4263_v62, inf }
 0xf2e   :  { %4272 = vmin.xlane.f32.xlu0 %v4271_v63 }
 0xfb1   :  { %v4270_v1 = vpop.xlane.xlu1 %4269 }
 0xfb2   :  { %vm4280_vm15 = vcmp.eq.f32.partialorder %v4262_v48, %v4270_v1 }
 0xfb3   :  { %v4284_v2 = vsel %vm4280_vm15, %v11450_v0, 32  ;;  %v4267_v3 = vpop.xlane.xlu0 %4266 }
 0xfb4   :  { %v4302_v4 = vsel %vm375_vm0, %v4284_v2, 2147483647  ;;  %vm4279_vm2 = vcmp.eq.f32.partialorder %v4261_v53, %v4267_v3 }
 0xfb5   :  { %v4283_v5 = vsel %vm4279_vm2, %v11450_v0, 32  ;;  %v4276_v10 = vpop.xlane.xlu1 %4275  ;;  %v4304_v6 = vshra.s32 %v4302_v4, 16  ;;  %v4303_v22 = vand.u32 65535, %v4302_v4 }
 0xfb6   :  { %v4287_v12 = vsel %vm375_vm0, %v4283_v5, 2147483647  ;;  %vm4282_vm3 = vcmp.eq.f32.partialorder %v4264_v60, %v4276_v10 }
 0xfb7   :  { %v4286_v7 = vsel %vm4282_vm3, %v11450_v0, 32  ;;  %v4273_v8 = vpop.xlane.xlu0 %4272  ;;  %v4306_v15 = vcvt.s32.f32 %v4304_v6  ;;  %v4289_v41 = vshra.s32 %v4287_v12, 16  ;;  %v4288_v23 = vand.u32 65535, %v4287_v12 }
 0xfb8   :  { %v4332_v9 = vsel %vm375_vm0, %v4286_v7, 2147483647  ;;  %vm4281_vm4 = vcmp.eq.f32.partialorder %v4263_v62, %v4273_v8  ;;  %v4305_v26 = vcvt.s32.f32 %v4303_v22  ;;  %v4642_v22 = vld [vmem:[#allocation11 + $0x10] sm:$0xff] }
 0xfb9   :  { %v4285_v11 = vsel %vm4281_vm4, %v11450_v0, 32  ;;  %4307 = vmin.xlane.f32.xlu1 %v4306_v15  ;;  %v4291_v13 = vcvt.s32.f32 %v4289_v41  ;;  %v4334_v20 = vshra.s32 %v4332_v9, 16  ;;  %v4333_v28 = vand.u32 65535, %v4332_v9  ;;  %v4490_v41 = vld [vmem:[#allocation10] sm:$0xff] }
 0xfba   :  { %v4317_v16 = vsel %vm375_vm0, %v4285_v11, 2147483647  ;;  %v4290_v34 = vcvt.s32.f32 %v4288_v23  ;;  %v4565_v23 = vld [vmem:[#allocation11 + $0x8] sm:$0xff] }
 0xfbb   :  { %4292 = vmin.xlane.f32.xlu0 %v4291_v13  ;;  %v4336_v17 = vcvt.s32.f32 %v4334_v20  ;;  %v4319_v19 = vshra.s32 %v4317_v16, 16  ;;  %v4318_v35 = vand.u32 65535, %v4317_v16  ;;  %v4335_v38 = vcvt.s32.f32 %v4333_v28 }
 0xfbd   :  { %4337 = vmin.xlane.f32.xlu1 %v4336_v17  ;;  %v4321_v21 = vcvt.s32.f32 %v4319_v19  ;;  %v4320_v40 = vcvt.s32.f32 %v4318_v35 }
 0xfbf   :  { %4322 = vmin.xlane.f32.xlu0 %v4321_v21 }
0x1042   :  { %v4308_v24 = vpop.xlane.xlu1 %4307 }
0x1043   :  { %vm4309_vm5 = vcmp.eq.f32.partialorder %v4306_v15, %v4308_v24  ;;  %v4314_v43 = vcvt.f32.s32 %v4308_v24  ;;  %v4564_v24 = vld [vmem:[#allocation11] sm:$0xff] }
0x1044   :  { %v4293_v32 = vpop.xlane.xlu0 %4292  ;;  %v4310_v33 = vsel %vm4309_vm5, %v4305_v26, inf }
0x1045   :  { %4311 = vmin.xlane.f32.xlu1 %v4310_v33  ;;  %vm4294_vm7 = vcmp.eq.f32.partialorder %v4291_v13, %v4293_v32  ;;  %v4299_v54 = vcvt.f32.s32 %v4293_v32  ;;  %v4315_v44 = vshll.u32 %v4314_v43, 16  ;;  %v4867_v43 = vld [vmem:[#allocation11 + $0x28] sm:$0xff] }
0x1046   :  { %v4338_v36 = vpop.xlane.xlu1 %4337  ;;  %v4295_v37 = vsel %vm4294_vm7, %v4290_v34, inf }
0x1047   :  { %4296 = vmin.xlane.f32.xlu0 %v4295_v37  ;;  %vm4339_vm8 = vcmp.eq.f32.partialorder %v4336_v17, %v4338_v36  ;;  %v4344_v45 = vcvt.f32.s32 %v4338_v36  ;;  %v4300_v48 = vshll.u32 %v4299_v54, 16  ;;  %v4866_v54 = vld [vmem:[#allocation11 + $0x20] sm:$0xff] }
0x1048   :  { %v4323_v14 = vpop.xlane.xlu0 %4322  ;;  %v4340_v39 = vsel %vm4339_vm8, %v4335_v38, inf }
0x1049   :  { %4341 = vmin.xlane.f32.xlu1 %v4340_v39  ;;  %vm4324_vm11 = vcmp.eq.f32.partialorder %v4321_v21, %v4323_v14  ;;  %v4329_v49 = vcvt.f32.s32 %v4323_v14  ;;  %v4345_v53 = vshll.u32 %v4344_v45, 16  ;;  %v4643_v21 = vld [vmem:[#allocation11 + $0x18] sm:$0xff] }
0x104a   :  { %v4325_v42 = vsel %vm4324_vm11, %v4320_v40, inf  ;;  %v4791_v40 = vld [vmem:[#allocation10 + $0x10] sm:$0xff] }
0x104b   :  { %4326 = vmin.xlane.f32.xlu0 %v4325_v42  ;;  %v4330_v59 = vshll.u32 %v4329_v49, 16 }
0x10ce   :  { %v4312_v58 = vpop.xlane.xlu1 %4311 }
0x10cf   :  { %v4313_v46 = vcvt.f32.s32 %v4312_v58 }
0x10d0   :  { %v4297_v47 = vpop.xlane.xlu0 %4296 }
0x10d1   :  { %v4316_v50 = vadd.s32 %v4315_v44, %v4313_v46  ;;  %v4298_v51 = vcvt.f32.s32 %v4297_v47 }
0x10d2   :  { %v4342_v52 = vpop.xlane.xlu1 %4341 }
0x10d3   :  { %4485 = vst [vmem:[%s10568_s29 + $0x8] sm:$0xff] %v4316_v50  ;;  %v4301_v55 = vadd.s32 %v4300_v48, %v4298_v51  ;;  %v4343_v56 = vcvt.f32.s32 %v4342_v52  ;;  %vm4348_vm12 = vcmp.eq.s32.totalorder %v11450_v0, %v4316_v50  ;;  %v4943_v50 = vld [vmem:[#allocation10 + $0x18] sm:$0xff]  ;;  %v5018_v52 = vld [vmem:[#allocation11 + $0x30] sm:$0xff] }
0x10d4   :  { %v4327_v57 = vpop.xlane.xlu0 %4326  ;;  %v8725_v63 = vsel %vm4348_vm12, 1.0, %v10362_v29  ;;  %v5019_v51 = vld [vmem:[#allocation11 + $0x38] sm:$0xff] }
0x10d5   :  { %4484 = vst [vmem:[%s10568_s29] sm:$0xff] %v4301_v55  ;;  %v4346_v60 = vadd.s32 %v4345_v53, %v4343_v56  ;;  %v4328_v61 = vcvt.f32.s32 %v4327_v57  ;;  %vm4347_vm13 = vcmp.eq.s32.totalorder %v11450_v0, %v4301_v55 }
0x10d6   :  { %v8724_v62 = vsel %vm4347_vm13, 1.0, %v10362_v29 }
0x10d7   :  { %4487 = vst [vmem:[%s10568_s29 + $0x18] sm:$0xff] %v4346_v60  ;;  %v4331_v1 = vadd.s32 %v4330_v59, %v4328_v61  ;;  %9758 = vmatprep.mubr.msk.f32.mxu0 %vm375_vm0, %v8724_v62  ;;  %vm4350_vm14 = vcmp.eq.s32.totalorder %v11450_v0, %v4346_v60  ;;  %v5185_v62 = vld [vmem:[#allocation14 + $0x8] sm:$0xff] }
0x10d8   :  { %9759 = vmatmul.mubr.msk.f32.vlgmr.msra.gmra.mxu0 %vm375_vm0, %v8725_v63  ;;  %v8727_v3 = vsel %vm4350_vm14, 1.0, %v10362_v29  ;;  %v5094_v63 = vld [vmem:[#allocation14] sm:$0xff] }
0x10d9   :  { %4486 = vst [vmem:[%s10568_s29 + $0x10] sm:$0xff] %v4331_v1  ;;  %vm4349_vm15 = vcmp.eq.s32.totalorder %v11450_v0, %v4331_v1 }
0x10da   :  { %v8726_v2 = vsel %vm4349_vm15, 1.0, %v10362_v29 }
0x10db   :  { %9761 = vmatprep.mubr.msk.f32.mxu0 %vm375_vm0, %v8726_v2  ;;  %v5275_v2 = vld [vmem:[#allocation16 + $0xf8] sm:$0xff] }
0x10dc   :  { %9762 = vmatmul.mubr.msk.f32.gmra.mxu0 %vm375_vm0, %v8727_v3  ;;  %v5183_v3 = vld [vmem:[#allocation16 + $0x78] sm:$0xff] }
0x10dd   :  { %9772 = vmatprep.mubr.msk.f32.mxu0 %vm10363_vm10, %v10362_v29 }
0x1198   :  { %v11478_v4 = vpop.f32.mrf.mxu0 }
0x1199   :  { %v4457_v5 = vsub.f32 %v11478_v4, %v11417_v30 }
0x119a   :  { %v11482_v10 = vpop.f32.mrf.mxu0 }
0x119b   :  { %v4456_v0 = vsub.f32 %v11482_v10, %v11415_v27  ;;  %v4461_v8 = vmul.f32 %v4457_v5, %v4457_v5  ;;  %v5182_v5 = vld [vmem:[#allocation16 + $0x70] sm:$0xff] }
0x119c   :  { %v11486_v6 = vpop.f32.mrf.mxu0 }
0x119d   :  { %9765 = vmatpush3.msra.mxu0 %v11486_v6  ;;  %9776 = vmatpush3.msra.mxu1 %v11486_v6  ;;  %v4459_v12 = vsub.f32 %v11486_v6, %v11425_v31  ;;  %v4460_v7 = vmul.f32 %v4456_v0, %v4456_v0  ;;  %v4567_v31 = vld [vmem:[#allocation10 + $0x8] sm:$0xff]  ;;  %v4465_v13 = vsel %vm1525_vm6, %v4461_v8, 0.0  ;;  %v5179_v8 = vld [vmem:[#allocation16 + $0x58] sm:$0xff] }
0x119e   :  { %v11492_v15 = vpop.f32.mrf.mxu0  ;;  %9766 = vmatprep.subr.mxu0 %v10362_v29  ;;  %9777 = vmatprep.subr.mxu1 %v10362_v29  ;;  %v5181_v0 = vld [vmem:[#allocation16 + $0x68] sm:$0xff] }
0x119f   :  { %9767 = vmatpush3.msra.mxu0 %v11492_v15  ;;  %9778 = vmatpush3.msra.mxu1 %v11492_v15  ;;  %v4458_v27 = vsub.f32 %v11492_v15, %v11421_v25  ;;  %v4464_v30 = vsel %vm1525_vm6, %v4460_v7, 0.0  ;;  %v4463_v11 = vmul.f32 %v4459_v12, %v4459_v12  ;;  %v5180_v12 = vld [vmem:[#allocation16 + $0x60] sm:$0xff]  ;;  %v5271_v7 = vld [vmem:[#allocation16 + $0xd8] sm:$0xff] }
0x11a0   :  { %9768 = vmatprep.subr.mxu0 %v10362_v29  ;;  %9779 = vmatprep.subr.mxu1 %v10362_v29  ;;  %v4466_v25 = vadd.f32 %v4465_v13, %v4464_v30  ;;  %v5269_v30 = vld [vmem:[#allocation16 + $0xc8] sm:$0xff]  ;;  %v5175_v13 = vld [vmem:[#allocation16 + $0x38] sm:$0xff] }
0x11a1   :  { %9769 = vmatpush3.msra.mxu0 %v11478_v4  ;;  %9780 = vmatpush3.msra.mxu1 %v11478_v4  ;;  %v4462_v9 = vmul.f32 %v4458_v27, %v4458_v27  ;;  %v4469_v17 = vsel %vm1525_vm6, %v4463_v11, 0.0  ;;  %v5178_v27 = vld [vmem:[#allocation16 + $0x50] sm:$0xff]  ;;  %v5267_v11 = vld [vmem:[#allocation16 + $0xb8] sm:$0xff] }
0x11a2   :  { %9770 = vmatprep.subr.mxu0 %v10362_v29  ;;  %9781 = vmatprep.subr.mxu1 %v10362_v29 }
0x11a3   :  { %9771 = vmatpush3.msra.mxu0 %v11482_v10  ;;  %9782 = vmatpush3.msra.mxu1 %v11482_v10  ;;  %v4467_v20 = vsel %vm1525_vm6, %v4462_v9, 0.0  ;;  %v5176_v9 = vld [vmem:[#allocation16 + $0x40] sm:$0xff] }
0x11a4   :  { %9784 = vmatmul.mubr.msk.f32.vlgmr.msra.gmra.mxu1 %vm375_vm0, %v4567_v31  ;;  %9773 = vmatmul.mubr.msk.f32.vlgmr.msra.gmra.mxu0 %vm375_vm0, %v4490_v41  ;;  %v4468_v16 = vadd.f32 %v4467_v20, %v4466_v25  ;;  %v5177_v31 = vld [vmem:[#allocation16 + $0x48] sm:$0xff]  ;;  %v5268_v41 = vld [vmem:[#allocation16 + $0xc0] sm:$0xff]  ;;  %v5266_v25 = vld [vmem:[#allocation16 + $0xb0] sm:$0xff] }
0x11a5   :  { %9786 = vmatprep.subr.mxu0 %v10362_v29  ;;  %9790 = vmatprep.mubr.msk.f32.mxu0 %vm10363_vm10, %v10362_v29  ;;  %v5174_v20 = vld [vmem:[#allocation16 + $0x30] sm:$0xff] }
0x11a6   :  { %v4470_v19 = vadd.f32 %v4469_v17, %v4468_v16  ;;  %9793 = vmatprep.subr.mxu1 %v10362_v29  ;;  %9797 = vmatprep.mubr.msk.f32.mxu1 %vm10363_vm10, %v10362_v29  ;;  %v5265_v16 = vld [vmem:[#allocation16 + $0xa8] sm:$0xff] }
0x11a7   :  { %9787 = vmatpush3.msra.mxu0 %v4643_v21  ;;  %9794 = vmatpush3.msra.mxu1 %v4565_v23  ;;  %v5173_v17 = vld [vmem:[#allocation16 + $0x28] sm:$0xff]  ;;  %v5172_v21 = vld [vmem:[#allocation16 + $0x20] sm:$0xff]  ;;  %v5171_v23 = vld [vmem:[#allocation16 + $0x18] sm:$0xff] }
0x11a8   :  { %4471 = vadd.xlane.f32.xlu0 %v4470_v19  ;;  %9788 = vmatprep.subr.mxu0 %v10362_v29  ;;  %v5264_v19 = vld [vmem:[#allocation16 + $0xa0] sm:$0xff] }
0x11a9   :  { %9789 = vmatpush3.msra.mxu0 %v4642_v22  ;;  %9795 = vmatprep.subr.mxu1 %v10362_v29  ;;  %v5263_v22 = vld [vmem:[#allocation16 + $0x98] sm:$0xff] }
0x11aa   :  { %9800 = vmatprep.subr.mxu0 %v10362_v29  ;;  %9796 = vmatpush3.msra.mxu1 %v4564_v24  ;;  %v5262_v24 = vld [vmem:[#allocation16 + $0x90] sm:$0xff] }
0x11ab   :  { %9811 = vmatprep.subr.mxu1 %v10362_v29 }
0x1231   :  { %v4472_v26 = vpop.xlane.xlu0 %4471 }
0x1232   :  { %v4473_v28 = vrot.slane %v4472_v26, 4 }
0x1234   :  { %v4474_v32 = vadd.f32 %v4473_v28, %v4472_v26  ;;  %v5170_v26 = vld [vmem:[#allocation16 + $0x10] sm:$0xff]  ;;  %v5261_v28 = vld [vmem:[#allocation16 + $0x88] sm:$0xff] }
0x1236   :  { %v4475_v33 = vrot.slane %v4474_v32, 2 }
0x1238   :  { %v4476_v34 = vadd.f32 %v4475_v33, %v4474_v32  ;;  %v5260_v32 = vld [vmem:[#allocation16 + $0x80] sm:$0xff]  ;;  %v5169_v33 = vld [vmem:[#allocation16 + $0x8] sm:$0xff] }
0x123a   :  { %v4477_v35 = vrot.slane %v4476_v34, 1 }
0x123c   :  { %v4478_v36 = vadd.f32 %v4477_v35, %v4476_v34  ;;  %v5168_v34 = vld [vmem:[#allocation16] sm:$0xff]  ;;  %v5515_v35 = vld [vmem:[#allocation16 + $0x178] sm:$0xff] }
0x123e   :  { %9851 = vpush %v4478_v36 }
0x1264   :  { %v4637_v37 = vpop.f32.mrf.mxu1  ;;  %v4560_v38 = vpop.f32.mrf.mxu0 }
0x1265   :  { %9791 = vmatmul.mubr.msk.f32.vlgmr.msra.gmra.mxu0 %vm1525_vm6, %v4637_v37  ;;  %9798 = vmatmul.mubr.msk.f32.vlgmr.msra.gmra.mxu1 %vm1525_vm6, %v4560_v38  ;;  %v5514_v38 = vld [vmem:[#allocation16 + $0x170] sm:$0xff] }
0x1266   :  { %9801 = vmatpush3.msra.mxu0 %v11486_v6  ;;  %v9785_v14 = vpop.f32.mrf.mxu1  ;;  %9808 = vmatprep.mubr.msk.f32.mxu0 %vm10363_vm10, %v10362_v29  ;;  %v9774_v39 = vpop.f32.mrf.mxu0 }
0x1267   :  { %9802 = vmatprep.subr.mxu0 %v10362_v29  ;;  %9815 = vmatprep.mubr.msk.f32.mxu1 %vm10363_vm10, %v10362_v29  ;;  %v5513_v14 = vld [vmem:[#allocation16 + $0x168] sm:$0xff] }
0x1268   :  { %9803 = vmatpush3.msra.mxu0 %v11492_v15  ;;  %9812 = vmatpush3.msra.mxu1 %v4867_v43  ;;  %v5512_v43 = vld [vmem:[#allocation16 + $0x160] sm:$0xff] }
0x1269   :  { %9804 = vmatprep.subr.mxu0 %v10362_v29  ;;  %9813 = vmatprep.subr.mxu1 %v10362_v29 }
0x126a   :  { %9805 = vmatpush3.msra.mxu0 %v11478_v4  ;;  %9814 = vmatpush3.msra.mxu1 %v4866_v54  ;;  %v5511_v54 = vld [vmem:[#allocation16 + $0x158] sm:$0xff] }
0x126b   :  { %9806 = vmatprep.subr.mxu0 %v10362_v29  ;;  %9818 = vmatprep.subr.mxu1 %v10362_v29 }
0x126c   :  { %9807 = vmatpush3.msra.mxu0 %v11482_v10 }
0x126d   :  { %9809 = vmatmul.mubr.msk.f32.vlgmr.msra.gmra.mxu0 %vm375_vm0, %v4791_v40  ;;  %9829 = vmatprep.subr.mxu0 %v10362_v29  ;;  %v5425_v40 = vld [vmem:[#allocation14 + $0x10] sm:$0xff] }
0x126e   :  { %9833 = vmatprep.mubr.msk.f32.mxu0 %vm10363_vm10, %v10362_v29  ;;  %9830 = vmatpush3.msra.mxu0 %v5019_v51  ;;  %v5502_v51 = vld [vmem:[#allocation16 + $0x110] sm:$0xff] }
0x126f   :  { %s9852_s29 = spop %9851  ;;  %9831 = vmatprep.subr.mxu0 %v10362_v29 }
0x1270   :  { %s4482_s22 = smul.f32 0.001953125, %s9852_s29  ;;  %9832 = vmatpush3.msra.mxu0 %v5018_v52  ;;  %v5501_v52 = vld [vmem:[#allocation16 + $0x108] sm:$0xff] }
0x1271   :  { %9836 = vmatprep.subr.mxu0 %v10362_v29 }
0x1272   :  { %s4483_s23 = smul.f32 0.25, %s4482_s22 }
0x1274   :  { %v4488_v42 = vstv %s4483_s23 }
0x1275   :  { %4489 = vst [vmem:[#allocation28] sm:$0x1] %v4488_v42 }
0x1325   :  { %v4713_v58 = vpop.f32.mrf.mxu0  ;;  %v4786_v44 = vpop.f32.mrf.mxu1 }
0x1326   :  { %v4787_v45 = vadd.f32 %v4786_v44, %v4713_v58  ;;  %v5510_v58 = vld [vmem:[#allocation16 + $0x150] sm:$0xff]  ;;  %v5509_v44 = vld [vmem:[#allocation16 + $0x148] sm:$0xff] }
0x1327   :  { %v9792_v46 = vpop.f32.mrf.mxu0  ;;  %v9799_v47 = vpop.f32.mrf.mxu1 }
0x1328   :  { %v5507_v46 = vld [vmem:[#allocation16 + $0x138] sm:$0xff]  ;;  %v5506_v47 = vld [vmem:[#allocation16 + $0x130] sm:$0xff] }
0x132d   :  { %v4861_v48 = vpop.f32.mrf.mxu0 }
0x132e   :  { %9816 = vmatmul.mubr.msk.f32.vlgmr.msra.gmra.mxu1 %vm1525_vm6, %v4861_v48  ;;  %v5505_v48 = vld [vmem:[#allocation16 + $0x128] sm:$0xff] }
0x132f   :  { %9819 = vmatpush3.msra.mxu1 %v11486_v6  ;;  %v9810_v49 = vpop.f32.mrf.mxu0  ;;  %9826 = vmatprep.mubr.msk.f32.mxu1 %vm10363_vm10, %v10362_v29  ;;  %v5272_v6 = vld [vmem:[#allocation16 + $0xe0] sm:$0xff] }
0x1330   :  { %9820 = vmatprep.subr.mxu1 %v10362_v29  ;;  %v5504_v49 = vld [vmem:[#allocation16 + $0x120] sm:$0xff] }
0x1331   :  { %9821 = vmatpush3.msra.mxu1 %v11492_v15  ;;  %v5270_v15 = vld [vmem:[#allocation16 + $0xd0] sm:$0xff] }
0x1332   :  { %9822 = vmatprep.subr.mxu1 %v10362_v29 }
0x1333   :  { %9823 = vmatpush3.msra.mxu1 %v11478_v4  ;;  %v5274_v4 = vld [vmem:[#allocation16 + $0xf0] sm:$0xff] }
0x1334   :  { %9824 = vmatprep.subr.mxu1 %v10362_v29 }
0x1335   :  { %9825 = vmatpush3.msra.mxu1 %v11482_v10  ;;  %v5273_v10 = vld [vmem:[#allocation16 + $0xe8] sm:$0xff] }
0x1336   :  { %9827 = vmatmul.mubr.msk.f32.vlgmr.msra.gmra.mxu1 %vm375_vm0, %v4943_v50  ;;  %9841 = vmatprep.subr.mxu1 %v10362_v29  ;;  %v5503_v50 = vld [vmem:[#allocation16 + $0x118] sm:$0xff] }
0x1337   :  { %9843 = vmatprep.mubr.msk.f32.mxu1 %vm10363_vm10, %v10362_v29 }
0x13ee   :  { %v4937_v53 = vpop.f32.mrf.mxu1 }
0x13ef   :  { %v4941_v55 = vadd.f32 %v4937_v53, %v4787_v45  ;;  %v5508_v45 = vld [vmem:[#allocation16 + $0x140] sm:$0xff] }
0x13f0   :  { %v9817_v56 = vpop.f32.mrf.mxu1  ;;  %v5500_v53 = vld [vmem:[#allocation16 + $0x100] sm:$0xff] }
0x13f1   :  { %v5609_v56 = vld [vmem:[%s12041_s26 + $0x78] sm:$0xff] }
0x13f6   :  { %v5013_v57 = vpop.f32.mrf.mxu1 }
0x13f7   :  { %9834 = vmatmul.mubr.msk.f32.vlgmr.msra.gmra.mxu0 %vm1525_vm6, %v5013_v57  ;;  %v5624_v57 = vld [vmem:[%s12041_s26 + $0xf0] sm:$0xff] }
0x13f8   :  { %v9828_v59 = vpop.f32.mrf.mxu1  ;;  %9838 = vmatprep.mubr.msk.f32.mxu0 %vm10363_vm10, %v10362_v29 }
0x13f9   :  { %v5608_v59 = vld [vmem:[%s12041_s26 + $0x70] sm:$0xff] }
0x14b7   :  { %v5089_v60 = vpop.f32.mrf.mxu0 }
0x14b8   :  { %v11562_v61 = vadd.f32 %v5089_v60, %v4941_v55  ;;  %v5625_v55 = vld [vmem:[%s12041_s26 + $0xf8] sm:$0xff]  ;;  %v5623_v60 = vld [vmem:[%s12041_s26 + $0xe8] sm:$0xff] }
0x14b9   :  { %v9835_v1 = vpop.f32.mrf.mxu0 }
0x14ba   :  { %9837 = vmatpush3.msra.mxu0 %v11562_v61  ;;  %9842 = vmatpush3.msra.mxu1 %v11562_v61  ;;  %v5621_v1 = vld [vmem:[%s12041_s26 + $0xd8] sm:$0xff] }
0x14bb   :  { %9844 = vmatmul.mubr.msk.f32.vlgmr.msra.gmra.mxu1 %vm2775_vm9, %v5185_v62  ;;  %9839 = vmatmul.mubr.msk.f32.vlgmr.msra.gmra.mxu0 %vm2775_vm9, %v5094_v63  ;;  %v5622_v62 = vld [vmem:[%s12041_s26 + $0xe0] sm:$0xff] }
0x14bc   :  { %5295 = vmatprep.subr.mxu0 %v5275_v2  ;;  %5369 = vmatprep.subr.mxu1 %v5183_v3  ;;  %v5606_v63 = vld [vmem:[%s12041_s26 + $0x60] sm:$0xff]  ;;  %v5605_v2 = vld [vmem:[%s12041_s26 + $0x58] sm:$0xff]  ;;  %v5620_v3 = vld [vmem:[%s12041_s26 + $0xd0] sm:$0xff] }
0x14bd   :  { %5296 = vmatpush1.msra.mxu0 %v5274_v4  ;;  %5370 = vmatpush1.msra.mxu1 %v5182_v5  ;;  %v5604_v4 = vld [vmem:[%s12041_s26 + $0x50] sm:$0xff]  ;;  %v5619_v5 = vld [vmem:[%s12041_s26 + $0xc8] sm:$0xff] }
0x14be   :  { %5297 = vmatprep.subr.mxu0 %v5273_v10  ;;  %5371 = vmatprep.subr.mxu1 %v5181_v0  ;;  %v5603_v10 = vld [vmem:[%s12041_s26 + $0x48] sm:$0xff] }
0x14bf   :  { %5298 = vmatpush1.msra.mxu0 %v5272_v6  ;;  %5372 = vmatpush1.msra.mxu1 %v5180_v12 }
0x14c0   :  { %5299 = vmatprep.subr.mxu0 %v5271_v7  ;;  %5373 = vmatprep.subr.mxu1 %v5179_v8  ;;  %v5618_v8 = vld [vmem:[%s12041_s26 + $0xc0] sm:$0xff] }
0x14c1   :  { %5300 = vmatpush1.msra.mxu0 %v5270_v15  ;;  %5374 = vmatpush1.msra.mxu1 %v5178_v27  ;;  %v5602_v15 = vld [vmem:[%s12041_s26 + $0x40] sm:$0xff]  ;;  %v5617_v27 = vld [vmem:[%s12041_s26 + $0xb8] sm:$0xff] }
0x14c2   :  { %5301 = vmatprep.subr.mxu0 %v5269_v30  ;;  %5375 = vmatprep.subr.mxu1 %v5177_v31  ;;  %v5601_v30 = vld [vmem:[%s12041_s26 + $0x38] sm:$0xff]  ;;  %v5616_v31 = vld [vmem:[%s12041_s26 + $0xb0] sm:$0xff] }
0x14c3   :  { %5302 = vmatpush1.msra.mxu0 %v5268_v41  ;;  %5376 = vmatpush1.msra.mxu1 %v5176_v9  ;;  %v5600_v41 = vld [vmem:[%s12041_s26 + $0x30] sm:$0xff]  ;;  %v5615_v9 = vld [vmem:[%s12041_s26 + $0xa8] sm:$0xff] }
0x14c4   :  { %5303 = vmatprep.subr.mxu0 %v5267_v11  ;;  %5377 = vmatprep.subr.mxu1 %v5175_v13  ;;  %v5599_v11 = vld [vmem:[%s12041_s26 + $0x28] sm:$0xff]  ;;  %v5614_v13 = vld [vmem:[%s12041_s26 + $0xa0] sm:$0xff] }
0x14c5   :  { %5304 = vmatpush1.msra.mxu0 %v5266_v25  ;;  %5378 = vmatpush1.msra.mxu1 %v5174_v20  ;;  %v5598_v25 = vld [vmem:[%s12041_s26 + $0x20] sm:$0xff]  ;;  %v5613_v20 = vld [vmem:[%s12041_s26 + $0x98] sm:$0xff] }
0x14c6   :  { %5305 = vmatprep.subr.mxu0 %v5265_v16  ;;  %5379 = vmatprep.subr.mxu1 %v5173_v17  ;;  %v5597_v16 = vld [vmem:[%s12041_s26 + $0x18] sm:$0xff]  ;;  %v5612_v17 = vld [vmem:[%s12041_s26 + $0x90] sm:$0xff] }
0x14c7   :  { %5306 = vmatpush1.msra.mxu0 %v5264_v19  ;;  %5380 = vmatpush1.msra.mxu1 %v5172_v21  ;;  %v5596_v19 = vld [vmem:[%s12041_s26 + $0x10] sm:$0xff]  ;;  %v5611_v21 = vld [vmem:[%s12041_s26 + $0x88] sm:$0xff] }
0x14c8   :  { %5307 = vmatprep.subr.mxu0 %v5263_v22  ;;  %5381 = vmatprep.subr.mxu1 %v5171_v23  ;;  %v5595_v22 = vld [vmem:[%s12041_s26 + $0x8] sm:$0xff]  ;;  %v5610_v23 = vld [vmem:[%s12041_s26 + $0x80] sm:$0xff] }
0x14c9   :  { %5308 = vmatpush1.msra.mxu0 %v5262_v24  ;;  %5382 = vmatpush1.msra.mxu1 %v5170_v26  ;;  %v5594_v24 = vld [vmem:[%s12041_s26] sm:$0xff] }
0x14ca   :  { %5309 = vmatprep.subr.mxu0 %v5261_v28  ;;  %5343 = vmatprep.mubr.f32.mxu0 %v10362_v29 }
0x14cb   :  { %5310 = vmatpush1.msra.mxu0 %v5260_v32  ;;  %5417 = vmatprep.mubr.f32.mxu1 %v10362_v29 }
0x14cc   :  { %9846 = vmatprep.subr.mxu0 %v10362_v29  ;;  %5383 = vmatprep.subr.mxu1 %v5169_v33 }
0x14cd   :  { %5384 = vmatpush1.msra.mxu1 %v5168_v34 }
0x14ce   :  { %5535 = vmatprep.subr.mxu1 %v5515_v35 }
0x157b   :  { %v5255_v36 = vpop.f32.mrf.mxu1  ;;  %v5164_v37 = vpop.f32.mrf.mxu0 }
0x157c   :  { %8742 = vmatmul.mubr.msk.f32.vlgmr.msra.gmra.mxu0 %vm574_vm1, %v5255_v36  ;;  %8743 = vmatmul.mubr.msk.f32.vlgmr.msra.gmra.mxu1 %vm574_vm1, %v5164_v37 }
0x157d   :  { %9847 = vmatpush3.msra.mxu0 %v11562_v61  ;;  %v9845_v39 = vpop.f32.mrf.mxu1  ;;  %9848 = vmatprep.mubr.msk.f32.mxu0 %vm10363_vm10, %v10362_v29  ;;  %v9840_v42 = vpop.f32.mrf.mxu0  ;;  %v5607_v61 = vld [vmem:[%s12041_s26 + $0x68] sm:$0xff] }
0x157e   :  { %5536 = vmatpush1.msra.mxu1 %v5514_v38  ;;  %5583 = vmatprep.mubr.f32.mxu1 %v10362_v29 }
0x157f   :  { %5537 = vmatprep.subr.mxu1 %v5513_v14  ;;  %9268 = vmatprep.subr.mxu0 %v5625_v55 }
0x1580   :  { %9849 = vmatmul.mubr.msk.f32.vlgmr.msra.gmra.mxu0 %vm2775_vm9, %v5425_v40  ;;  %5538 = vmatpush1.msra.mxu1 %v5512_v43 }
0x1581   :  { %5539 = vmatprep.subr.mxu1 %v5511_v54  ;;  %9269 = vmatpush3.msra.mxu0 %v5609_v56 }
0x1582   :  { %5540 = vmatpush1.msra.mxu1 %v5510_v58  ;;  %9270 = vmatprep.subr.mxu0 %v5624_v57 }
0x1583   :  { %5541 = vmatprep.subr.mxu1 %v5509_v44  ;;  %9271 = vmatpush3.msra.mxu0 %v5608_v59 }
0x1584   :  { %5542 = vmatpush1.msra.mxu1 %v5508_v45  ;;  %9272 = vmatprep.subr.mxu0 %v5623_v60 }
0x1585   :  { %5543 = vmatprep.subr.mxu1 %v5507_v46  ;;  %9273 = vmatpush3.msra.mxu0 %v5607_v61 }
0x1586   :  { %5544 = vmatpush1.msra.mxu1 %v5506_v47  ;;  %9274 = vmatprep.subr.mxu0 %v5622_v62 }
0x1587   :  { %5545 = vmatprep.subr.mxu1 %v5505_v48  ;;  %9275 = vmatpush3.msra.mxu0 %v5606_v63 }
0x1588   :  { %5546 = vmatpush1.msra.mxu1 %v5504_v49  ;;  %9276 = vmatprep.subr.mxu0 %v5621_v1 }
0x1589   :  { %5547 = vmatprep.subr.mxu1 %v5503_v50  ;;  %9277 = vmatpush3.msra.mxu0 %v5605_v2 }
0x158a   :  { %5548 = vmatpush1.msra.mxu1 %v5502_v51  ;;  %9278 = vmatprep.subr.mxu0 %v5620_v3 }
0x158b   :  { %5549 = vmatprep.subr.mxu1 %v5501_v52  ;;  %9279 = vmatpush3.msra.mxu0 %v5604_v4 }
0x158c   :  { %5550 = vmatpush1.msra.mxu1 %v5500_v53  ;;  %9280 = vmatprep.subr.mxu0 %v5619_v5 }
0x158d   :  { %9303 = vmatprep.subr.mxu1 %v5625_v55  ;;  %9281 = vmatpush3.msra.mxu0 %v5603_v10 }
0x158e   :  { %9282 = vmatprep.subr.mxu0 %v5618_v8 }
0x158f   :  { %9283 = vmatpush3.msra.mxu0 %v5602_v15 }
0x1590   :  { %9284 = vmatprep.subr.mxu0 %v5617_v27 }
0x1591   :  { %9285 = vmatpush3.msra.mxu0 %v5601_v30 }
0x1592   :  { %9286 = vmatprep.subr.mxu0 %v5616_v31 }
0x1593   :  { %9287 = vmatpush3.msra.mxu0 %v5600_v41 }
0x1594   :  { %9288 = vmatprep.subr.mxu0 %v5615_v9 }
0x1595   :  { %9289 = vmatpush3.msra.mxu0 %v5599_v11 }
0x1596   :  { %9290 = vmatprep.subr.mxu0 %v5614_v13 }
0x1597   :  { %9291 = vmatpush3.msra.mxu0 %v5598_v25 }
0x1598   :  { %9292 = vmatprep.subr.mxu0 %v5613_v20 }
0x1599   :  { %9293 = vmatpush3.msra.mxu0 %v5597_v16 }
0x159a   :  { %9294 = vmatprep.subr.mxu0 %v5612_v17 }
0x159b   :  { %9295 = vmatpush3.msra.mxu0 %v5596_v19 }
0x159c   :  { %9296 = vmatprep.subr.mxu0 %v5611_v21 }
0x159d   :  { %9297 = vmatpush3.msra.mxu0 %v5595_v22 }
0x159e   :  { %9298 = vmatprep.subr.mxu0 %v5610_v23 }
0x159f   :  { %9299 = vmatpush3.msra.mxu0 %v5594_v24 }
0x163c   :  { %v11592_v0 = vpop.f32.mrf.mxu0  ;;  %v5419_v26 = vpop.f32.mrf.mxu1 }
0x163d   :  { %v5420_v32 = vadd.f32 %v5419_v26, %v11592_v0  ;;  %v5810_v0 = vld [vmem:[%s12042_s28 + $0x48] sm:$0xff] }
0x163e   :  { %v11594_v6 = vpop.f32.mrf.mxu0  ;;  %v5421_v28 = vpop.f32.mrf.mxu1 }
0x163f   :  { %v5422_v34 = vadd.f32 %v5421_v28, %v11594_v6  ;;  %v5809_v6 = vld [vmem:[%s12042_s28 + $0x40] sm:$0xff] }
0x1640   :  { %v5495_v12 = vpop.f32.mrf.mxu0 }
0x1641   :  { %8745 = vmatmul.mubr.msk.f32.vlgmr.msra.gmra.mxu1 %vm574_vm1, %v5495_v12  ;;  %v5808_v12 = vld [vmem:[%s12042_s28 + $0x38] sm:$0xff] }
0x1642   :  { %v9850_v7 = vpop.f32.mrf.mxu0  ;;  %9304 = vmatpush3.msra.mxu1 %v5609_v56 }
0x1643   :  { %9305 = vmatprep.subr.mxu1 %v5624_v57  ;;  %v5807_v7 = vld [vmem:[%s12042_s28 + $0x30] sm:$0xff] }
0x1644   :  { %9306 = vmatpush3.msra.mxu1 %v5608_v59 }
0x1645   :  { %9307 = vmatprep.subr.mxu1 %v5623_v60 }
0x1646   :  { %9308 = vmatpush3.msra.mxu1 %v5607_v61 }
0x1647   :  { %9309 = vmatprep.subr.mxu1 %v5622_v62 }
0x1648   :  { %9310 = vmatpush3.msra.mxu1 %v5606_v63 }
0x1649   :  { %9311 = vmatprep.subr.mxu1 %v5621_v1  ;;  %v5816_v1 = vld [vmem:[%s12042_s28 + $0x78] sm:$0xff] }
0x164a   :  { %9312 = vmatpush3.msra.mxu1 %v5605_v2  ;;  %v5815_v2 = vld [vmem:[%s12042_s28 + $0x70] sm:$0xff]  ;;  %5836 = vmatprep.subr.mxu0 %v5816_v1 }
0x164b   :  { %9313 = vmatprep.subr.mxu1 %v5620_v3  ;;  %v5814_v3 = vld [vmem:[%s12042_s28 + $0x68] sm:$0xff] }
0x164c   :  { %9314 = vmatpush3.msra.mxu1 %v5604_v4  ;;  %v5813_v4 = vld [vmem:[%s12042_s28 + $0x60] sm:$0xff] }
0x164d   :  { %9315 = vmatprep.subr.mxu1 %v5619_v5  ;;  %v5812_v5 = vld [vmem:[%s12042_s28 + $0x58] sm:$0xff] }
0x164e   :  { %9316 = vmatpush3.msra.mxu1 %v5603_v10  ;;  %v5811_v10 = vld [vmem:[%s12042_s28 + $0x50] sm:$0xff] }
0x164f   :  { %9317 = vmatprep.subr.mxu1 %v5618_v8  ;;  %v5806_v8 = vld [vmem:[%s12042_s28 + $0x28] sm:$0xff] }
0x1650   :  { %9318 = vmatpush3.msra.mxu1 %v5602_v15  ;;  %v5805_v15 = vld [vmem:[%s12042_s28 + $0x20] sm:$0xff] }
0x1651   :  { %9319 = vmatprep.subr.mxu1 %v5617_v27  ;;  %v5804_v27 = vld [vmem:[%s12042_s28 + $0x18] sm:$0xff] }
0x1652   :  { %9320 = vmatpush3.msra.mxu1 %v5601_v30  ;;  %v5803_v30 = vld [vmem:[%s12042_s28 + $0x10] sm:$0xff] }
0x1653   :  { %9321 = vmatprep.subr.mxu1 %v5616_v31  ;;  %v5802_v31 = vld [vmem:[%s12042_s28 + $0x8] sm:$0xff] }
0x1654   :  { %9322 = vmatpush3.msra.mxu1 %v5600_v41  ;;  %v5801_v41 = vld [vmem:[%s12042_s28] sm:$0xff] }
0x1655   :  { %9323 = vmatprep.subr.mxu1 %v5615_v9 }
0x1656   :  { %9324 = vmatpush3.msra.mxu1 %v5599_v11 }
0x1657   :  { %9325 = vmatprep.subr.mxu1 %v5614_v13 }
0x1658   :  { %9326 = vmatpush3.msra.mxu1 %v5598_v25 }
0x1659   :  { %9327 = vmatprep.subr.mxu1 %v5613_v20 }
0x165a   :  { %9328 = vmatpush3.msra.mxu1 %v5597_v16 }
0x165b   :  { %9329 = vmatprep.subr.mxu1 %v5612_v17 }
0x165c   :  { %9330 = vmatpush3.msra.mxu1 %v5596_v19 }
0x165d   :  { %9331 = vmatprep.subr.mxu1 %v5611_v21 }
0x165e   :  { %9332 = vmatpush3.msra.mxu1 %v5595_v22 }
0x165f   :  { %9333 = vmatprep.subr.mxu1 %v5610_v23 }
0x1660   :  { %9334 = vmatpush3.msra.mxu1 %v5594_v24  ;;  %v5592_v24 = vld [vmem:[#allocation17] sm:$0x1] }
0x1661   :  { %5910 = vmatprep.subr.mxu1 %v5816_v1  ;;  %v6080_v1 = vld [vmem:[#allocation20 + $0x20] sm:$0xff] }
0x1701   :  { %v5585_v33 = vpop.f32.mrf.mxu1 }
0x1702   :  { %v11617_v35 = vadd.f32 %v5585_v33, %v5420_v32  ;;  %v5593_v32 = vld [vmem:[#allocation19] sm:$0x1] }
0x1703   :  { %v5587_v36 = vpop.f32.mrf.mxu1 }
0x1704   :  { %v5626_v37 = vrot.slane %v11617_v35, 4  ;;  %v5638_v38 = vmul.f32 %v11617_v35, %v11617_v35  ;;  %v11622_v14 = vadd.f32 %v5587_v36, %v5422_v34  ;;  %v6107_v36 = vld [vmem:[#allocation20 + $0xf8] sm:$0xff] }
0x1706   :  { %v5627_v39 = vadd.f32 %v5626_v37, %v11617_v35  ;;  %v5640_v40 = vrot.slane %v5638_v38, 4  ;;  %v5632_v42 = vrot.slane %v11622_v14, 4  ;;  %v5639_v43 = vmul.f32 %v11622_v14, %v11622_v14  ;;  %v6106_v37 = vld [vmem:[#allocation20 + $0xf0] sm:$0xff] }
0x1708   :  { %v5628_v54 = vrot.slane %v5627_v39, 2  ;;  %v5641_v58 = vadd.f32 %v5640_v40, %v5638_v38  ;;  %v5633_v44 = vadd.f32 %v5632_v42, %v11622_v14  ;;  %v5646_v45 = vrot.slane %v5639_v43, 4  ;;  %v6105_v38 = vld [vmem:[#allocation20 + $0xe8] sm:$0xff]  ;;  %v6103_v40 = vld [vmem:[#allocation20 + $0xd8] sm:$0xff]  ;;  %v6102_v42 = vld [vmem:[#allocation20 + $0xd0] sm:$0xff] }
0x170a   :  { %v5634_v46 = vrot.slane %v5633_v44, 2  ;;  %v5629_v47 = vadd.f32 %v5628_v54, %v5627_v39  ;;  %v5647_v48 = vadd.f32 %v5646_v45, %v5639_v43  ;;  %v5642_v49 = vrot.slane %v5641_v58, 2  ;;  %v6104_v39 = vld [vmem:[#allocation20 + $0xe0] sm:$0xff]  ;;  %v6101_v43 = vld [vmem:[#allocation20 + $0xc8] sm:$0xff] }
0x170b   :  { %v6100_v54 = vld [vmem:[#allocation20 + $0xc0] sm:$0xff]  ;;  %v6097_v45 = vld [vmem:[#allocation20 + $0xa8] sm:$0xff] }
0x170c   :  { %v5635_v50 = vadd.f32 %v5634_v46, %v5633_v44  ;;  %v5648_v51 = vrot.slane %v5647_v48, 2  ;;  %v5643_v52 = vadd.f32 %v5642_v49, %v5641_v58  ;;  %v5630_v53 = vrot.slane %v5629_v47, 1  ;;  %v6099_v58 = vld [vmem:[#allocation20 + $0xb8] sm:$0xff]  ;;  %v6098_v44 = vld [vmem:[#allocation20 + $0xb0] sm:$0xff]  ;;  %v6096_v46 = vld [vmem:[#allocation20 + $0xa0] sm:$0xff] }
0x170d   :  { %v6093_v49 = vld [vmem:[#allocation20 + $0x88] sm:$0xff] }
0x170e   :  { %v5636_v55 = vrot.slane %v5635_v50, 1  ;;  %v5649_v56 = vadd.f32 %v5648_v51, %v5647_v48  ;;  %v5644_v57 = vrot.slane %v5643_v52, 1  ;;  %v5631_v61 = vadd.f32 %v5630_v53, %v5629_v47  ;;  %v6095_v47 = vld [vmem:[#allocation20 + $0x98] sm:$0xff]  ;;  %v6094_v48 = vld [vmem:[#allocation20 + $0x90] sm:$0xff]  ;;  %v6089_v53 = vld [vmem:[#allocation20 + $0x68] sm:$0xff] }
0x170f   :  { %v6091_v51 = vld [vmem:[#allocation20 + $0x78] sm:$0xff] }
0x1710   :  { %v5637_v59 = vadd.f32 %v5636_v55, %v5635_v50  ;;  %v5650_v60 = vrot.slane %v5649_v56, 1  ;;  %v5645_v63 = vadd.f32 %v5644_v57, %v5643_v52  ;;  %v6092_v50 = vld [vmem:[#allocation20 + $0x80] sm:$0xff]  ;;  %v6090_v52 = vld [vmem:[#allocation20 + $0x70] sm:$0xff] }
0x1711   :  { %v6088_v55 = vld [vmem:[#allocation20 + $0x60] sm:$0xff]  ;;  %v6086_v57 = vld [vmem:[#allocation20 + $0x50] sm:$0xff] }
0x1712   :  { %5716 = vmatprep.mubr.f32.mxu0 %v5637_v59  ;;  %v5651_v62 = vadd.f32 %v5650_v60, %v5649_v56  ;;  %v6087_v56 = vld [vmem:[#allocation20 + $0x58] sm:$0xff]  ;;  %v6085_v59 = vld [vmem:[#allocation20 + $0x48] sm:$0xff]  ;;  %v6084_v60 = vld [vmem:[#allocation20 + $0x40] sm:$0xff] }
0x1713   :  { %5717 = vmatmul.mubr.f32.vlgmr.msra.gmra.mxu0 %v5631_v61  ;;  %v6083_v61 = vld [vmem:[#allocation20 + $0x38] sm:$0xff] }
0x1714   :  { %5787 = vmatprep.mubr.f32.mxu1 %v5651_v62  ;;  %5884 = vmatprep.mubr.f32.mxu0 %v10362_v29  ;;  %v6082_v62 = vld [vmem:[#allocation20 + $0x30] sm:$0xff] }
0x1715   :  { %5788 = vmatmul.mubr.f32.vlgmr.msra.gmra.mxu1 %v5645_v63  ;;  %5837 = vmatpush1.msra.mxu0 %v5815_v2  ;;  %v6081_v63 = vld [vmem:[#allocation20 + $0x28] sm:$0xff] }
0x1716   :  { %5958 = vmatprep.mubr.f32.mxu1 %v10362_v29  ;;  %5911 = vmatpush1.msra.mxu1 %v5815_v2  ;;  %v6079_v2 = vld [vmem:[#allocation20 + $0x18] sm:$0xff] }
0x1717   :  { %5838 = vmatprep.subr.mxu0 %v5814_v3  ;;  %5912 = vmatprep.subr.mxu1 %v5814_v3  ;;  %v6078_v3 = vld [vmem:[#allocation20 + $0x10] sm:$0xff] }
0x1718   :  { %5839 = vmatpush1.msra.mxu0 %v5813_v4  ;;  %5913 = vmatpush1.msra.mxu1 %v5813_v4  ;;  %v6077_v4 = vld [vmem:[#allocation20 + $0x8] sm:$0xff] }
0x1719   :  { %5840 = vmatprep.subr.mxu0 %v5812_v5  ;;  %5914 = vmatprep.subr.mxu1 %v5812_v5  ;;  %v6076_v5 = vld [vmem:[#allocation20] sm:$0xff] }
0x171a   :  { %5841 = vmatpush1.msra.mxu0 %v5811_v10  ;;  %5915 = vmatpush1.msra.mxu1 %v5811_v10  ;;  %v6139_v10 = vld [vmem:[#allocation20 + $0x1f8] sm:$0xff] }
0x171b   :  { %5842 = vmatprep.subr.mxu0 %v5810_v0  ;;  %5916 = vmatprep.subr.mxu1 %v5810_v0  ;;  %v6138_v0 = vld [vmem:[#allocation20 + $0x1f0] sm:$0xff] }
0x171c   :  { %5843 = vmatpush1.msra.mxu0 %v5809_v6  ;;  %5917 = vmatpush1.msra.mxu1 %v5809_v6  ;;  %v6137_v6 = vld [vmem:[#allocation20 + $0x1e8] sm:$0xff] }
0x171d   :  { %5844 = vmatprep.subr.mxu0 %v5808_v12  ;;  %5918 = vmatprep.subr.mxu1 %v5808_v12  ;;  %v6136_v12 = vld [vmem:[#allocation20 + $0x1e0] sm:$0xff] }
0x171e   :  { %5845 = vmatpush1.msra.mxu0 %v5807_v7  ;;  %5919 = vmatpush1.msra.mxu1 %v5807_v7  ;;  %v6135_v7 = vld [vmem:[#allocation20 + $0x1d8] sm:$0xff] }
0x171f   :  { %5846 = vmatprep.subr.mxu0 %v5806_v8  ;;  %5920 = vmatprep.subr.mxu1 %v5806_v8  ;;  %v6134_v8 = vld [vmem:[#allocation20 + $0x1d0] sm:$0xff] }
0x1720   :  { %5847 = vmatpush1.msra.mxu0 %v5805_v15  ;;  %5921 = vmatpush1.msra.mxu1 %v5805_v15  ;;  %v6133_v15 = vld [vmem:[#allocation20 + $0x1c8] sm:$0xff] }
0x1721   :  { %5848 = vmatprep.subr.mxu0 %v5804_v27  ;;  %5922 = vmatprep.subr.mxu1 %v5804_v27  ;;  %v6132_v27 = vld [vmem:[#allocation20 + $0x1c0] sm:$0xff] }
0x1722   :  { %5849 = vmatpush1.msra.mxu0 %v5803_v30  ;;  %5923 = vmatpush1.msra.mxu1 %v5803_v30  ;;  %v6131_v30 = vld [vmem:[#allocation20 + $0x1b8] sm:$0xff] }
0x1723   :  { %5850 = vmatprep.subr.mxu0 %v5802_v31  ;;  %5924 = vmatprep.subr.mxu1 %v5802_v31  ;;  %v6130_v31 = vld [vmem:[#allocation20 + $0x1b0] sm:$0xff] }
0x1724   :  { %5851 = vmatpush1.msra.mxu0 %v5801_v41  ;;  %5925 = vmatpush1.msra.mxu1 %v5801_v41 }
0x1725   :  { %6368 = vmatprep.subr.mxu1 %v6107_v36  ;;  %v6122_v36 = vld [vmem:[#allocation20 + $0x170] sm:$0xff] }
0x17d3   :  { %v9300_v9 = vpop.f32.mrf.mxu0 }
0x17d5   :  { %v9301_v11 = vpop.f32.mrf.mxu0  ;;  %v9335_v13 = vpop.f32.mrf.mxu1 }
0x17d6   :  { %v9302_v25 = vadd.f32 %v9301_v11, %v9300_v9  ;;  %v6129_v9 = vld [vmem:[#allocation20 + $0x1a8] sm:$0xff] }
0x17d7   :  { %v9336_v20 = vpop.f32.mrf.mxu1 }
0x17d8   :  { %v5722_v16 = vmul.f32 0.03125, %v9302_v25  ;;  %v9337_v17 = vadd.f32 %v9336_v20, %v9335_v13  ;;  %v6128_v13 = vld [vmem:[#allocation20 + $0x1a0] sm:$0xff]  ;;  %v6127_v20 = vld [vmem:[#allocation20 + $0x198] sm:$0xff] }
0x17da   :  { %v5794_v19 = vmul.f32 %v5722_v16, %v5722_v16  ;;  %v5793_v21 = vmul.f32 0.03125, %v9337_v17  ;;  %v6126_v17 = vld [vmem:[#allocation20 + $0x190] sm:$0xff] }
0x17dc   :  { %v5795_v22 = vsub.f32 %v5793_v21, %v5794_v19  ;;  %v6125_v21 = vld [vmem:[#allocation20 + $0x188] sm:$0xff] }
0x17de   :  { %v5796_v23 = vadd.f32 1e-05, %v5795_v22 }
0x17e0   :  { %9922 = vrsqrt.f32 %v5796_v23 }
0x17ed   :  { %v9923_v26 = vpop.eup %9922 }
0x17ee   :  { %v5798_v28 = vmul.f32 %v9923_v26, %v5592_v24  ;;  %v6124_v24 = vld [vmem:[#allocation20 + $0x180] sm:$0xff] }
0x17f0   :  { %8746 = vmatmul.mubr.msk.f32.vlgmr.msra.gmra.mxu0 %vm574_vm1, %v5798_v28  ;;  %v5799_v33 = vmul.f32 %v5798_v28, %v5722_v16  ;;  %v6123_v28 = vld [vmem:[#allocation20 + $0x178] sm:$0xff] }
0x17f1   :  { %6063 = vmatprep.mubr.f32.mxu0 %v10362_v29 }
0x17f2   :  { %v5800_v34 = vsub.f32 %v5593_v32, %v5799_v33 }
0x17f4   :  { %8747 = vmatmul.mubr.msk.f32.vlgmr.msra.gmra.mxu1 %vm574_vm1, %v5800_v34 }
0x17f5   :  { %6369 = vmatpush1.msra.mxu1 %v6106_v37  ;;  %v6121_v37 = vld [vmem:[#allocation20 + $0x168] sm:$0xff] }
0x17f6   :  { %6370 = vmatprep.subr.mxu1 %v6105_v38 }
0x17f7   :  { %6371 = vmatpush1.msra.mxu1 %v6104_v39 }
0x17f8   :  { %6372 = vmatprep.subr.mxu1 %v6103_v40  ;;  %v6119_v40 = vld [vmem:[#allocation20 + $0x158] sm:$0xff] }
0x17f9   :  { %6373 = vmatpush1.msra.mxu1 %v6102_v42 }
0x17fa   :  { %6374 = vmatprep.subr.mxu1 %v6101_v43  ;;  %v6118_v43 = vld [vmem:[#allocation20 + $0x150] sm:$0xff] }
0x17fb   :  { %6375 = vmatpush1.msra.mxu1 %v6100_v54 }
0x17fc   :  { %6376 = vmatprep.subr.mxu1 %v6099_v58  ;;  %v5991_v58 = vld [vmem:[%s12043_s1] sm:$0xff] }
0x17fd   :  { %6377 = vmatpush1.msra.mxu1 %v6098_v44 }
0x17fe   :  { %6378 = vmatprep.subr.mxu1 %v6097_v45  ;;  %v6258_v45 = vld [vmem:[#allocation20 + $0x2f8] sm:$0xff] }
0x17ff   :  { %6379 = vmatpush1.msra.mxu1 %v6096_v46  ;;  %v6116_v46 = vld [vmem:[#allocation20 + $0x140] sm:$0xff] }
0x1800   :  { %6380 = vmatprep.subr.mxu1 %v6095_v47  ;;  %v6115_v47 = vld [vmem:[#allocation20 + $0x138] sm:$0xff] }
0x1801   :  { %6381 = vmatpush1.msra.mxu1 %v6094_v48  ;;  %v5992_v48 = vld [vmem:[%s12043_s1 + $0x8] sm:$0xff] }
0x1802   :  { %6382 = vmatprep.subr.mxu1 %v6093_v49  ;;  %v6114_v49 = vld [vmem:[#allocation20 + $0x130] sm:$0xff] }
0x1803   :  { %6383 = vmatpush1.msra.mxu1 %v6092_v50  ;;  %v6113_v50 = vld [vmem:[#allocation20 + $0x128] sm:$0xff] }
0x1804   :  { %6384 = vmatprep.subr.mxu1 %v6091_v51  ;;  %v6112_v51 = vld [vmem:[#allocation20 + $0x120] sm:$0xff] }
0x1805   :  { %6385 = vmatpush1.msra.mxu1 %v6090_v52  ;;  %v8750_v52 = vld [vmem:[%s12043_s1 + $0x10] sm:$0xff] }
0x1806   :  { %6386 = vmatprep.subr.mxu1 %v6089_v53  ;;  %v6257_v53 = vld [vmem:[#allocation20 + $0x2f0] sm:$0xff] }
0x1807   :  { %6387 = vmatpush1.msra.mxu1 %v6088_v55  ;;  %v6256_v55 = vld [vmem:[#allocation20 + $0x2e8] sm:$0xff] }
0x1808   :  { %6388 = vmatprep.subr.mxu1 %v6087_v56  ;;  %v6255_v56 = vld [vmem:[#allocation20 + $0x2e0] sm:$0xff] }
0x1809   :  { %6389 = vmatpush1.msra.mxu1 %v6086_v57  ;;  %v6254_v57 = vld [vmem:[#allocation20 + $0x2d8] sm:$0xff] }
0x180a   :  { %6390 = vmatprep.subr.mxu1 %v6085_v59  ;;  %v8751_v59 = vld [vmem:[%s12043_s1 + $0x18] sm:$0xff] }
0x180b   :  { %6391 = vmatpush1.msra.mxu1 %v6084_v60  ;;  %v6253_v60 = vld [vmem:[#allocation20 + $0x2d0] sm:$0xff] }
0x180c   :  { %6392 = vmatprep.subr.mxu1 %v6083_v61  ;;  %v6252_v61 = vld [vmem:[#allocation20 + $0x2c8] sm:$0xff] }
0x180d   :  { %6393 = vmatpush1.msra.mxu1 %v6082_v62  ;;  %v6251_v62 = vld [vmem:[#allocation20 + $0x2c0] sm:$0xff] }
0x180e   :  { %6394 = vmatprep.subr.mxu1 %v6081_v63  ;;  %v6250_v63 = vld [vmem:[#allocation20 + $0x2b8] sm:$0xff] }
0x180f   :  { %6395 = vmatpush1.msra.mxu1 %v6080_v1  ;;  %v6249_v1 = vld [vmem:[#allocation20 + $0x2b0] sm:$0xff] }
0x1810   :  { %6396 = vmatprep.subr.mxu1 %v6079_v2  ;;  %v6248_v2 = vld [vmem:[#allocation20 + $0x2a8] sm:$0xff] }
0x1811   :  { %6397 = vmatpush1.msra.mxu1 %v6078_v3  ;;  %v6247_v3 = vld [vmem:[#allocation20 + $0x2a0] sm:$0xff] }
0x1812   :  { %6398 = vmatprep.subr.mxu1 %v6077_v4  ;;  %v6246_v4 = vld [vmem:[#allocation20 + $0x298] sm:$0xff] }
0x1813   :  { %6399 = vmatpush1.msra.mxu1 %v6076_v5  ;;  %v6245_v5 = vld [vmem:[#allocation20 + $0x290] sm:$0xff] }
0x1814   :  { %6400 = vmatprep.subr.mxu1 %v6139_v10  ;;  %v6244_v10 = vld [vmem:[#allocation20 + $0x288] sm:$0xff] }
0x1815   :  { %6401 = vmatpush2.msra.mxu1 %v6138_v0  ;;  %v6243_v0 = vld [vmem:[#allocation20 + $0x280] sm:$0xff] }
0x1816   :  { %6402 = vmatprep.subr.mxu1 %v6137_v6  ;;  %v6242_v6 = vld [vmem:[#allocation20 + $0x278] sm:$0xff] }
0x1817   :  { %6403 = vmatpush2.msra.mxu1 %v6136_v12  ;;  %v6241_v12 = vld [vmem:[#allocation20 + $0x270] sm:$0xff] }
0x1818   :  { %6404 = vmatprep.subr.mxu1 %v6135_v7  ;;  %v6240_v7 = vld [vmem:[#allocation20 + $0x268] sm:$0xff] }
0x1819   :  { %6405 = vmatpush2.msra.mxu1 %v6134_v8  ;;  %v6239_v8 = vld [vmem:[#allocation20 + $0x260] sm:$0xff] }
0x181a   :  { %6406 = vmatprep.subr.mxu1 %v6133_v15  ;;  %v6238_v15 = vld [vmem:[#allocation20 + $0x258] sm:$0xff] }
0x181b   :  { %6407 = vmatpush2.msra.mxu1 %v6132_v27  ;;  %v6237_v27 = vld [vmem:[#allocation20 + $0x250] sm:$0xff] }
0x181c   :  { %6408 = vmatprep.subr.mxu1 %v6131_v30  ;;  %v6236_v30 = vld [vmem:[#allocation20 + $0x248] sm:$0xff] }
0x181d   :  { %6409 = vmatpush2.msra.mxu1 %v6130_v31  ;;  %v6235_v31 = vld [vmem:[#allocation20 + $0x240] sm:$0xff] }
0x181e   :  { %6410 = vmatprep.subr.mxu1 %v6129_v9  ;;  %v6233_v9 = vld [vmem:[#allocation20 + $0x230] sm:$0xff] }
0x181f   :  { %6411 = vmatpush2.msra.mxu1 %v6128_v13  ;;  %v6231_v13 = vld [vmem:[#allocation20 + $0x220] sm:$0xff] }
0x1820   :  { %6412 = vmatprep.subr.mxu1 %v6127_v20  ;;  %v6229_v20 = vld [vmem:[#allocation20 + $0x210] sm:$0xff] }
0x1821   :  { %6413 = vmatpush2.msra.mxu1 %v6126_v17  ;;  %v6227_v17 = vld [vmem:[#allocation20 + $0x200] sm:$0xff] }
0x1822   :  { %6414 = vmatprep.subr.mxu1 %v6125_v21  ;;  %v6289_v21 = vld [vmem:[#allocation20 + $0x3f0] sm:$0xff] }
0x1823   :  { %6415 = vmatpush2.msra.mxu1 %v6124_v24  ;;  %v6286_v24 = vld [vmem:[#allocation20 + $0x3d8] sm:$0xff] }
0x1824   :  { %6416 = vmatprep.subr.mxu1 %v6123_v28  ;;  %v6284_v28 = vld [vmem:[#allocation20 + $0x3c8] sm:$0xff] }
0x1825   :  { %6417 = vmatpush2.msra.mxu1 %v6122_v36  ;;  %v6280_v36 = vld [vmem:[#allocation20 + $0x3a8] sm:$0xff] }
0x1826   :  { %6418 = vmatprep.subr.mxu1 %v6121_v37  ;;  %v6279_v37 = vld [vmem:[#allocation20 + $0x3a0] sm:$0xff] }
0x18b0   :  { %v5886_v41 = vpop.f32.mrf.mxu0 }
0x18b1   :  { %v5968_v11 = vrot.slane %v5886_v41, %v10794_v18  ;;  %v6234_v41 = vld [vmem:[#allocation20 + $0x238] sm:$0xff] }
0x18b2   :  { %v5888_v25 = vpop.f32.mrf.mxu0 }
0x18b3   :  { %v5972_v16 = vrot.slane %v5888_v25, %v10794_v18  ;;  %v5973_v22 = vmul.f32 %v5968_v11, %v11617_v35  ;;  %v6120_v35 = vld [vmem:[#allocation20 + $0x160] sm:$0xff]  ;;  %v6232_v11 = vld [vmem:[#allocation20 + $0x228] sm:$0xff]  ;;  %v6230_v25 = vld [vmem:[#allocation20 + $0x218] sm:$0xff] }
0x18b4   :  { %v5960_v19 = vpop.f32.mrf.mxu1  ;;  %6419 = vmatpush2.msra.mxu1 %v6120_v35  ;;  %v6277_v35 = vld [vmem:[#allocation20 + $0x390] sm:$0xff] }
0x18b5   :  { %v5978_v23 = vrot.slane %v5960_v19, %v10794_v18  ;;  %v5974_v32 = vmul.f32 %v5972_v16, %v11622_v14  ;;  %v6117_v14 = vld [vmem:[#allocation20 + $0x148] sm:$0xff]  ;;  %6420 = vmatprep.subr.mxu1 %v6119_v40  ;;  %v6290_v19 = vld [vmem:[#allocation20 + $0x3f8] sm:$0xff]  ;;  %v6275_v40 = vld [vmem:[#allocation20 + $0x380] sm:$0xff] }
0x18b6   :  { %v5962_v26 = vpop.f32.mrf.mxu1  ;;  %6421 = vmatpush2.msra.mxu1 %v6118_v43  ;;  %v6228_v16 = vld [vmem:[#allocation20 + $0x208] sm:$0xff]  ;;  %v6273_v43 = vld [vmem:[#allocation20 + $0x370] sm:$0xff] }
0x18b7   :  { %v5983_v33 = vadd.f32 %v5978_v23, %v5973_v22  ;;  %v5982_v34 = vrot.slane %v5962_v26, %v10794_v18  ;;  %6422 = vmatprep.subr.mxu1 %v6117_v14  ;;  %v6288_v22 = vld [vmem:[#allocation20 + $0x3e8] sm:$0xff]  ;;  %v6287_v23 = vld [vmem:[#allocation20 + $0x3e0] sm:$0xff]  ;;  %v6285_v26 = vld [vmem:[#allocation20 + $0x3d0] sm:$0xff] }
0x18b8   :  { %6423 = vmatpush2.msra.mxu1 %v6116_v46  ;;  %v6272_v14 = vld [vmem:[#allocation20 + $0x368] sm:$0xff]  ;;  %v6269_v46 = vld [vmem:[#allocation20 + $0x350] sm:$0xff] }
0x18b9   :  { %v5984_v38 = vadd.f32 %v5982_v34, %v5974_v32  ;;  %v5987_v39 = vmul.f32 0.2, %v5983_v33  ;;  %vm5985_vm10 = vcmp.ge.f32.partialorder %v5983_v33, 0.0  ;;  %6424 = vmatprep.subr.mxu1 %v6115_v47  ;;  %v6283_v32 = vld [vmem:[#allocation20 + $0x3c0] sm:$0xff]  ;;  %v6281_v34 = vld [vmem:[#allocation20 + $0x3b0] sm:$0xff]  ;;  %v6268_v47 = vld [vmem:[#allocation20 + $0x348] sm:$0xff] }
0x18ba   :  { %6425 = vmatpush2.msra.mxu1 %v6114_v49  ;;  %v6266_v49 = vld [vmem:[#allocation20 + $0x338] sm:$0xff] }
0x18bb   :  { %v5988_v42 = vmul.f32 0.2, %v5984_v38  ;;  %vm5986_vm1 = vcmp.ge.f32.partialorder %v5984_v38, 0.0  ;;  %v11660_v44 = vsel %vm5985_vm10, %v5983_v33, %v5987_v39  ;;  %6426 = vmatprep.subr.mxu1 %v6113_v50  ;;  %v6282_v33 = vld [vmem:[#allocation20 + $0x3b8] sm:$0xff]  ;;  %v6276_v39 = vld [vmem:[#allocation20 + $0x388] sm:$0xff]  ;;  %v6265_v50 = vld [vmem:[#allocation20 + $0x330] sm:$0xff] }
0x18bc   :  { %6427 = vmatpush2.msra.mxu1 %v6112_v51  ;;  %v6264_v51 = vld [vmem:[#allocation20 + $0x328] sm:$0xff] }
0x18bd   :  { %v11656_v54 = vsel %vm5986_vm1, %v5984_v38, %v5988_v42  ;;  %v6278_v38 = vld [vmem:[#allocation20 + $0x398] sm:$0xff] }
0x18be   :  { %6029 = vmatprep.subr.mxu0 %v11656_v54  ;;  %v6274_v42 = vld [vmem:[#allocation20 + $0x378] sm:$0xff] }
0x18bf   :  { %6030 = vmatpush1.msra.mxu0 %v11660_v44 }
0x18c0   :  { %8748 = vmatmul.mubr.msk.f32.vlgmr.msra.gmra.mxu0 %vm2775_vm9, %v5991_v58  ;;  %6179 = vmatprep.subr.mxu0 %v11656_v54  ;;  %v6271_v58 = vld [vmem:[#allocation20 + $0x360] sm:$0xff] }
0x18c1   :  { %6180 = vmatpush1.msra.mxu0 %v11660_v44  ;;  %6069 = vmatprep.mubr.f32.mxu0 %v10362_v29 }
0x18c2   :  { %6291 = vmatprep.subr.mxu0 %v6258_v45  ;;  %v6270_v45 = vld [vmem:[#allocation20 + $0x358] sm:$0xff] }
0x18c4   :  { %8749 = vmatmul.mubr.msk.f32.gmra.mxu0 %vm2775_vm9, %v5992_v48  ;;  %v6267_v48 = vld [vmem:[#allocation20 + $0x340] sm:$0xff] }
0x18c5   :  { %6213 = vmatprep.mubr.f32.mxu0 %v10362_v29 }
0x18c8   :  { %8752 = vmatmul.mubr.msk.f32.vlgmr.msra.gmra.mxu0 %vm2775_vm9, %v8750_v52  ;;  %v6263_v52 = vld [vmem:[#allocation20 + $0x320] sm:$0xff] }
0x18c9   :  { %6292 = vmatpush1.msra.mxu0 %v6257_v53  ;;  %6219 = vmatprep.mubr.f32.mxu0 %v10362_v29  ;;  %v6111_v53 = vld [vmem:[#allocation20 + $0x118] sm:$0xff] }
0x18ca   :  { %6293 = vmatprep.subr.mxu0 %v6256_v55  ;;  %v6110_v55 = vld [vmem:[#allocation20 + $0x110] sm:$0xff]  ;;  %6428 = vmatprep.subr.mxu1 %v6111_v53  ;;  %v6532_v53 = vld [vmem:[#allocation20 + $0x400] sm:$0xff] }
0x18cb   :  { %6294 = vmatpush1.msra.mxu0 %v6255_v56  ;;  %v6262_v56 = vld [vmem:[#allocation20 + $0x318] sm:$0xff]  ;;  %6429 = vmatpush2.msra.mxu1 %v6110_v55  ;;  %v6784_v55 = vld [vmem:[#allocation20 + $0x6a0] sm:$0xff] }
0x18cc   :  { %6295 = vmatprep.subr.mxu0 %v6254_v57  ;;  %8753 = vmatmul.mubr.msk.f32.gmra.mxu0 %vm2775_vm9, %v8751_v59  ;;  %v6261_v57 = vld [vmem:[#allocation20 + $0x310] sm:$0xff]  ;;  %v6109_v59 = vld [vmem:[#allocation20 + $0x108] sm:$0xff] }
0x18cd   :  { %6296 = vmatpush1.msra.mxu0 %v6253_v60  ;;  %v6108_v60 = vld [vmem:[#allocation20 + $0x100] sm:$0xff]  ;;  %6430 = vmatprep.subr.mxu1 %v6109_v59  ;;  %v6594_v59 = vld [vmem:[#allocation20 + $0x5f0] sm:$0xff] }
0x18ce   :  { %6297 = vmatprep.subr.mxu0 %v6252_v61  ;;  %v6260_v61 = vld [vmem:[#allocation20 + $0x308] sm:$0xff]  ;;  %6431 = vmatpush2.msra.mxu1 %v6108_v60  ;;  %v6782_v60 = vld [vmem:[#allocation20 + $0x690] sm:$0xff] }
0x18cf   :  { %6298 = vmatpush1.msra.mxu0 %v6251_v62  ;;  %v6259_v62 = vld [vmem:[#allocation20 + $0x300] sm:$0xff] }
0x18d0   :  { %6299 = vmatprep.subr.mxu0 %v6250_v63  ;;  %v6563_v63 = vld [vmem:[#allocation20 + $0x4f8] sm:$0xff] }
0x18d1   :  { %6300 = vmatpush1.msra.mxu0 %v6249_v1  ;;  %6596 = vmatprep.subr.mxu1 %v6563_v63  ;;  %v6592_v63 = vld [vmem:[#allocation20 + $0x5e0] sm:$0xff] }
0x18d2   :  { %6301 = vmatprep.subr.mxu0 %v6248_v2 }
0x18d3   :  { %6302 = vmatpush1.msra.mxu0 %v6247_v3  ;;  %v6562_v3 = vld [vmem:[#allocation20 + $0x4f0] sm:$0xff] }
0x18d4   :  { %6303 = vmatprep.subr.mxu0 %v6246_v4  ;;  %v6561_v4 = vld [vmem:[#allocation20 + $0x4e8] sm:$0xff] }
0x18d5   :  { %6304 = vmatpush1.msra.mxu0 %v6245_v5 }
0x18d6   :  { %6305 = vmatprep.subr.mxu0 %v6244_v10  ;;  %v6560_v10 = vld [vmem:[#allocation20 + $0x4e0] sm:$0xff] }
0x18d7   :  { %6306 = vmatpush1.msra.mxu0 %v6243_v0  ;;  %v6559_v0 = vld [vmem:[#allocation20 + $0x4d8] sm:$0xff] }
0x18d8   :  { %6307 = vmatprep.subr.mxu0 %v6242_v6 }
0x18d9   :  { %6308 = vmatpush1.msra.mxu0 %v6241_v12  ;;  %v6558_v12 = vld [vmem:[#allocation20 + $0x4d0] sm:$0xff] }
0x18da   :  { %6309 = vmatprep.subr.mxu0 %v6240_v7  ;;  %v6557_v7 = vld [vmem:[#allocation20 + $0x4c8] sm:$0xff] }
0x18db   :  { %6310 = vmatpush1.msra.mxu0 %v6239_v8 }
0x18dc   :  { %6311 = vmatprep.subr.mxu0 %v6238_v15  ;;  %v6556_v15 = vld [vmem:[#allocation20 + $0x4c0] sm:$0xff] }
0x18dd   :  { %6312 = vmatpush1.msra.mxu0 %v6237_v27  ;;  %v6555_v27 = vld [vmem:[#allocation20 + $0x4b8] sm:$0xff] }
0x18de   :  { %6313 = vmatprep.subr.mxu0 %v6236_v30 }
0x18df   :  { %6314 = vmatpush1.msra.mxu0 %v6235_v31  ;;  %v6554_v31 = vld [vmem:[#allocation20 + $0x4b0] sm:$0xff] }
0x18e0   :  { %6315 = vmatprep.subr.mxu0 %v6234_v41  ;;  %v6553_v41 = vld [vmem:[#allocation20 + $0x4a8] sm:$0xff] }
0x18e1   :  { %6316 = vmatpush1.msra.mxu0 %v6233_v9 }
0x18e2   :  { %6317 = vmatprep.subr.mxu0 %v6232_v11  ;;  %v6552_v11 = vld [vmem:[#allocation20 + $0x4a0] sm:$0xff] }
0x18e3   :  { %6318 = vmatpush1.msra.mxu0 %v6231_v13  ;;  %v6551_v13 = vld [vmem:[#allocation20 + $0x498] sm:$0xff] }
0x18e4   :  { %6319 = vmatprep.subr.mxu0 %v6230_v25 }
0x18e5   :  { %6320 = vmatpush1.msra.mxu0 %v6229_v20  ;;  %v6550_v20 = vld [vmem:[#allocation20 + $0x490] sm:$0xff] }
0x18e6   :  { %6321 = vmatprep.subr.mxu0 %v6228_v16  ;;  %v6549_v16 = vld [vmem:[#allocation20 + $0x488] sm:$0xff] }
0x18e7   :  { %6322 = vmatpush1.msra.mxu0 %v6227_v17  ;;  %v6548_v17 = vld [vmem:[#allocation20 + $0x480] sm:$0xff] }
0x18e8   :  { %6323 = vmatprep.subr.mxu0 %v6290_v19  ;;  %v8754_v19 = vld [vmem:[%s12043_s1 + $0x20] sm:$0xff] }
0x18e9   :  { %6324 = vmatpush2.msra.mxu0 %v6289_v21  ;;  %v6547_v21 = vld [vmem:[#allocation20 + $0x478] sm:$0xff] }
0x18ea   :  { %6325 = vmatprep.subr.mxu0 %v6288_v22  ;;  %v6795_v22 = vld [vmem:[#allocation20 + $0x6f8] sm:$0xff] }
0x18eb   :  { %6326 = vmatpush2.msra.mxu0 %v6287_v23  ;;  %v6546_v23 = vld [vmem:[#allocation20 + $0x470] sm:$0xff] }
0x18ec   :  { %6327 = vmatprep.subr.mxu0 %v6286_v24  ;;  %v8755_v24 = vld [vmem:[%s12043_s1 + $0x28] sm:$0xff] }
0x18ed   :  { %6328 = vmatpush2.msra.mxu0 %v6285_v26  ;;  %v6544_v26 = vld [vmem:[#allocation20 + $0x460] sm:$0xff] }
0x18ee   :  { %6329 = vmatprep.subr.mxu0 %v6284_v28  ;;  %v6543_v28 = vld [vmem:[#allocation20 + $0x458] sm:$0xff] }
0x18ef   :  { %6330 = vmatpush2.msra.mxu0 %v6283_v32  ;;  %v6542_v32 = vld [vmem:[#allocation20 + $0x450] sm:$0xff] }
0x18f0   :  { %6331 = vmatprep.subr.mxu0 %v6282_v33  ;;  %v6541_v33 = vld [vmem:[#allocation20 + $0x448] sm:$0xff] }
0x18f1   :  { %6332 = vmatpush2.msra.mxu0 %v6281_v34  ;;  %v8758_v34 = vld [vmem:[%s12043_s1 + $0x30] sm:$0xff] }
0x18f2   :  { %6333 = vmatprep.subr.mxu0 %v6280_v36  ;;  %v6540_v36 = vld [vmem:[#allocation20 + $0x440] sm:$0xff] }
0x18f3   :  { %6334 = vmatpush2.msra.mxu0 %v6279_v37  ;;  %v6793_v37 = vld [vmem:[#allocation20 + $0x6e8] sm:$0xff] }
0x18f4   :  { %6335 = vmatprep.subr.mxu0 %v6278_v38  ;;  %v6539_v38 = vld [vmem:[#allocation20 + $0x438] sm:$0xff] }
0x18f5   :  { %6336 = vmatpush2.msra.mxu0 %v6277_v35  ;;  %v6792_v35 = vld [vmem:[#allocation20 + $0x6e0] sm:$0xff] }
0x18f6   :  { %6337 = vmatprep.subr.mxu0 %v6276_v39  ;;  %v6538_v39 = vld [vmem:[#allocation20 + $0x430] sm:$0xff] }
0x18f7   :  { %6338 = vmatpush2.msra.mxu0 %v6275_v40  ;;  %v8759_v40 = vld [vmem:[%s12043_s1 + $0x38] sm:$0xff] }
0x18f8   :  { %6339 = vmatprep.subr.mxu0 %v6274_v42  ;;  %v6791_v42 = vld [vmem:[#allocation20 + $0x6d8] sm:$0xff] }
0x18f9   :  { %6340 = vmatpush2.msra.mxu0 %v6273_v43  ;;  %v6790_v43 = vld [vmem:[#allocation20 + $0x6d0] sm:$0xff] }
0x18fa   :  { %6341 = vmatprep.subr.mxu0 %v6272_v14  ;;  %v6537_v14 = vld [vmem:[#allocation20 + $0x428] sm:$0xff] }
0x18fb   :  { %6342 = vmatpush2.msra.mxu0 %v6271_v58  ;;  %v6789_v58 = vld [vmem:[#allocation20 + $0x6c8] sm:$0xff] }
0x18fc   :  { %6343 = vmatprep.subr.mxu0 %v6270_v45  ;;  %v6536_v45 = vld [vmem:[#allocation20 + $0x420] sm:$0xff] }
0x18fd   :  { %6344 = vmatpush2.msra.mxu0 %v6269_v46  ;;  %v6788_v46 = vld [vmem:[#allocation20 + $0x6c0] sm:$0xff] }
0x18fe   :  { %6345 = vmatprep.subr.mxu0 %v6268_v47  ;;  %v6535_v47 = vld [vmem:[#allocation20 + $0x418] sm:$0xff] }
0x18ff   :  { %6346 = vmatpush2.msra.mxu0 %v6267_v48  ;;  %v6787_v48 = vld [vmem:[#allocation20 + $0x6b8] sm:$0xff] }
0x1900   :  { %6347 = vmatprep.subr.mxu0 %v6266_v49  ;;  %v6534_v49 = vld [vmem:[#allocation20 + $0x410] sm:$0xff] }
0x1901   :  { %6348 = vmatpush2.msra.mxu0 %v6265_v50  ;;  %v6786_v50 = vld [vmem:[#allocation20 + $0x6b0] sm:$0xff] }
0x1902   :  { %6349 = vmatprep.subr.mxu0 %v6264_v51  ;;  %v6533_v51 = vld [vmem:[#allocation20 + $0x408] sm:$0xff] }
0x1903   :  { %6350 = vmatpush2.msra.mxu0 %v6263_v52  ;;  %v6785_v52 = vld [vmem:[#allocation20 + $0x6a8] sm:$0xff] }
0x1904   :  { %6351 = vmatprep.subr.mxu0 %v6262_v56  ;;  %v6595_v56 = vld [vmem:[#allocation20 + $0x5f8] sm:$0xff] }
0x1905   :  { %6352 = vmatpush2.msra.mxu0 %v6261_v57  ;;  %v6783_v57 = vld [vmem:[#allocation20 + $0x698] sm:$0xff] }
0x1906   :  { %6353 = vmatprep.subr.mxu0 %v6260_v61  ;;  %v6593_v61 = vld [vmem:[#allocation20 + $0x5e8] sm:$0xff] }
0x1907   :  { %6354 = vmatpush2.msra.mxu0 %v6259_v62  ;;  %v6781_v62 = vld [vmem:[#allocation20 + $0x688] sm:$0xff] }
0x1908   :  { %6484 = vmatprep.subr.mxu0 %v11656_v54 }
0x1980   :  { %v6065_v1 = vpop.f32.mrf.mxu0 }
0x1982   :  { %v6067_v2 = vpop.f32.mrf.mxu0 }
0x1983   :  { %6432 = vmatprep.mubr.f32.mxu1 %v6067_v2  ;;  %v6591_v2 = vld [vmem:[#allocation20 + $0x5d8] sm:$0xff] }
0x1984   :  { %v6071_v5 = vpop.f32.mrf.mxu0  ;;  %6433 = vmatmul.mubr.f32.vlgmr.msra.gmra.mxu1 %v6065_v1  ;;  %v6780_v1 = vld [vmem:[#allocation20 + $0x680] sm:$0xff] }
0x1985   :  { %6597 = vmatpush1.msra.mxu1 %v6562_v3  ;;  %v6779_v3 = vld [vmem:[#allocation20 + $0x678] sm:$0xff] }
0x1986   :  { %v6073_v6 = vpop.f32.mrf.mxu0  ;;  %6598 = vmatprep.subr.mxu1 %v6561_v4  ;;  %v6590_v4 = vld [vmem:[#allocation20 + $0x5d0] sm:$0xff] }
0x1987   :  { %6438 = vmatprep.mubr.f32.mxu1 %v6073_v6  ;;  %6599 = vmatpush1.msra.mxu1 %v6560_v10  ;;  %v6589_v10 = vld [vmem:[#allocation20 + $0x5c8] sm:$0xff]  ;;  %v6588_v6 = vld [vmem:[#allocation20 + $0x5c0] sm:$0xff] }
0x1988   :  { %v6215_v8 = vpop.f32.mrf.mxu0  ;;  %6439 = vmatmul.mubr.f32.gmra.mxu1 %v6071_v5  ;;  %6600 = vmatprep.subr.mxu1 %v6559_v0  ;;  %v6778_v5 = vld [vmem:[#allocation20 + $0x670] sm:$0xff]  ;;  %v6777_v0 = vld [vmem:[#allocation20 + $0x668] sm:$0xff] }
0x1989   :  { %6601 = vmatpush1.msra.mxu1 %v6558_v12  ;;  %v6776_v12 = vld [vmem:[#allocation20 + $0x660] sm:$0xff] }
0x198a   :  { %v6217_v30 = vpop.f32.mrf.mxu0  ;;  %6602 = vmatprep.subr.mxu1 %v6557_v7  ;;  %v6587_v7 = vld [vmem:[#allocation20 + $0x5b8] sm:$0xff] }
0x198b   :  { %6355 = vmatprep.mubr.f32.mxu0 %v6217_v30  ;;  %6603 = vmatpush1.msra.mxu1 %v6556_v15  ;;  %v6586_v15 = vld [vmem:[#allocation20 + $0x5b0] sm:$0xff]  ;;  %v6585_v30 = vld [vmem:[#allocation20 + $0x5a8] sm:$0xff] }
0x198c   :  { %v6221_v9 = vpop.f32.mrf.mxu0  ;;  %6356 = vmatmul.mubr.f32.vlgmr.msra.gmra.mxu0 %v6215_v8  ;;  %6604 = vmatprep.subr.mxu1 %v6555_v27  ;;  %v6775_v8 = vld [vmem:[#allocation20 + $0x658] sm:$0xff]  ;;  %v6774_v27 = vld [vmem:[#allocation20 + $0x650] sm:$0xff] }
0x198d   :  { %6485 = vmatpush1.msra.mxu0 %v11660_v44  ;;  %6605 = vmatpush1.msra.mxu1 %v6554_v31  ;;  %v6773_v31 = vld [vmem:[#allocation20 + $0x648] sm:$0xff] }
0x198e   :  { %6716 = vmatprep.subr.mxu0 %v11656_v54  ;;  %v6223_v25 = vpop.f32.mrf.mxu0  ;;  %6606 = vmatprep.subr.mxu1 %v6553_v41  ;;  %v6545_v54 = vld [vmem:[#allocation20 + $0x468] sm:$0xff]  ;;  %v6584_v41 = vld [vmem:[#allocation20 + $0x5a0] sm:$0xff] }
0x198f   :  { %6361 = vmatprep.mubr.f32.mxu0 %v6223_v25  ;;  %6607 = vmatpush1.msra.mxu1 %v6552_v11  ;;  %v6771_v11 = vld [vmem:[#allocation20 + $0x638] sm:$0xff]  ;;  %v6769_v25 = vld [vmem:[#allocation20 + $0x628] sm:$0xff] }
0x1990   :  { %6362 = vmatmul.mubr.f32.gmra.mxu0 %v6221_v9  ;;  %6608 = vmatprep.subr.mxu1 %v6551_v13  ;;  %v6772_v9 = vld [vmem:[#allocation20 + $0x640] sm:$0xff]  ;;  %v6770_v13 = vld [vmem:[#allocation20 + $0x630] sm:$0xff] }
0x1991   :  { %6518 = vmatprep.mubr.f32.mxu0 %v10362_v29  ;;  %6609 = vmatpush1.msra.mxu1 %v6550_v20  ;;  %v6768_v20 = vld [vmem:[#allocation20 + $0x620] sm:$0xff] }
0x1992   :  { %6610 = vmatprep.subr.mxu1 %v6549_v16  ;;  %v6767_v16 = vld [vmem:[#allocation20 + $0x618] sm:$0xff] }
0x1993   :  { %6611 = vmatpush1.msra.mxu1 %v6548_v17  ;;  %v6766_v17 = vld [vmem:[#allocation20 + $0x610] sm:$0xff] }
0x1994   :  { %8756 = vmatmul.mubr.msk.f32.vlgmr.msra.gmra.mxu0 %vm2775_vm9, %v8754_v19  ;;  %6612 = vmatprep.subr.mxu1 %v6547_v21  ;;  %v6765_v19 = vld [vmem:[#allocation20 + $0x608] sm:$0xff]  ;;  %v6764_v21 = vld [vmem:[#allocation20 + $0x600] sm:$0xff] }
0x1995   :  { %6717 = vmatpush1.msra.mxu0 %v11660_v44  ;;  %6524 = vmatprep.mubr.f32.mxu0 %v10362_v29  ;;  %v6794_v44 = vld [vmem:[#allocation20 + $0x6f0] sm:$0xff] }
0x1996   :  { %6828 = vmatprep.subr.mxu0 %v6795_v22  ;;  %6613 = vmatpush1.msra.mxu1 %v6546_v23  ;;  %v6827_v22 = vld [vmem:[#allocation20 + $0x7f8] sm:$0xff]  ;;  %v6826_v23 = vld [vmem:[#allocation20 + $0x7f0] sm:$0xff] }
0x1997   :  { %6614 = vmatprep.subr.mxu1 %v6545_v54  ;;  %v6825_v54 = vld [vmem:[#allocation20 + $0x7e8] sm:$0xff] }
0x1998   :  { %8757 = vmatmul.mubr.msk.f32.gmra.mxu0 %vm2775_vm9, %v8755_v24  ;;  %6615 = vmatpush1.msra.mxu1 %v6544_v26  ;;  %v6824_v24 = vld [vmem:[#allocation20 + $0x7e0] sm:$0xff]  ;;  %v6583_v26 = vld [vmem:[#allocation20 + $0x598] sm:$0xff] }
0x1999   :  { %6750 = vmatprep.mubr.f32.mxu0 %v10362_v29  ;;  %6616 = vmatprep.subr.mxu1 %v6543_v28  ;;  %v6823_v28 = vld [vmem:[#allocation20 + $0x7d8] sm:$0xff] }
0x199a   :  { %6617 = vmatpush1.msra.mxu1 %v6542_v32  ;;  %v6582_v32 = vld [vmem:[#allocation20 + $0x590] sm:$0xff] }
0x199b   :  { %6618 = vmatprep.subr.mxu1 %v6541_v33  ;;  %v6822_v33 = vld [vmem:[#allocation20 + $0x7d0] sm:$0xff] }
0x199c   :  { %8760 = vmatmul.mubr.msk.f32.vlgmr.msra.gmra.mxu0 %vm2775_vm9, %v8758_v34  ;;  %6619 = vmatpush1.msra.mxu1 %v6540_v36  ;;  %v6581_v34 = vld [vmem:[#allocation20 + $0x588] sm:$0xff] }
0x199d   :  { %6756 = vmatprep.mubr.f32.mxu0 %v10362_v29  ;;  %6829 = vmatpush1.msra.mxu0 %v6794_v44  ;;  %v6821_v36 = vld [vmem:[#allocation20 + $0x7c8] sm:$0xff]  ;;  %v6580_v44 = vld [vmem:[#allocation20 + $0x580] sm:$0xff] }
0x199e   :  { %6830 = vmatprep.subr.mxu0 %v6793_v37  ;;  %6620 = vmatprep.subr.mxu1 %v6539_v38  ;;  %v6820_v37 = vld [vmem:[#allocation20 + $0x7c0] sm:$0xff]  ;;  %v6579_v38 = vld [vmem:[#allocation20 + $0x578] sm:$0xff] }
0x199f   :  { %6831 = vmatpush1.msra.mxu0 %v6792_v35  ;;  %6621 = vmatpush1.msra.mxu1 %v6538_v39  ;;  %v6819_v35 = vld [vmem:[#allocation20 + $0x7b8] sm:$0xff]  ;;  %v6578_v39 = vld [vmem:[#allocation20 + $0x570] sm:$0xff] }
0x19a0   :  { %8761 = vmatmul.mubr.msk.f32.gmra.mxu0 %vm2775_vm9, %v8759_v40  ;;  %6832 = vmatprep.subr.mxu0 %v6791_v42  ;;  %v6818_v40 = vld [vmem:[#allocation20 + $0x7b0] sm:$0xff]  ;;  %v6577_v42 = vld [vmem:[#allocation20 + $0x568] sm:$0xff] }
0x19a1   :  { %6833 = vmatpush1.msra.mxu0 %v6790_v43  ;;  %6622 = vmatprep.subr.mxu1 %v6537_v14  ;;  %v6817_v43 = vld [vmem:[#allocation20 + $0x7a8] sm:$0xff]  ;;  %v6576_v14 = vld [vmem:[#allocation20 + $0x560] sm:$0xff] }
0x19a2   :  { %6834 = vmatprep.subr.mxu0 %v6789_v58  ;;  %6623 = vmatpush1.msra.mxu1 %v6536_v45  ;;  %v6816_v58 = vld [vmem:[#allocation20 + $0x7a0] sm:$0xff]  ;;  %v6575_v45 = vld [vmem:[#allocation20 + $0x558] sm:$0xff] }
0x19a3   :  { %6835 = vmatpush1.msra.mxu0 %v6788_v46  ;;  %6624 = vmatprep.subr.mxu1 %v6535_v47  ;;  %v6815_v46 = vld [vmem:[#allocation20 + $0x798] sm:$0xff]  ;;  %v6574_v47 = vld [vmem:[#allocation20 + $0x550] sm:$0xff] }
0x19a4   :  { %6836 = vmatprep.subr.mxu0 %v6787_v48  ;;  %6625 = vmatpush1.msra.mxu1 %v6534_v49  ;;  %v6814_v48 = vld [vmem:[#allocation20 + $0x790] sm:$0xff]  ;;  %v6573_v49 = vld [vmem:[#allocation20 + $0x548] sm:$0xff] }
0x19a5   :  { %6837 = vmatpush1.msra.mxu0 %v6786_v50  ;;  %6626 = vmatprep.subr.mxu1 %v6533_v51  ;;  %v6813_v50 = vld [vmem:[#allocation20 + $0x788] sm:$0xff]  ;;  %v6572_v51 = vld [vmem:[#allocation20 + $0x540] sm:$0xff] }
0x19a6   :  { %6838 = vmatprep.subr.mxu0 %v6785_v52  ;;  %6627 = vmatpush1.msra.mxu1 %v6532_v53  ;;  %v6812_v52 = vld [vmem:[#allocation20 + $0x780] sm:$0xff]  ;;  %v6571_v53 = vld [vmem:[#allocation20 + $0x538] sm:$0xff] }
0x19a7   :  { %6839 = vmatpush1.msra.mxu0 %v6784_v55  ;;  %6628 = vmatprep.subr.mxu1 %v6595_v56  ;;  %v6811_v55 = vld [vmem:[#allocation20 + $0x778] sm:$0xff]  ;;  %v6570_v56 = vld [vmem:[#allocation20 + $0x530] sm:$0xff] }
0x19a8   :  { %6840 = vmatprep.subr.mxu0 %v6783_v57  ;;  %6629 = vmatpush2.msra.mxu1 %v6594_v59  ;;  %v6810_v57 = vld [vmem:[#allocation20 + $0x770] sm:$0xff]  ;;  %v6569_v59 = vld [vmem:[#allocation20 + $0x528] sm:$0xff] }
0x19a9   :  { %6841 = vmatpush1.msra.mxu0 %v6782_v60  ;;  %6630 = vmatprep.subr.mxu1 %v6593_v61  ;;  %v6809_v60 = vld [vmem:[#allocation20 + $0x768] sm:$0xff]  ;;  %v6568_v61 = vld [vmem:[#allocation20 + $0x520] sm:$0xff] }
0x19aa   :  { %6842 = vmatprep.subr.mxu0 %v6781_v62  ;;  %6631 = vmatpush2.msra.mxu1 %v6592_v63  ;;  %v6808_v62 = vld [vmem:[#allocation20 + $0x760] sm:$0xff]  ;;  %v6567_v63 = vld [vmem:[#allocation20 + $0x518] sm:$0xff] }
0x19ab   :  { %6843 = vmatpush1.msra.mxu0 %v6780_v1  ;;  %6632 = vmatprep.subr.mxu1 %v6591_v2  ;;  %v6807_v1 = vld [vmem:[#allocation20 + $0x758] sm:$0xff]  ;;  %v6566_v2 = vld [vmem:[#allocation20 + $0x510] sm:$0xff] }
0x19ac   :  { %6844 = vmatprep.subr.mxu0 %v6779_v3  ;;  %6633 = vmatpush2.msra.mxu1 %v6590_v4  ;;  %v6806_v3 = vld [vmem:[#allocation20 + $0x750] sm:$0xff]  ;;  %v6565_v4 = vld [vmem:[#allocation20 + $0x508] sm:$0xff] }
0x19ad   :  { %6845 = vmatpush1.msra.mxu0 %v6778_v5  ;;  %6634 = vmatprep.subr.mxu1 %v6589_v10  ;;  %v6805_v5 = vld [vmem:[#allocation20 + $0x748] sm:$0xff]  ;;  %v6564_v10 = vld [vmem:[#allocation20 + $0x500] sm:$0xff] }
0x19ae   :  { %6846 = vmatprep.subr.mxu0 %v6777_v0  ;;  %6635 = vmatpush2.msra.mxu1 %v6588_v6  ;;  %v6804_v0 = vld [vmem:[#allocation20 + $0x740] sm:$0xff]  ;;  %v6803_v6 = vld [vmem:[#allocation20 + $0x738] sm:$0xff] }
0x19af   :  { %6847 = vmatpush1.msra.mxu0 %v6776_v12  ;;  %6636 = vmatprep.subr.mxu1 %v6587_v7  ;;  %v6802_v12 = vld [vmem:[#allocation20 + $0x730] sm:$0xff]  ;;  %v6801_v7 = vld [vmem:[#allocation20 + $0x728] sm:$0xff] }
0x19b0   :  { %6848 = vmatprep.subr.mxu0 %v6775_v8  ;;  %6637 = vmatpush2.msra.mxu1 %v6586_v15  ;;  %v6800_v8 = vld [vmem:[#allocation20 + $0x720] sm:$0xff]  ;;  %v6799_v15 = vld [vmem:[#allocation20 + $0x718] sm:$0xff] }
0x19b1   :  { %6849 = vmatpush1.msra.mxu0 %v6774_v27  ;;  %6638 = vmatprep.subr.mxu1 %v6585_v30  ;;  %v6798_v27 = vld [vmem:[#allocation20 + $0x710] sm:$0xff]  ;;  %v6797_v30 = vld [vmem:[#allocation20 + $0x708] sm:$0xff] }
0x19b2   :  { %6850 = vmatprep.subr.mxu0 %v6773_v31  ;;  %6639 = vmatpush2.msra.mxu1 %v6584_v41  ;;  %v6796_v31 = vld [vmem:[#allocation20 + $0x700] sm:$0xff] }
0x19b3   :  { %6851 = vmatpush1.msra.mxu0 %v6772_v9  ;;  %6640 = vmatprep.subr.mxu1 %v6583_v26  ;;  %v6941_v26 = vld [vmem:[%s12044_s12 + $0xf0] sm:$0xff] }
0x19b4   :  { %6852 = vmatprep.subr.mxu0 %v6771_v11  ;;  %6641 = vmatpush2.msra.mxu1 %v6582_v32  ;;  %v6940_v32 = vld [vmem:[%s12044_s12 + $0xe8] sm:$0xff] }
0x19b5   :  { %6853 = vmatpush1.msra.mxu0 %v6770_v13  ;;  %6642 = vmatprep.subr.mxu1 %v6581_v34  ;;  %v6939_v34 = vld [vmem:[%s12044_s12 + $0xe0] sm:$0xff] }
0x19b6   :  { %6854 = vmatprep.subr.mxu0 %v6769_v25  ;;  %6643 = vmatpush2.msra.mxu1 %v6580_v44  ;;  %v6938_v44 = vld [vmem:[%s12044_s12 + $0xd8] sm:$0xff] }
0x19b7   :  { %6855 = vmatpush1.msra.mxu0 %v6768_v20  ;;  %6644 = vmatprep.subr.mxu1 %v6579_v38  ;;  %v6937_v38 = vld [vmem:[%s12044_s12 + $0xd0] sm:$0xff] }
0x19b8   :  { %6856 = vmatprep.subr.mxu0 %v6767_v16  ;;  %6645 = vmatpush2.msra.mxu1 %v6578_v39  ;;  %v6936_v39 = vld [vmem:[%s12044_s12 + $0xc8] sm:$0xff] }
0x19b9   :  { %6857 = vmatpush1.msra.mxu0 %v6766_v17  ;;  %6646 = vmatprep.subr.mxu1 %v6577_v42  ;;  %v6935_v42 = vld [vmem:[%s12044_s12 + $0xc0] sm:$0xff] }
0x19ba   :  { %6858 = vmatprep.subr.mxu0 %v6765_v19  ;;  %6647 = vmatpush2.msra.mxu1 %v6576_v14  ;;  %v6934_v14 = vld [vmem:[%s12044_s12 + $0xb8] sm:$0xff] }
0x19bb   :  { %6859 = vmatpush1.msra.mxu0 %v6764_v21  ;;  %6648 = vmatprep.subr.mxu1 %v6575_v45  ;;  %v6933_v45 = vld [vmem:[%s12044_s12 + $0xb0] sm:$0xff] }
0x19bc   :  { %6860 = vmatprep.subr.mxu0 %v6827_v22  ;;  %6649 = vmatpush2.msra.mxu1 %v6574_v47  ;;  %v6932_v47 = vld [vmem:[%s12044_s12 + $0xa8] sm:$0xff] }
0x19bd   :  { %6861 = vmatpush2.msra.mxu0 %v6826_v23  ;;  %6650 = vmatprep.subr.mxu1 %v6573_v49  ;;  %v6931_v49 = vld [vmem:[%s12044_s12 + $0xa0] sm:$0xff] }
0x19be   :  { %6862 = vmatprep.subr.mxu0 %v6825_v54  ;;  %6651 = vmatpush2.msra.mxu1 %v6572_v51  ;;  %v6942_v54 = vld [vmem:[%s12044_s12 + $0xf8] sm:$0xff] }
0x19bf   :  { %6863 = vmatpush2.msra.mxu0 %v6824_v24  ;;  %6652 = vmatprep.subr.mxu1 %v6571_v53  ;;  %v6926_v24 = vld [vmem:[%s12044_s12 + $0x78] sm:$0xff]  ;;  %v6929_v53 = vld [vmem:[%s12044_s12 + $0x90] sm:$0xff] }
0x19c0   :  { %6864 = vmatprep.subr.mxu0 %v6823_v28  ;;  %6653 = vmatpush2.msra.mxu1 %v6570_v56  ;;  %v6925_v28 = vld [vmem:[%s12044_s12 + $0x70] sm:$0xff]  ;;  %v6930_v51 = vld [vmem:[%s12044_s12 + $0x98] sm:$0xff]  ;;  %v6928_v56 = vld [vmem:[%s12044_s12 + $0x88] sm:$0xff] }
0x19c1   :  { %6865 = vmatpush2.msra.mxu0 %v6822_v33  ;;  %6654 = vmatprep.subr.mxu1 %v6569_v59  ;;  %v6924_v33 = vld [vmem:[%s12044_s12 + $0x68] sm:$0xff]  ;;  %v6927_v59 = vld [vmem:[%s12044_s12 + $0x80] sm:$0xff] }
0x19c2   :  { %6866 = vmatprep.subr.mxu0 %v6821_v36  ;;  %6655 = vmatpush2.msra.mxu1 %v6568_v61  ;;  %v6923_v36 = vld [vmem:[%s12044_s12 + $0x60] sm:$0xff] }
0x19c3   :  { %6867 = vmatpush2.msra.mxu0 %v6820_v37  ;;  %6656 = vmatprep.subr.mxu1 %v6567_v63  ;;  %v6922_v37 = vld [vmem:[%s12044_s12 + $0x58] sm:$0xff] }
0x19c4   :  { %6868 = vmatprep.subr.mxu0 %v6819_v35  ;;  %6657 = vmatpush2.msra.mxu1 %v6566_v2  ;;  %v6921_v35 = vld [vmem:[%s12044_s12 + $0x50] sm:$0xff] }
0x19c5   :  { %6869 = vmatpush2.msra.mxu0 %v6818_v40  ;;  %6658 = vmatprep.subr.mxu1 %v6565_v4  ;;  %v6920_v40 = vld [vmem:[%s12044_s12 + $0x48] sm:$0xff] }
0x19c6   :  { %6870 = vmatprep.subr.mxu0 %v6817_v43  ;;  %6659 = vmatpush2.msra.mxu1 %v6564_v10  ;;  %v6919_v43 = vld [vmem:[%s12044_s12 + $0x40] sm:$0xff] }
0x19c7   :  { %6871 = vmatpush2.msra.mxu0 %v6816_v58  ;;  %9338 = vmatprep.subr.mxu1 %v6942_v54  ;;  %v6918_v58 = vld [vmem:[%s12044_s12 + $0x38] sm:$0xff] }
0x19c8   :  { %6872 = vmatprep.subr.mxu0 %v6815_v46  ;;  %v6917_v46 = vld [vmem:[%s12044_s12 + $0x30] sm:$0xff] }
0x19c9   :  { %6873 = vmatpush2.msra.mxu0 %v6814_v48  ;;  %v6916_v48 = vld [vmem:[%s12044_s12 + $0x28] sm:$0xff] }
0x19ca   :  { %6874 = vmatprep.subr.mxu0 %v6813_v50  ;;  %v6915_v50 = vld [vmem:[%s12044_s12 + $0x20] sm:$0xff] }
0x19cb   :  { %6875 = vmatpush2.msra.mxu0 %v6812_v52  ;;  %v6914_v52 = vld [vmem:[%s12044_s12 + $0x18] sm:$0xff] }
0x19cc   :  { %6876 = vmatprep.subr.mxu0 %v6811_v55  ;;  %v6913_v55 = vld [vmem:[%s12044_s12 + $0x10] sm:$0xff] }
0x19cd   :  { %6877 = vmatpush2.msra.mxu0 %v6810_v57  ;;  %v6912_v57 = vld [vmem:[%s12044_s12 + $0x8] sm:$0xff] }
0x19ce   :  { %6878 = vmatprep.subr.mxu0 %v6809_v60  ;;  %v6911_v60 = vld [vmem:[%s12044_s12] sm:$0xff] }
0x19cf   :  { %6879 = vmatpush2.msra.mxu0 %v6808_v62 }
0x19d0   :  { %6880 = vmatprep.subr.mxu0 %v6807_v1 }
0x19d1   :  { %6881 = vmatpush2.msra.mxu0 %v6806_v3 }
0x19d2   :  { %6882 = vmatprep.subr.mxu0 %v6805_v5 }
0x19d3   :  { %6883 = vmatpush2.msra.mxu0 %v6804_v0 }
0x19d4   :  { %6884 = vmatprep.subr.mxu0 %v6803_v6 }
0x19d5   :  { %6885 = vmatpush2.msra.mxu0 %v6802_v12 }
0x19d6   :  { %6886 = vmatprep.subr.mxu0 %v6801_v7 }
0x19d7   :  { %6887 = vmatpush2.msra.mxu0 %v6800_v8 }
0x19d8   :  { %6888 = vmatprep.subr.mxu0 %v6799_v15 }
0x19d9   :  { %6889 = vmatpush2.msra.mxu0 %v6798_v27 }
0x19da   :  { %6890 = vmatprep.subr.mxu0 %v6797_v30 }
0x19db   :  { %6891 = vmatpush2.msra.mxu0 %v6796_v31 }
0x19dc   :  { %9373 = vmatprep.subr.mxu0 %v6942_v54 }
0x1a44   :  { %v6434_v61 = vpop.f32.mrf.mxu1 }
0x1a46   :  { %v6436_v62 = vpop.f32.mrf.mxu1 }
0x1a48   :  { %v6440_v63 = vpop.f32.mrf.mxu1 }
0x1a4a   :  { %v6442_v1 = vpop.f32.mrf.mxu1 }
0x1a4c   :  { %v11691_v41 = vpop.f32.mrf.mxu0 }
0x1a4d   :  { %v6435_v5 = vadd.f32 %v6434_v61, %v11691_v41  ;;  %v7125_v61 = vld [vmem:[#allocation22 + $0x8] sm:$0xff] }
0x1a4e   :  { %v11693_v9 = vpop.f32.mrf.mxu0 }
0x1a4f   :  { %v6437_v10 = vadd.f32 %v6436_v62, %v11693_v9  ;;  %v7124_v62 = vld [vmem:[#allocation22] sm:$0xff] }
0x1a50   :  { %v11695_v11 = vpop.f32.mrf.mxu0 }
0x1a51   :  { %v6441_v6 = vadd.f32 %v6440_v63, %v11695_v11 }
0x1a52   :  { %v11697_v13 = vpop.f32.mrf.mxu0 }
0x1a53   :  { %v6443_v27 = vadd.f32 %v6442_v1, %v11697_v13 }
0x1a54   :  { %v6520_v25 = vpop.f32.mrf.mxu0 }
0x1a56   :  { %v6522_v20 = vpop.f32.mrf.mxu0 }
0x1a57   :  { %6660 = vmatprep.mubr.f32.mxu1 %v6522_v20 }
0x1a58   :  { %v6526_v16 = vpop.f32.mrf.mxu0  ;;  %6661 = vmatmul.mubr.f32.vlgmr.msra.gmra.mxu1 %v6520_v25 }
0x1a59   :  { %9339 = vmatpush3.msra.mxu1 %v6926_v24 }
0x1a5a   :  { %v6528_v17 = vpop.f32.mrf.mxu0  ;;  %9340 = vmatprep.subr.mxu1 %v6941_v26 }
0x1a5b   :  { %6666 = vmatprep.mubr.f32.mxu1 %v6528_v17  ;;  %9341 = vmatpush3.msra.mxu1 %v6925_v28 }
0x1a5c   :  { %6667 = vmatmul.mubr.f32.gmra.mxu1 %v6526_v16  ;;  %v6752_v19 = vpop.f32.mrf.mxu0  ;;  %9342 = vmatprep.subr.mxu1 %v6940_v32 }
0x1a5d   :  { %9343 = vmatpush3.msra.mxu1 %v6924_v33 }
0x1a5e   :  { %v6754_v21 = vpop.f32.mrf.mxu0  ;;  %9344 = vmatprep.subr.mxu1 %v6939_v34 }
0x1a5f   :  { %6892 = vmatprep.mubr.f32.mxu0 %v6754_v21  ;;  %9345 = vmatpush3.msra.mxu1 %v6923_v36 }
0x1a60   :  { %v6758_v22 = vpop.f32.mrf.mxu0  ;;  %6893 = vmatmul.mubr.f32.vlgmr.msra.gmra.mxu0 %v6752_v19  ;;  %9346 = vmatprep.subr.mxu1 %v6938_v44 }
0x1a61   :  { %9374 = vmatpush3.msra.mxu0 %v6926_v24  ;;  %9347 = vmatpush3.msra.mxu1 %v6922_v37 }
0x1a62   :  { %v6760_v23 = vpop.f32.mrf.mxu0  ;;  %9375 = vmatprep.subr.mxu0 %v6941_v26  ;;  %9348 = vmatprep.subr.mxu1 %v6937_v38 }
0x1a63   :  { %6898 = vmatprep.mubr.f32.mxu0 %v6760_v23  ;;  %9376 = vmatpush3.msra.mxu0 %v6925_v28 }
0x1a64   :  { %6899 = vmatmul.mubr.f32.gmra.mxu0 %v6758_v22  ;;  %9377 = vmatprep.subr.mxu0 %v6940_v32 }
0x1a65   :  { %9378 = vmatpush3.msra.mxu0 %v6924_v33  ;;  %9349 = vmatpush3.msra.mxu1 %v6921_v35 }
0x1a66   :  { %9379 = vmatprep.subr.mxu0 %v6939_v34  ;;  %9350 = vmatprep.subr.mxu1 %v6936_v39 }
0x1a67   :  { %9380 = vmatpush3.msra.mxu0 %v6923_v36  ;;  %9351 = vmatpush3.msra.mxu1 %v6920_v40 }
0x1a68   :  { %9381 = vmatprep.subr.mxu0 %v6938_v44  ;;  %9352 = vmatprep.subr.mxu1 %v6935_v42 }
0x1a69   :  { %9382 = vmatpush3.msra.mxu0 %v6922_v37  ;;  %9353 = vmatpush3.msra.mxu1 %v6919_v43 }
0x1a6a   :  { %9383 = vmatprep.subr.mxu0 %v6937_v38  ;;  %9354 = vmatprep.subr.mxu1 %v6934_v14 }
0x1a6b   :  { %9384 = vmatpush3.msra.mxu0 %v6921_v35  ;;  %9355 = vmatpush3.msra.mxu1 %v6918_v58 }
0x1a6c   :  { %9385 = vmatprep.subr.mxu0 %v6936_v39  ;;  %9356 = vmatprep.subr.mxu1 %v6933_v45 }
0x1a6d   :  { %9386 = vmatpush3.msra.mxu0 %v6920_v40  ;;  %9357 = vmatpush3.msra.mxu1 %v6917_v46 }
0x1a6e   :  { %9387 = vmatprep.subr.mxu0 %v6935_v42  ;;  %9358 = vmatprep.subr.mxu1 %v6932_v47 }
0x1a6f   :  { %9388 = vmatpush3.msra.mxu0 %v6919_v43  ;;  %9359 = vmatpush3.msra.mxu1 %v6916_v48 }
0x1a70   :  { %9389 = vmatprep.subr.mxu0 %v6934_v14  ;;  %9360 = vmatprep.subr.mxu1 %v6931_v49 }
0x1a71   :  { %9390 = vmatpush3.msra.mxu0 %v6918_v58  ;;  %9361 = vmatpush3.msra.mxu1 %v6915_v50 }
0x1a72   :  { %9391 = vmatprep.subr.mxu0 %v6933_v45  ;;  %9362 = vmatprep.subr.mxu1 %v6930_v51 }
0x1a73   :  { %9392 = vmatpush3.msra.mxu0 %v6917_v46  ;;  %9363 = vmatpush3.msra.mxu1 %v6914_v52 }
0x1a74   :  { %9393 = vmatprep.subr.mxu0 %v6932_v47  ;;  %9364 = vmatprep.subr.mxu1 %v6929_v53 }
0x1a75   :  { %9394 = vmatpush3.msra.mxu0 %v6916_v48  ;;  %9365 = vmatpush3.msra.mxu1 %v6913_v55 }
0x1a76   :  { %9395 = vmatprep.subr.mxu0 %v6931_v49  ;;  %9366 = vmatprep.subr.mxu1 %v6928_v56 }
0x1a77   :  { %9396 = vmatpush3.msra.mxu0 %v6915_v50  ;;  %9367 = vmatpush3.msra.mxu1 %v6912_v57 }
0x1a78   :  { %9397 = vmatprep.subr.mxu0 %v6930_v51  ;;  %9368 = vmatprep.subr.mxu1 %v6927_v59 }
0x1a79   :  { %9398 = vmatpush3.msra.mxu0 %v6914_v52  ;;  %9369 = vmatpush3.msra.mxu1 %v6911_v60 }
0x1a7a   :  { %9399 = vmatprep.subr.mxu0 %v6929_v53  ;;  %v7131_v53 = vld [vmem:[#allocation22 + $0x38] sm:$0xff] }
0x1a7b   :  { %9400 = vmatpush3.msra.mxu0 %v6913_v55  ;;  %v7130_v55 = vld [vmem:[#allocation22 + $0x30] sm:$0xff]  ;;  %7159 = vmatprep.subr.mxu1 %v7131_v53 }
0x1a7c   :  { %9401 = vmatprep.subr.mxu0 %v6928_v56  ;;  %v7129_v56 = vld [vmem:[#allocation22 + $0x28] sm:$0xff] }
0x1a7d   :  { %9402 = vmatpush3.msra.mxu0 %v6912_v57  ;;  %v7128_v57 = vld [vmem:[#allocation22 + $0x20] sm:$0xff] }
0x1a7e   :  { %9403 = vmatprep.subr.mxu0 %v6927_v59  ;;  %v7127_v59 = vld [vmem:[#allocation22 + $0x18] sm:$0xff] }
0x1a7f   :  { %9404 = vmatpush3.msra.mxu0 %v6911_v60  ;;  %v7126_v60 = vld [vmem:[#allocation22 + $0x10] sm:$0xff] }
0x1b18   :  { %v6662_v2 = vpop.f32.mrf.mxu1 }
0x1b19   :  { %v6673_v12 = vadd.f32 %v6662_v2, %v6435_v5 }
0x1b1a   :  { %v6664_v3 = vpop.f32.mrf.mxu1 }
0x1b1b   :  { %v6674_v7 = vadd.f32 %v6664_v3, %v6437_v10 }
0x1b1c   :  { %v6668_v4 = vpop.f32.mrf.mxu1 }
0x1b1d   :  { %v6675_v30 = vadd.f32 %v6668_v4, %v6441_v6 }
0x1b1e   :  { %v6670_v8 = vpop.f32.mrf.mxu1 }
0x1b1f   :  { %v6676_v16 = vadd.f32 %v6670_v8, %v6443_v27  ;;  %v6909_v8 = vld [vmem:[#allocation23] sm:$0x1] }
0x1b20   :  { %v6894_v0 = vpop.f32.mrf.mxu0 }
0x1b21   :  { %v11735_v31 = vadd.f32 %v6894_v0, %v6673_v12 }
0x1b22   :  { %v6896_v15 = vpop.f32.mrf.mxu0 }
0x1b23   :  { %v11737_v25 = vadd.f32 %v6896_v15, %v6674_v7  ;;  %v6957_v9 = vmul.f32 %v11735_v31, %v11735_v31 }
0x1b24   :  { %v6900_v20 = vpop.f32.mrf.mxu0 }
0x1b25   :  { %v11739_v17 = vadd.f32 %v6900_v20, %v6675_v30  ;;  %v6958_v21 = vmul.f32 %v11737_v25, %v11737_v25  ;;  %v6910_v20 = vld [vmem:[#allocation25] sm:$0x1] }
0x1b26   :  { %v6902_v41 = vpop.f32.mrf.mxu0 }
0x1b27   :  { %v6943_v11 = vadd.f32 %v11739_v17, %v11735_v31  ;;  %v6959_v19 = vmul.f32 %v11739_v17, %v11739_v17  ;;  %v11747_v13 = vadd.f32 %v6902_v41, %v6676_v16 }
0x1b29   :  { %v6944_v22 = vrot.slane %v6943_v11, 4  ;;  %v6961_v23 = vadd.f32 %v6959_v19, %v6957_v9  ;;  %v6950_v54 = vadd.f32 %v11747_v13, %v11737_v25  ;;  %v6960_v24 = vmul.f32 %v11747_v13, %v11747_v13 }
0x1b2b   :  { %v6945_v26 = vadd.f32 %v6944_v22, %v6943_v11  ;;  %v6962_v28 = vrot.slane %v6961_v23, 4  ;;  %v6951_v32 = vrot.slane %v6950_v54, 4  ;;  %v6968_v33 = vadd.f32 %v6960_v24, %v6958_v21 }
0x1b2d   :  { %v6946_v34 = vrot.slane %v6945_v26, 2  ;;  %v6963_v36 = vadd.f32 %v6962_v28, %v6961_v23  ;;  %v6952_v44 = vadd.f32 %v6951_v32, %v6950_v54  ;;  %v6969_v37 = vrot.slane %v6968_v33, 4 }
0x1b2f   :  { %v6947_v38 = vadd.f32 %v6946_v34, %v6945_v26  ;;  %v6964_v35 = vrot.slane %v6963_v36, 2  ;;  %v6953_v39 = vrot.slane %v6952_v44, 2  ;;  %v6970_v40 = vadd.f32 %v6969_v37, %v6968_v33 }
0x1b31   :  { %v6965_v42 = vadd.f32 %v6964_v35, %v6963_v36  ;;  %v6954_v43 = vadd.f32 %v6953_v39, %v6952_v44  ;;  %v6971_v14 = vrot.slane %v6970_v40, 2  ;;  %v6948_v58 = vrot.slane %v6947_v38, 1  ;;  %v8807_v39 = vld [vmem:[%s12046_s2 + $0x1f8] sm:$0xff] }
0x1b33   :  { %v6955_v45 = vrot.slane %v6954_v43, 1  ;;  %v6972_v46 = vadd.f32 %v6971_v14, %v6970_v40  ;;  %v6966_v47 = vrot.slane %v6965_v42, 1  ;;  %v6949_v50 = vadd.f32 %v6948_v58, %v6947_v38  ;;  %v8806_v14 = vld [vmem:[%s12046_s2 + $0x1f0] sm:$0xff]  ;;  %v7452_v58 = vld [vmem:[%s12046_s2 + $0xf8] sm:$0xff] }
0x1b35   :  { %v6956_v48 = vadd.f32 %v6955_v45, %v6954_v43  ;;  %v6973_v49 = vrot.slane %v6972_v46, 1  ;;  %v6967_v52 = vadd.f32 %v6966_v47, %v6965_v42  ;;  %v7316_v42 = vld [vmem:[%s12045_s8] sm:$0xff]  ;;  %v8791_v43 = vld [vmem:[%s12046_s2 + $0x178] sm:$0xff]  ;;  %v8790_v45 = vld [vmem:[%s12046_s2 + $0x170] sm:$0xff] }
0x1b36   :  { %v8805_v47 = vld [vmem:[%s12046_s2 + $0x1e8] sm:$0xff] }
0x1b37   :  { %7039 = vmatprep.mubr.f32.mxu1 %v6956_v48  ;;  %v6974_v51 = vadd.f32 %v6973_v49, %v6972_v46  ;;  %v8769_v46 = vld [vmem:[%s12045_s8 + $0x28] sm:$0xff] }
0x1b38   :  { %7040 = vmatmul.mubr.f32.vlgmr.msra.gmra.mxu1 %v6949_v50  ;;  %v7317_v48 = vld [vmem:[%s12045_s8 + $0x8] sm:$0xff]  ;;  %v8804_v50 = vld [vmem:[%s12046_s2 + $0x1e0] sm:$0xff] }
0x1b39   :  { %7110 = vmatprep.mubr.f32.mxu0 %v6974_v51  ;;  %7199 = vmatprep.mubr.f32.mxu1 %v10362_v29  ;;  %v8789_v49 = vld [vmem:[%s12046_s2 + $0x168] sm:$0xff]  ;;  %v8788_v51 = vld [vmem:[%s12046_s2 + $0x160] sm:$0xff] }
0x1b3a   :  { %7111 = vmatmul.mubr.f32.vlgmr.msra.gmra.mxu0 %v6967_v52  ;;  %7160 = vmatpush1.msra.mxu1 %v7130_v55  ;;  %v8770_v52 = vld [vmem:[%s12045_s8 + $0x30] sm:$0xff] }
0x1b3b   :  { %7396 = vmatprep.mubr.f32.mxu0 %v10362_v29  ;;  %7161 = vmatprep.subr.mxu1 %v7129_v56 }
0x1b3c   :  { %7162 = vmatpush1.msra.mxu1 %v7128_v57 }
0x1b3d   :  { %7163 = vmatprep.subr.mxu1 %v7127_v59 }
0x1b3e   :  { %7164 = vmatpush1.msra.mxu1 %v7126_v60 }
0x1b3f   :  { %7165 = vmatprep.subr.mxu1 %v7125_v61 }
0x1b40   :  { %7166 = vmatpush1.msra.mxu1 %v7124_v62 }
0x1b41   :  { %7233 = vmatprep.subr.mxu1 %v7131_v53  ;;  %v8803_v53 = vld [vmem:[%s12046_s2 + $0x1d8] sm:$0xff] }
0x1bf8   :  { %v9370_v63 = vpop.f32.mrf.mxu1 }
0x1bfa   :  { %v9371_v1 = vpop.f32.mrf.mxu1  ;;  %v9405_v2 = vpop.f32.mrf.mxu0 }
0x1bfb   :  { %v9372_v3 = vadd.f32 %v9371_v1, %v9370_v63  ;;  %v8785_v63 = vld [vmem:[%s12046_s2 + $0x148] sm:$0xff]  ;;  %v7436_v1 = vld [vmem:[%s12046_s2 + $0x78] sm:$0xff] }
0x1bfc   :  { %v9406_v4 = vpop.f32.mrf.mxu0 }
0x1bfd   :  { %v7045_v5 = vmul.f32 0.0078125, %v9372_v3  ;;  %v9407_v10 = vadd.f32 %v9406_v4, %v9405_v2  ;;  %v8800_v2 = vld [vmem:[%s12046_s2 + $0x1c0] sm:$0xff]  ;;  %v7451_v3 = vld [vmem:[%s12046_s2 + $0xf0] sm:$0xff] }
0x1bfe   :  { %v8784_v4 = vld [vmem:[%s12046_s2 + $0x140] sm:$0xff] }
0x1bff   :  { %v7117_v0 = vmul.f32 %v7045_v5, %v7045_v5  ;;  %v7116_v6 = vmul.f32 0.0078125, %v9407_v10  ;;  %v8799_v10 = vld [vmem:[%s12046_s2 + $0x1b8] sm:$0xff] }
0x1c01   :  { %v7118_v12 = vsub.f32 %v7116_v6, %v7117_v0  ;;  %v7450_v0 = vld [vmem:[%s12046_s2 + $0xe8] sm:$0xff]  ;;  %v8783_v6 = vld [vmem:[%s12046_s2 + $0x138] sm:$0xff] }
0x1c03   :  { %v7119_v7 = vadd.f32 1e-05, %v7118_v12  ;;  %v7434_v12 = vld [vmem:[%s12046_s2 + $0x68] sm:$0xff] }
0x1c05   :  { %9924 = vrsqrt.f32 %v7119_v7  ;;  %v8798_v7 = vld [vmem:[%s12046_s2 + $0x1b0] sm:$0xff] }
0x1c12   :  { %v9925_v15 = vpop.eup %9924 }
0x1c13   :  { %v7121_v27 = vmul.f32 %v9925_v15, %v6909_v8  ;;  %v7449_v8 = vld [vmem:[%s12046_s2 + $0xe0] sm:$0xff]  ;;  %v8782_v15 = vld [vmem:[%s12046_s2 + $0x130] sm:$0xff] }
0x1c15   :  { %8762 = vmatmul.mubr.msk.f32.vlgmr.msra.gmra.mxu1 %vm375_vm0, %v7121_v27  ;;  %v7122_v30 = vmul.f32 %v7121_v27, %v7045_v5  ;;  %v7435_v5 = vld [vmem:[%s12046_s2 + $0x70] sm:$0xff]  ;;  %v7433_v27 = vld [vmem:[%s12046_s2 + $0x60] sm:$0xff] }
0x1c16   :  { %7234 = vmatpush1.msra.mxu1 %v7130_v55  ;;  %7273 = vmatprep.mubr.f32.mxu1 %v10362_v29  ;;  %v7318_v55 = vld [vmem:[%s12045_s8 + $0x10] sm:$0xff] }
0x1c17   :  { %7235 = vmatprep.subr.mxu1 %v7129_v56  ;;  %v7123_v16 = vsub.f32 %v6910_v20, %v7122_v30  ;;  %v8787_v56 = vld [vmem:[%s12046_s2 + $0x158] sm:$0xff]  ;;  %v8797_v30 = vld [vmem:[%s12046_s2 + $0x1a8] sm:$0xff] }
0x1c18   :  { %7236 = vmatpush1.msra.mxu1 %v7128_v57  ;;  %v8802_v57 = vld [vmem:[%s12046_s2 + $0x1d0] sm:$0xff]  ;;  %v7448_v20 = vld [vmem:[%s12046_s2 + $0xd8] sm:$0xff] }
0x1c19   :  { %7237 = vmatprep.subr.mxu1 %v7127_v59  ;;  %v8786_v59 = vld [vmem:[%s12046_s2 + $0x150] sm:$0xff] }
0x1c1a   :  { %7238 = vmatpush1.msra.mxu1 %v7126_v60  ;;  %v8771_v60 = vld [vmem:[%s12045_s8 + $0x38] sm:$0xff] }
0x1c1b   :  { %7239 = vmatprep.subr.mxu1 %v7125_v61  ;;  %v8801_v61 = vld [vmem:[%s12046_s2 + $0x1c8] sm:$0xff] }
0x1c1c   :  { %7240 = vmatpush1.msra.mxu1 %v7124_v62  ;;  %v7319_v62 = vld [vmem:[%s12045_s8 + $0x18] sm:$0xff] }
0x1c1d   :  { %8763 = vmatmul.mubr.msk.f32.vlgmr.msra.gmra.mxu1 %vm375_vm0, %v7123_v16  ;;  %v8781_v16 = vld [vmem:[%s12046_s2 + $0x128] sm:$0xff] }
0x1c1e   :  { %7534 = vmatprep.mubr.f32.mxu1 %v10362_v29 }
0x1cd5   :  { %v7201_v41 = vpop.f32.mrf.mxu1 }
0x1cd6   :  { %v7283_v11 = vrot.slane %v7201_v41, %v10794_v18  ;;  %v7432_v41 = vld [vmem:[%s12046_s2 + $0x58] sm:$0xff] }
0x1cd7   :  { %v7203_v9 = vpop.f32.mrf.mxu1 }
0x1cd8   :  { %v7287_v19 = vrot.slane %v7203_v9, %v10794_v18  ;;  %v7290_v22 = vmul.f32 %v7283_v11, %v11739_v17  ;;  %v7288_v54 = vmul.f32 %v7283_v11, %v11735_v31  ;;  %v8796_v9 = vld [vmem:[%s12046_s2 + $0x1a0] sm:$0xff]  ;;  %v7447_v11 = vld [vmem:[%s12046_s2 + $0xd0] sm:$0xff] }
0x1cda   :  { %v7289_v26 = vmul.f32 %v7287_v19, %v11737_v25  ;;  %v7291_v28 = vmul.f32 %v7287_v19, %v11747_v13  ;;  %v8768_v13 = vld [vmem:[%s12045_s8 + $0x20] sm:$0xff] }
0x1cdb   :  { %v8780_v19 = vld [vmem:[%s12046_s2 + $0x120] sm:$0xff] }
0x1cdd   :  { %v7275_v21 = vpop.f32.mrf.mxu1 }
0x1cde   :  { %v7295_v23 = vrot.slane %v7275_v21, %v10794_v18  ;;  %v7431_v21 = vld [vmem:[%s12046_s2 + $0x50] sm:$0xff] }
0x1cdf   :  { %v7277_v24 = vpop.f32.mrf.mxu1 }
0x1ce0   :  { %v7302_v32 = vadd.f32 %v7295_v23, %v7290_v22  ;;  %v7299_v33 = vrot.slane %v7277_v24, %v10794_v18  ;;  %v7300_v34 = vadd.f32 %v7295_v23, %v7288_v54  ;;  %v8795_v22 = vld [vmem:[%s12046_s2 + $0x198] sm:$0xff]  ;;  %v7446_v23 = vld [vmem:[%s12046_s2 + $0xc8] sm:$0xff] }
0x1ce1   :  { %v8779_v54 = vld [vmem:[%s12046_s2 + $0x118] sm:$0xff]  ;;  %v7430_v24 = vld [vmem:[%s12046_s2 + $0x48] sm:$0xff] }
0x1ce2   :  { %v7301_v36 = vadd.f32 %v7299_v33, %v7289_v26  ;;  %v7303_v44 = vadd.f32 %v7299_v33, %v7291_v28  ;;  %v7310_v37 = vmul.f32 0.2, %v7302_v32  ;;  %vm7306_vm9 = vcmp.ge.f32.partialorder %v7302_v32, 0.0  ;;  %v8794_v26 = vld [vmem:[%s12046_s2 + $0x190] sm:$0xff]  ;;  %v7445_v28 = vld [vmem:[%s12046_s2 + $0xc0] sm:$0xff] }
0x1ce3   :  { %v7308_v31 = vmul.f32 0.2, %v7300_v34  ;;  %vm7304_vm3 = vcmp.ge.f32.partialorder %v7300_v34, 0.0  ;;  %v7429_v33 = vld [vmem:[%s12046_s2 + $0x40] sm:$0xff] }
0x1ce4   :  { %v7309_v38 = vmul.f32 0.2, %v7301_v36  ;;  %v7311_v17 = vmul.f32 0.2, %v7303_v44  ;;  %vm7307_vm0 = vcmp.ge.f32.partialorder %v7303_v44, 0.0  ;;  %vm7305_vm2 = vcmp.ge.f32.partialorder %v7301_v36, 0.0 }
0x1ce5   :  { %v11773_v18 = vsel %vm7306_vm9, %v7302_v32, %v7310_v37  ;;  %v11783_v40 = vsel %vm7304_vm3, %v7300_v34, %v7308_v31  ;;  %v8778_v32 = vld [vmem:[%s12046_s2 + $0x110] sm:$0xff]  ;;  %v8793_v34 = vld [vmem:[%s12046_s2 + $0x188] sm:$0xff]  ;;  %v7428_v37 = vld [vmem:[%s12046_s2 + $0x38] sm:$0xff] }
0x1ce6   :  { %v11769_v35 = vsel %vm7307_vm0, %v7303_v44, %v7311_v17  ;;  %v11777_v25 = vsel %vm7305_vm2, %v7301_v36, %v7309_v38  ;;  %v7444_v36 = vld [vmem:[%s12046_s2 + $0xb8] sm:$0xff]  ;;  %v8777_v44 = vld [vmem:[%s12046_s2 + $0x108] sm:$0xff]  ;;  %v8792_v38 = vld [vmem:[%s12046_s2 + $0x180] sm:$0xff] }
0x1ce7   :  { %7360 = vmatprep.subr.mxu0 %v11769_v35  ;;  %7498 = vmatprep.subr.mxu1 %v11769_v35  ;;  %v7443_v17 = vld [vmem:[%s12046_s2 + $0xb0] sm:$0xff]  ;;  %v8776_v31 = vld [vmem:[%s12046_s2 + $0x100] sm:$0xff] }
0x1ce8   :  { %7361 = vmatpush1.msra.mxu0 %v11773_v18  ;;  %7499 = vmatpush1.msra.mxu1 %v11773_v18 }
0x1ce9   :  { %7362 = vmatprep.subr.mxu0 %v11777_v25  ;;  %7500 = vmatprep.subr.mxu1 %v11777_v25 }
0x1cea   :  { %7363 = vmatpush1.msra.mxu0 %v11783_v40  ;;  %7501 = vmatpush1.msra.mxu1 %v11783_v40 }
0x1ceb   :  { %8772 = vmatmul.mubr.msk.f32.vlgmr.msra.gmra.mxu1 %vm1525_vm6, %v8768_v13  ;;  %9408 = vmatprep.subr.mxu0 %v8807_v39  ;;  %v7427_v13 = vld [vmem:[%s12046_s2 + $0x30] sm:$0xff]  ;;  %v7442_v39 = vld [vmem:[%s12046_s2 + $0xa8] sm:$0xff] }
0x1cec   :  { %8764 = vmatmul.mubr.msk.f32.vlgmr.msra.gmra.mxu0 %vm1525_vm6, %v7316_v42  ;;  %7540 = vmatprep.mubr.f32.mxu1 %v10362_v29  ;;  %v7426_v42 = vld [vmem:[%s12046_s2 + $0x28] sm:$0xff] }
0x1ced   :  { %9409 = vmatpush3.msra.mxu0 %v8791_v43  ;;  %7402 = vmatprep.mubr.f32.mxu0 %v10362_v29  ;;  %v7441_v43 = vld [vmem:[%s12046_s2 + $0xa0] sm:$0xff] }
0x1cee   :  { %9410 = vmatprep.subr.mxu0 %v8806_v14  ;;  %9452 = vmatprep.subr.mxu1 %v7452_v58  ;;  %v7425_v14 = vld [vmem:[%s12046_s2 + $0x20] sm:$0xff]  ;;  %v7440_v58 = vld [vmem:[%s12046_s2 + $0x98] sm:$0xff] }
0x1cef   :  { %9411 = vmatpush3.msra.mxu0 %v8790_v45  ;;  %8773 = vmatmul.mubr.msk.f32.gmra.mxu1 %vm1525_vm6, %v8769_v46  ;;  %v7424_v45 = vld [vmem:[%s12046_s2 + $0x18] sm:$0xff]  ;;  %v7439_v46 = vld [vmem:[%s12046_s2 + $0x90] sm:$0xff] }
0x1cf0   :  { %9412 = vmatprep.subr.mxu0 %v8805_v47  ;;  %8765 = vmatmul.mubr.msk.f32.gmra.mxu0 %vm1525_vm6, %v7317_v48  ;;  %v7423_v47 = vld [vmem:[%s12046_s2 + $0x10] sm:$0xff]  ;;  %v7438_v48 = vld [vmem:[%s12046_s2 + $0x88] sm:$0xff] }
0x1cf1   :  { %9413 = vmatpush3.msra.mxu0 %v8789_v49  ;;  %7546 = vmatprep.mubr.f32.mxu1 %v10362_v29  ;;  %v7422_v49 = vld [vmem:[%s12046_s2 + $0x8] sm:$0xff] }
0x1cf2   :  { %9414 = vmatprep.subr.mxu0 %v8804_v50  ;;  %7408 = vmatprep.mubr.f32.mxu0 %v10362_v29  ;;  %v7437_v50 = vld [vmem:[%s12046_s2 + $0x80] sm:$0xff] }
0x1cf3   :  { %9415 = vmatpush3.msra.mxu0 %v8788_v51  ;;  %8774 = vmatmul.mubr.msk.f32.gmra.mxu1 %vm1525_vm6, %v8770_v52  ;;  %v7421_v51 = vld [vmem:[%s12046_s2] sm:$0xff]  ;;  %v8847_v52 = vld [vmem:[%s12046_s2 + $0x2f8] sm:$0xff] }
0x1cf4   :  { %9416 = vmatprep.subr.mxu0 %v8803_v53  ;;  %8766 = vmatmul.mubr.msk.f32.gmra.mxu0 %vm1525_vm6, %v7318_v55 }
0x1cf5   :  { %9417 = vmatpush3.msra.mxu0 %v8787_v56  ;;  %7552 = vmatprep.mubr.f32.mxu1 %v10362_v29 }
0x1cf6   :  { %9418 = vmatprep.subr.mxu0 %v8802_v57  ;;  %7414 = vmatprep.mubr.f32.mxu0 %v10362_v29 }
0x1cf7   :  { %9419 = vmatpush3.msra.mxu0 %v8786_v59  ;;  %8775 = vmatmul.mubr.msk.f32.gmra.mxu1 %vm1525_vm6, %v8771_v60  ;;  %v8831_v59 = vld [vmem:[%s12046_s2 + $0x278] sm:$0xff] }
0x1cf8   :  { %9420 = vmatprep.subr.mxu0 %v8801_v61  ;;  %8767 = vmatmul.mubr.msk.f32.gmra.mxu0 %vm1525_vm6, %v7319_v62 }
0x1cf9   :  { %9421 = vmatpush3.msra.mxu0 %v8785_v63  ;;  %9453 = vmatpush3.msra.mxu1 %v7436_v1  ;;  %v8846_v63 = vld [vmem:[%s12046_s2 + $0x2f0] sm:$0xff] }
0x1cfa   :  { %9422 = vmatprep.subr.mxu0 %v8800_v2  ;;  %9454 = vmatprep.subr.mxu1 %v7451_v3  ;;  %v8830_v3 = vld [vmem:[%s12046_s2 + $0x270] sm:$0xff] }
0x1cfb   :  { %9423 = vmatpush3.msra.mxu0 %v8784_v4  ;;  %9455 = vmatpush3.msra.mxu1 %v7435_v5 }
0x1cfc   :  { %9424 = vmatprep.subr.mxu0 %v8799_v10  ;;  %9456 = vmatprep.subr.mxu1 %v7450_v0  ;;  %v8845_v10 = vld [vmem:[%s12046_s2 + $0x2e8] sm:$0xff] }
0x1cfd   :  { %9425 = vmatpush3.msra.mxu0 %v8783_v6  ;;  %9457 = vmatpush3.msra.mxu1 %v7434_v12 }
0x1cfe   :  { %9426 = vmatprep.subr.mxu0 %v8798_v7  ;;  %9458 = vmatprep.subr.mxu1 %v7449_v8  ;;  %v8844_v8 = vld [vmem:[%s12046_s2 + $0x2e0] sm:$0xff] }
0x1cff   :  { %9427 = vmatpush3.msra.mxu0 %v8782_v15  ;;  %9459 = vmatpush3.msra.mxu1 %v7433_v27  ;;  %v8828_v27 = vld [vmem:[%s12046_s2 + $0x260] sm:$0xff] }
0x1d00   :  { %9428 = vmatprep.subr.mxu0 %v8797_v30  ;;  %9460 = vmatprep.subr.mxu1 %v7448_v20  ;;  %v8808_v30 = vld [vmem:[%s12045_s8 + $0x40] sm:$0xff]  ;;  %v8843_v20 = vld [vmem:[%s12046_s2 + $0x2d8] sm:$0xff] }
0x1d01   :  { %9429 = vmatpush3.msra.mxu0 %v8781_v16  ;;  %9461 = vmatpush3.msra.mxu1 %v7432_v41  ;;  %v8827_v16 = vld [vmem:[%s12046_s2 + $0x258] sm:$0xff]  ;;  %v8842_v41 = vld [vmem:[%s12046_s2 + $0x2d0] sm:$0xff] }
0x1d02   :  { %9430 = vmatprep.subr.mxu0 %v8796_v9  ;;  %9462 = vmatprep.subr.mxu1 %v7447_v11  ;;  %v8809_v9 = vld [vmem:[%s12045_s8 + $0x48] sm:$0xff]  ;;  %v8826_v11 = vld [vmem:[%s12046_s2 + $0x250] sm:$0xff] }
0x1d03   :  { %9431 = vmatpush3.msra.mxu0 %v8780_v19  ;;  %9463 = vmatpush3.msra.mxu1 %v7431_v21  ;;  %v8811_v19 = vld [vmem:[%s12045_s8 + $0x58] sm:$0xff]  ;;  %v8850_v21 = vld [vmem:[%s12045_s8 + $0x70] sm:$0xff] }
0x1d04   :  { %9432 = vmatprep.subr.mxu0 %v8795_v22  ;;  %9464 = vmatprep.subr.mxu1 %v7446_v23  ;;  %v8851_v22 = vld [vmem:[%s12045_s8 + $0x78] sm:$0xff]  ;;  %v8841_v23 = vld [vmem:[%s12046_s2 + $0x2c8] sm:$0xff] }
0x1d05   :  { %9433 = vmatpush3.msra.mxu0 %v8779_v54  ;;  %9465 = vmatpush3.msra.mxu1 %v7430_v24  ;;  %v8825_v54 = vld [vmem:[%s12046_s2 + $0x248] sm:$0xff]  ;;  %v8840_v24 = vld [vmem:[%s12046_s2 + $0x2c0] sm:$0xff] }
0x1d06   :  { %9434 = vmatprep.subr.mxu0 %v8794_v26  ;;  %9466 = vmatprep.subr.mxu1 %v7445_v28  ;;  %v8824_v26 = vld [vmem:[%s12046_s2 + $0x240] sm:$0xff]  ;;  %v8839_v28 = vld [vmem:[%s12046_s2 + $0x2b8] sm:$0xff] }
0x1d07   :  { %9435 = vmatpush3.msra.mxu0 %v8778_v32  ;;  %9467 = vmatpush3.msra.mxu1 %v7429_v33  ;;  %v8887_v32 = vld [vmem:[%s12046_s2 + $0x3f8] sm:$0xff] }
0x1d08   :  { %9436 = vmatprep.subr.mxu0 %v8793_v34  ;;  %9468 = vmatprep.subr.mxu1 %v7444_v36  ;;  %v8871_v33 = vld [vmem:[%s12046_s2 + $0x378] sm:$0xff]  ;;  %v8838_v34 = vld [vmem:[%s12046_s2 + $0x2b0] sm:$0xff] }
0x1d09   :  { %9437 = vmatpush3.msra.mxu0 %v8777_v44  ;;  %9469 = vmatpush3.msra.mxu1 %v7428_v37  ;;  %v8886_v36 = vld [vmem:[%s12046_s2 + $0x3f0] sm:$0xff] }
0x1d0a   :  { %9438 = vmatprep.subr.mxu0 %v8792_v38  ;;  %9470 = vmatprep.subr.mxu1 %v7443_v17  ;;  %v8822_v44 = vld [vmem:[%s12046_s2 + $0x230] sm:$0xff]  ;;  %v8837_v38 = vld [vmem:[%s12046_s2 + $0x2a8] sm:$0xff] }
0x1d0b   :  { %9439 = vmatpush3.msra.mxu0 %v8776_v31  ;;  %9471 = vmatpush3.msra.mxu1 %v7427_v13  ;;  %v8870_v37 = vld [vmem:[%s12046_s2 + $0x370] sm:$0xff]  ;;  %v8885_v17 = vld [vmem:[%s12046_s2 + $0x3e8] sm:$0xff] }
0x1d0c   :  { %7807 = vmatprep.subr.mxu0 %v11769_v35  ;;  %9472 = vmatprep.subr.mxu1 %v7442_v39  ;;  %v8821_v31 = vld [vmem:[%s12046_s2 + $0x228] sm:$0xff]  ;;  %v8836_v39 = vld [vmem:[%s12046_s2 + $0x2a0] sm:$0xff] }
0x1d0d   :  { %9473 = vmatpush3.msra.mxu1 %v7426_v42  ;;  %v8869_v13 = vld [vmem:[%s12046_s2 + $0x368] sm:$0xff]  ;;  %v8884_v42 = vld [vmem:[%s12046_s2 + $0x3e0] sm:$0xff] }
0x1d0e   :  { %9474 = vmatprep.subr.mxu1 %v7441_v43  ;;  %v8820_v43 = vld [vmem:[%s12046_s2 + $0x220] sm:$0xff] }
0x1d0f   :  { %9475 = vmatpush3.msra.mxu1 %v7425_v14  ;;  %v8868_v14 = vld [vmem:[%s12046_s2 + $0x360] sm:$0xff] }
0x1d10   :  { %9476 = vmatprep.subr.mxu1 %v7440_v58  ;;  %v8835_v58 = vld [vmem:[%s12046_s2 + $0x298] sm:$0xff] }
0x1d11   :  { %9477 = vmatpush3.msra.mxu1 %v7424_v45  ;;  %v8883_v45 = vld [vmem:[%s12046_s2 + $0x3d8] sm:$0xff] }
0x1d12   :  { %9478 = vmatprep.subr.mxu1 %v7439_v46  ;;  %v8819_v46 = vld [vmem:[%s12046_s2 + $0x218] sm:$0xff] }
0x1d13   :  { %9479 = vmatpush3.msra.mxu1 %v7423_v47  ;;  %v8867_v47 = vld [vmem:[%s12046_s2 + $0x358] sm:$0xff] }
0x1d14   :  { %9480 = vmatprep.subr.mxu1 %v7438_v48  ;;  %v8834_v48 = vld [vmem:[%s12046_s2 + $0x290] sm:$0xff] }
0x1d15   :  { %9481 = vmatpush3.msra.mxu1 %v7422_v49  ;;  %v8882_v49 = vld [vmem:[%s12046_s2 + $0x3d0] sm:$0xff] }
0x1d16   :  { %9482 = vmatprep.subr.mxu1 %v7437_v50  ;;  %v8818_v50 = vld [vmem:[%s12046_s2 + $0x210] sm:$0xff] }
0x1d17   :  { %9483 = vmatpush3.msra.mxu1 %v7421_v51  ;;  %v8866_v51 = vld [vmem:[%s12046_s2 + $0x350] sm:$0xff] }
0x1d18   :  { %9496 = vmatprep.subr.mxu1 %v8847_v52  ;;  %v8833_v52 = vld [vmem:[%s12046_s2 + $0x288] sm:$0xff] }
0x1dab   :  { %v7536_v53 = vpop.f32.mrf.mxu1 }
0x1dac   :  { %v7398_v55 = vpop.f32.mrf.mxu0 }
0x1dad   :  { %v7538_v56 = vpop.f32.mrf.mxu1 }
0x1dae   :  { %v7400_v57 = vpop.f32.mrf.mxu0  ;;  %7656 = vmatprep.mubr.f32.mxu0 %v7538_v56  ;;  %v8865_v56 = vld [vmem:[%s12046_s2 + $0x348] sm:$0xff] }
0x1daf   :  { %v7542_v60 = vpop.f32.mrf.mxu1  ;;  %7657 = vmatmul.mubr.f32.vlgmr.msra.gmra.mxu0 %v7536_v53  ;;  %7741 = vmatprep.mubr.f32.mxu1 %v7400_v57  ;;  %v8881_v53 = vld [vmem:[%s12046_s2 + $0x3c8] sm:$0xff]  ;;  %v8832_v57 = vld [vmem:[%s12046_s2 + $0x280] sm:$0xff] }
0x1db0   :  { %7808 = vmatpush1.msra.mxu0 %v11773_v18  ;;  %v7404_v61 = vpop.f32.mrf.mxu0  ;;  %7742 = vmatmul.mubr.f32.vlgmr.msra.gmra.mxu1 %v7398_v55  ;;  %v8817_v55 = vld [vmem:[%s12046_s2 + $0x208] sm:$0xff] }
0x1db1   :  { %7809 = vmatprep.subr.mxu0 %v11777_v25  ;;  %v7544_v62 = vpop.f32.mrf.mxu1  ;;  %9497 = vmatpush3.msra.mxu1 %v8831_v59  ;;  %v8880_v59 = vld [vmem:[%s12046_s2 + $0x3c0] sm:$0xff] }
0x1db2   :  { %7810 = vmatpush1.msra.mxu0 %v11783_v40  ;;  %v7406_v1 = vpop.f32.mrf.mxu0  ;;  %7661 = vmatprep.mubr.f32.mxu0 %v7544_v62  ;;  %v8879_v62 = vld [vmem:[%s12046_s2 + $0x3b8] sm:$0xff] }
0x1db3   :  { %8035 = vmatprep.subr.mxu0 %v11769_v35  ;;  %v7548_v2 = vpop.f32.mrf.mxu1  ;;  %7662 = vmatmul.mubr.f32.gmra.mxu0 %v7542_v60  ;;  %v8829_v35 = vld [vmem:[%s12046_s2 + $0x268] sm:$0xff]  ;;  %v8816_v60 = vld [vmem:[%s12046_s2 + $0x200] sm:$0xff] }
0x1db4   :  { %7746 = vmatprep.mubr.f32.mxu1 %v7406_v1  ;;  %v7410_v4 = vpop.f32.mrf.mxu0  ;;  %9498 = vmatprep.subr.mxu1 %v8846_v63  ;;  %v8863_v63 = vld [vmem:[%s12046_s2 + $0x338] sm:$0xff]  ;;  %v8878_v1 = vld [vmem:[%s12046_s2 + $0x3b0] sm:$0xff] }
0x1db5   :  { %7747 = vmatmul.mubr.f32.gmra.mxu1 %v7404_v61  ;;  %v7550_v5 = vpop.f32.mrf.mxu1  ;;  %v8864_v61 = vld [vmem:[%s12046_s2 + $0x340] sm:$0xff] }
0x1db6   :  { %v7412_v0 = vpop.f32.mrf.mxu0  ;;  %7666 = vmatprep.mubr.f32.mxu0 %v7550_v5  ;;  %9499 = vmatpush3.msra.mxu1 %v8830_v3  ;;  %v8877_v3 = vld [vmem:[%s12046_s2 + $0x3a8] sm:$0xff]  ;;  %v8876_v5 = vld [vmem:[%s12046_s2 + $0x3a0] sm:$0xff] }
0x1db7   :  { %v7554_v6 = vpop.f32.mrf.mxu1  ;;  %7667 = vmatmul.mubr.f32.gmra.mxu0 %v7548_v2  ;;  %7751 = vmatprep.mubr.f32.mxu1 %v7412_v0  ;;  %v8862_v2 = vld [vmem:[%s12046_s2 + $0x330] sm:$0xff]  ;;  %v8875_v0 = vld [vmem:[%s12046_s2 + $0x398] sm:$0xff] }
0x1db8   :  { %v7416_v12 = vpop.f32.mrf.mxu0  ;;  %9500 = vmatprep.subr.mxu1 %v8845_v10  ;;  %v8860_v10 = vld [vmem:[%s12046_s2 + $0x320] sm:$0xff] }
0x1db9   :  { %7752 = vmatmul.mubr.f32.gmra.mxu1 %v7410_v4  ;;  %v7556_v7 = vpop.f32.mrf.mxu1  ;;  %v8861_v4 = vld [vmem:[%s12046_s2 + $0x328] sm:$0xff] }
0x1dba   :  { %v7418_v15 = vpop.f32.mrf.mxu0  ;;  %7671 = vmatprep.mubr.f32.mxu0 %v7556_v7  ;;  %9501 = vmatpush3.msra.mxu1 %v8829_v35  ;;  %v8874_v35 = vld [vmem:[%s12046_s2 + $0x390] sm:$0xff]  ;;  %v8873_v7 = vld [vmem:[%s12046_s2 + $0x388] sm:$0xff] }
0x1dbb   :  { %7672 = vmatmul.mubr.f32.gmra.mxu0 %v7554_v6  ;;  %7756 = vmatprep.mubr.f32.mxu1 %v7418_v15  ;;  %v8859_v6 = vld [vmem:[%s12046_s2 + $0x318] sm:$0xff]  ;;  %v8872_v15 = vld [vmem:[%s12046_s2 + $0x380] sm:$0xff] }
0x1dbc   :  { %7843 = vmatprep.mubr.f32.mxu0 %v10362_v29  ;;  %9502 = vmatprep.subr.mxu1 %v8844_v8  ;;  %v8857_v8 = vld [vmem:[%s12046_s2 + $0x308] sm:$0xff] }
0x1dbd   :  { %7757 = vmatmul.mubr.f32.gmra.mxu1 %v7416_v12  ;;  %v8858_v12 = vld [vmem:[%s12046_s2 + $0x310] sm:$0xff] }
0x1dbe   :  { %9503 = vmatpush3.msra.mxu1 %v8828_v27  ;;  %v8856_v27 = vld [vmem:[%s12046_s2 + $0x300] sm:$0xff] }
0x1dbf   :  { %8812 = vmatmul.mubr.msk.f32.vlgmr.msra.gmra.mxu0 %vm1525_vm6, %v8808_v30  ;;  %9504 = vmatprep.subr.mxu1 %v8843_v20 }
0x1dc0   :  { %8036 = vmatpush1.msra.mxu0 %v11773_v18  ;;  %7849 = vmatprep.mubr.f32.mxu0 %v10362_v29  ;;  %v8810_v18 = vld [vmem:[%s12045_s8 + $0x50] sm:$0xff] }
0x1dc1   :  { %8037 = vmatprep.subr.mxu0 %v11777_v25  ;;  %9505 = vmatpush3.msra.mxu1 %v8827_v16  ;;  %v8848_v25 = vld [vmem:[%s12045_s8 + $0x60] sm:$0xff] }
0x1dc2   :  { %8038 = vmatpush1.msra.mxu0 %v11783_v40  ;;  %9506 = vmatprep.subr.mxu1 %v8842_v41  ;;  %v8849_v40 = vld [vmem:[%s12045_s8 + $0x68] sm:$0xff] }
0x1dc3   :  { %8813 = vmatmul.mubr.msk.f32.gmra.mxu0 %vm1525_vm6, %v8809_v9  ;;  %9507 = vmatpush3.msra.mxu1 %v8826_v11 }
0x1dc4   :  { %7855 = vmatprep.mubr.f32.mxu0 %v10362_v29  ;;  %9508 = vmatprep.subr.mxu1 %v8841_v23 }
0x1dc5   :  { %9509 = vmatpush3.msra.mxu1 %v8825_v54  ;;  %9540 = vmatprep.subr.mxu0 %v8887_v32 }
0x1dc6   :  { %9510 = vmatprep.subr.mxu1 %v8840_v24 }
0x1dc7   :  { %8814 = vmatmul.mubr.msk.f32.gmra.mxu0 %vm1525_vm6, %v8810_v18  ;;  %9511 = vmatpush3.msra.mxu1 %v8824_v26 }
0x1dc8   :  { %7861 = vmatprep.mubr.f32.mxu0 %v10362_v29  ;;  %9512 = vmatprep.subr.mxu1 %v8839_v28 }
0x1dcb   :  { %8815 = vmatmul.mubr.msk.f32.gmra.mxu0 %vm1525_vm6, %v8811_v19 }
0x1dcc   :  { %8071 = vmatprep.mubr.f32.mxu0 %v10362_v29 }
0x1dcf   :  { %8852 = vmatmul.mubr.msk.f32.vlgmr.msra.gmra.mxu0 %vm1525_vm6, %v8848_v25 }
0x1dd0   :  { %8077 = vmatprep.mubr.f32.mxu0 %v10362_v29  ;;  %9541 = vmatpush3.msra.mxu0 %v8871_v33 }
0x1dd1   :  { %9542 = vmatprep.subr.mxu0 %v8886_v36 }
0x1dd2   :  { %9543 = vmatpush3.msra.mxu0 %v8870_v37 }
0x1dd3   :  { %8853 = vmatmul.mubr.msk.f32.gmra.mxu0 %vm1525_vm6, %v8849_v40  ;;  %9544 = vmatprep.subr.mxu0 %v8885_v17 }
0x1dd4   :  { %8083 = vmatprep.mubr.f32.mxu0 %v10362_v29  ;;  %9545 = vmatpush3.msra.mxu0 %v8869_v13 }
0x1dd5   :  { %9546 = vmatprep.subr.mxu0 %v8884_v42 }
0x1dd6   :  { %9547 = vmatpush3.msra.mxu0 %v8868_v14 }
0x1dd7   :  { %8854 = vmatmul.mubr.msk.f32.gmra.mxu0 %vm1525_vm6, %v8850_v21  ;;  %9548 = vmatprep.subr.mxu0 %v8883_v45 }
0x1dd8   :  { %8089 = vmatprep.mubr.f32.mxu0 %v10362_v29  ;;  %v8823_v29 = vld [vmem:[%s12046_s2 + $0x238] sm:$0xff]  ;;  %9549 = vmatpush3.msra.mxu0 %v8867_v47 }
0x1dd9   :  { %9513 = vmatpush3.msra.mxu1 %v8823_v29  ;;  %9550 = vmatprep.subr.mxu0 %v8882_v49 }
0x1dda   :  { %9514 = vmatprep.subr.mxu1 %v8838_v34  ;;  %9551 = vmatpush3.msra.mxu0 %v8866_v51 }
0x1ddb   :  { %8855 = vmatmul.mubr.msk.f32.gmra.mxu0 %vm1525_vm6, %v8851_v22  ;;  %9515 = vmatpush3.msra.mxu1 %v8822_v44 }
0x1ddc   :  { %9516 = vmatprep.subr.mxu1 %v8837_v38  ;;  %9552 = vmatprep.subr.mxu0 %v8881_v53 }
0x1ddd   :  { %9517 = vmatpush3.msra.mxu1 %v8821_v31  ;;  %9553 = vmatpush3.msra.mxu0 %v8865_v56 }
0x1dde   :  { %9518 = vmatprep.subr.mxu1 %v8836_v39  ;;  %9554 = vmatprep.subr.mxu0 %v8880_v59 }
0x1ddf   :  { %9519 = vmatpush3.msra.mxu1 %v8820_v43  ;;  %9555 = vmatpush3.msra.mxu0 %v8864_v61 }
0x1de0   :  { %9520 = vmatprep.subr.mxu1 %v8835_v58  ;;  %9556 = vmatprep.subr.mxu0 %v8879_v62 }
0x1de1   :  { %9521 = vmatpush3.msra.mxu1 %v8819_v46  ;;  %9557 = vmatpush3.msra.mxu0 %v8863_v63 }
0x1de2   :  { %9522 = vmatprep.subr.mxu1 %v8834_v48  ;;  %9558 = vmatprep.subr.mxu0 %v8878_v1 }
0x1de3   :  { %9523 = vmatpush3.msra.mxu1 %v8818_v50  ;;  %9559 = vmatpush3.msra.mxu0 %v8862_v2 }
0x1de4   :  { %9524 = vmatprep.subr.mxu1 %v8833_v52  ;;  %9560 = vmatprep.subr.mxu0 %v8877_v3 }
0x1de5   :  { %9525 = vmatpush3.msra.mxu1 %v8817_v55  ;;  %9561 = vmatpush3.msra.mxu0 %v8861_v4 }
0x1de6   :  { %9526 = vmatprep.subr.mxu1 %v8832_v57  ;;  %9562 = vmatprep.subr.mxu0 %v8876_v5 }
0x1de7   :  { %9527 = vmatpush3.msra.mxu1 %v8816_v60  ;;  %9563 = vmatpush3.msra.mxu0 %v8860_v10 }
0x1de8   :  { %9564 = vmatprep.subr.mxu0 %v8875_v0 }
0x1de9   :  { %9565 = vmatpush3.msra.mxu0 %v8859_v6 }
0x1dea   :  { %9566 = vmatprep.subr.mxu0 %v8874_v35 }
0x1deb   :  { %9567 = vmatpush3.msra.mxu0 %v8858_v12 }
0x1dec   :  { %9568 = vmatprep.subr.mxu0 %v8873_v7 }
0x1ded   :  { %9569 = vmatpush3.msra.mxu0 %v8857_v8 }
0x1dee   :  { %9570 = vmatprep.subr.mxu0 %v8872_v15 }
0x1def   :  { %9571 = vmatpush3.msra.mxu0 %v8856_v27 }
0x1e6f   :  { %v9440_v30 = vpop.f32.mrf.mxu0 }
0x1e71   :  { %v9441_v20 = vpop.f32.mrf.mxu0 }
0x1e72   :  { %v11967_v16 = vadd.f32 %v9441_v20, %v9440_v30 }
0x1e73   :  { %v9443_v41 = vpop.f32.mrf.mxu0 }
0x1e75   :  { %v9444_v9 = vpop.f32.mrf.mxu0 }
0x1e76   :  { %v11969_v11 = vadd.f32 %v9444_v9, %v9443_v41 }
0x1e77   :  { %v9446_v18 = vpop.f32.mrf.mxu0 }
0x1e79   :  { %v9447_v19 = vpop.f32.mrf.mxu0 }
0x1e7a   :  { %v11971_v25 = vadd.f32 %v9447_v19, %v9446_v18 }
0x1e7b   :  { %v9449_v40 = vpop.f32.mrf.mxu0 }
0x1e7d   :  { %v9450_v21 = vpop.f32.mrf.mxu0 }
0x1e7e   :  { %v11973_v22 = vadd.f32 %v9450_v21, %v9449_v40 }
0x1e7f   :  { %v7845_v23 = vpop.f32.mrf.mxu0 }
0x1e81   :  { %v7847_v54 = vpop.f32.mrf.mxu0 }
0x1e82   :  { %7965 = vmatprep.mubr.f32.mxu1 %v7847_v54 }
0x1e83   :  { %v7851_v24 = vpop.f32.mrf.mxu0  ;;  %7966 = vmatmul.mubr.f32.vlgmr.msra.gmra.mxu1 %v7845_v23 }
0x1e85   :  { %v7853_v26 = vpop.f32.mrf.mxu0 }
0x1e86   :  { %7970 = vmatprep.mubr.f32.mxu1 %v7853_v26 }
0x1e87   :  { %v7857_v28 = vpop.f32.mrf.mxu0  ;;  %7971 = vmatmul.mubr.f32.gmra.mxu1 %v7851_v24 }
0x1e89   :  { %v7859_v32 = vpop.f32.mrf.mxu0 }
0x1e8a   :  { %7975 = vmatprep.mubr.f32.mxu1 %v7859_v32 }
0x1e8b   :  { %v7863_v29 = vpop.f32.mrf.mxu0  ;;  %7976 = vmatmul.mubr.f32.gmra.mxu1 %v7857_v28 }
0x1e8d   :  { %v7865_v33 = vpop.f32.mrf.mxu0 }
0x1e8e   :  { %7980 = vmatprep.mubr.f32.mxu1 %v7865_v33 }
0x1e8f   :  { %7981 = vmatmul.mubr.f32.gmra.mxu1 %v7863_v29  ;;  %v8073_v34 = vpop.f32.mrf.mxu0 }
0x1e91   :  { %v8075_v36 = vpop.f32.mrf.mxu0 }
0x1e92   :  { %8193 = vmatprep.mubr.f32.mxu0 %v8075_v36 }
0x1e93   :  { %v8079_v44 = vpop.f32.mrf.mxu0  ;;  %8194 = vmatmul.mubr.f32.vlgmr.msra.gmra.mxu0 %v8073_v34 }
0x1e95   :  { %v8081_v37 = vpop.f32.mrf.mxu0 }
0x1e96   :  { %8198 = vmatprep.mubr.f32.mxu0 %v8081_v37 }
0x1e97   :  { %v8085_v38 = vpop.f32.mrf.mxu0  ;;  %8199 = vmatmul.mubr.f32.gmra.mxu0 %v8079_v44 }
0x1e99   :  { %v8087_v17 = vpop.f32.mrf.mxu0 }
0x1e9a   :  { %8203 = vmatprep.mubr.f32.mxu0 %v8087_v17 }
0x1e9b   :  { %v8091_v31 = vpop.f32.mrf.mxu0  ;;  %8204 = vmatmul.mubr.f32.gmra.mxu0 %v8085_v38 }
0x1e9d   :  { %v8093_v13 = vpop.f32.mrf.mxu0 }
0x1e9e   :  { %8208 = vmatprep.mubr.f32.mxu0 %v8093_v13 }
0x1e9f   :  { %8209 = vmatmul.mubr.f32.gmra.mxu0 %v8091_v31 }
0x1ea0   :  { %10273 = shalt.err (!%p10270_p0)
}
0x1ea1   :  { %8270 = dma.vmem_to_hbm [thread:$0]  %s8268_s19, 16, %s10573_s13, [#allocation4]   ;;  %v9484_v39 = vpop.f32.mrf.mxu1  ;;  %v8888_v4 = vld [vmem:[#allocation26] ss:$0 sm:$0xff] }
0x1ea3   :  { %v9485_v42 = vpop.f32.mrf.mxu1 }
0x1ea4   :  { %v9486_v53 = vadd.f32 %v9485_v42, %v9484_v39 }
0x1ea5   :  { %v9487_v43 = vpop.f32.mrf.mxu1 }
0x1ea6   :  { %v7744_v59 = vadd.f32 %v9486_v53, %v11967_v16 }
0x1ea7   :  { %v9488_v14 = vpop.f32.mrf.mxu1 }
0x1ea8   :  { %v9489_v60 = vadd.f32 %v9488_v14, %v9487_v43 }
0x1ea9   :  { %v9490_v58 = vpop.f32.mrf.mxu1 }
0x1eaa   :  { %v7749_v10 = vadd.f32 %v9489_v60, %v11969_v11 }
0x1eab   :  { %v9491_v45 = vpop.f32.mrf.mxu1 }
0x1eac   :  { %v9492_v2 = vadd.f32 %v9491_v45, %v9490_v58 }
0x1ead   :  { %v9493_v46 = vpop.f32.mrf.mxu1 }
0x1eae   :  { %v7754_v15 = vadd.f32 %v9492_v2, %v11971_v25 }
0x1eaf   :  { %v9494_v47 = vpop.f32.mrf.mxu1 }
0x1eb0   :  { %v9495_v20 = vadd.f32 %v9494_v47, %v9493_v46 }
0x1eb2   :  { %v7759_v54 = vadd.f32 %v9495_v20, %v11973_v22 }
0x1f43   :  { %v9528_v48 = vpop.f32.mrf.mxu1 }
0x1f45   :  { %v9529_v49 = vpop.f32.mrf.mxu1 }
0x1f46   :  { %v9530_v55 = vadd.f32 %v9529_v49, %v9528_v48 }
0x1f47   :  { %v9531_v50 = vpop.f32.mrf.mxu1 }
0x1f48   :  { %v7986_v62 = vadd.f32 %v9530_v55, %v7744_v59 }
0x1f49   :  { %v9532_v51 = vpop.f32.mrf.mxu1 }
0x1f4a   :  { %v9533_v63 = vadd.f32 %v9532_v51, %v9531_v50 }
0x1f4b   :  { %v9534_v52 = vpop.f32.mrf.mxu1 }
0x1f4c   :  { %v7987_v12 = vadd.f32 %v9533_v63, %v7749_v10 }
0x1f4d   :  { %v9535_v56 = vpop.f32.mrf.mxu1 }
0x1f4e   :  { %v9536_v6 = vadd.f32 %v9535_v56, %v9534_v52 }
0x1f4f   :  { %v9537_v3 = vpop.f32.mrf.mxu1 }
0x1f50   :  { %v7988_v9 = vadd.f32 %v9536_v6, %v7754_v15 }
0x1f51   :  { %v9538_v27 = vpop.f32.mrf.mxu1 }
0x1f52   :  { %v9539_v19 = vadd.f32 %v9538_v27, %v9537_v3 }
0x1f53   :  { %v9572_v57 = vpop.f32.mrf.mxu0 }
0x1f54   :  { %v7989_v32 = vadd.f32 %v9539_v19, %v7759_v54 }
0x1f55   :  { %v9573_v61 = vpop.f32.mrf.mxu0 }
0x1f56   :  { %v9574_v1 = vadd.f32 %v9573_v61, %v9572_v57 }
0x1f57   :  { %v9575_v5 = vpop.f32.mrf.mxu0 }
0x1f58   :  { %v8214_v0 = vadd.f32 %v9574_v1, %v7986_v62 }
0x1f59   :  { %v9576_v35 = vpop.f32.mrf.mxu0 }
0x1f5a   :  { %v8225_v7 = vadd.f32 %v8888_v4, %v8214_v0  ;;  %v9577_v8 = vadd.f32 %v9576_v35, %v9575_v5 }
0x1f5b   :  { %v9578_v30 = vpop.f32.mrf.mxu0 }
0x1f5c   :  { %v8229_v16 = vsub.f32 0.0, %v8225_v7  ;;  %v8215_v41 = vadd.f32 %v9577_v8, %v7987_v12 }
0x1f5d   :  { %v9579_v18 = vpop.f32.mrf.mxu0 }
0x1f5e   :  { %v8233_v40 = vmul.f32 1.442695, %v8229_v16  ;;  %v8226_v21 = vadd.f32 %v8888_v4, %v8215_v41  ;;  %v9580_v23 = vadd.f32 %v9579_v18, %v9578_v30 }
0x1f5f   :  { %v9581_v11 = vpop.f32.mrf.mxu0 }
0x1f60   :  { %9926 = vpow2.f32 %v8233_v40  ;;  %v8230_v24 = vsub.f32 0.0, %v8226_v21  ;;  %v8216_v26 = vadd.f32 %v9580_v23, %v7988_v9 }
0x1f61   :  { %v9582_v28 = vpop.f32.mrf.mxu0 }
0x1f62   :  { %v8235_v25 = vmul.f32 1.442695, %v8230_v24  ;;  %v8227_v29 = vadd.f32 %v8888_v4, %v8216_v26  ;;  %v9583_v33 = vadd.f32 %v9582_v28, %v9581_v11 }
0x1f64   :  { %9928 = vpow2.f32 %v8235_v25  ;;  %v8231_v34 = vsub.f32 0.0, %v8227_v29  ;;  %v8217_v36 = vadd.f32 %v9583_v33, %v7989_v32 }
0x1f66   :  { %v8237_v44 = vmul.f32 1.442695, %v8231_v34  ;;  %v8228_v37 = vadd.f32 %v8888_v4, %v8217_v36 }
0x1f68   :  { %9930 = vpow2.f32 %v8237_v44  ;;  %v8232_v38 = vsub.f32 0.0, %v8228_v37 }
0x1f6a   :  { %v8239_v17 = vmul.f32 1.442695, %v8232_v38 }
0x1f6c   :  { %9932 = vpow2.f32 %v8239_v17 }
0x1f6d   :  { %v9927_v22 = vpop.eup %9926 }
0x1f6e   :  { %v8241_v31 = vadd.f32 1.0, %v9927_v22 }
0x1f70   :  { %9934 = vrcp.f32 %v8241_v31 }
0x1f71   :  { %v9929_v13 = vpop.eup %9928 }
0x1f72   :  { %v8242_v39 = vadd.f32 1.0, %v9929_v13 }
0x1f74   :  { %9936 = vrcp.f32 %v8242_v39 }
0x1f75   :  { %v9931_v42 = vpop.eup %9930 }
0x1f76   :  { %v8243_v43 = vadd.f32 1.0, %v9931_v42 }
0x1f78   :  { %9938 = vrcp.f32 %v8243_v43 }
0x1f79   :  { %v9933_v14 = vpop.eup %9932 }
0x1f7a   :  { %v8244_v58 = vadd.f32 1.0, %v9933_v14 }
0x1f7c   :  { %9940 = vrcp.f32 %v8244_v58 }
0x1f7d   :  { %v9935_v45 = vpop.eup %9934 }
0x1f7e   :  { %8253 = vst [vmem:[%s10563_s17] sm:$0xff] %v9935_v45 }
0x1f81   :  { %v9937_v46 = vpop.eup %9936 }
0x1f82   :  { %8254 = vst [vmem:[%s10563_s17 + $0x8] sm:$0xff] %v9937_v46 }
0x1f85   :  { %v9939_v47 = vpop.eup %9938 }
0x1f86   :  { %8255 = vst [vmem:[%s10563_s17 + $0x10] sm:$0xff] %v9939_v47 }
0x1f89   :  { %v9941_v48 = vpop.eup %9940 }
0x1f8a   :  { %8256 = vst [vmem:[%s10563_s17 + $0x18] sm:$0xff] %v9941_v48 }
0x1f8b   :  { %10300 = dma.done.wait [#allocation4], 16  }
0x1f8c   :  { %10301 = vsyncadd [#allocation4], 4294967280 }
0x1f8d   :  { %8278 = vsyncpa [#allocation3], 1 }
0x1f8e   :  { %8279 = vsyncpa [#allocation6], 1 }
0x1f8f   :  { %8280 = vsyncpa [#allocation9], 1 }
0x1f90   :  { %8281 = vsyncpa [#allocation12], 1 }
0x1f91   :  { %8282 = vsyncpa [#allocation15], 1 }
0x1f92   :  { %8283 = vsyncpa [#allocation18], 1 }
0x1f93   :  { %8284 = vsyncpa [#allocation21], 1 }
0x1f94   :  { %8285 = vsyncpa [#allocation24], 1 }
0x1f95   :  { %8286 = vsyncpa [#allocation27], 1 }
0x1f96   :  { %8287 = vsyncpa [#allocation4], 1 }

</bundles_post_ra>
